<compile_context>
chip_gen: v5e
topology: v5e:2x2
jax: 0.10.0
libtpu: 0.0.40
codegen_flags: <defaults>
</compile_context>

<pallas_src>
import math

import numpy as np

import jax
import jax.numpy as jnp
from jax.experimental import pallas as pl
from jax.experimental.pallas import tpu as pltpu

# ----------------------------- model config ---------------------------------
NC = 4                                   # number of classes (small, synthetic)
NO = NC + 5                              # outputs per anchor
ANCHORS_PX = [                           # default YOLOv5 anchors (pixels)
    [10, 13, 16, 30, 33, 23],
    [30, 61, 62, 45, 59, 119],
    [116, 90, 156, 198, 373, 326],
]
NA = len(ANCHORS_PX[0]) // 2             # anchors per level = 3
NL = len(ANCHORS_PX)                     # detection levels  = 3
STRIDES = [8.0, 16.0, 32.0]              # m.stride after the dry-run in __init__
BACKBONE_CH = [8, 16, 16, 32, 32]        # channels of the 5 patchify Conv blocks
DETECT_CH = [16, 32, 32]                 # ch fed to Detect (P3, P4, P5)

IMG = 64                                 # input spatial size (H = W)
OUT_PAD = 128                            # lane-dense padded width of na*no (=27)
DETECT_CMAX = max(DETECT_CH)             # padded K of the batched detect weights
GRID_NS = [IMG // int(s) for s in STRIDES]           # [8, 4, 2]
LEVEL_CELLS = [n * n for n in GRID_NS]               # [64, 16, 4]
LEVEL_OFFS = [0]
for _c in LEVEL_CELLS[:-1]:
    LEVEL_OFFS.append(LEVEL_OFFS[-1] + _c)           # [0, 64, 80]
TOT_CELLS = sum(LEVEL_CELLS)                         # 84


# --------------------------- Morton-order helpers ----------------------------
def _morton(i, j, nbits):
    m = 0
    for t in range(nbits):
        m |= ((i >> t) & 1) << (2 * t + 1)           # row bits -> odd positions
        m |= ((j >> t) & 1) << (2 * t)               # col bits -> even positions
    return m


def _morton_to_raster_perm(n):
    """perm[morton_code] = raster index (i*n + j) on an n x n grid."""
    nb = int(n).bit_length() - 1
    p = np.zeros(n * n, np.int32)
    for i in range(n):
        for j in range(n):
            p[_morton(i, j, nb)] = i * n + j
    return p


def _raster_to_morton_perm(n):
    """perm[raster index] = morton_code on an n x n grid."""
    nb = int(n).bit_length() - 1
    p = np.zeros(n * n, np.int32)
    for i in range(n):
        for j in range(n):
            p[i * n + j] = _morton(i, j, nb)
    return p


PIX_PERM = jnp.asarray(_morton_to_raster_perm(IMG))              # (IMG*IMG,)
R2M_PERMS = [jnp.asarray(_raster_to_morton_perm(n)) for n in GRID_NS]


def _build_decode_tables():
    """(3, TOT_CELLS, OUT_PAD) f32 decode tables, rows in Morton order per level.

    plane 0 (tmul): per-lane multiplier of sigmoid(p)
                    xy lanes -> 2*stride, conf lanes -> 1, wh/pad lanes -> 0
    plane 1 (tadd): per-lane additive term
                    xy lanes -> (grid_coord - 0.5) * stride, others -> 0
    plane 2 (twh):  per-lane 4*anchor_grid value (wh lanes only, others 0)

    so that  dec = tmul * s + tadd + twh * s * s  with  s = sigmoid(p)
    reproduces  xy = (2s + grid)*stride,  wh = (2s)^2*anchor_grid,  conf = s.
    """
    t = np.zeros((3, TOT_CELLS, OUT_PAD), np.float32)
    for lvl, (n, s) in enumerate(zip(GRID_NS, STRIDES)):
        off = LEVEL_OFFS[lvl]
        nb = int(n).bit_length() - 1
        for i in range(n):            # row index (y)
            for j in range(n):        # col index (x)
                r = off + _morton(i, j, nb)
                for a in range(NA):
                    base = a * NO
                    t[0, r, base + 0] = 2.0 * s
                    t[0, r, base + 1] = 2.0 * s
                    t[0, r, base + 4:base + NO] = 1.0
                    t[1, r, base + 0] = (j - 0.5) * s
                    t[1, r, base + 1] = (i - 0.5) * s
                    t[2, r, base + 2] = 4.0 * float(ANCHORS_PX[lvl][2 * a])
                    t[2, r, base + 3] = 4.0 * float(ANCHORS_PX[lvl][2 * a + 1])
    return jnp.asarray(t)


# ----------------------------- parameters ------------------------------------
def init_params(key):
    p = {}
    c_in = 3
    for li, c_out in enumerate(BACKBONE_CH):
        key, kw = jax.random.split(key)
        w = 0.05 * jax.random.normal(kw, (4 * c_in, c_out), jnp.float32)
        p[f"w{li}"] = w.astype(jnp.bfloat16)          # (kh, kw, c_in)-ordered rows
        p[f"b{li}"] = jnp.zeros((1, c_out), jnp.float32)   # conv bias (BN fused to id)
        c_in = c_out
    wd = np.zeros((NL, DETECT_CMAX, OUT_PAD), np.float32)
    bd = np.zeros((NL, OUT_PAD), np.float32)
    for i, (c, s) in enumerate(zip(DETECT_CH, STRIDES)):
        key, kw = jax.random.split(key)
        w = 0.05 * jax.random.normal(kw, (c, NA * NO), jnp.float32)
        wd[i, :c, :NA * NO] = np.asarray(w)
        # _initialize_biases(): objectness + class bias offsets
        b = np.zeros((NA, NO), np.float32)
        b[:, 4] += math.log(8.0 / (640.0 / s) ** 2)
        b[:, 5:5 + NC] += math.log(0.6 / (NC - 0.99999))
        bd[i, :NA * NO] = b.reshape(-1)
    p["wd"] = jnp.asarray(wd).astype(jnp.bfloat16)
    p["bd"] = jnp.asarray(bd)
    p["dectab"] = _build_decode_tables()
    return p


# ----------------------------- Pallas kernel ---------------------------------
def _silu(x):
    return x * jax.nn.sigmoid(x)


def _conv_regroup(src_ref, w_ref, b_ref):
    """k=2,s=2 Conv + SiLU from a Morton-ordered (4*m, Cin) f32 activation ref.

    Four consecutive Morton rows of `src_ref` are the 2x2 patch of one output
    cell, so im2col is 4 stride-4 row slices; the patch matmul is the sum of 4
    per-offset bf16 matmuls (K = Cin each) accumulated in f32 on the MXU.
    """
    rows, c_in = src_ref.shape
    m4 = rows // 4
    acc = None
    for p in range(4):                                         # (kh, kw) = divmod(p, 2)
        xp = src_ref[pl.ds(p, m4, stride=4), :].astype(jnp.bfloat16)   # (m4, c_in)
        wp = w_ref[p * c_in:(p + 1) * c_in, :]                         # (c_in, c_out) bf16
        d = jnp.dot(xp, wp, preferred_element_type=jnp.float32)
        acc = d if acc is None else acc + d
    return _silu(acc + b_ref[...])                             # f32 epilogue


def _fused_kernel(x_ref, w0, b0, w1, b1, w2, b2, w3, b3, w4, b4,
                  wd_ref, bd_ref, dtab_ref, raw_ref, dec_ref,
                  a0, a1, a2, a3):
    # ---------------- backbone: 5 x (Conv k=2,s=2 + SiLU) -------------------
    # conv0 reads the patch-major Morton input directly (columns = (kh, kw, c)).
    x0 = x_ref[0].astype(jnp.bfloat16)                                  # (1024, 12)
    y0 = _silu(jnp.dot(x0, w0[...], preferred_element_type=jnp.float32) + b0[...])
    a0[...] = y0                                                        # (1024, 8)

    y1 = _conv_regroup(a0, w1, b1)
    a1[...] = y1                                                        # (256, 16)
    y2 = _conv_regroup(a1, w2, b2)
    a2[...] = y2                                                        # (64, 16)  P3
    y3 = _conv_regroup(a2, w3, b3)
    a3[...] = y3                                                        # (16, 32)  P4
    y4 = _conv_regroup(a3, w4, b4)                                      # (4, 32)   P5

    # ---------------- Detect head + inference decode per level --------------
    feats = (y2, y3, y4)
    for i in range(NL):
        f = feats[i]
        m, c = f.shape
        off = LEVEL_OFFS[i]

        w = wd_ref[i, :c, :]                       # (c, 128) bf16 (zero-padded cols >= 27)
        bias = bd_ref[i:i + 1, :]                  # (1, 128) f32
        p = jnp.dot(f.astype(jnp.bfloat16), w, preferred_element_type=jnp.float32) + bias
        raw_ref[0, off:off + m, :] = p             # raw head logits (lane-dense store)

        # eval-mode decode with precomputed per-row/per-lane tables:
        #   dec = tmul*s + tadd + twh*s*s   (grid, stride, anchor_grid baked in)
        s = jax.nn.sigmoid(p)
        tmul = dtab_ref[0, off:off + m, :]
        tadd = dtab_ref[1, off:off + m, :]
        twh = dtab_ref[2, off:off + m, :]
        dec_ref[0, off:off + m, :] = tmul * s + tadd + twh * (s * s)


def _fused_call(params, x_pm):
    bs, n_cells, kc = x_pm.shape

    def whole(shape):
        nd = len(shape)
        return pl.BlockSpec(shape, lambda b, _n=nd: (0,) * _n)

    in_specs = [pl.BlockSpec((1, n_cells, kc), lambda b: (b, 0, 0))]
    args = [x_pm]
    for li in range(len(BACKBONE_CH)):
        w, bb = params[f"w{li}"], params[f"b{li}"]
        in_specs += [whole(w.shape), whole(bb.shape)]
        args += [w, bb]
    in_specs += [whole(params["wd"].shape), whole(params["bd"].shape),
                 whole(params["dectab"].shape)]
    args += [params["wd"], params["bd"], params["dectab"]]

    out_spec = pl.BlockSpec((1, TOT_CELLS, OUT_PAD), lambda b: (b, 0, 0))
    out_shape = (jax.ShapeDtypeStruct((bs, TOT_CELLS, OUT_PAD), jnp.float32),
                 jax.ShapeDtypeStruct((bs, TOT_CELLS, OUT_PAD), jnp.float32))

    return pl.pallas_call(
        _fused_kernel,
        grid=(bs,),
        in_specs=in_specs,
        out_specs=(out_spec, out_spec),
        out_shape=out_shape,
        scratch_shapes=[
            pltpu.VMEM(((IMG // 2) ** 2, BACKBONE_CH[0]), jnp.float32),   # (1024, 8)
            pltpu.VMEM(((IMG // 4) ** 2, BACKBONE_CH[1]), jnp.float32),   # (256, 16)
            pltpu.VMEM((LEVEL_CELLS[0], BACKBONE_CH[2]), jnp.float32),    # (64, 16)  P3
            pltpu.VMEM((LEVEL_CELLS[1], BACKBONE_CH[3]), jnp.float32),    # (16, 32)  P4
        ],
        compiler_params=pltpu.CompilerParams(
            dimension_semantics=("parallel",),
            vmem_limit_bytes=32 * 1024 * 1024,
        ),
    )(*args)


# ----------------------------- forward (wrapper) ------------------------------
@jax.jit
def detection_model_forward(params, x_nchw):
    """Inference forward: returns (cat(z, 1), [x0, x1, x2]) like Detect (eval mode)."""
    bs = x_nchw.shape[0]
    # NCHW -> flat NHWC rows, Morton-order the pixels and fold the level-0 2x2
    # patch into the channel dim: (bs, IMG*IMG//4, 12).  This single gather
    # replaces all per-layer patchify transposes.
    x = jnp.transpose(x_nchw, (0, 2, 3, 1)).astype(jnp.float32)
    x = x.reshape(bs, IMG * IMG, 3)
    x = jnp.take(x, PIX_PERM, axis=1).reshape(bs, (IMG * IMG) // 4, 12)

    raw, dec = _fused_call(params, x)

    z_list, x_list = [], []
    for i, n in enumerate(GRID_NS):
        m = n * n
        off = LEVEL_OFFS[i]
        perm = R2M_PERMS[i]
        r = jnp.take(raw[:, off:off + m, :NA * NO], perm, axis=1)
        d = jnp.take(dec[:, off:off + m, :NA * NO], perm, axis=1)
        r = r.reshape(bs, n, n, NA, NO).transpose(0, 3, 1, 2, 4)   # (bs, na, ny, nx, no)
        d = d.reshape(bs, n, n, NA, NO).transpose(0, 3, 1, 2, 4)
        x_list.append(r)
        z_list.append(d.reshape(bs, NA * n * n, NO))
    return jnp.concatenate(z_list, axis=1), x_list


# ------------------------- pure-JAX f32 reference -----------------------------
def _patchify_ref(x):
    b, h, w, c = x.shape
    x = x.reshape(b, h // 2, 2, w // 2, 2, c).transpose(0, 1, 3, 2, 4, 5)
    return x.reshape(b, h // 2, w // 2, 4 * c)


def reference_forward(params, x_nchw):
    x = jnp.transpose(x_nchw, (0, 2, 3, 1)).astype(jnp.float32)
    feats = []
    for li in range(len(BACKBONE_CH)):
        w = params[f"w{li}"].astype(jnp.float32)
        b = params[f"b{li}"]
        p = _patchify_ref(x)
        bs, hh, ww, k = p.shape
        y = p.reshape(bs * hh * ww, k) @ w + b
        y = y * jax.nn.sigmoid(y)
        x = y.reshape(bs, hh, ww, -1)
        if li >= 2:
            feats.append(x)
    z_list, x_list = [], []
    for i, f in enumerate(feats):
        bs, ny, nx, c = f.shape
        s_i = STRIDES[i]
        w = params["wd"].astype(jnp.float32)[i, :c, :NA * NO]
        b = params["bd"][i, :NA * NO]
        p = f.reshape(bs * ny * nx, c) @ w + b
        raw = p.reshape(bs, ny, nx, NA, NO).transpose(0, 3, 1, 2, 4)
        sig = jax.nn.sigmoid(raw)
        ys, xs = jnp.meshgrid(jnp.arange(ny, dtype=jnp.float32),
                              jnp.arange(nx, dtype=jnp.float32), indexing="ij")
        grid = jnp.stack([xs, ys], axis=-1) - 0.5
        anchor_grid = jnp.asarray(ANCHORS_PX[i], jnp.float32).reshape(NA, 1, 1, 2)
        xy = (sig[..., 0:2] * 2.0 + grid) * s_i
        wh = (sig[..., 2:4] * 2.0) ** 2 * anchor_grid
        y = jnp.concatenate([xy, wh, sig[..., 4:]], axis=-1)
        z_list.append(y.reshape(bs, NA * ny * nx, NO))
        x_list.append(raw)
    return jnp.concatenate(z_list, axis=1), x_list


# ----------------------------- driver -----------------------------------------
if __name__ == "__main__":
    params = init_params(jax.random.PRNGKey(0))
    kx, _ = jax.random.split(jax.random.PRNGKey(0))
    x = jax.random.normal(kx, (2, 3, IMG, IMG), jnp.float32)      # NCHW, like PyTorch

    z, xs = detection_model_forward(params, x)
    jax.block_until_ready(z)
    for xi in xs:
        jax.block_until_ready(xi)

    expect_rows = NA * sum(LEVEL_CELLS)                           # 3*(64+16+4) = 252
    assert z.shape == (2, expect_rows, NO), z.shape
    for i, n in enumerate(GRID_NS):
        assert xs[i].shape == (2, NA, n, n, NO), xs[i].shape
    assert bool(jnp.all(jnp.isfinite(z)))

    # numerics check against a pure-JAX f32 reference of the same module math
    z_ref, xs_ref = reference_forward(params, x)

    def nerr(a, b):
        return float(jnp.max(jnp.abs(a - b) / (1.0 + jnp.abs(b))))

    assert nerr(z, z_ref) < 5e-2, nerr(z, z_ref)
    for a, b in zip(xs, xs_ref):
        assert nerr(a, b) < 5e-2, nerr(a, b)

    print("KERNEL_OK")
</pallas_src>

<mosaic_0001>
module attributes {stable_mosaic.version = 11 : i64} {
  func.func @_fused_kernel(%arg0: i32, %arg1: memref<1x1024x12xf32, #tpu.memory_space<vmem>>, %arg2: memref<12x8xbf16, #tpu.memory_space<vmem>>, %arg3: memref<1x8xf32, #tpu.memory_space<vmem>>, %arg4: memref<32x16xbf16, #tpu.memory_space<vmem>>, %arg5: memref<1x16xf32, #tpu.memory_space<vmem>>, %arg6: memref<64x16xbf16, #tpu.memory_space<vmem>>, %arg7: memref<1x16xf32, #tpu.memory_space<vmem>>, %arg8: memref<64x32xbf16, #tpu.memory_space<vmem>>, %arg9: memref<1x32xf32, #tpu.memory_space<vmem>>, %arg10: memref<128x32xbf16, #tpu.memory_space<vmem>>, %arg11: memref<1x32xf32, #tpu.memory_space<vmem>>, %arg12: memref<3x32x128xbf16, #tpu.memory_space<vmem>>, %arg13: memref<3x128xf32, #tpu.memory_space<vmem>>, %arg14: memref<3x84x128xf32, #tpu.memory_space<vmem>>, %arg15: memref<1x84x128xf32, #tpu.memory_space<vmem>>, %arg16: memref<1x84x128xf32, #tpu.memory_space<vmem>>, %arg17: memref<1024x8xf32, #tpu.memory_space<vmem>>, %arg18: memref<256x16xf32, #tpu.memory_space<vmem>>, %arg19: memref<64x16xf32, #tpu.memory_space<vmem>>, %arg20: memref<16x32xf32, #tpu.memory_space<vmem>>) attributes {dimension_semantics = [#tpu.dimension_semantics<parallel>], iteration_bounds = array<i64: 2>, scalar_prefetch = 0 : i64, scratch_operands = 4 : i64, tpu.core_type = #tpu.core_type<tc>, window_params = [{transform_indices = @transform_0, window_bounds = array<i64: 1, 1024, 12>}, {pipeline_mode = #tpu.pipeline_mode<synchronous>, transform_indices = @transform_1, window_bounds = array<i64: 12, 8>}, {pipeline_mode = #tpu.pipeline_mode<synchronous>, transform_indices = @transform_2, window_bounds = array<i64: 1, 8>}, {pipeline_mode = #tpu.pipeline_mode<synchronous>, transform_indices = @transform_3, window_bounds = array<i64: 32, 16>}, {pipeline_mode = #tpu.pipeline_mode<synchronous>, transform_indices = @transform_4, window_bounds = array<i64: 1, 16>}, {pipeline_mode = #tpu.pipeline_mode<synchronous>, transform_indices = @transform_5, window_bounds = array<i64: 64, 16>}, {pipeline_mode = #tpu.pipeline_mode<synchronous>, transform_indices = @transform_6, window_bounds = array<i64: 1, 16>}, {pipeline_mode = #tpu.pipeline_mode<synchronous>, transform_indices = @transform_7, window_bounds = array<i64: 64, 32>}, {pipeline_mode = #tpu.pipeline_mode<synchronous>, transform_indices = @transform_8, window_bounds = array<i64: 1, 32>}, {pipeline_mode = #tpu.pipeline_mode<synchronous>, transform_indices = @transform_9, window_bounds = array<i64: 128, 32>}, {pipeline_mode = #tpu.pipeline_mode<synchronous>, transform_indices = @transform_10, window_bounds = array<i64: 1, 32>}, {pipeline_mode = #tpu.pipeline_mode<synchronous>, transform_indices = @transform_11, window_bounds = array<i64: 3, 32, 128>}, {pipeline_mode = #tpu.pipeline_mode<synchronous>, transform_indices = @transform_12, window_bounds = array<i64: 3, 128>}, {pipeline_mode = #tpu.pipeline_mode<synchronous>, transform_indices = @transform_13, window_bounds = array<i64: 3, 84, 128>}, {transform_indices = @transform_14, window_bounds = array<i64: 1, 84, 128>}, {transform_indices = @transform_15, window_bounds = array<i64: 1, 84, 128>}]} {
    %c0 = arith.constant 0 : index
    %c0_0 = arith.constant 0 : index
    %c0_1 = arith.constant 0 : index
    %0 = vector.load %arg1[%c0, %c0_0, %c0_1] : memref<1x1024x12xf32, #tpu.memory_space<vmem>>, vector<1x1024x12xf32>
    %1 = vector.shape_cast %0 : vector<1x1024x12xf32> to vector<1024x12xf32>
    %2 = arith.truncf %1 : vector<1024x12xf32> to vector<1024x12xbf16>
    %c0_2 = arith.constant 0 : index
    %c0_3 = arith.constant 0 : index
    %3 = vector.load %arg2[%c0_2, %c0_3] : memref<12x8xbf16, #tpu.memory_space<vmem>>, vector<12x8xbf16>
    %cst = arith.constant dense<0.000000e+00> : vector<1024x8xf32>
    %4 = tpu.matmul %2, %3, %cst {dimension_numbers = #tpu.dot_dimension_numbers<[1], [0], [0], [1], [0, 0, 1, 1], [], []>} : vector<1024x12xbf16>, vector<12x8xbf16>, vector<1024x8xf32> -> vector<1024x8xf32>
    %c0_4 = arith.constant 0 : index
    %c0_5 = arith.constant 0 : index
    %5 = vector.load %arg3[%c0_4, %c0_5] : memref<1x8xf32, #tpu.memory_space<vmem>>, vector<1x8xf32>
    %6 = vector.broadcast %5 : vector<1x8xf32> to vector<1024x8xf32>
    %7 = arith.addf %4, %6 : vector<1024x8xf32>
    %8 = arith.negf %7 : vector<1024x8xf32>
    %9 = math.exp %8 : vector<1024x8xf32>
    %cst_6 = arith.constant 1.000000e+00 : f32
    %10 = vector.broadcast %cst_6 : f32 to vector<1024x8xf32>
    %11 = arith.addf %10, %9 : vector<1024x8xf32>
    %12 = arith.divf %10, %11 : vector<1024x8xf32>
    %13 = arith.mulf %7, %12 : vector<1024x8xf32>
    %c0_7 = arith.constant 0 : index
    %c0_8 = arith.constant 0 : index
    %14 = vector.load %arg17[%c0_7, %c0_8] : memref<1024x8xf32, #tpu.memory_space<vmem>>, vector<1024x8xf32>
    tpu.vector_store %arg17[%c0_7, %c0_8], %13 {strides = array<i32>} : memref<1024x8xf32, #tpu.memory_space<vmem>>, vector<1024x8xf32>,
    %c0_9 = arith.constant 0 : index
    %c0_10 = arith.constant 0 : index
    %15 = tpu.strided_load %arg17[%c0_9, %c0_10] {strides = array<i32: 4, 1>} : memref<1024x8xf32, #tpu.memory_space<vmem>>, vector<256x8xf32>
    %16 = arith.truncf %15 : vector<256x8xf32> to vector<256x8xbf16>
    %c0_11 = arith.constant 0 : index
    %c0_12 = arith.constant 0 : index
    %17 = vector.load %arg4[%c0_11, %c0_12] : memref<32x16xbf16, #tpu.memory_space<vmem>>, vector<8x16xbf16>
    %cst_13 = arith.constant dense<0.000000e+00> : vector<256x16xf32>
    %18 = tpu.matmul %16, %17, %cst_13 {dimension_numbers = #tpu.dot_dimension_numbers<[1], [0], [0], [1], [0, 0, 1, 1], [], []>} : vector<256x8xbf16>, vector<8x16xbf16>, vector<256x16xf32> -> vector<256x16xf32>
    %c1 = arith.constant 1 : index
    %c0_14 = arith.constant 0 : index
    %19 = tpu.strided_load %arg17[%c1, %c0_14] {strides = array<i32: 4, 1>} : memref<1024x8xf32, #tpu.memory_space<vmem>>, vector<256x8xf32>
    %20 = arith.truncf %19 : vector<256x8xf32> to vector<256x8xbf16>
    %c8 = arith.constant 8 : index
    %c0_15 = arith.constant 0 : index
    %21 = vector.load %arg4[%c8, %c0_15] : memref<32x16xbf16, #tpu.memory_space<vmem>>, vector<8x16xbf16>
    %cst_16 = arith.constant dense<0.000000e+00> : vector<256x16xf32>
    %22 = tpu.matmul %20, %21, %cst_16 {dimension_numbers = #tpu.dot_dimension_numbers<[1], [0], [0], [1], [0, 0, 1, 1], [], []>} : vector<256x8xbf16>, vector<8x16xbf16>, vector<256x16xf32> -> vector<256x16xf32>
    %23 = arith.addf %18, %22 : vector<256x16xf32>
    %c2 = arith.constant 2 : index
    %c0_17 = arith.constant 0 : index
    %24 = tpu.strided_load %arg17[%c2, %c0_17] {strides = array<i32: 4, 1>} : memref<1024x8xf32, #tpu.memory_space<vmem>>, vector<256x8xf32>
    %25 = arith.truncf %24 : vector<256x8xf32> to vector<256x8xbf16>
    %c16 = arith.constant 16 : index
    %c0_18 = arith.constant 0 : index
    %26 = vector.load %arg4[%c16, %c0_18] : memref<32x16xbf16, #tpu.memory_space<vmem>>, vector<8x16xbf16>
    %cst_19 = arith.constant dense<0.000000e+00> : vector<256x16xf32>
    %27 = tpu.matmul %25, %26, %cst_19 {dimension_numbers = #tpu.dot_dimension_numbers<[1], [0], [0], [1], [0, 0, 1, 1], [], []>} : vector<256x8xbf16>, vector<8x16xbf16>, vector<256x16xf32> -> vector<256x16xf32>
    %28 = arith.addf %23, %27 : vector<256x16xf32>
    %c3 = arith.constant 3 : index
    %c0_20 = arith.constant 0 : index
    %29 = tpu.strided_load %arg17[%c3, %c0_20] {strides = array<i32: 4, 1>} : memref<1024x8xf32, #tpu.memory_space<vmem>>, vector<256x8xf32>
    %30 = arith.truncf %29 : vector<256x8xf32> to vector<256x8xbf16>
    %c24 = arith.constant 24 : index
    %c0_21 = arith.constant 0 : index
    %31 = vector.load %arg4[%c24, %c0_21] : memref<32x16xbf16, #tpu.memory_space<vmem>>, vector<8x16xbf16>
    %cst_22 = arith.constant dense<0.000000e+00> : vector<256x16xf32>
    %32 = tpu.matmul %30, %31, %cst_22 {dimension_numbers = #tpu.dot_dimension_numbers<[1], [0], [0], [1], [0, 0, 1, 1], [], []>} : vector<256x8xbf16>, vector<8x16xbf16>, vector<256x16xf32> -> vector<256x16xf32>
    %33 = arith.addf %28, %32 : vector<256x16xf32>
    %c0_23 = arith.constant 0 : index
    %c0_24 = arith.constant 0 : index
    %34 = vector.load %arg5[%c0_23, %c0_24] : memref<1x16xf32, #tpu.memory_space<vmem>>, vector<1x16xf32>
    %35 = vector.broadcast %34 : vector<1x16xf32> to vector<256x16xf32>
    %36 = arith.addf %33, %35 : vector<256x16xf32>
    %37 = arith.negf %36 : vector<256x16xf32>
    %38 = math.exp %37 : vector<256x16xf32>
    %cst_25 = arith.constant 1.000000e+00 : f32
    %39 = vector.broadcast %cst_25 : f32 to vector<256x16xf32>
    %40 = arith.addf %39, %38 : vector<256x16xf32>
    %41 = arith.divf %39, %40 : vector<256x16xf32>
    %42 = arith.mulf %36, %41 : vector<256x16xf32>
    %c0_26 = arith.constant 0 : index
    %c0_27 = arith.constant 0 : index
    %43 = vector.load %arg18[%c0_26, %c0_27] : memref<256x16xf32, #tpu.memory_space<vmem>>, vector<256x16xf32>
    tpu.vector_store %arg18[%c0_26, %c0_27], %42 {strides = array<i32>} : memref<256x16xf32, #tpu.memory_space<vmem>>, vector<256x16xf32>,
    %c0_28 = arith.constant 0 : index
    %c0_29 = arith.constant 0 : index
    %44 = tpu.strided_load %arg18[%c0_28, %c0_29] {strides = array<i32: 4, 1>} : memref<256x16xf32, #tpu.memory_space<vmem>>, vector<64x16xf32>
    %45 = arith.truncf %44 : vector<64x16xf32> to vector<64x16xbf16>
    %c0_30 = arith.constant 0 : index
    %c0_31 = arith.constant 0 : index
    %46 = vector.load %arg6[%c0_30, %c0_31] : memref<64x16xbf16, #tpu.memory_space<vmem>>, vector<16x16xbf16>
    %cst_32 = arith.constant dense<0.000000e+00> : vector<64x16xf32>
    %47 = tpu.matmul %45, %46, %cst_32 {dimension_numbers = #tpu.dot_dimension_numbers<[1], [0], [0], [1], [0, 0, 1, 1], [], []>} : vector<64x16xbf16>, vector<16x16xbf16>, vector<64x16xf32> -> vector<64x16xf32>
    %c1_33 = arith.constant 1 : index
    %c0_34 = arith.constant 0 : index
    %48 = tpu.strided_load %arg18[%c1_33, %c0_34] {strides = array<i32: 4, 1>} : memref<256x16xf32, #tpu.memory_space<vmem>>, vector<64x16xf32>
    %49 = arith.truncf %48 : vector<64x16xf32> to vector<64x16xbf16>
    %c16_35 = arith.constant 16 : index
    %c0_36 = arith.constant 0 : index
    %50 = vector.load %arg6[%c16_35, %c0_36] : memref<64x16xbf16, #tpu.memory_space<vmem>>, vector<16x16xbf16>
    %cst_37 = arith.constant dense<0.000000e+00> : vector<64x16xf32>
    %51 = tpu.matmul %49, %50, %cst_37 {dimension_numbers = #tpu.dot_dimension_numbers<[1], [0], [0], [1], [0, 0, 1, 1], [], []>} : vector<64x16xbf16>, vector<16x16xbf16>, vector<64x16xf32> -> vector<64x16xf32>
    %52 = arith.addf %47, %51 : vector<64x16xf32>
    %c2_38 = arith.constant 2 : index
    %c0_39 = arith.constant 0 : index
    %53 = tpu.strided_load %arg18[%c2_38, %c0_39] {strides = array<i32: 4, 1>} : memref<256x16xf32, #tpu.memory_space<vmem>>, vector<64x16xf32>
    %54 = arith.truncf %53 : vector<64x16xf32> to vector<64x16xbf16>
    %c32 = arith.constant 32 : index
    %c0_40 = arith.constant 0 : index
    %55 = vector.load %arg6[%c32, %c0_40] : memref<64x16xbf16, #tpu.memory_space<vmem>>, vector<16x16xbf16>
    %cst_41 = arith.constant dense<0.000000e+00> : vector<64x16xf32>
    %56 = tpu.matmul %54, %55, %cst_41 {dimension_numbers = #tpu.dot_dimension_numbers<[1], [0], [0], [1], [0, 0, 1, 1], [], []>} : vector<64x16xbf16>, vector<16x16xbf16>, vector<64x16xf32> -> vector<64x16xf32>
    %57 = arith.addf %52, %56 : vector<64x16xf32>
    %c3_42 = arith.constant 3 : index
    %c0_43 = arith.constant 0 : index
    %58 = tpu.strided_load %arg18[%c3_42, %c0_43] {strides = array<i32: 4, 1>} : memref<256x16xf32, #tpu.memory_space<vmem>>, vector<64x16xf32>
    %59 = arith.truncf %58 : vector<64x16xf32> to vector<64x16xbf16>
    %c48 = arith.constant 48 : index
    %c0_44 = arith.constant 0 : index
    %60 = vector.load %arg6[%c48, %c0_44] : memref<64x16xbf16, #tpu.memory_space<vmem>>, vector<16x16xbf16>
    %cst_45 = arith.constant dense<0.000000e+00> : vector<64x16xf32>
    %61 = tpu.matmul %59, %60, %cst_45 {dimension_numbers = #tpu.dot_dimension_numbers<[1], [0], [0], [1], [0, 0, 1, 1], [], []>} : vector<64x16xbf16>, vector<16x16xbf16>, vector<64x16xf32> -> vector<64x16xf32>
    %62 = arith.addf %57, %61 : vector<64x16xf32>
    %c0_46 = arith.constant 0 : index
    %c0_47 = arith.constant 0 : index
    %63 = vector.load %arg7[%c0_46, %c0_47] : memref<1x16xf32, #tpu.memory_space<vmem>>, vector<1x16xf32>
    %64 = vector.broadcast %63 : vector<1x16xf32> to vector<64x16xf32>
    %65 = arith.addf %62, %64 : vector<64x16xf32>
    %66 = arith.negf %65 : vector<64x16xf32>
    %67 = math.exp %66 : vector<64x16xf32>
    %cst_48 = arith.constant 1.000000e+00 : f32
    %68 = vector.broadcast %cst_48 : f32 to vector<64x16xf32>
    %69 = arith.addf %68, %67 : vector<64x16xf32>
    %70 = arith.divf %68, %69 : vector<64x16xf32>
    %71 = arith.mulf %65, %70 : vector<64x16xf32>
    %c0_49 = arith.constant 0 : index
    %c0_50 = arith.constant 0 : index
    %72 = vector.load %arg19[%c0_49, %c0_50] : memref<64x16xf32, #tpu.memory_space<vmem>>, vector<64x16xf32>
    tpu.vector_store %arg19[%c0_49, %c0_50], %71 {strides = array<i32>} : memref<64x16xf32, #tpu.memory_space<vmem>>, vector<64x16xf32>,
    %c0_51 = arith.constant 0 : index
    %c0_52 = arith.constant 0 : index
    %73 = tpu.strided_load %arg19[%c0_51, %c0_52] {strides = array<i32: 4, 1>} : memref<64x16xf32, #tpu.memory_space<vmem>>, vector<16x16xf32>
    %74 = arith.truncf %73 : vector<16x16xf32> to vector<16x16xbf16>
    %c0_53 = arith.constant 0 : index
    %c0_54 = arith.constant 0 : index
    %75 = vector.load %arg8[%c0_53, %c0_54] : memref<64x32xbf16, #tpu.memory_space<vmem>>, vector<16x32xbf16>
    %cst_55 = arith.constant dense<0.000000e+00> : vector<16x32xf32>
    %76 = tpu.matmul %74, %75, %cst_55 {dimension_numbers = #tpu.dot_dimension_numbers<[1], [0], [0], [1], [0, 0, 1, 1], [], []>} : vector<16x16xbf16>, vector<16x32xbf16>, vector<16x32xf32> -> vector<16x32xf32>
    %c1_56 = arith.constant 1 : index
    %c0_57 = arith.constant 0 : index
    %77 = tpu.strided_load %arg19[%c1_56, %c0_57] {strides = array<i32: 4, 1>} : memref<64x16xf32, #tpu.memory_space<vmem>>, vector<16x16xf32>
    %78 = arith.truncf %77 : vector<16x16xf32> to vector<16x16xbf16>
    %c16_58 = arith.constant 16 : index
    %c0_59 = arith.constant 0 : index
    %79 = vector.load %arg8[%c16_58, %c0_59] : memref<64x32xbf16, #tpu.memory_space<vmem>>, vector<16x32xbf16>
    %cst_60 = arith.constant dense<0.000000e+00> : vector<16x32xf32>
    %80 = tpu.matmul %78, %79, %cst_60 {dimension_numbers = #tpu.dot_dimension_numbers<[1], [0], [0], [1], [0, 0, 1, 1], [], []>} : vector<16x16xbf16>, vector<16x32xbf16>, vector<16x32xf32> -> vector<16x32xf32>
    %81 = arith.addf %76, %80 : vector<16x32xf32>
    %c2_61 = arith.constant 2 : index
    %c0_62 = arith.constant 0 : index
    %82 = tpu.strided_load %arg19[%c2_61, %c0_62] {strides = array<i32: 4, 1>} : memref<64x16xf32, #tpu.memory_space<vmem>>, vector<16x16xf32>
    %83 = arith.truncf %82 : vector<16x16xf32> to vector<16x16xbf16>
    %c32_63 = arith.constant 32 : index
    %c0_64 = arith.constant 0 : index
    %84 = vector.load %arg8[%c32_63, %c0_64] : memref<64x32xbf16, #tpu.memory_space<vmem>>, vector<16x32xbf16>
    %cst_65 = arith.constant dense<0.000000e+00> : vector<16x32xf32>
    %85 = tpu.matmul %83, %84, %cst_65 {dimension_numbers = #tpu.dot_dimension_numbers<[1], [0], [0], [1], [0, 0, 1, 1], [], []>} : vector<16x16xbf16>, vector<16x32xbf16>, vector<16x32xf32> -> vector<16x32xf32>
    %86 = arith.addf %81, %85 : vector<16x32xf32>
    %c3_66 = arith.constant 3 : index
    %c0_67 = arith.constant 0 : index
    %87 = tpu.strided_load %arg19[%c3_66, %c0_67] {strides = array<i32: 4, 1>} : memref<64x16xf32, #tpu.memory_space<vmem>>, vector<16x16xf32>
    %88 = arith.truncf %87 : vector<16x16xf32> to vector<16x16xbf16>
    %c48_68 = arith.constant 48 : index
    %c0_69 = arith.constant 0 : index
    %89 = vector.load %arg8[%c48_68, %c0_69] : memref<64x32xbf16, #tpu.memory_space<vmem>>, vector<16x32xbf16>
    %cst_70 = arith.constant dense<0.000000e+00> : vector<16x32xf32>
    %90 = tpu.matmul %88, %89, %cst_70 {dimension_numbers = #tpu.dot_dimension_numbers<[1], [0], [0], [1], [0, 0, 1, 1], [], []>} : vector<16x16xbf16>, vector<16x32xbf16>, vector<16x32xf32> -> vector<16x32xf32>
    %91 = arith.addf %86, %90 : vector<16x32xf32>
    %c0_71 = arith.constant 0 : index
    %c0_72 = arith.constant 0 : index
    %92 = vector.load %arg9[%c0_71, %c0_72] : memref<1x32xf32, #tpu.memory_space<vmem>>, vector<1x32xf32>
    %93 = vector.broadcast %92 : vector<1x32xf32> to vector<16x32xf32>
    %94 = arith.addf %91, %93 : vector<16x32xf32>
    %95 = arith.negf %94 : vector<16x32xf32>
    %96 = math.exp %95 : vector<16x32xf32>
    %cst_73 = arith.constant 1.000000e+00 : f32
    %97 = vector.broadcast %cst_73 : f32 to vector<16x32xf32>
    %98 = arith.addf %97, %96 : vector<16x32xf32>
    %99 = arith.divf %97, %98 : vector<16x32xf32>
    %100 = arith.mulf %94, %99 : vector<16x32xf32>
    %c0_74 = arith.constant 0 : index
    %c0_75 = arith.constant 0 : index
    %101 = vector.load %arg20[%c0_74, %c0_75] : memref<16x32xf32, #tpu.memory_space<vmem>>, vector<16x32xf32>
    tpu.vector_store %arg20[%c0_74, %c0_75], %100 {strides = array<i32>} : memref<16x32xf32, #tpu.memory_space<vmem>>, vector<16x32xf32>,
    %c0_76 = arith.constant 0 : index
    %c0_77 = arith.constant 0 : index
    %102 = tpu.strided_load %arg20[%c0_76, %c0_77] {strides = array<i32: 4, 1>} : memref<16x32xf32, #tpu.memory_space<vmem>>, vector<4x32xf32>
    %103 = arith.truncf %102 : vector<4x32xf32> to vector<4x32xbf16>
    %c0_78 = arith.constant 0 : index
    %c0_79 = arith.constant 0 : index
    %104 = vector.load %arg10[%c0_78, %c0_79] : memref<128x32xbf16, #tpu.memory_space<vmem>>, vector<32x32xbf16>
    %cst_80 = arith.constant dense<0.000000e+00> : vector<4x32xf32>
    %105 = tpu.matmul %103, %104, %cst_80 {dimension_numbers = #tpu.dot_dimension_numbers<[1], [0], [0], [1], [0, 0, 1, 1], [], []>} : vector<4x32xbf16>, vector<32x32xbf16>, vector<4x32xf32> -> vector<4x32xf32>
    %c1_81 = arith.constant 1 : index
    %c0_82 = arith.constant 0 : index
    %106 = tpu.strided_load %arg20[%c1_81, %c0_82] {strides = array<i32: 4, 1>} : memref<16x32xf32, #tpu.memory_space<vmem>>, vector<4x32xf32>
    %107 = arith.truncf %106 : vector<4x32xf32> to vector<4x32xbf16>
    %c32_83 = arith.constant 32 : index
    %c0_84 = arith.constant 0 : index
    %108 = vector.load %arg10[%c32_83, %c0_84] : memref<128x32xbf16, #tpu.memory_space<vmem>>, vector<32x32xbf16>
    %cst_85 = arith.constant dense<0.000000e+00> : vector<4x32xf32>
    %109 = tpu.matmul %107, %108, %cst_85 {dimension_numbers = #tpu.dot_dimension_numbers<[1], [0], [0], [1], [0, 0, 1, 1], [], []>} : vector<4x32xbf16>, vector<32x32xbf16>, vector<4x32xf32> -> vector<4x32xf32>
    %110 = arith.addf %105, %109 : vector<4x32xf32>
    %c2_86 = arith.constant 2 : index
    %c0_87 = arith.constant 0 : index
    %111 = tpu.strided_load %arg20[%c2_86, %c0_87] {strides = array<i32: 4, 1>} : memref<16x32xf32, #tpu.memory_space<vmem>>, vector<4x32xf32>
    %112 = arith.truncf %111 : vector<4x32xf32> to vector<4x32xbf16>
    %c64 = arith.constant 64 : index
    %c0_88 = arith.constant 0 : index
    %113 = vector.load %arg10[%c64, %c0_88] : memref<128x32xbf16, #tpu.memory_space<vmem>>, vector<32x32xbf16>
    %cst_89 = arith.constant dense<0.000000e+00> : vector<4x32xf32>
    %114 = tpu.matmul %112, %113, %cst_89 {dimension_numbers = #tpu.dot_dimension_numbers<[1], [0], [0], [1], [0, 0, 1, 1], [], []>} : vector<4x32xbf16>, vector<32x32xbf16>, vector<4x32xf32> -> vector<4x32xf32>
    %115 = arith.addf %110, %114 : vector<4x32xf32>
    %c3_90 = arith.constant 3 : index
    %c0_91 = arith.constant 0 : index
    %116 = tpu.strided_load %arg20[%c3_90, %c0_91] {strides = array<i32: 4, 1>} : memref<16x32xf32, #tpu.memory_space<vmem>>, vector<4x32xf32>
    %117 = arith.truncf %116 : vector<4x32xf32> to vector<4x32xbf16>
    %c96 = arith.constant 96 : index
    %c0_92 = arith.constant 0 : index
    %118 = vector.load %arg10[%c96, %c0_92] : memref<128x32xbf16, #tpu.memory_space<vmem>>, vector<32x32xbf16>
    %cst_93 = arith.constant dense<0.000000e+00> : vector<4x32xf32>
    %119 = tpu.matmul %117, %118, %cst_93 {dimension_numbers = #tpu.dot_dimension_numbers<[1], [0], [0], [1], [0, 0, 1, 1], [], []>} : vector<4x32xbf16>, vector<32x32xbf16>, vector<4x32xf32> -> vector<4x32xf32>
    %120 = arith.addf %115, %119 : vector<4x32xf32>
    %c0_94 = arith.constant 0 : index
    %c0_95 = arith.constant 0 : index
    %121 = vector.load %arg11[%c0_94, %c0_95] : memref<1x32xf32, #tpu.memory_space<vmem>>, vector<1x32xf32>
    %122 = vector.broadcast %121 : vector<1x32xf32> to vector<4x32xf32>
    %123 = arith.addf %120, %122 : vector<4x32xf32>
    %124 = arith.negf %123 : vector<4x32xf32>
    %125 = math.exp %124 : vector<4x32xf32>
    %cst_96 = arith.constant 1.000000e+00 : f32
    %126 = vector.broadcast %cst_96 : f32 to vector<4x32xf32>
    %127 = arith.addf %126, %125 : vector<4x32xf32>
    %128 = arith.divf %126, %127 : vector<4x32xf32>
    %129 = arith.mulf %123, %128 : vector<4x32xf32>
    %c0_97 = arith.constant 0 : index
    %c0_98 = arith.constant 0 : index
    %c0_99 = arith.constant 0 : index
    %130 = vector.load %arg12[%c0_97, %c0_98, %c0_99] : memref<3x32x128xbf16, #tpu.memory_space<vmem>>, vector<1x16x128xbf16>
    %131 = vector.shape_cast %130 : vector<1x16x128xbf16> to vector<16x128xbf16>
    %c0_100 = arith.constant 0 : index
    %c0_101 = arith.constant 0 : index
    %132 = vector.load %arg13[%c0_100, %c0_101] : memref<3x128xf32, #tpu.memory_space<vmem>>, vector<1x128xf32>
    %133 = arith.truncf %71 : vector<64x16xf32> to vector<64x16xbf16>
    %cst_102 = arith.constant dense<0.000000e+00> : vector<64x128xf32>
    %134 = tpu.matmul %133, %131, %cst_102 {dimension_numbers = #tpu.dot_dimension_numbers<[1], [0], [0], [1], [0, 0, 1, 1], [], []>} : vector<64x16xbf16>, vector<16x128xbf16>, vector<64x128xf32> -> vector<64x128xf32>
    %135 = vector.broadcast %132 : vector<1x128xf32> to vector<64x128xf32>
    %136 = arith.addf %134, %135 : vector<64x128xf32>
    %c0_103 = arith.constant 0 : index
    %c0_104 = arith.constant 0 : index
    %c0_105 = arith.constant 0 : index
    %137 = vector.load %arg15[%c0_103, %c0_104, %c0_105] : memref<1x84x128xf32, #tpu.memory_space<vmem>>, vector<1x64x128xf32>
    %138 = vector.shape_cast %137 : vector<1x64x128xf32> to vector<64x128xf32>
    %139 = vector.shape_cast %136 : vector<64x128xf32> to vector<1x64x128xf32>
    tpu.vector_store %arg15[%c0_103, %c0_104, %c0_105], %139 {strides = array<i32>} : memref<1x84x128xf32, #tpu.memory_space<vmem>>, vector<1x64x128xf32>,
    %140 = arith.negf %136 : vector<64x128xf32>
    %141 = math.exp %140 : vector<64x128xf32>
    %cst_106 = arith.constant 1.000000e+00 : f32
    %142 = vector.broadcast %cst_106 : f32 to vector<64x128xf32>
    %143 = arith.addf %142, %141 : vector<64x128xf32>
    %144 = arith.divf %142, %143 : vector<64x128xf32>
    %c0_107 = arith.constant 0 : index
    %c0_108 = arith.constant 0 : index
    %c0_109 = arith.constant 0 : index
    %145 = vector.load %arg14[%c0_107, %c0_108, %c0_109] : memref<3x84x128xf32, #tpu.memory_space<vmem>>, vector<1x64x128xf32>
    %146 = vector.shape_cast %145 : vector<1x64x128xf32> to vector<64x128xf32>
    %c1_110 = arith.constant 1 : index
    %c0_111 = arith.constant 0 : index
    %c0_112 = arith.constant 0 : index
    %147 = vector.load %arg14[%c1_110, %c0_111, %c0_112] : memref<3x84x128xf32, #tpu.memory_space<vmem>>, vector<1x64x128xf32>
    %148 = vector.shape_cast %147 : vector<1x64x128xf32> to vector<64x128xf32>
    %c2_113 = arith.constant 2 : index
    %c0_114 = arith.constant 0 : index
    %c0_115 = arith.constant 0 : index
    %149 = vector.load %arg14[%c2_113, %c0_114, %c0_115] : memref<3x84x128xf32, #tpu.memory_space<vmem>>, vector<1x64x128xf32>
    %150 = vector.shape_cast %149 : vector<1x64x128xf32> to vector<64x128xf32>
    %151 = arith.mulf %146, %144 : vector<64x128xf32>
    %152 = arith.addf %151, %148 : vector<64x128xf32>
    %153 = arith.mulf %144, %144 : vector<64x128xf32>
    %154 = arith.mulf %150, %153 : vector<64x128xf32>
    %155 = arith.addf %152, %154 : vector<64x128xf32>
    %c0_116 = arith.constant 0 : index
    %c0_117 = arith.constant 0 : index
    %c0_118 = arith.constant 0 : index
    %156 = vector.load %arg16[%c0_116, %c0_117, %c0_118] : memref<1x84x128xf32, #tpu.memory_space<vmem>>, vector<1x64x128xf32>
    %157 = vector.shape_cast %156 : vector<1x64x128xf32> to vector<64x128xf32>
    %158 = vector.shape_cast %155 : vector<64x128xf32> to vector<1x64x128xf32>
    tpu.vector_store %arg16[%c0_116, %c0_117, %c0_118], %158 {strides = array<i32>} : memref<1x84x128xf32, #tpu.memory_space<vmem>>, vector<1x64x128xf32>,
    %c1_119 = arith.constant 1 : index
    %c0_120 = arith.constant 0 : index
    %c0_121 = arith.constant 0 : index
    %159 = vector.load %arg12[%c1_119, %c0_120, %c0_121] : memref<3x32x128xbf16, #tpu.memory_space<vmem>>, vector<1x32x128xbf16>
    %160 = vector.shape_cast %159 : vector<1x32x128xbf16> to vector<32x128xbf16>
    %c1_122 = arith.constant 1 : index
    %c0_123 = arith.constant 0 : index
    %161 = vector.load %arg13[%c1_122, %c0_123] : memref<3x128xf32, #tpu.memory_space<vmem>>, vector<1x128xf32>
    %162 = arith.truncf %100 : vector<16x32xf32> to vector<16x32xbf16>
    %cst_124 = arith.constant dense<0.000000e+00> : vector<16x128xf32>
    %163 = tpu.matmul %162, %160, %cst_124 {dimension_numbers = #tpu.dot_dimension_numbers<[1], [0], [0], [1], [0, 0, 1, 1], [], []>} : vector<16x32xbf16>, vector<32x128xbf16>, vector<16x128xf32> -> vector<16x128xf32>
    %164 = vector.broadcast %161 : vector<1x128xf32> to vector<16x128xf32>
    %165 = arith.addf %163, %164 : vector<16x128xf32>
    %c0_125 = arith.constant 0 : index
    %c64_126 = arith.constant 64 : index
    %c0_127 = arith.constant 0 : index
    %166 = vector.load %arg15[%c0_125, %c64_126, %c0_127] : memref<1x84x128xf32, #tpu.memory_space<vmem>>, vector<1x16x128xf32>
    %167 = vector.shape_cast %166 : vector<1x16x128xf32> to vector<16x128xf32>
    %168 = vector.shape_cast %165 : vector<16x128xf32> to vector<1x16x128xf32>
    tpu.vector_store %arg15[%c0_125, %c64_126, %c0_127], %168 {strides = array<i32>} : memref<1x84x128xf32, #tpu.memory_space<vmem>>, vector<1x16x128xf32>,
    %169 = arith.negf %165 : vector<16x128xf32>
    %170 = math.exp %169 : vector<16x128xf32>
    %cst_128 = arith.constant 1.000000e+00 : f32
    %171 = vector.broadcast %cst_128 : f32 to vector<16x128xf32>
    %172 = arith.addf %171, %170 : vector<16x128xf32>
    %173 = arith.divf %171, %172 : vector<16x128xf32>
    %c0_129 = arith.constant 0 : index
    %c64_130 = arith.constant 64 : index
    %c0_131 = arith.constant 0 : index
    %174 = vector.load %arg14[%c0_129, %c64_130, %c0_131] : memref<3x84x128xf32, #tpu.memory_space<vmem>>, vector<1x16x128xf32>
    %175 = vector.shape_cast %174 : vector<1x16x128xf32> to vector<16x128xf32>
    %c1_132 = arith.constant 1 : index
    %c64_133 = arith.constant 64 : index
    %c0_134 = arith.constant 0 : index
    %176 = vector.load %arg14[%c1_132, %c64_133, %c0_134] : memref<3x84x128xf32, #tpu.memory_space<vmem>>, vector<1x16x128xf32>
    %177 = vector.shape_cast %176 : vector<1x16x128xf32> to vector<16x128xf32>
    %c2_135 = arith.constant 2 : index
    %c64_136 = arith.constant 64 : index
    %c0_137 = arith.constant 0 : index
    %178 = vector.load %arg14[%c2_135, %c64_136, %c0_137] : memref<3x84x128xf32, #tpu.memory_space<vmem>>, vector<1x16x128xf32>
    %179 = vector.shape_cast %178 : vector<1x16x128xf32> to vector<16x128xf32>
    %180 = arith.mulf %175, %173 : vector<16x128xf32>
    %181 = arith.addf %180, %177 : vector<16x128xf32>
    %182 = arith.mulf %173, %173 : vector<16x128xf32>
    %183 = arith.mulf %179, %182 : vector<16x128xf32>
    %184 = arith.addf %181, %183 : vector<16x128xf32>
    %c0_138 = arith.constant 0 : index
    %c64_139 = arith.constant 64 : index
    %c0_140 = arith.constant 0 : index
    %185 = vector.load %arg16[%c0_138, %c64_139, %c0_140] : memref<1x84x128xf32, #tpu.memory_space<vmem>>, vector<1x16x128xf32>
    %186 = vector.shape_cast %185 : vector<1x16x128xf32> to vector<16x128xf32>
    %187 = vector.shape_cast %184 : vector<16x128xf32> to vector<1x16x128xf32>
    tpu.vector_store %arg16[%c0_138, %c64_139, %c0_140], %187 {strides = array<i32>} : memref<1x84x128xf32, #tpu.memory_space<vmem>>, vector<1x16x128xf32>,
    %c2_141 = arith.constant 2 : index
    %c0_142 = arith.constant 0 : index
    %c0_143 = arith.constant 0 : index
    %188 = vector.load %arg12[%c2_141, %c0_142, %c0_143] : memref<3x32x128xbf16, #tpu.memory_space<vmem>>, vector<1x32x128xbf16>
    %189 = vector.shape_cast %188 : vector<1x32x128xbf16> to vector<32x128xbf16>
    %c2_144 = arith.constant 2 : index
    %c0_145 = arith.constant 0 : index
    %190 = vector.load %arg13[%c2_144, %c0_145] : memref<3x128xf32, #tpu.memory_space<vmem>>, vector<1x128xf32>
    %191 = arith.truncf %129 : vector<4x32xf32> to vector<4x32xbf16>
    %cst_146 = arith.constant dense<0.000000e+00> : vector<4x128xf32>
    %192 = tpu.matmul %191, %189, %cst_146 {dimension_numbers = #tpu.dot_dimension_numbers<[1], [0], [0], [1], [0, 0, 1, 1], [], []>} : vector<4x32xbf16>, vector<32x128xbf16>, vector<4x128xf32> -> vector<4x128xf32>
    %193 = vector.broadcast %190 : vector<1x128xf32> to vector<4x128xf32>
    %194 = arith.addf %192, %193 : vector<4x128xf32>
    %c0_147 = arith.constant 0 : index
    %c80 = arith.constant 80 : index
    %c0_148 = arith.constant 0 : index
    %195 = vector.load %arg15[%c0_147, %c80, %c0_148] : memref<1x84x128xf32, #tpu.memory_space<vmem>>, vector<1x4x128xf32>
    %196 = vector.shape_cast %195 : vector<1x4x128xf32> to vector<4x128xf32>
    %197 = vector.shape_cast %194 : vector<4x128xf32> to vector<1x4x128xf32>
    tpu.vector_store %arg15[%c0_147, %c80, %c0_148], %197 {strides = array<i32>} : memref<1x84x128xf32, #tpu.memory_space<vmem>>, vector<1x4x128xf32>,
    %198 = arith.negf %194 : vector<4x128xf32>
    %199 = math.exp %198 : vector<4x128xf32>
    %cst_149 = arith.constant 1.000000e+00 : f32
    %200 = vector.broadcast %cst_149 : f32 to vector<4x128xf32>
    %201 = arith.addf %200, %199 : vector<4x128xf32>
    %202 = arith.divf %200, %201 : vector<4x128xf32>
    %c0_150 = arith.constant 0 : index
    %c80_151 = arith.constant 80 : index
    %c0_152 = arith.constant 0 : index
    %203 = vector.load %arg14[%c0_150, %c80_151, %c0_152] : memref<3x84x128xf32, #tpu.memory_space<vmem>>, vector<1x4x128xf32>
    %204 = vector.shape_cast %203 : vector<1x4x128xf32> to vector<4x128xf32>
    %c1_153 = arith.constant 1 : index
    %c80_154 = arith.constant 80 : index
    %c0_155 = arith.constant 0 : index
    %205 = vector.load %arg14[%c1_153, %c80_154, %c0_155] : memref<3x84x128xf32, #tpu.memory_space<vmem>>, vector<1x4x128xf32>
    %206 = vector.shape_cast %205 : vector<1x4x128xf32> to vector<4x128xf32>
    %c2_156 = arith.constant 2 : index
    %c80_157 = arith.constant 80 : index
    %c0_158 = arith.constant 0 : index
    %207 = vector.load %arg14[%c2_156, %c80_157, %c0_158] : memref<3x84x128xf32, #tpu.memory_space<vmem>>, vector<1x4x128xf32>
    %208 = vector.shape_cast %207 : vector<1x4x128xf32> to vector<4x128xf32>
    %209 = arith.mulf %204, %202 : vector<4x128xf32>
    %210 = arith.addf %209, %206 : vector<4x128xf32>
    %211 = arith.mulf %202, %202 : vector<4x128xf32>
    %212 = arith.mulf %208, %211 : vector<4x128xf32>
    %213 = arith.addf %210, %212 : vector<4x128xf32>
    %c0_159 = arith.constant 0 : index
    %c80_160 = arith.constant 80 : index
    %c0_161 = arith.constant 0 : index
    %214 = vector.load %arg16[%c0_159, %c80_160, %c0_161] : memref<1x84x128xf32, #tpu.memory_space<vmem>>, vector<1x4x128xf32>
    %215 = vector.shape_cast %214 : vector<1x4x128xf32> to vector<4x128xf32>
    %216 = vector.shape_cast %213 : vector<4x128xf32> to vector<1x4x128xf32>
    tpu.vector_store %arg16[%c0_159, %c80_160, %c0_161], %216 {strides = array<i32>} : memref<1x84x128xf32, #tpu.memory_space<vmem>>, vector<1x4x128xf32>,
    return
  }
  func.func @transform_0(%arg0: i32) -> (i32, i32, i32) {
    %c0_i32 = arith.constant 0 : i32
    %c0_i32_0 = arith.constant 0 : i32
    %c0_i32_1 = arith.constant 0 : i32
    return %arg0, %c0_i32, %c0_i32_0 : i32, i32, i32
  }
  func.func @transform_1(%arg0: i32) -> (i32, i32) {
    %c0_i32 = arith.constant 0 : i32
    %c0_i32_0 = arith.constant 0 : i32
    %c0_i32_1 = arith.constant 0 : i32
    return %c0_i32, %c0_i32_0 : i32, i32
  }
  func.func @transform_2(%arg0: i32) -> (i32, i32) {
    %c0_i32 = arith.constant 0 : i32
    %c0_i32_0 = arith.constant 0 : i32
    %c0_i32_1 = arith.constant 0 : i32
    return %c0_i32, %c0_i32_0 : i32, i32
  }
  func.func @transform_3(%arg0: i32) -> (i32, i32) {
    %c0_i32 = arith.constant 0 : i32
    %c0_i32_0 = arith.constant 0 : i32
    %c0_i32_1 = arith.constant 0 : i32
    return %c0_i32, %c0_i32_0 : i32, i32
  }
  func.func @transform_4(%arg0: i32) -> (i32, i32) {
    %c0_i32 = arith.constant 0 : i32
    %c0_i32_0 = arith.constant 0 : i32
    %c0_i32_1 = arith.constant 0 : i32
    return %c0_i32, %c0_i32_0 : i32, i32
  }
  func.func @transform_5(%arg0: i32) -> (i32, i32) {
    %c0_i32 = arith.constant 0 : i32
    %c0_i32_0 = arith.constant 0 : i32
    %c0_i32_1 = arith.constant 0 : i32
    return %c0_i32, %c0_i32_0 : i32, i32
  }
  func.func @transform_6(%arg0: i32) -> (i32, i32) {
    %c0_i32 = arith.constant 0 : i32
    %c0_i32_0 = arith.constant 0 : i32
    %c0_i32_1 = arith.constant 0 : i32
    return %c0_i32, %c0_i32_0 : i32, i32
  }
  func.func @transform_7(%arg0: i32) -> (i32, i32) {
    %c0_i32 = arith.constant 0 : i32
    %c0_i32_0 = arith.constant 0 : i32
    %c0_i32_1 = arith.constant 0 : i32
    return %c0_i32, %c0_i32_0 : i32, i32
  }
  func.func @transform_8(%arg0: i32) -> (i32, i32) {
    %c0_i32 = arith.constant 0 : i32
    %c0_i32_0 = arith.constant 0 : i32
    %c0_i32_1 = arith.constant 0 : i32
    return %c0_i32, %c0_i32_0 : i32, i32
  }
  func.func @transform_9(%arg0: i32) -> (i32, i32) {
    %c0_i32 = arith.constant 0 : i32
    %c0_i32_0 = arith.constant 0 : i32
    %c0_i32_1 = arith.constant 0 : i32
    return %c0_i32, %c0_i32_0 : i32, i32
  }
  func.func @transform_10(%arg0: i32) -> (i32, i32) {
    %c0_i32 = arith.constant 0 : i32
    %c0_i32_0 = arith.constant 0 : i32
    %c0_i32_1 = arith.constant 0 : i32
    return %c0_i32, %c0_i32_0 : i32, i32
  }
  func.func @transform_11(%arg0: i32) -> (i32, i32, i32) {
    %c0_i32 = arith.constant 0 : i32
    %c0_i32_0 = arith.constant 0 : i32
    %c0_i32_1 = arith.constant 0 : i32
    %c0_i32_2 = arith.constant 0 : i32
    return %c0_i32, %c0_i32_0, %c0_i32_1 : i32, i32, i32
  }
  func.func @transform_12(%arg0: i32) -> (i32, i32) {
    %c0_i32 = arith.constant 0 : i32
    %c0_i32_0 = arith.constant 0 : i32
    %c0_i32_1 = arith.constant 0 : i32
    return %c0_i32, %c0_i32_0 : i32, i32
  }
  func.func @transform_13(%arg0: i32) -> (i32, i32, i32) {
    %c0_i32 = arith.constant 0 : i32
    %c0_i32_0 = arith.constant 0 : i32
    %c0_i32_1 = arith.constant 0 : i32
    %c0_i32_2 = arith.constant 0 : i32
    return %c0_i32, %c0_i32_0, %c0_i32_1 : i32, i32, i32
  }
  func.func @transform_14(%arg0: i32) -> (i32, i32, i32) {
    %c0_i32 = arith.constant 0 : i32
    %c0_i32_0 = arith.constant 0 : i32
    %c0_i32_1 = arith.constant 0 : i32
    return %arg0, %c0_i32, %c0_i32_0 : i32, i32, i32
  }
  func.func @transform_15(%arg0: i32) -> (i32, i32, i32) {
    %c0_i32 = arith.constant 0 : i32
    %c0_i32_0 = arith.constant 0 : i32
    %c0_i32_1 = arith.constant 0 : i32
    return %arg0, %c0_i32, %c0_i32_0 : i32, i32, i32
  }
}

</mosaic_0001>

<bundles_post_ra>
// kernel: detection_model_forward.1
= control target key start
LH: loop header
LB: loop body
LE: loop exit
PB: predicated region body
PF: predicated region fallthrough
CT: control target
= control target key end

     0   :  { %s8265_s18 = smov 0   ;;  %s11976_s0 = inlined_call_operand.vmem [shape: f32[2,1024,12], index: 0, kind: input, shape index: {}]   ;;  %s11977_s1 = inlined_call_operand.vmem [shape: bf16[12,8], index: 1, kind: input, shape index: {}]   ;;  %s11978_s2 = inlined_call_operand.vmem [shape: f32[1,8], index: 2, kind: input, shape index: {}]   ;;  %s11979_s3 = inlined_call_operand.vmem [shape: bf16[32,16], index: 3, kind: input, shape index: {}]   ;;  %s11980_s4 = inlined_call_operand.vmem [shape: f32[1,16], index: 4, kind: input, shape index: {}]   ;;  %s11981_s5 = inlined_call_operand.vmem [shape: bf16[64,16], index: 5, kind: input, shape index: {}]   ;;  %s11982_s6 = inlined_call_operand.vmem [shape: f32[1,16], index: 6, kind: input, shape index: {}]   ;;  %s11983_s7 = inlined_call_operand.vmem [shape: bf16[64,32], index: 7, kind: input, shape index: {}]   ;;  %s11984_s8 = inlined_call_operand.vmem [shape: f32[1,32], index: 8, kind: input, shape index: {}]   ;;  %s11985_s9 = inlined_call_operand.vmem [shape: bf16[128,32], index: 9, kind: input, shape index: {}]   ;;  %s11986_s10 = inlined_call_operand.vmem [shape: f32[1,32], index: 10, kind: input, shape index: {}]   ;;  %s11987_s11 = inlined_call_operand.vmem [shape: bf16[3,32,128], index: 11, kind: input, shape index: {}]   ;;  %s11988_s12 = inlined_call_operand.vmem [shape: f32[3,128], index: 12, kind: input, shape index: {}]   ;;  %s11989_s13 = inlined_call_operand.vmem [shape: f32[3,84,128], index: 13, kind: input, shape index: {}]   ;;  %s11990_s14 = inlined_call_operand.vmem [shape: f32[2,84,128], index: 14, kind: output, shape index: {0}]   ;;  %s11991_s15 = inlined_call_operand.vmem [shape: f32[2,84,128], index: 15, kind: output, shape index: {1}]  }
   0x1 LB: > { %s6930_s19 = sadd.s32 4294967295, %s8183_s18   ;;  %p6934_p0 = scmp.ge.s32.totalorder %s8183_s18, 1  ;;  %s8183_s18 = sphi %s8265_s18, %s26_s18  }
   0x2   : > { %p440_p1 = scmp.lt.s32.totalorder %s8183_s18, 3 }
   0x4   : > { %p441_p2 = pnand %p6934_p0, %p440_p1 }
   0x5   : > { %p493_p3 = scmp.lt.s32.totalorder (!%p441_p2), %s6930_s19, 1 }
   0x6   : > { %444 = sbr.rel (%p441_p2) target bundleno = 2308 (0x904), region = 76 }
   0xb   : > { %v6941_v0 = vld [vmem:[%s11977_s1] sm:$0xf]  ;;  %v7400_v1 = vld [vmem:[%s11977_s1] sm:$0x30]  ;;  %vm905_vm0 = vcmask 1045504   ;;  %s12239_s19 = smov (!%p493_p3, %s6930_s19), 1 }
   0xc   : > { %v6942_v2 = vor.u32 %v7400_v1, %v6941_v0  ;;  %s7399_s24 = sshll.u32 %s12239_s19, 10  ;;  %vm712_vm1 = vcmask 97280   ;;  %vm3798_vm6 = vcmask 64512  }
   0xd   : > { %s8285_s27 = scalar_lea.vmem %s11976_s0, %s7399_s24 }
   0xe   : > { %v907_v3 = vsel %vm905_vm0, %v6942_v2, 0  ;;  %v509_v4 = vld [vmem:[%s8285_s27] sm:$0xff]  ;;  %v510_v5 = vld [vmem:[%s8285_s27 + $0x8] sm:$0xff]  ;;  %v511_v7 = vld [vmem:[%s8285_s27 + $0x10] sm:$0xff] }
   0xf   : > { %916 = vmatpush.bf16.msra.mxu0 %v907_v3  ;;  %7424 = vmatpush.bf16.msra.mxu3 %v907_v3  ;;  %v637_v6 = vpack.c.bf16 %v510_v5, %v509_v4  ;;  %v512_v8 = vld [vmem:[%s8285_s27 + $0x18] sm:$0xff]  ;;  %v513_v10 = vld [vmem:[%s8285_s27 + $0x20] sm:$0xff]  ;;  %v514_v11 = vld [vmem:[%s8285_s27 + $0x28] sm:$0xff] }
  0x10   : > { %7422 = vmatpush.bf16.msra.mxu1 %v907_v3  ;;  %7423 = vmatpush.bf16.msra.mxu2 %v907_v3  ;;  %v638_v9 = vpack.c.bf16 %v512_v8, %v511_v7  ;;  %v639_v12 = vpack.c.bf16 %v514_v11, %v513_v10  ;;  %v617_v13 = vld [vmem:[%s8285_s27 + $0x360] sm:$0xff]  ;;  %v618_v14 = vld [vmem:[%s8285_s27 + $0x368] sm:$0xff]  ;;  %v515_v16 = vld [vmem:[%s8285_s27 + $0x30] sm:$0xff] }
  0x11   : > { %v691_v15 = vpack.c.bf16 %v618_v14, %v617_v13  ;;  %v516_v17 = vld [vmem:[%s8285_s27 + $0x38] sm:$0xff]  ;;  %v619_v19 = vld [vmem:[%s8285_s27 + $0x370] sm:$0xff]  ;;  %v517_v22 = vld [vmem:[%s8285_s27 + $0x40] sm:$0xff] }
  0x12   : > { %6943 = vmatmul.msk.bf16.vlgmr.msra.gmra.mxu0 %vm712_vm1, %v637_v6  ;;  %v640_v18 = vpack.c.bf16 %v516_v17, %v515_v16  ;;  %v620_v20 = vld [vmem:[%s8285_s27 + $0x378] sm:$0xff]  ;;  %v518_v23 = vld [vmem:[%s8285_s27 + $0x48] sm:$0xff]  ;;  %v589_v25 = vld [vmem:[%s8285_s27 + $0x280] sm:$0xff] }
  0x13   : > { %6997 = vmatmul.msk.bf16.vlgmr.msra.gmra.mxu3 %vm712_vm1, %v691_v15  ;;  %v692_v21 = vpack.c.bf16 %v620_v20, %v619_v19  ;;  %v641_v24 = vpack.c.bf16 %v518_v23, %v517_v22  ;;  %v590_v26 = vld [vmem:[%s8285_s27 + $0x288] sm:$0xff]  ;;  %v621_v27 = vld [vmem:[%s8285_s27 + $0x380] sm:$0xff]  ;;  %v519_v31 = vld [vmem:[%s8285_s27 + $0x50] sm:$0xff] }
  0x14   : > { %v677_v28 = vpack.c.bf16 %v590_v26, %v589_v25  ;;  %v622_v29 = vld [vmem:[%s8285_s27 + $0x388] sm:$0xff]  ;;  %v520_v32 = vld [vmem:[%s8285_s27 + $0x58] sm:$0xff]  ;;  %v591_v34 = vld [vmem:[%s8285_s27 + $0x290] sm:$0xff] }
  0x15   : > { %v693_v30 = vpack.c.bf16 %v622_v29, %v621_v27  ;;  %v642_v33 = vpack.c.bf16 %v520_v32, %v519_v31  ;;  %v592_v35 = vld [vmem:[%s8285_s27 + $0x298] sm:$0xff]  ;;  %v623_v36 = vld [vmem:[%s8285_s27 + $0x390] sm:$0xff]  ;;  %v521_v40 = vld [vmem:[%s8285_s27 + $0x60] sm:$0xff] }
  0x16   : > { %6983 = vmatmul.msk.bf16.vlgmr.msra.gmra.mxu1 %vm712_vm1, %v677_v28  ;;  %v678_v37 = vpack.c.bf16 %v592_v35, %v591_v34  ;;  %v624_v38 = vld [vmem:[%s8285_s27 + $0x398] sm:$0xff]  ;;  %v522_v41 = vld [vmem:[%s8285_s27 + $0x68] sm:$0xff]  ;;  %v593_v43 = vld [vmem:[%s8285_s27 + $0x2a0] sm:$0xff] }
  0x17   : > { %v694_v39 = vpack.c.bf16 %v624_v38, %v623_v36  ;;  %v643_v42 = vpack.c.bf16 %v522_v41, %v521_v40  ;;  %v594_v44 = vld [vmem:[%s8285_s27 + $0x2a8] sm:$0xff]  ;;  %v605_v45 = vld [vmem:[%s8285_s27 + $0x300] sm:$0xff]  ;;  %v523_v52 = vld [vmem:[%s8285_s27 + $0x70] sm:$0xff] }
  0x18   : > { %v606_v46 = vld [vmem:[%s8285_s27 + $0x308] sm:$0xff]  ;;  %v679_v47 = vpack.c.bf16 %v594_v44, %v593_v43  ;;  %v625_v49 = vld [vmem:[%s8285_s27 + $0x3a0] sm:$0xff]  ;;  %v524_v53 = vld [vmem:[%s8285_s27 + $0x78] sm:$0xff] }
  0x19   : > { %v685_v48 = vpack.c.bf16 %v606_v46, %v605_v45  ;;  %v626_v50 = vld [vmem:[%s8285_s27 + $0x3a8] sm:$0xff]  ;;  %v644_v54 = vpack.c.bf16 %v524_v53, %v523_v52  ;;  %v595_v55 = vld [vmem:[%s8285_s27 + $0x2b0] sm:$0xff]  ;;  %v596_v56 = vld [vmem:[%s8285_s27 + $0x2b8] sm:$0xff] }
  0x1a   : > { %v695_v51 = vpack.c.bf16 %v626_v50, %v625_v49  ;;  %v607_v57 = vld [vmem:[%s8285_s27 + $0x310] sm:$0xff]  ;;  %v608_v58 = vld [vmem:[%s8285_s27 + $0x318] sm:$0xff]  ;;  %v680_v59 = vpack.c.bf16 %v596_v56, %v595_v55  ;;  %v525_v0 = vld [vmem:[%s8285_s27 + $0x80] sm:$0xff] }
  0x1b   : > { %6991 = vmatmul.msk.bf16.vlgmr.msra.gmra.mxu2 %vm712_vm1, %v685_v48  ;;  %v686_v60 = vpack.c.bf16 %v608_v58, %v607_v57  ;;  %v627_v61 = vld [vmem:[%s8285_s27 + $0x3b0] sm:$0xff]  ;;  %v628_v62 = vld [vmem:[%s8285_s27 + $0x3b8] sm:$0xff]  ;;  %v526_v1 = vld [vmem:[%s8285_s27 + $0x88] sm:$0xff] }
  0x1c   : > { %v696_v63 = vpack.c.bf16 %v628_v62, %v627_v61  ;;  %v8352_v2 = vld [vmem:[%s11978_s2] ss:$0 sm:$0xff]  ;;  %v645_v3 = vpack.c.bf16 %v526_v1, %v525_v0  ;;  %v598_v7 = vld [vmem:[%s8285_s27 + $0x2c8] sm:$0xff]  ;;  %v528_v22 = vld [vmem:[%s8285_s27 + $0x98] sm:$0xff] }
  0x1d   : > { %v597_v6 = vld [vmem:[%s8285_s27 + $0x2c0] sm:$0xff]  ;;  %v630_v14 = vld [vmem:[%s8285_s27 + $0x3c8] sm:$0xff]  ;;  %v599_v26 = vld [vmem:[%s8285_s27 + $0x2d0] sm:$0xff] }
  0x1e   : > { %v609_v8 = vld [vmem:[%s8285_s27 + $0x320] sm:$0xff]  ;;  %v681_v11 = vpack.c.bf16 %v598_v7, %v597_v6  ;;  %v600_v27 = vld [vmem:[%s8285_s27 + $0x2d8] sm:$0xff]  ;;  %v611_v28 = vld [vmem:[%s8285_s27 + $0x330] sm:$0xff] }
  0x1f   : > { %v629_v13 = vld [vmem:[%s8285_s27 + $0x3c0] sm:$0xff]  ;;  %v612_v29 = vld [vmem:[%s8285_s27 + $0x338] sm:$0xff]  ;;  %v682_v32 = vpack.c.bf16 %v600_v27, %v599_v26  ;;  %v631_v34 = vld [vmem:[%s8285_s27 + $0x3d0] sm:$0xff] }
  0x20   : > { %v697_v15 = vpack.c.bf16 %v630_v14, %v629_v13  ;;  %v632_v35 = vld [vmem:[%s8285_s27 + $0x3d8] sm:$0xff]  ;;  %v529_v52 = vld [vmem:[%s8285_s27 + $0xa0] sm:$0xff]  ;;  %v530_v53 = vld [vmem:[%s8285_s27 + $0xa8] sm:$0xff] }
  0x21   : > { %v698_v38 = vpack.c.bf16 %v632_v35, %v631_v34  ;;  %v601_v1 = vld [vmem:[%s8285_s27 + $0x2e0] sm:$0xff]  ;;  %v614_v6 = vld [vmem:[%s8285_s27 + $0x348] sm:$0xff]  ;;  %v531_v34 = vld [vmem:[%s8285_s27 + $0xb0] sm:$0xff] }
  0x22   : > { %6944 = vmatmul.msk.bf16.gmra.mxu0 %vm712_vm1, %v638_v9  ;;  %v610_v9 = vld [vmem:[%s8285_s27 + $0x328] sm:$0xff]  ;;  %v532_v35 = vld [vmem:[%s8285_s27 + $0xb8] sm:$0xff] }
  0x23   : > { %6998 = vmatmul.msk.bf16.gmra.mxu3 %vm712_vm1, %v692_v21  ;;  %v527_v21 = vld [vmem:[%s8285_s27 + $0x90] sm:$0xff] }
  0x24   : > { %v646_v23 = vpack.c.bf16 %v528_v22, %v527_v21 }
  0x26   : > { %6984 = vmatmul.msk.bf16.gmra.mxu1 %vm712_vm1, %v678_v37 }
  0x2b   : > { %6992 = vmatmul.msk.bf16.gmra.mxu2 %vm712_vm1, %v686_v60 }
  0x32   : > { %6945 = vmatmul.msk.bf16.gmra.mxu0 %vm712_vm1, %v639_v12  ;;  %v687_v12 = vpack.c.bf16 %v610_v9, %v609_v8 }
  0x33   : > { %6999 = vmatmul.msk.bf16.gmra.mxu3 %vm712_vm1, %v693_v30 }
  0x36   : > { %6985 = vmatmul.msk.bf16.gmra.mxu1 %vm712_vm1, %v679_v47 }
  0x3b   : > { %6993 = vmatmul.msk.bf16.gmra.mxu2 %vm712_vm1, %v687_v12  ;;  %v634_v12 = vld [vmem:[%s8285_s27 + $0x3e8] sm:$0xff] }
  0x42   : > { %6946 = vmatmul.msk.bf16.gmra.mxu0 %vm712_vm1, %v640_v18 }
  0x43   : > { %7000 = vmatmul.msk.bf16.gmra.mxu3 %vm712_vm1, %v694_v39 }
  0x46   : > { %6986 = vmatmul.msk.bf16.gmra.mxu1 %vm712_vm1, %v680_v59  ;;  %v647_v59 = vpack.c.bf16 %v530_v53, %v529_v52  ;;  %v603_v53 = vld [vmem:[%s8285_s27 + $0x2f0] sm:$0xff] }
  0x52   : > { %6947 = vmatmul.msk.bf16.gmra.mxu0 %vm712_vm1, %v641_v24 }
  0x53   : > { %7001 = vmatmul.msk.bf16.gmra.mxu3 %vm712_vm1, %v695_v51 }
  0x56   : > { %6987 = vmatmul.msk.bf16.gmra.mxu1 %vm712_vm1, %v681_v11  ;;  %v633_v11 = vld [vmem:[%s8285_s27 + $0x3e0] sm:$0xff] }
  0x62   : > { %6948 = vmatmul.msk.bf16.gmra.mxu0 %vm712_vm1, %v642_v33  ;;  %v688_v33 = vpack.c.bf16 %v612_v29, %v611_v28 }
  0x63   : > { %7002 = vmatmul.msk.bf16.gmra.mxu3 %vm712_vm1, %v696_v63 }
  0x64   : > { %6994 = vmatmul.msk.bf16.gmra.mxu2 %vm712_vm1, %v688_v33 }
  0x66   : > { %6988 = vmatmul.msk.bf16.gmra.mxu1 %vm712_vm1, %v682_v32 }
  0x72   : > { %6949 = vmatmul.msk.bf16.gmra.mxu0 %vm712_vm1, %v643_v42 }
  0x73   : > { %7003 = vmatmul.msk.bf16.gmra.mxu3 %vm712_vm1, %v697_v15 }
  0x82   : > { %6950 = vmatmul.msk.bf16.gmra.mxu0 %vm712_vm1, %v644_v54 }
  0x83   : > { %7004 = vmatmul.msk.bf16.gmra.mxu3 %vm712_vm1, %v698_v38 }
  0x8f   : > { %v918_v4 = vpop.f32.mrf.mxu0 }
  0x90   : > { %v8355_v5 = vadd.f32 %v8352_v2, %v918_v4  ;;  %v613_v4 = vld [vmem:[%s8285_s27 + $0x340] sm:$0xff] }
  0x92   : > { %v7007_v10 = vmul.f32 -1.442695, %v8355_v5  ;;  %6951 = vmatmul.msk.bf16.gmra.mxu0 %vm712_vm1, %v645_v3  ;;  %v602_v3 = vld [vmem:[%s8285_s27 + $0x2e8] sm:$0xff] }
  0x93   : > { %v683_v9 = vpack.c.bf16 %v602_v3, %v601_v1 }
  0x94   : > { %7442 = vpow2.f32 %v7007_v10  ;;  %v689_v10 = vpack.c.bf16 %v614_v6, %v613_v4 }
  0x95   : > { %6989 = vmatmul.msk.bf16.gmra.mxu1 %vm712_vm1, %v683_v9 }
  0x96   : > { %6995 = vmatmul.msk.bf16.gmra.mxu2 %vm712_vm1, %v689_v10 }
  0x97   : > { %v920_v16 = vpop.f32.mrf.mxu0 }
  0x98   : > { %v8369_v17 = vadd.f32 %v8352_v2, %v920_v16  ;;  %v699_v16 = vpack.c.bf16 %v634_v12, %v633_v11 }
  0x9a   : > { %v7443_v18 = vpop.eup %7442  ;;  %v7008_v19 = vmul.f32 -1.442695, %v8369_v17  ;;  %7005 = vmatmul.msk.bf16.gmra.mxu3 %vm712_vm1, %v699_v16  ;;  %v534_v16 = vld [vmem:[%s8285_s27 + $0xc8] sm:$0xff] }
  0x9b   : > { %v1622_v20 = vadd.f32 1.0, %v7443_v18 }
  0x9c   : > { %7444 = vpow2.f32 %v7008_v19 }
  0x9d   : > { %7446 = vrcp.f32 %v1622_v20  ;;  %v1761_v41 = vand.u32 2147483648, %v1622_v20  ;;  %v1759_v44 = vand.u32 2147483647, %v1622_v20  ;;  %vm1755_vm3 = vweird.f32 %v1622_v20 }
  0x9f   : > { %v923_v24 = vpop.f32.mrf.mxu0  ;;  %v1762_v50 = vor.u32 1.1754944e-38, %v1761_v41  ;;  %vm1760_vm5 = vcmp.eq.f32.partialorder %v1759_v44, 8.507059e+37  ;;  %v648_v41 = vpack.c.bf16 %v532_v35, %v531_v34 }
  0xa0   : > { %v8375_v25 = vadd.f32 %v8352_v2, %v923_v24 }
  0xa2   : > { %v7445_v30 = vpop.eup %7444  ;;  %v7009_v31 = vmul.f32 -1.442695, %v8375_v25  ;;  %6952 = vmatmul.msk.bf16.gmra.mxu0 %vm712_vm1, %v646_v23 }
  0xa3   : > { %v7447_v36 = vpop.eup %7446  ;;  %v1623_v37 = vadd.f32 1.0, %v7445_v30 }
  0xa4   : > { %v1751_v39 = vmul.f32 %v7447_v36, %v1622_v20  ;;  %7448 = vpow2.f32 %v7009_v31  ;;  %vm1756_vm2 = vweird.f32 %v7447_v36 }
  0xa5   : > { %7450 = vrcp.f32 %v1623_v37  ;;  %vm1757_vm4 = vmor %vm1755_vm3, %vm1756_vm2  ;;  %v1776_v60 = vand.u32 2147483648, %v1623_v37  ;;  %v1774_v63 = vand.u32 2147483647, %v1623_v37  ;;  %vm1770_vm8 = vweird.f32 %v1623_v37 }
  0xa6   : > { %v1752_v40 = vsub.f32 1.0, %v1751_v39 }
  0xa7   : > { %v925_v42 = vpop.f32.mrf.mxu0  ;;  %v1777_v14 = vor.u32 1.1754944e-38, %v1776_v60  ;;  %vm1775_vm10 = vcmp.eq.f32.partialorder %v1774_v63, 8.507059e+37  ;;  %v635_v60 = vld [vmem:[%s8285_s27 + $0x3f0] sm:$0xff] }
  0xa8   : > { %v1753_v43 = vmul.f32 %v7447_v36, %v1752_v40  ;;  %v8389_v45 = vadd.f32 %v8352_v2, %v925_v42 }
  0xaa   : > { %v7449_v46 = vpop.eup %7448  ;;  %v1754_v47 = vadd.f32 %v7447_v36, %v1753_v43  ;;  %v7010_v48 = vmul.f32 -1.442695, %v8389_v45 }
  0xab   : > { %v7451_v49 = vpop.eup %7450  ;;  %v8392_v51 = vadd.f32 1.0, %v7449_v46 }
  0xac   : > { %v1758_v54 = vsel %vm1757_vm4, %v7447_v36, %v1754_v47  ;;  %v1766_v55 = vmul.f32 %v7451_v49, %v1623_v37  ;;  %7452 = vpow2.f32 %v7010_v48  ;;  %vm1771_vm7 = vweird.f32 %v7451_v49 }
  0xad   : > { %v1763_v56 = vsel %vm1760_vm5, %v1762_v50, %v1758_v54  ;;  %7454 = vrcp.f32 %v8392_v51  ;;  %vm1772_vm9 = vmor %vm1770_vm8, %vm1771_vm7  ;;  %v1791_v23 = vand.u32 2147483648, %v8392_v51  ;;  %v1789_v27 = vand.u32 2147483647, %v8392_v51 }
  0xae   : > { %v3670_v57 = vmul.f32 %v1763_v56, %v8355_v5  ;;  %v1767_v58 = vsub.f32 1.0, %v1766_v55  ;;  %vm1785_vm12 = vweird.f32 %v8392_v51  ;;  %v604_v56 = vld [vmem:[%s8285_s27 + $0x2f8] sm:$0xff] }
  0xaf   : > { %v928_v61 = vpop.f32.mrf.mxu0  ;;  %v1792_v32 = vor.u32 1.1754944e-38, %v1791_v23  ;;  %vm1790_vm14 = vcmp.eq.f32.partialorder %v1789_v27, 8.507059e+37  ;;  %v684_v4 = vpack.c.bf16 %v604_v56, %v603_v53 }
  0xb0   : > { %3799 = vst.msk [vmem:[#allocation2] sm:$0xff] %vm3798_vm6, %v3670_v57  ;;  %v1768_v62 = vmul.f32 %v7451_v49, %v1767_v58  ;;  %v8400_v0 = vadd.f32 %v8352_v2, %v928_v61  ;;  %v615_v57 = vld [vmem:[%s8285_s27 + $0x350] sm:$0xff]  ;;  %v616_v58 = vld [vmem:[%s8285_s27 + $0x358] sm:$0xff] }
  0xb1   : > { %v636_v61 = vld [vmem:[%s8285_s27 + $0x3f8] sm:$0xff]  ;;  %v690_v6 = vpack.c.bf16 %v616_v58, %v615_v57  ;;  %6990 = vmatmul.msk.bf16.gmra.mxu1 %vm712_vm1, %v684_v4 }
  0xb2   : > { %v7453_v5 = vpop.eup %7452  ;;  %v1769_v7 = vadd.f32 %v7451_v49, %v1768_v62  ;;  %v7011_v8 = vmul.f32 -1.442695, %v8400_v0  ;;  %6953 = vmatmul.msk.bf16.gmra.mxu0 %vm712_vm1, %v647_v59 }
  0xb3   : > { %v7455_v13 = vpop.eup %7454  ;;  %v1625_v15 = vadd.f32 1.0, %v7453_v5  ;;  %v700_v5 = vpack.c.bf16 %v636_v61, %v635_v60  ;;  %6996 = vmatmul.msk.bf16.gmra.mxu2 %vm712_vm1, %v690_v6  ;;  %v536_v60 = vld [vmem:[%s8285_s27 + $0xd8] sm:$0xff] }
  0xb4   : > { %v1773_v18 = vsel %vm1772_vm9, %v7451_v49, %v1769_v7  ;;  %v1781_v19 = vmul.f32 %v7455_v13, %v8392_v51  ;;  %7456 = vpow2.f32 %v7011_v8  ;;  %vm1786_vm11 = vweird.f32 %v7455_v13 }
  0xb5   : > { %v1778_v20 = vsel %vm1775_vm10, %v1777_v14, %v1773_v18  ;;  %7458 = vrcp.f32 %v1625_v15  ;;  %vm1787_vm13 = vmor %vm1785_vm12, %vm1786_vm11  ;;  %v1806_v42 = vand.u32 2147483648, %v1625_v15  ;;  %v1804_v46 = vand.u32 2147483647, %v1625_v15  ;;  %7006 = vmatmul.msk.bf16.gmra.mxu3 %vm712_vm1, %v700_v5 }
  0xb6   : > { %v3671_v21 = vmul.f32 %v1778_v20, %v8369_v17  ;;  %v1782_v22 = vsub.f32 1.0, %v1781_v19  ;;  %vm1800_vm0 = vweird.f32 %v1625_v15 }
  0xb7   : > { %v930_v24 = vpop.f32.mrf.mxu0  ;;  %v1807_v51 = vor.u32 1.1754944e-38, %v1806_v42  ;;  %vm1805_vm3 = vcmp.eq.f32.partialorder %v1804_v46, 8.507059e+37  ;;  %v4449_v46 = vld [vmem:[%s11979_s3 + $0x8] sm:$0xf] }
  0xb8   : > { %3800 = vst.msk [vmem:[#allocation2 + $0x8] sm:$0xff] %vm3798_vm6, %v3671_v21  ;;  %v1783_v26 = vmul.f32 %v7455_v13, %v1782_v22  ;;  %v8420_v28 = vadd.f32 %v8352_v2, %v930_v24  ;;  %v1188_v21 = vpop.f32.mrf.mxu3 }
  0xba   : > { %v7457_v29 = vpop.eup %7456  ;;  %v1784_v30 = vadd.f32 %v7455_v13, %v1783_v26  ;;  %v7012_v17 = vmul.f32 -1.442695, %v8420_v28 }
  0xbb   : > { %v7459_v31 = vpop.eup %7458  ;;  %v8424_v33 = vadd.f32 1.0, %v7457_v29 }
  0xbc   : > { %v1788_v36 = vsel %vm1787_vm13, %v7455_v13, %v1784_v30  ;;  %v1796_v37 = vmul.f32 %v7459_v31, %v1625_v15  ;;  %7460 = vpow2.f32 %v7012_v17  ;;  %vm1801_vm15 = vweird.f32 %v7459_v31  ;;  %v533_v15 = vld [vmem:[%s8285_s27 + $0xc0] sm:$0xff] }
  0xbd   : > { %v1793_v38 = vsel %vm1790_vm14, %v1792_v32, %v1788_v36  ;;  %7462 = vrcp.f32 %v8424_v33  ;;  %vm1802_vm2 = vmor %vm1800_vm0, %vm1801_vm15  ;;  %v1821_v1 = vand.u32 2147483648, %v8424_v33  ;;  %v1819_v8 = vand.u32 2147483647, %v8424_v33 }
  0xbe   : > { %v3672_v39 = vmul.f32 %v1793_v38, %v8375_v25  ;;  %v1797_v40 = vsub.f32 1.0, %v1796_v37  ;;  %vm1815_vm5 = vweird.f32 %v8424_v33  ;;  %v649_v24 = vpack.c.bf16 %v534_v16, %v533_v15  ;;  %v8525_v16 = vld [vmem:[%s8285_s27 + $0xe0] sm:$0xff] }
  0xbf   : > { %v933_v43 = vpop.f32.mrf.mxu0  ;;  %v1822_v13 = vor.u32 1.1754944e-38, %v1821_v1  ;;  %vm1820_vm8 = vcmp.eq.f32.partialorder %v1819_v8, 8.507059e+37  ;;  %vm11992_vm13 = vcmask 1043456  }
  0xc0   : > { %3801 = vst.msk [vmem:[#allocation2 + $0x10] sm:$0xff] %vm3798_vm6, %v3672_v39  ;;  %v1798_v44 = vmul.f32 %v7459_v31, %v1797_v40  ;;  %v8432_v47 = vadd.f32 %v8352_v2, %v933_v43 }
  0xc2   : > { %v7461_v48 = vpop.eup %7460  ;;  %v1799_v49 = vadd.f32 %v7459_v31, %v1798_v44  ;;  %v7013_v25 = vmul.f32 -1.442695, %v8432_v47  ;;  %6954 = vmatmul.msk.bf16.gmra.mxu0 %vm712_vm1, %v648_v41  ;;  %v4087_v41 = vld [vmem:[%s11979_s3 + $0x4] sm:$0xf]  ;;  %v4006_v44 = vld [vmem:[%s11979_s3] sm:$0xf] }
  0xc3   : > { %v7463_v50 = vpop.eup %7462  ;;  %v8436_v52 = vadd.f32 1.0, %v7461_v48  ;;  %v4138_v53 = vsel %vm11992_vm13, %v4087_v41, 0 }
  0xc4   : > { %v1803_v54 = vsel %vm1802_vm2, %v7459_v31, %v1799_v49  ;;  %v1811_v55 = vmul.f32 %v7463_v50, %v8424_v33  ;;  %7464 = vpow2.f32 %v7013_v25  ;;  %vm1816_vm4 = vweird.f32 %v7463_v50  ;;  %4147 = vmatpush.bf16.msrb.mxu1 %v4138_v53 }
  0xc5   : > { %v1808_v59 = vsel %vm1805_vm3, %v1807_v51, %v1803_v54  ;;  %7466 = vrcp.f32 %v8436_v52  ;;  %vm1817_vm7 = vmor %vm1815_vm5, %vm1816_vm4  ;;  %v1834_v26 = vand.u32 2147483647, %v8436_v52  ;;  %v1836_v27 = vand.u32 2147483648, %v8436_v52 }
  0xc6   : > { %v3673_v62 = vmul.f32 %v1808_v59, %v8389_v45  ;;  %v1812_v63 = vsub.f32 1.0, %v1811_v55  ;;  %v8472_v31 = vadd.f32 %v8352_v2, %v1188_v21  ;;  %vm1830_vm10 = vweird.f32 %v8436_v52  ;;  %v535_v59 = vld [vmem:[%s8285_s27 + $0xd0] sm:$0xff] }
  0xc7   : > { %v935_v3 = vpop.f32.mrf.mxu0  ;;  %v1837_v36 = vor.u32 1.1754944e-38, %v1836_v27  ;;  %vm1835_vm12 = vcmp.eq.f32.partialorder %v1834_v26, 8.507059e+37  ;;  %v4278_v54 = vsel %vm11992_vm13, %v4006_v44, 0  ;;  %v4499_v55 = vsel %vm11992_vm13, %v4449_v46, 0 }
  0xc8   : > { %3802 = vst.msk [vmem:[#allocation2 + $0x18] sm:$0xff] %vm3798_vm6, %v3673_v62  ;;  %v1813_v7 = vmul.f32 %v7463_v50, %v1812_v63  ;;  %v8451_v9 = vadd.f32 %v8352_v2, %v935_v3  ;;  %v7115_v34 = vmul.f32 -1.442695, %v8472_v31  ;;  %4287 = vmatpush.bf16.msrb.mxu2 %v4278_v54  ;;  %4508 = vmatpush.bf16.msrb.mxu3 %v4499_v55 }
  0xc9   : > { %v650_v8 = vpack.c.bf16 %v536_v60, %v535_v59  ;;  %v1118_v60 = vpop.f32.mrf.mxu1 }
  0xca   : > { %v7465_v45 = vpop.eup %7464  ;;  %v1814_v10 = vadd.f32 %v7463_v50, %v1813_v7  ;;  %v7014_v11 = vmul.f32 -1.442695, %v8451_v9 }
  0xcb   : > { %v7467_v12 = vpop.eup %7466  ;;  %v8458_v14 = vadd.f32 1.0, %v7465_v45 }
  0xcc   : > { %v1818_v18 = vsel %vm1817_vm7, %v7463_v50, %v1814_v10  ;;  %v1826_v19 = vmul.f32 %v7467_v12, %v8436_v52  ;;  %7468 = vpow2.f32 %v7014_v11  ;;  %vm1831_vm9 = vweird.f32 %v7467_v12  ;;  %v1190_v50 = vpop.f32.mrf.mxu3 }
  0xcd   : > { %v1823_v20 = vsel %vm1820_vm8, %v1822_v13, %v1818_v18  ;;  %7470 = vrcp.f32 %v8458_v14  ;;  %vm1832_vm11 = vmor %vm1830_vm10, %vm1831_vm9  ;;  %v1849_v48 = vand.u32 2147483647, %v8458_v14  ;;  %v1851_v49 = vand.u32 2147483648, %v8458_v14  ;;  %v8528_v18 = vld [vmem:[%s8285_s27 + $0xe8] sm:$0xff] }
  0xce   : > { %v3674_v22 = vmul.f32 %v1823_v20, %v8400_v0  ;;  %v1827_v23 = vsub.f32 1.0, %v1826_v19  ;;  %v8499_v52 = vadd.f32 %v8352_v2, %v1190_v50  ;;  %vm1845_vm15 = vweird.f32 %v8458_v14 }
  0xcf   : > { %v938_v29 = vpop.f32.mrf.mxu0  ;;  %v1852_v62 = vor.u32 1.1754944e-38, %v1851_v49  ;;  %vm1850_vm2 = vcmp.eq.f32.partialorder %v1849_v48, 8.507059e+37 }
  0xd0   : > { %3803 = vst.msk [vmem:[#allocation2 + $0x20] sm:$0xff] %vm3798_vm6, %v3674_v22  ;;  %v1828_v30 = vmul.f32 %v7467_v12, %v1827_v23  ;;  %v8469_v17 = vadd.f32 %v8352_v2, %v938_v29  ;;  %v7116_v1 = vmul.f32 -1.442695, %v8499_v52 }
  0xd2   : > { %v7469_v32 = vpop.eup %7468  ;;  %v1829_v33 = vadd.f32 %v7467_v12, %v1828_v30  ;;  %v7015_v0 = vmul.f32 -1.442695, %v8469_v17  ;;  %6955 = vmatmul.msk.bf16.gmra.mxu0 %vm712_vm1, %v649_v24 }
  0xd3   : > { %v7471_v35 = vpop.eup %7470  ;;  %v8478_v37 = vadd.f32 1.0, %v7469_v32  ;;  %v651_v32 = vpack.c.bf16 %v8528_v18, %v8525_v16 }
  0xd4   : > { %v1833_v38 = vsel %vm1832_vm11, %v7467_v12, %v1829_v33  ;;  %v1841_v39 = vmul.f32 %v7471_v35, %v8458_v14  ;;  %7472 = vpow2.f32 %v7015_v0  ;;  %vm1846_vm14 = vweird.f32 %v7471_v35  ;;  %v1193_v21 = vpop.f32.mrf.mxu3 }
  0xd5   : > { %v1838_v40 = vsel %vm1835_vm12, %v1837_v36, %v1833_v38  ;;  %7474 = vrcp.f32 %v8478_v37  ;;  %vm1847_vm0 = vmor %vm1845_vm15, %vm1846_vm14  ;;  %v1864_v7 = vand.u32 2147483647, %v8478_v37  ;;  %v1866_v11 = vand.u32 2147483648, %v8478_v37 }
  0xd6   : > { %v3675_v42 = vmul.f32 %v1838_v40, %v8420_v28  ;;  %v1842_v43 = vsub.f32 1.0, %v1841_v39  ;;  %7476 = vpow2.f32 %v7115_v34  ;;  %vm1860_vm4 = vweird.f32 %v8478_v37 }
  0xd7   : > { %v940_v25 = vpop.f32.mrf.mxu0  ;;  %vm1865_vm5 = vcmp.eq.f32.partialorder %v1864_v7, 8.507059e+37  ;;  %v1867_v20 = vor.u32 1.1754944e-38, %v1866_v11 }
  0xd8   : > { %3804 = vst.msk [vmem:[#allocation2 + $0x28] sm:$0xff] %vm3798_vm6, %v3675_v42  ;;  %v1843_v28 = vmul.f32 %v7471_v35, %v1842_v43  ;;  %v8496_v51 = vadd.f32 %v8352_v2, %v940_v25 }
  0xda   : > { %v7473_v56 = vpop.eup %7472  ;;  %v1844_v57 = vadd.f32 %v7471_v35, %v1843_v28  ;;  %v7016_v58 = vmul.f32 -1.442695, %v8496_v51 }
  0xdb   : > { %v7475_v61 = vpop.eup %7474  ;;  %v8509_v63 = vadd.f32 1.0, %v7473_v56 }
  0xdc   : > { %v7477_v3 = vpop.eup %7476  ;;  %v1848_v4 = vsel %vm1847_vm0, %v7471_v35, %v1844_v57  ;;  %v1856_v6 = vmul.f32 %v7475_v61, %v8478_v37  ;;  %7478 = vpow2.f32 %v7016_v58  ;;  %vm1861_vm3 = vweird.f32 %v7475_v61 }
  0xdd   : > { %v1853_v5 = vsel %vm1850_vm2, %v1852_v62, %v1848_v4  ;;  %7480 = vrcp.f32 %v8509_v63  ;;  %v8517_v12 = vadd.f32 1.0, %v7477_v3  ;;  %vm1862_vm7 = vmor %vm1860_vm4, %vm1861_vm3  ;;  %v1879_v23 = vand.u32 2147483647, %v8509_v63  ;;  %v1195_v62 = vpop.f32.mrf.mxu3 }
  0xde   : > { %v3676_v45 = vmul.f32 %v1853_v5, %v8432_v47  ;;  %v1857_v10 = vsub.f32 1.0, %v1856_v6  ;;  %7482 = vpow2.f32 %v7116_v1  ;;  %v1881_v24 = vand.u32 2147483648, %v8509_v63 }
  0xdf   : > { %v943_v13 = vpop.f32.mrf.mxu0  ;;  %7484 = vrcp.f32 %v8517_v12  ;;  %vm1875_vm8 = vweird.f32 %v8509_v63  ;;  %v3379_v34 = vand.u32 2147483647, %v8517_v12  ;;  %v8544_v35 = vadd.f32 %v8352_v2, %v1193_v21 }
  0xe0   : > { %3805 = vst.msk [vmem:[#allocation2 + $0x30] sm:$0xff] %vm3798_vm6, %v3676_v45  ;;  %v1858_v14 = vmul.f32 %v7475_v61, %v1857_v10  ;;  %v8522_v15 = vadd.f32 %v8352_v2, %v943_v13  ;;  %v3381_v39 = vand.u32 2147483648, %v8517_v12  ;;  %vm8550_vm9 = vcmp.eq.f32.partialorder %v1879_v23, 8.507059e+37 }
  0xe1   : > { %v1882_v42 = vor.u32 1.1754944e-38, %v1881_v24  ;;  %vm3375_vm11 = vweird.f32 %v8517_v12  ;;  %v7117_v49 = vmul.f32 -1.442695, %v8544_v35  ;;  %vm8560_vm14 = vcmp.eq.f32.partialorder %v3379_v34, 8.507059e+37 }
  0xe2   : > { %v7479_v47 = vpop.eup %7478  ;;  %v1859_v19 = vadd.f32 %v7475_v61, %v1858_v14  ;;  %6956 = vmatmul.msk.bf16.gmra.mxu0 %vm712_vm1, %v650_v8  ;;  %v7017_v27 = vmul.f32 -1.442695, %v8522_v15  ;;  %v3382_v28 = vor.u32 1.1754944e-38, %v3381_v39  ;;  %v8585_v4 = vadd.f32 %v8352_v2, %v1195_v62 }
  0xe3   : > { %v7481_v22 = vpop.eup %7480  ;;  %v8534_v26 = vadd.f32 1.0, %v7479_v47 }
  0xe4   : > { %v1863_v29 = vsel %vm1862_vm7, %v7475_v61, %v1859_v19  ;;  %v1871_v30 = vmul.f32 %v7481_v22, %v8509_v63  ;;  %v7483_v33 = vpop.eup %7482  ;;  %vm1876_vm10 = vweird.f32 %v7481_v22 }
  0xe5   : > { %v1868_v0 = vsel %vm1865_vm5, %v1867_v20, %v1863_v29  ;;  %7486 = vrcp.f32 %v8534_v26  ;;  %v7485_v36 = vpop.eup %7484  ;;  %v8548_v40 = vadd.f32 1.0, %v7483_v33  ;;  %vm1877_vm15 = vmor %vm1875_vm8, %vm1876_vm10  ;;  %vm1890_vm0 = vweird.f32 %v8534_v26  ;;  %v4008_v29 = vld [vmem:[#allocation2 + $0x1] ss:$4 sm:$0xff] }
  0xe6   : > { %v3677_v37 = vmul.f32 %v1868_v0, %v8451_v9  ;;  %v1872_v38 = vsub.f32 1.0, %v1871_v30  ;;  %v3371_v43 = vmul.f32 %v7485_v36, %v8517_v12  ;;  %7488 = vpow2.f32 %v7017_v27 }
  0xe7   : > { %v945_v44 = vpop.f32.mrf.mxu0  ;;  %v1894_v9 = vand.u32 2147483647, %v8534_v26  ;;  %7490 = vrcp.f32 %v8548_v40  ;;  %vm3376_vm12 = vweird.f32 %v7485_v36  ;;  %v1896_v56 = vand.u32 2147483648, %v8534_v26 }
  0xe8   : > { %3806 = vst.msk [vmem:[#allocation2 + $0x38] sm:$0xff] %vm3798_vm6, %v3677_v37  ;;  %v1873_v46 = vmul.f32 %v7481_v22, %v1872_v38  ;;  %v3372_v48 = vsub.f32 1.0, %v3371_v43  ;;  %v8565_v53 = vadd.f32 %v8352_v2, %v945_v44  ;;  %7492 = vpow2.f32 %v7117_v49  ;;  %vm8571_vm2 = vmor %vm3375_vm11, %vm3376_vm12 }
  0xe9   : > { %vm8576_vm3 = vcmp.eq.f32.partialorder %v1894_v9, 8.507059e+37  ;;  %vm3390_vm4 = vweird.f32 %v8548_v40  ;;  %v3396_v11 = vand.u32 2147483648, %v8548_v40  ;;  %v7118_v12 = vmul.f32 -1.442695, %v8585_v4 }
  0xea   : > { %v1874_v25 = vadd.f32 %v7481_v22, %v1873_v46  ;;  %v3373_v55 = vmul.f32 %v7485_v36, %v3372_v48  ;;  %v7018_v61 = vmul.f32 -1.442695, %v8565_v53 }
  0xeb   : > { %v7487_v54 = vpop.eup %7486  ;;  %v3397_v18 = vor.u32 1.1754944e-38, %v3396_v11  ;;  %v1198_v11 = vpop.f32.mrf.mxu3 }
  0xec   : > { %v1878_v57 = vsel %vm1877_vm15, %v7481_v22, %v1874_v25  ;;  %v1886_v59 = vmul.f32 %v7487_v54, %v8534_v26  ;;  %v7489_v63 = vpop.eup %7488  ;;  %v3374_v3 = vadd.f32 %v7485_v36, %v3373_v55  ;;  %7494 = vpow2.f32 %v7018_v61  ;;  %v4370_v61 = vld [vmem:[#allocation2 + $0x2] ss:$4 sm:$0xff] }
  0xed   : > { %v1883_v1 = vsel %vm8550_vm9, %v1882_v42, %v1878_v57  ;;  %v7491_v6 = vpop.eup %7490  ;;  %v8588_v8 = vadd.f32 1.0, %v7489_v63  ;;  %vm1891_vm5 = vweird.f32 %v7487_v54  ;;  %v3394_v22 = vand.u32 2147483647, %v8548_v40 }
  0xee   : > { %v3678_v5 = vmul.f32 %v1883_v1, %v8469_v17  ;;  %v1887_v7 = vsub.f32 1.0, %v1886_v59  ;;  %v3378_v45 = vsel %vm8571_vm2, %v7485_v36, %v3374_v3  ;;  %v3386_v10 = vmul.f32 %v7491_v6, %v8548_v40  ;;  %v7493_v19 = vpop.eup %7492  ;;  %vm1892_vm8 = vmor %vm1890_vm0, %vm1891_vm5  ;;  %v3927_v40 = vld [vmem:[#allocation2] ss:$4 sm:$0xff] }
  0xef   : > { %v948_v13 = vpop.f32.mrf.mxu0  ;;  %v3383_v14 = vsel %vm8560_vm14, %v3382_v28, %v3378_v45  ;;  %7496 = vrcp.f32 %v8588_v8  ;;  %v4010_v47 = vld [vmem:[#allocation2 + $0x21] ss:$4 sm:$0xff]  ;;  %vm3391_vm7 = vweird.f32 %v7491_v6  ;;  %v8601_v24 = vadd.f32 1.0, %v7493_v19  ;;  %v3929_v34 = vld [vmem:[#allocation2 + $0x20] ss:$4 sm:$0xff] }
  0xf0   : > { %3807 = vst.msk [vmem:[#allocation2 + $0x40] sm:$0xff] %vm3798_vm6, %v3678_v5  ;;  %v1888_v17 = vmul.f32 %v7487_v54, %v1887_v7  ;;  %v3778_v20 = vmul.f32 %v3383_v14, %v8472_v31  ;;  %v3387_v21 = vsub.f32 1.0, %v3386_v10  ;;  %7498 = vpow2.f32 %v7118_v12  ;;  %vm8618_vm9 = vmor %vm3390_vm4, %vm3391_vm7  ;;  %v4372_v25 = vld [vmem:[#allocation2 + $0x22] ss:$4 sm:$0xff] }
  0xf1   : > { %v8604_v27 = vadd.f32 %v8352_v2, %v948_v13  ;;  %v1897_v31 = vor.u32 1.1754944e-38, %v1896_v56  ;;  %v1909_v33 = vand.u32 2147483647, %v8588_v8  ;;  %v4071_v0 = vpack.c.bf16 %v4010_v47, %v4008_v29  ;;  %v539_v7 = vld [vmem:[%s8285_s27 + $0xf0] sm:$0xff]  ;;  %v540_v45 = vld [vmem:[%s8285_s27 + $0xf8] sm:$0xff] }
  0xf2   : > { %v1889_v23 = vadd.f32 %v7487_v54, %v1888_v17  ;;  %6957 = vmatmul.msk.bf16.gmra.mxu0 %vm712_vm1, %v651_v32  ;;  %3907 = vst.msk [vmem:[#allocation2 + $0x360] sm:$0xff] %vm3798_vm6, %v3778_v20  ;;  %v3388_v30 = vmul.f32 %v7491_v6, %v3387_v21  ;;  %v7495_v36 = vpop.eup %7494  ;;  %v1911_v32 = vand.u32 2147483648, %v8588_v8  ;;  %7500 = vrcp.f32 %v8601_v24 }
  0xf3   : > { %vm8626_vm10 = vcmp.eq.f32.partialorder %v3394_v22, 8.507059e+37  ;;  %v8630_v41 = vadd.f32 1.0, %v7495_v36  ;;  %7135 = vmatmul.msk.bf16.vlgmr.msrb.gmra.mxu1 %vm3798_vm6, %v4071_v0  ;;  %v7019_v44 = vmul.f32 -1.442695, %v8604_v27  ;;  %v3990_v46 = vpack.c.bf16 %v3929_v34, %v3927_v40 }
  0xf4   : > { %v1893_v37 = vsel %vm1892_vm8, %v7487_v54, %v1889_v23  ;;  %v3389_v38 = vadd.f32 %v7491_v6, %v3388_v30  ;;  %vm1905_vm11 = vweird.f32 %v8588_v8  ;;  %vm8639_vm12 = vcmp.eq.f32.partialorder %v1909_v33, 8.507059e+37 }
  0xf5   : > { %v1898_v26 = vsel %vm8576_vm3, %v1897_v31, %v1893_v37  ;;  %v7497_v42 = vpop.eup %7496  ;;  %v1912_v54 = vor.u32 1.1754944e-38, %v1911_v32  ;;  %v3409_v55 = vand.u32 2147483647, %v8601_v24  ;;  %7502 = vrcp.f32 %v8630_v41  ;;  %7151 = vmatmul.msk.bf16.vlgmr.msrb.gmra.mxu2 %vm3798_vm6, %v3990_v46 }
  0xf6   : > { %v3679_v43 = vmul.f32 %v1898_v26, %v8496_v51  ;;  %v3393_v9 = vsel %vm8618_vm9, %v7491_v6, %v3389_v38  ;;  %v1901_v48 = vmul.f32 %v7497_v42, %v8588_v8  ;;  %v7499_v28 = vpop.eup %7498  ;;  %v3411_v58 = vand.u32 2147483648, %v8601_v24 }
  0xf7   : > { %v950_v50 = vpop.f32.mrf.mxu0  ;;  %v3398_v51 = vsel %vm8626_vm10, %v3397_v18, %v3393_v9  ;;  %v8651_v59 = vadd.f32 1.0, %v7499_v28  ;;  %vm1906_vm14 = vweird.f32 %v7497_v42  ;;  %7504 = vpow2.f32 %v7019_v44 }
  0xf8   : > { %3808 = vst.msk [vmem:[#allocation2 + $0x48] sm:$0xff] %vm3798_vm6, %v3679_v43  ;;  %v3779_v56 = vmul.f32 %v3398_v51, %v8499_v52  ;;  %v1902_v57 = vsub.f32 1.0, %v1901_v48  ;;  %v7501_v62 = vpop.eup %7500  ;;  %v8654_v63 = vadd.f32 %v8352_v2, %v1118_v60  ;;  %v4433_v1 = vpack.c.bf16 %v4372_v25, %v4370_v61  ;;  %vm1907_vm3 = vmor %vm1905_vm11, %vm1906_vm14  ;;  %v1120_v25 = vpop.f32.mrf.mxu1 }
  0xf9   : > { %v3401_v52 = vmul.f32 %v7501_v62, %v8601_v24  ;;  %v1924_v6 = vand.u32 2147483647, %v8630_v41  ;;  %v1926_v5 = vand.u32 2147483648, %v8630_v41  ;;  %vm3405_vm15 = vweird.f32 %v8601_v24 }
  0xfa   : > { %3908 = vst.msk [vmem:[#allocation2 + $0x368] sm:$0xff] %vm3798_vm6, %v3779_v56  ;;  %v1903_v3 = vmul.f32 %v7497_v42, %v1902_v57  ;;  %vm3406_vm0 = vweird.f32 %v7501_v62  ;;  %vm8663_vm2 = vcmp.eq.f32.partialorder %v3409_v55, 8.507059e+37  ;;  %7506 = vrcp.f32 %v8651_v59  ;;  %7167 = vmatmul.msk.bf16.vlgmr.msrb.gmra.mxu3 %vm3798_vm6, %v4433_v1 }
  0xfb   : > { %v3402_v13 = vsub.f32 1.0, %v3401_v52  ;;  %v7087_v14 = vmul.f32 -1.442695, %v8654_v63  ;;  %v8671_v17 = vadd.f32 %v8352_v2, %v1198_v11  ;;  %v7503_v47 = vpop.eup %7502  ;;  %v3412_v19 = vor.u32 1.1754944e-38, %v3411_v58  ;;  %vm8690_vm7 = vmor %vm3405_vm15, %vm3406_vm0  ;;  %v1200_v58 = vpop.f32.mrf.mxu3 }
  0xfc   : > { %v1904_v12 = vadd.f32 %v7497_v42, %v1903_v3  ;;  %vm1920_vm4 = vweird.f32 %v8630_v41  ;;  %v8678_v20 = vadd.f32 %v8352_v2, %v950_v50  ;;  %v652_v21 = vpack.c.bf16 %v540_v45, %v539_v7 }
  0xfd   : > { %v3403_v23 = vmul.f32 %v7501_v62, %v3402_v13  ;;  %v1916_v29 = vmul.f32 %v7503_v47, %v8630_v41  ;;  %vm8681_vm5 = vcmp.eq.f32.partialorder %v1924_v6, 8.507059e+37  ;;  %v1927_v30 = vor.u32 1.1754944e-38, %v1926_v5  ;;  %v7505_v0 = vpop.eup %7504 }
  0xfe   : > { %v1908_v22 = vsel %vm1907_vm3, %v7497_v42, %v1904_v12  ;;  %v3424_v36 = vand.u32 2147483647, %v8651_v59  ;;  %7508 = vpow2.f32 %v7087_v14  ;;  %v7119_v37 = vmul.f32 -1.442695, %v8671_v17 }
  0xff   : > { %v953_v33 = vpop.f32.mrf.mxu0  ;;  %v1913_v8 = vsel %vm8639_vm12, %v1912_v54, %v1908_v22  ;;  %v3404_v18 = vadd.f32 %v7501_v62, %v3403_v23  ;;  %v1917_v32 = vsub.f32 1.0, %v1916_v29  ;;  %v8697_v26 = vadd.f32 1.0, %v7505_v0 }
 0x100   : > { %v3680_v16 = vmul.f32 %v1913_v8, %v8522_v15  ;;  %v7507_v38 = vpop.eup %7506  ;;  %v3426_v39 = vand.u32 2147483648, %v8651_v59  ;;  %7510 = vpow2.f32 %v7119_v37  ;;  %v7020_v24 = vmul.f32 -1.442695, %v8678_v20  ;;  %v1123_v37 = vpop.f32.mrf.mxu1 }
 0x101   : > { %v8702_v40 = vadd.f32 %v8352_v2, %v953_v33  ;;  %v3408_v15 = vsel %vm8690_vm7, %v7501_v62, %v3404_v18  ;;  %v1918_v42 = vmul.f32 %v7503_v47, %v1917_v32  ;;  %vm1921_vm8 = vweird.f32 %v7503_v47  ;;  %v8784_v32 = vld [vmem:[%s11978_s2] ss:$0 sm:$0xff] }
 0x102   : > { %6958 = vmatmul.msk.bf16.gmra.mxu0 %vm712_vm1, %v652_v21  ;;  %3809 = vst.msk [vmem:[#allocation2 + $0x50] sm:$0xff] %vm3798_vm6, %v3680_v16  ;;  %v3416_v43 = vmul.f32 %v7507_v38, %v8651_v59  ;;  %v3413_v44 = vsel %vm8663_vm2, %v3412_v19, %v3408_v15  ;;  %vm3420_vm9 = vweird.f32 %v8651_v59  ;;  %vm8712_vm10 = vcmp.eq.f32.partialorder %v3424_v36, 8.507059e+37  ;;  %vm1922_vm12 = vmor %vm1920_vm4, %vm1921_vm8 }
 0x103   : > { %7512 = vrcp.f32 %v8697_v26  ;;  %v3780_v9 = vmul.f32 %v3413_v44, %v8544_v35  ;;  %v1919_v48 = vadd.f32 %v7503_v47, %v1918_v42  ;;  %vm3421_vm11 = vweird.f32 %v7507_v38 }
 0x104   : > { %v3417_v49 = vsub.f32 1.0, %v3416_v43  ;;  %v7509_v50 = vpop.eup %7508  ;;  %v3427_v28 = vor.u32 1.1754944e-38, %v3426_v39  ;;  %7514 = vpow2.f32 %v7020_v24  ;;  %v8721_v51 = vadd.f32 %v8352_v2, %v1120_v25  ;;  %vm8733_vm14 = vmor %vm3420_vm9, %vm3421_vm11 }
 0x105   : > { %v7021_v54 = vmul.f32 -1.442695, %v8702_v40  ;;  %3909 = vst.msk [vmem:[#allocation2 + $0x370] sm:$0xff] %vm3798_vm6, %v3780_v9  ;;  %v1923_v55 = vsel %vm1922_vm12, %v7503_v47, %v1919_v48  ;;  %v1939_v35 = vand.u32 2147483647, %v8697_v26  ;;  %v8726_v57 = vadd.f32 1.0, %v7509_v50 }
 0x106   : > { %v3418_v56 = vmul.f32 %v7507_v38, %v3417_v49  ;;  %v7511_v60 = vpop.eup %7510  ;;  %v1928_v41 = vsel %vm8681_vm5, %v1927_v30, %v1923_v55  ;;  %v7088_v62 = vmul.f32 -1.442695, %v8721_v51  ;;  %v8739_v1 = vadd.f32 %v8352_v2, %v1200_v58 }
 0x107   : > { %7516 = vpow2.f32 %v7021_v54  ;;  %v955_v3 = vpop.f32.mrf.mxu0  ;;  %v3681_v52 = vmul.f32 %v1928_v41, %v8565_v53  ;;  %v1941_v5 = vand.u32 2147483648, %v8697_v26  ;;  %v2959_v59 = vand.u32 2147483647, %v8726_v57 }
 0x108   : > { %v3419_v6 = vadd.f32 %v7507_v38, %v3418_v56  ;;  %7518 = vrcp.f32 %v8726_v57  ;;  %v8745_v45 = vadd.f32 1.0, %v7511_v60  ;;  %v2961_v53 = vand.u32 2147483648, %v8726_v57 }
 0x109   : > { %v7513_v7 = vpop.eup %7512  ;;  %7520 = vpow2.f32 %v7088_v62  ;;  %3810 = vst.msk [vmem:[#allocation2 + $0x58] sm:$0xff] %vm3798_vm6, %v3681_v52  ;;  %v7120_v11 = vmul.f32 -1.442695, %v8739_v1  ;;  %vm1935_vm15 = vweird.f32 %v8697_v26  ;;  %vm8756_vm0 = vcmp.eq.f32.partialorder %v1939_v35, 8.507059e+37 }
 0x10a   : > { %v3423_v2 = vsel %vm8733_vm14, %v7507_v38, %v3419_v6  ;;  %v1931_v10 = vmul.f32 %v7513_v7, %v8697_v26  ;;  %v7515_v12 = vpop.eup %7514  ;;  %7522 = vrcp.f32 %v8745_v45  ;;  %v1942_v21 = vor.u32 1.1754944e-38, %v1941_v5 }
 0x10b   : > { %v3428_v13 = vsel %vm8712_vm10, %v3427_v28, %v3423_v2  ;;  %v3439_v22 = vand.u32 2147483647, %v8745_v45  ;;  %vm1936_vm2 = vweird.f32 %v7513_v7  ;;  %vm2955_vm3 = vweird.f32 %v8726_v57 }
 0x10c   : > { %v3781_v47 = vmul.f32 %v3428_v13, %v8585_v4  ;;  %v1932_v19 = vsub.f32 1.0, %v1931_v10  ;;  %v8764_v29 = vadd.f32 1.0, %v7515_v12  ;;  %7524 = vpow2.f32 %v7120_v11  ;;  %vm1937_vm9 = vmor %vm1935_vm15, %vm1936_vm2 }
 0x10d   : > { %v7517_v23 = vpop.eup %7516  ;;  %vm8767_vm4 = vcmp.eq.f32.partialorder %v2959_v59, 8.507059e+37  ;;  %v2962_v4 = vor.u32 1.1754944e-38, %v2961_v53  ;;  %vm3435_vm5 = vweird.f32 %v8745_v45  ;;  %v3441_v36 = vand.u32 2147483648, %v8745_v45 }
 0x10e   : > { %v7519_v31 = vpop.eup %7518  ;;  %3910 = vst.msk [vmem:[#allocation2 + $0x378] sm:$0xff] %vm3798_vm6, %v3781_v47  ;;  %v1933_v30 = vmul.f32 %v7513_v7, %v1932_v19  ;;  %v8771_v0 = vadd.f32 1.0, %v7517_v23  ;;  %7526 = vrcp.f32 %v8764_v29  ;;  %vm8777_vm8 = vcmp.eq.f32.partialorder %v3439_v22, 8.507059e+37  ;;  %v1203_v47 = vpop.f32.mrf.mxu3 }
 0x10f   : > { %v7521_v8 = vpop.eup %7520  ;;  %v2951_v34 = vmul.f32 %v7519_v31, %v8726_v57  ;;  %vm2956_vm7 = vweird.f32 %v7519_v31  ;;  %v8787_v38 = vadd.f32 %v8784_v32, %v1123_v37  ;;  %v1956_v15 = vand.u32 2147483648, %v8764_v29  ;;  %v8796_v43 = vpop.f32.mrf.mxu0 }
 0x110   : > { %v1934_v16 = vadd.f32 %v7513_v7, %v1933_v30  ;;  %v7523_v39 = vpop.eup %7522  ;;  %v8793_v42 = vadd.f32 1.0, %v7521_v8  ;;  %7528 = vrcp.f32 %v8771_v0  ;;  %v1954_v9 = vand.u32 2147483647, %v8764_v29  ;;  %vm8810_vm10 = vmor %vm2955_vm3, %vm2956_vm7 }
 0x111   : > { %v2952_v24 = vsub.f32 1.0, %v2951_v34  ;;  %v3431_v46 = vmul.f32 %v7523_v39, %v8745_v45  ;;  %v8801_v48 = vadd.f32 %v8784_v32, %v955_v3  ;;  %v3442_v50 = vor.u32 1.1754944e-38, %v3441_v36 }
 0x112   : > { %v1938_v44 = vsel %vm1937_vm9, %v7513_v7, %v1934_v16  ;;  %v7525_v49 = vpop.eup %7524  ;;  %7530 = vrcp.f32 %v8793_v42  ;;  %vm3436_vm11 = vweird.f32 %v7523_v39  ;;  %vm1950_vm12 = vweird.f32 %v8764_v29 }
 0x113   : > { %v1943_v26 = vsel %vm8756_vm0, %v1942_v21, %v1938_v44  ;;  %v2953_v25 = vmul.f32 %v7519_v31, %v2952_v24  ;;  %v3432_v55 = vsub.f32 1.0, %v3431_v46  ;;  %v2974_v56 = vand.u32 2147483647, %v8793_v42  ;;  %vm8834_vm0 = vmor %vm3435_vm5, %vm3436_vm11  ;;  %v1125_v24 = vpop.f32.mrf.mxu1 }
 0x114   : > { %v3682_v28 = vmul.f32 %v1943_v26, %v8604_v27  ;;  %v7527_v35 = vpop.eup %7526  ;;  %v1957_v60 = vor.u32 1.1754944e-38, %v1956_v15  ;;  %v2976_v41 = vand.u32 2147483648, %v8793_v42  ;;  %v8817_v61 = vadd.f32 1.0, %v7525_v49 }
 0x115   : > { %v2954_v58 = vadd.f32 %v7519_v31, %v2953_v25  ;;  %v3433_v27 = vmul.f32 %v7523_v39, %v3432_v55  ;;  %v1946_v57 = vmul.f32 %v7527_v35, %v8764_v29  ;;  %vm8821_vm14 = vcmp.eq.f32.partialorder %v1954_v9, 8.507059e+37 }
 0x116   : > { %3811 = vst.msk [vmem:[#allocation2 + $0x60] sm:$0xff] %vm3798_vm6, %v3682_v28  ;;  %vm2970_vm15 = vweird.f32 %v8793_v42  ;;  %v1969_v3 = vand.u32 2147483647, %v8771_v0  ;;  %v8827_v52 = vpop.eup %7528  ;;  %vm1951_vm2 = vweird.f32 %v7527_v35  ;;  %v8838_v7 = vor.u32 1.1754944e-38, %v2976_v41  ;;  %v542_v41 = vld [vmem:[%s8285_s27 + $0x108] sm:$0xff] }
 0x117   : > { %v2958_v6 = vsel %vm8810_vm10, %v7519_v31, %v2954_v58  ;;  %7532 = vrcp.f32 %v8817_v61  ;;  %vm1965_vm3 = vweird.f32 %v8771_v0  ;;  %v3434_v2 = vadd.f32 %v7523_v39, %v3433_v27  ;;  %v960_v30 = vpop.f32.mrf.mxu0 }
 0x118   : > { %v2963_v59 = vsel %vm8767_vm4, %v2962_v4, %v2958_v6  ;;  %v1947_v10 = vsub.f32 1.0, %v1946_v57  ;;  %vm8844_vm7 = vcmp.eq.f32.partialorder %v2974_v56, 8.507059e+37  ;;  %v3454_v45 = vand.u32 2147483647, %v8817_v61  ;;  %v7531_v11 = vpop.eup %7530 }
 0x119   : > { %v3750_v12 = vmul.f32 %v2963_v59, %v8654_v63  ;;  %vm3450_vm5 = vweird.f32 %v8817_v61  ;;  %v3456_v13 = vand.u32 2147483648, %v8817_v61  ;;  %v1961_v14 = vmul.f32 %v8827_v52, %v8771_v0 }
 0x11a   : > { %v3438_v19 = vsel %vm8834_vm0, %v7523_v39, %v3434_v2  ;;  %v1948_v21 = vmul.f32 %v7527_v35, %v1947_v10  ;;  %v2966_v22 = vmul.f32 %v7531_v11, %v8793_v42  ;;  %vm1966_vm4 = vweird.f32 %v8827_v52 }
 0x11b   : > { %3879 = vst.msk [vmem:[#allocation2 + $0x280] sm:$0xff] %vm3798_vm6, %v3750_v12  ;;  %v3443_v63 = vsel %vm8777_vm8, %v3442_v50, %v3438_v19  ;;  %vm2971_vm9 = vweird.f32 %v7531_v11  ;;  %v8861_v23 = vor.u32 1.1754944e-38, %v3456_v13  ;;  %v1962_v31 = vsub.f32 1.0, %v1961_v14  ;;  %vm1952_vm8 = vmor %vm1950_vm12, %vm1951_vm2 }
 0x11c   : > { %v3782_v33 = vmul.f32 %v3443_v63, %v8671_v17  ;;  %v1949_v4 = vadd.f32 %v7527_v35, %v1948_v21  ;;  %v2967_v8 = vsub.f32 1.0, %v2966_v22  ;;  %vm8864_vm10 = vcmp.eq.f32.partialorder %v3454_v45, 8.507059e+37  ;;  %vm8888_vm12 = vmor %vm2970_vm15, %vm2971_vm9 }
 0x11d   : > { %vm8868_vm11 = vcmp.eq.f32.partialorder %v1969_v3, 8.507059e+37  ;;  %v7533_v37 = vpop.eup %7532  ;;  %v1963_v16 = vmul.f32 %v8827_v52, %v1962_v31  ;;  %v1971_v18 = vand.u32 2147483648, %v8771_v0  ;;  %v7089_v17 = vmul.f32 -1.442695, %v8787_v38  ;;  %v1205_v3 = vpop.f32.mrf.mxu3 }
 0x11e   : > { %v8879_v39 = vadd.f32 %v8784_v32, %v1203_v47  ;;  %3911 = vst.msk [vmem:[#allocation2 + $0x380] sm:$0xff] %vm3798_vm6, %v3782_v33  ;;  %v1953_v15 = vsel %vm1952_vm8, %v7527_v35, %v1949_v4  ;;  %v2968_v44 = vmul.f32 %v7531_v11, %v2967_v8  ;;  %v3446_v46 = vmul.f32 %v7533_v37, %v8817_v61 }
 0x11f   : > { %vm3451_vm0 = vweird.f32 %v7533_v37  ;;  %v1958_v29 = vsel %vm8821_vm14, %v1957_v60, %v1953_v15  ;;  %v1964_v49 = vadd.f32 %v8827_v52, %v1963_v16  ;;  %v1972_v26 = vor.u32 1.1754944e-38, %v1971_v18  ;;  %vm1967_vm14 = vmor %vm1965_vm3, %vm1966_vm4  ;;  %v541_v60 = vld [vmem:[%s8285_s27 + $0x100] sm:$0xff] }
 0x120   : > { %7534 = vpow2.f32 %v7089_v17  ;;  %v3683_v25 = vmul.f32 %v1958_v29, %v8678_v20  ;;  %v2969_v50 = vadd.f32 %v7531_v11, %v2968_v44  ;;  %v3447_v28 = vsub.f32 1.0, %v3446_v46  ;;  %vm8921_vm15 = vmor %vm3450_vm5, %vm3451_vm0 }
 0x121   : > { %v7121_v42 = vmul.f32 -1.442695, %v8879_v39  ;;  %v1968_v54 = vsel %vm1967_vm14, %v8827_v52, %v1964_v49  ;;  %v7022_v55 = vmul.f32 -1.442695, %v8801_v48  ;;  %v8902_v56 = vadd.f32 %v8784_v32, %v1125_v24 }
 0x122   : > { %v8906_v35 = vadd.f32 %v8784_v32, %v8796_v43  ;;  %3812 = vst.msk [vmem:[#allocation2 + $0x68] sm:$0xff] %vm3798_vm6, %v3683_v25  ;;  %v2973_v20 = vsel %vm8888_vm12, %v7531_v11, %v2969_v50  ;;  %v3448_v0 = vmul.f32 %v7533_v37, %v3447_v28  ;;  %v1973_v58 = vsel %vm8868_vm11, %v1972_v26, %v1968_v54  ;;  %v1128_v11 = vpop.f32.mrf.mxu1  ;;  %v1158_v28 = vpop.f32.mrf.mxu2 }
 0x123   : > { %7536 = vpow2.f32 %v7121_v42  ;;  %v2978_v27 = vsel %vm8844_vm7, %v8838_v7, %v2973_v20  ;;  %v3684_v57 = vmul.f32 %v1973_v58, %v8702_v40  ;;  %v7090_v62 = vmul.f32 -1.442695, %v8902_v56  ;;  %v963_v40 = vpop.f32.mrf.mxu0 }
 0x124   : > { %7538 = vpow2.f32 %v7022_v55  ;;  %v3751_v52 = vmul.f32 %v2978_v27, %v8721_v51  ;;  %v3449_v6 = vadd.f32 %v7533_v37, %v3448_v0  ;;  %v8929_v5 = vadd.f32 %v8784_v32, %v1205_v3 }
 0x125   : > { %v7023_v7 = vmul.f32 -1.442695, %v8906_v35  ;;  %3813 = vst.msk [vmem:[#allocation2 + $0x70] sm:$0xff] %vm3798_vm6, %v3684_v57  ;;  %7540 = vpow2.f32 %v7090_v62  ;;  %v653_v61 = vpack.c.bf16 %v542_v41, %v541_v60  ;;  %v8934_v2 = vadd.f32 %v8784_v32, %v960_v30 }
 0x126   : > { %v7535_v59 = vpop.eup %7534  ;;  %3880 = vst.msk [vmem:[#allocation2 + $0x288] sm:$0xff] %vm3798_vm6, %v3751_v52  ;;  %v3453_v51 = vsel %vm8921_vm15, %v7533_v37, %v3449_v6  ;;  %v7122_v53 = vmul.f32 -1.442695, %v8929_v5  ;;  %v8946_v14 = vadd.f32 %v8784_v32, %v1128_v11  ;;  %v8949_v47 = vadd.f32 %v8784_v32, %v963_v40 }
 0x127   : > { %v1704_v10 = vadd.f32 1.0, %v7535_v59  ;;  %7542 = vpow2.f32 %v7023_v7  ;;  %v3458_v45 = vsel %vm8864_vm10, %v8861_v23, %v3453_v51  ;;  %6959 = vmatmul.msk.bf16.gmra.mxu0 %vm712_vm1, %v653_v61  ;;  %v7024_v31 = vmul.f32 -1.442695, %v8934_v2 }
 0x128   : > { %v3783_v13 = vmul.f32 %v3458_v45, %v8739_v1  ;;  %v7091_v4 = vmul.f32 -1.442695, %v8946_v14  ;;  %v8962_v8 = vmul.f32 -1.442695, %v8949_v47  ;;  %v8989_v0 = vadd.f32 %v8784_v32, %v1158_v28 }
 0x129   : > { %v7537_v12 = vpop.eup %7536  ;;  %7544 = vrcp.f32 %v1704_v10  ;;  %v2989_v21 = vand.u32 2147483647, %v1704_v10  ;;  %v2991_v63 = vand.u32 2147483648, %v1704_v10  ;;  %vm2985_vm2 = vweird.f32 %v1704_v10 }
 0x12a   : > { %v7539_v19 = vpop.eup %7538  ;;  %v8951_v22 = vadd.f32 1.0, %v7537_v12  ;;  %7546 = vpow2.f32 %v7122_v53  ;;  %3912 = vst.msk [vmem:[#allocation2 + $0x388] sm:$0xff] %vm3798_vm6, %v3783_v13 }
 0x12b   : > { %v8954_v23 = vadd.f32 1.0, %v7539_v19  ;;  %v7541_v1 = vpop.eup %7540  ;;  %vm8964_vm3 = vcmp.eq.f32.partialorder %v2989_v21, 8.507059e+37  ;;  %v2992_v18 = vor.u32 1.1754944e-38, %v2991_v63 }
 0x12c   : > { %7548 = vrcp.f32 %v8951_v22  ;;  %v3469_v33 = vand.u32 2147483647, %v8951_v22  ;;  %v8968_v36 = vadd.f32 1.0, %v7541_v1  ;;  %v3471_v17 = vand.u32 2147483648, %v8951_v22 }
 0x12d   : > { %v7543_v30 = vpop.eup %7542  ;;  %7550 = vrcp.f32 %v8954_v23  ;;  %v1986_v24 = vand.u32 2147483648, %v8954_v23  ;;  %vm3465_vm7 = vweird.f32 %v8951_v22  ;;  %v1984_v46 = vand.u32 2147483647, %v8954_v23 }
 0x12e   : > { %v8970_v37 = vadd.f32 1.0, %v7543_v30  ;;  %7552 = vpow2.f32 %v7024_v31  ;;  %vm8977_vm5 = vcmp.eq.f32.partialorder %v3469_v33, 8.507059e+37  ;;  %v3004_v9 = vand.u32 2147483647, %v8968_v36 }
 0x12f   : > { %v7545_v16 = vpop.eup %7544  ;;  %7554 = vrcp.f32 %v8968_v36  ;;  %vm1980_vm9 = vweird.f32 %v8954_v23  ;;  %v3006_v50 = vand.u32 2147483648, %v8968_v36  ;;  %v3472_v55 = vor.u32 1.1754944e-38, %v3471_v17 }
 0x130   : > { %v7547_v15 = vpop.eup %7546  ;;  %v2981_v44 = vmul.f32 %v7545_v16, %v1704_v10  ;;  %7556 = vpow2.f32 %v7091_v4  ;;  %vm2986_vm4 = vweird.f32 %v7545_v16  ;;  %v1987_v20 = vor.u32 1.1754944e-38, %v1986_v24 }
 0x131   : > { %v8982_v49 = vadd.f32 1.0, %v7547_v15  ;;  %7558 = vrcp.f32 %v8970_v37  ;;  %vm8992_vm10 = vcmp.eq.f32.partialorder %v1984_v46, 8.507059e+37  ;;  %vm3000_vm11 = vweird.f32 %v8968_v36  ;;  %vm9002_vm8 = vmor %vm2985_vm2, %vm2986_vm4 }
 0x132   : > { %v7549_v26 = vpop.eup %7548  ;;  %v2982_v25 = vsub.f32 1.0, %v2981_v44  ;;  %vm9006_vm12 = vcmp.eq.f32.partialorder %v3004_v9, 8.507059e+37  ;;  %v1999_v3 = vand.u32 2147483647, %v8970_v37  ;;  %v3007_v59 = vor.u32 1.1754944e-38, %v3006_v50  ;;  %v1208_v50 = vpop.f32.mrf.mxu3 }
 0x133   : > { %v7551_v42 = vpop.eup %7550  ;;  %v3461_v54 = vmul.f32 %v7549_v26, %v8951_v22  ;;  %7560 = vrcp.f32 %v8982_v49  ;;  %vm3466_vm0 = vweird.f32 %v7549_v26  ;;  %vm3480_vm15 = vweird.f32 %v8982_v49 }
 0x134   : > { %v2983_v58 = vmul.f32 %v7545_v16, %v2982_v25  ;;  %v1976_v60 = vmul.f32 %v7551_v42, %v8954_v23  ;;  %v8998_v27 = vpop.eup %7552  ;;  %vm1981_vm14 = vweird.f32 %v7551_v42  ;;  %v3484_v10 = vand.u32 2147483647, %v8982_v49  ;;  %vm9021_vm2 = vmor %vm3465_vm7, %vm3466_vm0 }
 0x135   : > { %v3462_v57 = vsub.f32 1.0, %v3461_v54  ;;  %v7555_v52 = vpop.eup %7554  ;;  %v3486_v13 = vand.u32 2147483648, %v8982_v49  ;;  %vm1995_vm13 = vweird.f32 %v8970_v37  ;;  %vm9032_vm7 = vcmp.eq.f32.partialorder %v1999_v3, 8.507059e+37 }
 0x136   : > { %v2984_v6 = vadd.f32 %v7545_v16, %v2983_v58  ;;  %v1977_v7 = vsub.f32 1.0, %v1976_v60  ;;  %v7557_v61 = vpop.eup %7556  ;;  %v2996_v51 = vmul.f32 %v7555_v52, %v8968_v36  ;;  %vm3001_vm4 = vweird.f32 %v7555_v52 }
 0x137   : > { %v3463_v40 = vmul.f32 %v7549_v26, %v3462_v57  ;;  %v9014_v53 = vpop.eup %7558  ;;  %v2001_v4 = vand.u32 2147483648, %v8970_v37  ;;  %vm9051_vm0 = vmor %vm3000_vm11, %vm3001_vm4  ;;  %v7103_v54 = vmul.f32 -1.442695, %v8989_v0  ;;  %v9082_v60 = vadd.f32 %v8784_v32, %v1208_v50 }
 0x138   : > { %v2988_v45 = vsel %vm9002_vm8, %v7545_v16, %v2984_v6  ;;  %v1978_v12 = vmul.f32 %v7551_v42, %v1977_v7  ;;  %v2997_v63 = vsub.f32 1.0, %v2996_v51  ;;  %v1991_v31 = vmul.f32 %v9014_v53, %v8970_v37  ;;  %v965_v6 = vpop.f32.mrf.mxu0 }
 0x139   : > { %v2993_v19 = vsel %vm8964_vm3, %v2992_v18, %v2988_v45  ;;  %v3464_v21 = vadd.f32 %v7549_v26, %v3463_v40  ;;  %v7561_v1 = vpop.eup %7560  ;;  %v9037_v16 = vadd.f32 1.0, %v7557_v61  ;;  %vm1982_vm3 = vmor %vm1980_vm9, %vm1981_vm14  ;;  %vm1996_vm9 = vweird.f32 %v9014_v53 }
 0x13a   : > { %v3752_v22 = vmul.f32 %v2993_v19, %v8787_v38  ;;  %v1979_v30 = vadd.f32 %v7551_v42, %v1978_v12  ;;  %v2998_v18 = vmul.f32 %v7555_v52, %v2997_v63  ;;  %v3476_v17 = vmul.f32 %v7561_v1, %v8982_v49  ;;  %vm1997_vm11 = vmor %vm1995_vm13, %vm1996_vm9  ;;  %v1130_v49 = vpop.f32.mrf.mxu1  ;;  %v1160_v12 = vpop.f32.mrf.mxu2 }
 0x13b   : > { %v3468_v34 = vsel %vm9021_vm2, %v7549_v26, %v3464_v21  ;;  %vm3481_vm8 = vweird.f32 %v7561_v1  ;;  %v1992_v44 = vsub.f32 1.0, %v1991_v31  ;;  %7562 = vrcp.f32 %v9037_v16 }
 0x13c   : > { %3881 = vst.msk [vmem:[#allocation2 + $0x290] sm:$0xff] %vm3798_vm6, %v3752_v22  ;;  %v3473_v38 = vsel %vm8977_vm5, %v3472_v55, %v3468_v34  ;;  %v1983_v24 = vsel %vm1982_vm3, %v7551_v42, %v1979_v30  ;;  %v2999_v9 = vadd.f32 %v7555_v52, %v2998_v18  ;;  %v3477_v26 = vsub.f32 1.0, %v3476_v17 }
 0x13d   : > { %v3784_v23 = vmul.f32 %v3473_v38, %v8879_v39  ;;  %v1988_v46 = vsel %vm8992_vm10, %v1987_v20, %v1983_v24  ;;  %vm9060_vm5 = vcmp.eq.f32.partialorder %v3484_v10, 8.507059e+37  ;;  %v1993_v36 = vmul.f32 %v9014_v53, %v1992_v44  ;;  %vm9076_vm10 = vmor %vm3480_vm15, %vm3481_vm8  ;;  %v543_v10 = vld [vmem:[%s8285_s27 + $0x110] sm:$0xff] }
 0x13e   : > { %v3685_v29 = vmul.f32 %v1988_v46, %v8801_v48  ;;  %v3003_v39 = vsel %vm9051_vm0, %v7555_v52, %v2999_v9  ;;  %v3478_v28 = vmul.f32 %v7561_v1, %v3477_v26  ;;  %v3487_v42 = vor.u32 1.1754944e-38, %v3486_v13 }
 0x13f   : > { %3913 = vst.msk [vmem:[#allocation2 + $0x390] sm:$0xff] %vm3798_vm6, %v3784_v23  ;;  %v3008_v48 = vsel %vm9006_vm12, %v3007_v59, %v3003_v39  ;;  %v1994_v20 = vadd.f32 %v9014_v53, %v1993_v36  ;;  %v2002_v58 = vor.u32 1.1754944e-38, %v2001_v4  ;;  %vm3015_vm12 = vweird.f32 %v9037_v16 }
 0x140   : > { %3814 = vst.msk [vmem:[#allocation2 + $0x78] sm:$0xff] %vm3798_vm6, %v3685_v29  ;;  %v3753_v41 = vmul.f32 %v3008_v48, %v8902_v56  ;;  %v3479_v43 = vadd.f32 %v7561_v1, %v3478_v28  ;;  %7564 = vpow2.f32 %v7103_v54  ;;  %v7123_v3 = vmul.f32 -1.442695, %v9082_v60  ;;  %v968_v29 = vpop.f32.mrf.mxu0 }
 0x141   : > { %v7563_v57 = vpop.eup %7562  ;;  %v1998_v62 = vsel %vm1997_vm11, %v9014_v53, %v1994_v20  ;;  %v9093_v52 = vadd.f32 1.0, %v8998_v27  ;;  %v9096_v56 = vadd.f32 %v8784_v32, %v1130_v49  ;;  %v3021_v61 = vand.u32 2147483648, %v9037_v16  ;;  %v544_v53 = vld [vmem:[%s8285_s27 + $0x118] sm:$0xff] }
 0x142   : > { %3882 = vst.msk [vmem:[#allocation2 + $0x298] sm:$0xff] %vm3798_vm6, %v3753_v41  ;;  %v3483_v37 = vsel %vm9076_vm10, %v7561_v1, %v3479_v43  ;;  %v2003_v7 = vsel %vm9032_vm7, %v2002_v58, %v1998_v62  ;;  %v3011_v59 = vmul.f32 %v7563_v57, %v9037_v16  ;;  %v3019_v51 = vand.u32 2147483647, %v9037_v16 }
 0x143   : > { %v3488_v27 = vsel %vm9060_vm5, %v3487_v42, %v3483_v37  ;;  %v3686_v40 = vmul.f32 %v2003_v7, %v8906_v35  ;;  %7566 = vpow2.f32 %v7123_v3  ;;  %vm3016_vm13 = vweird.f32 %v7563_v57  ;;  %v1133_v3 = vpop.f32.mrf.mxu1 }
 0x144   : > { %v3785_v45 = vmul.f32 %v3488_v27, %v8929_v5  ;;  %v3012_v11 = vsub.f32 1.0, %v3011_v59  ;;  %7568 = vrcp.f32 %v9093_v52  ;;  %v7092_v13 = vmul.f32 -1.442695, %v9096_v56  ;;  %vm9122_vm14 = vmor %vm3015_vm12, %vm3016_vm13 }
 0x145   : > { %3815 = vst.msk [vmem:[#allocation2 + $0x80] sm:$0xff] %vm3798_vm6, %v3686_v40  ;;  %v9116_v19 = vadd.f32 %v8784_v32, %v1160_v12  ;;  %7570 = vpow2.f32 %v8962_v8  ;;  %v3022_v63 = vor.u32 1.1754944e-38, %v3021_v61  ;;  %v654_v5 = vpack.c.bf16 %v544_v53, %v543_v10  ;;  %v1210_v8 = vpop.f32.mrf.mxu3 }
 0x146   : > { %v7565_v35 = vpop.eup %7564  ;;  %3914 = vst.msk [vmem:[#allocation2 + $0x398] sm:$0xff] %vm3798_vm6, %v3785_v45  ;;  %v3013_v21 = vmul.f32 %v7563_v57, %v3012_v11  ;;  %v2014_v22 = vand.u32 2147483647, %v9093_v52  ;;  %7572 = vpow2.f32 %v7092_v13  ;;  %vm3020_vm15 = vcmp.eq.f32.partialorder %v3019_v51, 8.507059e+37 }
 0x147   : > { %v9126_v1 = vadd.f32 1.0, %v7565_v35  ;;  %v7104_v30 = vmul.f32 -1.442695, %v9116_v19  ;;  %v2016_v4 = vand.u32 2147483648, %v9093_v52  ;;  %v9132_v34 = vadd.f32 %v8784_v32, %v1210_v8  ;;  %6960 = vmatmul.msk.bf16.gmra.mxu0 %vm712_vm1, %v654_v5 }
 0x148   : > { %v3014_v33 = vadd.f32 %v7563_v57, %v3013_v21  ;;  %vm2010_vm2 = vweird.f32 %v9093_v52  ;;  %v9138_v18 = vadd.f32 %v8784_v32, %v965_v6  ;;  %vm9147_vm4 = vcmp.eq.f32.partialorder %v2014_v22, 8.507059e+37 }
 0x149   : > { %v7567_v16 = vpop.eup %7566  ;;  %7574 = vrcp.f32 %v9126_v1  ;;  %v7124_v15 = vmul.f32 -1.442695, %v9132_v34  ;;  %v3199_v46 = vand.u32 2147483647, %v9126_v1  ;;  %v3201_v36 = vand.u32 2147483648, %v9126_v1 }
 0x14a   : > { %v7569_v17 = vpop.eup %7568  ;;  %v3018_v38 = vsel %vm9122_vm14, %v7563_v57, %v3014_v33  ;;  %v9142_v24 = vadd.f32 1.0, %v7567_v16  ;;  %7576 = vpow2.f32 %v7104_v30  ;;  %v2017_v50 = vor.u32 1.1754944e-38, %v2016_v4 }
 0x14b   : > { %v7571_v44 = vpop.eup %7570  ;;  %v3023_v23 = vsel %vm3020_vm15, %v3022_v63, %v3018_v38  ;;  %v2006_v9 = vmul.f32 %v7569_v17, %v9093_v52  ;;  %v7026_v54 = vmul.f32 -1.442695, %v9138_v18  ;;  %vm3195_vm7 = vweird.f32 %v9126_v1  ;;  %v1135_v16 = vpop.f32.mrf.mxu1 }
 0x14c   : > { %v3754_v25 = vmul.f32 %v3023_v23, %v8946_v14  ;;  %7578 = vrcp.f32 %v9142_v24  ;;  %v7573_v39 = vpop.eup %7572  ;;  %v3499_v28 = vand.u32 2147483647, %v9142_v24  ;;  %v3501_v48 = vand.u32 2147483648, %v9142_v24 }
 0x14d   : > { %v2007_v42 = vsub.f32 1.0, %v2006_v9  ;;  %7580 = vpow2.f32 %v7124_v15  ;;  %v9158_v55 = vadd.f32 1.0, %v7573_v39  ;;  %v9160_v20 = vadd.f32 1.0, %v7571_v44 }
 0x14e   : > { %3883 = vst.msk [vmem:[#allocation2 + $0x2a0] sm:$0xff] %vm3798_vm6, %v3754_v25  ;;  %v9163_v14 = vadd.f32 %v8784_v32, %v968_v29  ;;  %vm9166_vm3 = vcmp.eq.f32.partialorder %v3199_v46, 8.507059e+37  ;;  %vm2011_vm8 = vweird.f32 %v7569_v17  ;;  %v3202_v62 = vor.u32 1.1754944e-38, %v3201_v36 }
 0x14f   : > { %v7575_v58 = vpop.eup %7574  ;;  %v2008_v43 = vmul.f32 %v7569_v17, %v2007_v42  ;;  %vm3495_vm0 = vweird.f32 %v9142_v24  ;;  %7582 = vrcp.f32 %v9158_v55  ;;  %vm9173_vm5 = vcmp.eq.f32.partialorder %v3499_v28, 8.507059e+37  ;;  %vm2012_vm10 = vmor %vm2010_vm2, %vm2011_vm8 }
 0x150   : > { %v7577_v49 = vpop.eup %7576  ;;  %v3191_v57 = vmul.f32 %v7575_v58, %v9126_v1  ;;  %v9180_v59 = vadd.f32 %v8784_v32, %v1133_v3  ;;  %7584 = vpow2.f32 %v7026_v54  ;;  %vm3196_vm9 = vweird.f32 %v7575_v58 }
 0x151   : > { %v2009_v37 = vadd.f32 %v7569_v17, %v2008_v43  ;;  %v9177_v7 = vadd.f32 1.0, %v7577_v49  ;;  %v3502_v40 = vor.u32 1.1754944e-38, %v3501_v48  ;;  %7586 = vrcp.f32 %v9160_v20  ;;  %vm9195_vm12 = vmor %vm3195_vm7, %vm3196_vm9 }
 0x152   : > { %v7579_v61 = vpop.eup %7578  ;;  %v3192_v27 = vsub.f32 1.0, %v3191_v57  ;;  %v3034_v45 = vand.u32 2147483647, %v9158_v55  ;;  %v3036_v11 = vand.u32 2147483648, %v9158_v55  ;;  %vm3030_vm11 = vweird.f32 %v9158_v55  ;;  %v1163_v57 = vpop.f32.mrf.mxu2 }
 0x153   : > { %v7581_v51 = vpop.eup %7580  ;;  %v3491_v10 = vmul.f32 %v7579_v61, %v9142_v24  ;;  %v2013_v53 = vsel %vm2012_vm10, %v7569_v17, %v2009_v37  ;;  %7588 = vrcp.f32 %v9177_v7  ;;  %vm3496_vm13 = vweird.f32 %v7579_v61 }
 0x154   : > { %v3193_v12 = vmul.f32 %v7575_v58, %v3192_v27  ;;  %v2018_v13 = vsel %vm9147_vm4, %v2017_v50, %v2013_v53  ;;  %v3214_v63 = vand.u32 2147483647, %v9177_v7  ;;  %v3216_v22 = vand.u32 2147483648, %v9177_v7  ;;  %vm9216_vm15 = vmor %vm3495_vm0, %vm3496_vm13 }
 0x155   : > { %v3492_v35 = vsub.f32 1.0, %v3491_v10  ;;  %v3687_v21 = vmul.f32 %v2018_v13, %v8934_v2  ;;  %v7583_v5 = vpop.eup %7582  ;;  %v9202_v30 = vadd.f32 1.0, %v7581_v51  ;;  %v2029_v8 = vand.u32 2147483647, %v9160_v20 }
 0x156   : > { %v3194_v31 = vadd.f32 %v7575_v58, %v3193_v12  ;;  %v7585_v33 = vpop.eup %7584  ;;  %v3026_v4 = vmul.f32 %v7583_v5, %v9158_v55  ;;  %vm9207_vm14 = vcmp.eq.f32.partialorder %v3034_v45, 8.507059e+37  ;;  %v3037_v2 = vor.u32 1.1754944e-38, %v3036_v11 }
 0x157   : > { %v3493_v1 = vmul.f32 %v7579_v61, %v3492_v35  ;;  %3816 = vst.msk [vmem:[#allocation2 + $0x88] sm:$0xff] %vm3798_vm6, %v3687_v21  ;;  %v7587_v17 = vpop.eup %7586  ;;  %vm3031_vm2 = vweird.f32 %v7583_v5  ;;  %vm3210_vm4 = vweird.f32 %v9177_v7  ;;  %7590 = vrcp.f32 %v9202_v30 }
 0x158   : > { %v3198_v38 = vsel %vm9195_vm12, %v7575_v58, %v3194_v31  ;;  %vm2025_vm7 = vweird.f32 %v9160_v20  ;;  %v3027_v46 = vsub.f32 1.0, %v3026_v4  ;;  %vm9225_vm8 = vcmp.eq.f32.partialorder %v3214_v63, 8.507059e+37  ;;  %v4014_v31 = vld [vmem:[#allocation2 + $0x61] ss:$4 sm:$0xff] }
 0x159   : > { %v3203_v44 = vsel %vm9166_vm3, %v3202_v62, %v3198_v38  ;;  %v3494_v23 = vadd.f32 %v7579_v61, %v3493_v1  ;;  %v3217_v24 = vor.u32 1.1754944e-38, %v3216_v22  ;;  %v7589_v26 = vpop.eup %7588  ;;  %vm3510_vm0 = vweird.f32 %v9202_v30  ;;  %vm9243_vm3 = vmor %vm3030_vm11, %vm3031_vm2 }
 0x15a   : > { %v3766_v29 = vmul.f32 %v3203_v44, %v8989_v0  ;;  %v3514_v25 = vand.u32 2147483647, %v9202_v30  ;;  %v2021_v36 = vmul.f32 %v7587_v17, %v9160_v20  ;;  %v3028_v39 = vmul.f32 %v7583_v5, %v3027_v46  ;;  %v4012_v44 = vld [vmem:[#allocation2 + $0x41] ss:$4 sm:$0xff] }
 0x15b   : > { %v3498_v50 = vsel %vm9216_vm15, %v7579_v61, %v3494_v23  ;;  %v3206_v28 = vmul.f32 %v7589_v26, %v9177_v7  ;;  %v3516_v42 = vand.u32 2147483648, %v9202_v30  ;;  %vm3211_vm9 = vweird.f32 %v7589_v26  ;;  %v1213_v7 = vpop.f32.mrf.mxu3  ;;  %v3933_v23 = vld [vmem:[#allocation2 + $0x60] ss:$4 sm:$0xff] }
 0x15c   : > { %3895 = vst.msk [vmem:[#allocation2 + $0x300] sm:$0xff] %vm3798_vm6, %v3766_v29  ;;  %v3503_v54 = vsel %vm9173_vm5, %v3502_v40, %v3498_v50  ;;  %v2022_v48 = vsub.f32 1.0, %v2021_v36  ;;  %vm2026_vm10 = vweird.f32 %v7587_v17  ;;  %v3029_v41 = vadd.f32 %v7583_v5, %v3028_v39  ;;  %vm9264_vm11 = vmor %vm3210_vm4, %vm3211_vm9  ;;  %v1165_v50 = vpop.f32.mrf.mxu2 }
 0x15d   : > { %v3786_v58 = vmul.f32 %v3503_v54, %v9082_v60  ;;  %v3207_v43 = vsub.f32 1.0, %v3206_v28  ;;  %v2031_v49 = vand.u32 2147483648, %v9160_v20  ;;  %v7591_v62 = vpop.eup %7590  ;;  %v7093_v6 = vmul.f32 -1.442695, %v9180_v59  ;;  %vm2027_vm12 = vmor %vm2025_vm7, %vm2026_vm10  ;;  %v545_v20 = vld [vmem:[%s8285_s27 + $0x120] sm:$0xff] }
 0x15e   : > { %v2023_v3 = vmul.f32 %v7587_v17, %v2022_v48  ;;  %v9251_v55 = vadd.f32 %v8784_v32, %v1163_v57  ;;  %v9253_v37 = vadd.f32 1.0, %v7585_v33  ;;  %v3033_v61 = vsel %vm9243_vm3, %v7583_v5, %v3029_v41  ;;  %v546_v5 = vld [vmem:[%s8285_s27 + $0x128] sm:$0xff] }
 0x15f   : > { %3915 = vst.msk [vmem:[#allocation2 + $0x3a0] sm:$0xff] %vm3798_vm6, %v3786_v58  ;;  %v3208_v60 = vmul.f32 %v7589_v26, %v3207_v43  ;;  %v3506_v27 = vmul.f32 %v7591_v62, %v9202_v30  ;;  %vm3511_vm5 = vweird.f32 %v7591_v62  ;;  %v3038_v40 = vsel %vm9207_vm14, %v3037_v2, %v3033_v61  ;;  %v9293_v2 = vpop.f32.mrf.mxu0  ;;  %v4376_v48 = vld [vmem:[#allocation2 + $0x62] ss:$4 sm:$0xff] }
 0x160   : > { %v2024_v10 = vadd.f32 %v7587_v17, %v2023_v3  ;;  %v2032_v53 = vor.u32 1.1754944e-38, %v2031_v49  ;;  %7592 = vpow2.f32 %v7093_v6  ;;  %v3755_v45 = vmul.f32 %v3038_v40, %v9096_v56  ;;  %vm9287_vm14 = vmor %vm3510_vm0, %vm3511_vm5 }
 0x161   : > { %v3209_v11 = vadd.f32 %v7589_v26, %v3208_v60  ;;  %v3507_v12 = vsub.f32 1.0, %v3506_v27  ;;  %v7105_v13 = vmul.f32 -1.442695, %v9251_v55  ;;  %vm2030_vm13 = vcmp.eq.f32.partialorder %v2029_v8, 8.507059e+37 }
 0x162   : > { %v2028_v52 = vsel %vm2027_vm12, %v7587_v17, %v2024_v10  ;;  %v9274_v35 = vadd.f32 %v8784_v32, %v1213_v7  ;;  %7594 = vrcp.f32 %v9253_v37  ;;  %3884 = vst.msk [vmem:[#allocation2 + $0x2a8] sm:$0xff] %vm3798_vm6, %v3755_v45  ;;  %v3517_v33 = vor.u32 1.1754944e-38, %v3516_v42 }
 0x163   : > { %v3213_v56 = vsel %vm9264_vm11, %v7589_v26, %v3209_v11  ;;  %v3508_v21 = vmul.f32 %v7591_v62, %v3507_v12  ;;  %v2033_v63 = vsel %vm2030_vm13, %v2032_v53, %v2028_v52  ;;  %7596 = vpow2.f32 %v7105_v13  ;;  %v3931_v26 = vld [vmem:[#allocation2 + $0x40] ss:$4 sm:$0xff]  ;;  %v1215_v45 = vpop.f32.mrf.mxu3 }
 0x164   : > { %v3218_v22 = vsel %vm9225_vm8, %v3217_v24, %v3213_v56  ;;  %v3688_v1 = vmul.f32 %v2033_v63, %v8949_v47  ;;  %v7125_v4 = vmul.f32 -1.442695, %v9274_v35  ;;  %vm9296_vm15 = vcmp.eq.f32.partialorder %v3514_v25, 8.507059e+37 }
 0x165   : > { %v3767_v17 = vmul.f32 %v3218_v22, %v9116_v19  ;;  %v3509_v38 = vadd.f32 %v7591_v62, %v3508_v21  ;;  %v9301_v30 = vadd.f32 %v8784_v32, %v1135_v16  ;;  %v7027_v47 = vmul.f32 -1.442695, %v9163_v14  ;;  %v1168_v22 = vpop.f32.mrf.mxu2 }
 0x166   : > { %v7593_v46 = vpop.eup %7592  ;;  %3817 = vst.msk [vmem:[#allocation2 + $0x90] sm:$0xff] %vm3798_vm6, %v3688_v1  ;;  %7598 = vpow2.f32 %v7125_v4  ;;  %v655_v9 = vpack.c.bf16 %v546_v5, %v545_v20  ;;  %v4072_v24 = vpack.c.bf16 %v4014_v31, %v4012_v44  ;;  %v2044_v25 = vand.u32 2147483647, %v9253_v37 }
 0x167   : > { %3896 = vst.msk [vmem:[#allocation2 + $0x308] sm:$0xff] %vm3798_vm6, %v3767_v17  ;;  %v3513_v19 = vsel %vm9287_vm14, %v7591_v62, %v3509_v38  ;;  %v9308_v29 = vadd.f32 1.0, %v7593_v46  ;;  %v7094_v36 = vmul.f32 -1.442695, %v9301_v30  ;;  %v2046_v42 = vand.u32 2147483648, %v9253_v37  ;;  %v973_v12 = vpop.f32.mrf.mxu0 }
 0x168   : > { %v9312_v39 = vpop.eup %7594  ;;  %v3518_v28 = vsel %vm9296_vm15, %v3517_v33, %v3513_v19  ;;  %v9318_v54 = vadd.f32 %v8784_v32, %v1165_v50  ;;  %6961 = vmatmul.msk.bf16.gmra.mxu0 %vm712_vm1, %v655_v9  ;;  %7136 = vmatmul.msk.bf16.gmra.mxu1 %vm3798_vm6, %v4072_v24  ;;  %v3991_v0 = vpack.c.bf16 %v3933_v23, %v3931_v26  ;;  %v4374_v62 = vld [vmem:[#allocation2 + $0x42] ss:$4 sm:$0xff]  ;;  %vm2040_vm2 = vweird.f32 %v9253_v37 }
 0x169   : > { %v7597_v58 = vpop.eup %7596  ;;  %v3787_v41 = vmul.f32 %v3518_v28, %v9132_v34  ;;  %7600 = vrcp.f32 %v9308_v29  ;;  %v3049_v43 = vand.u32 2147483647, %v9308_v29  ;;  %v2036_v57 = vmul.f32 %v9312_v39, %v9253_v37 }
 0x16a   : > { %v9325_v49 = vadd.f32 1.0, %v7597_v58  ;;  %7602 = vpow2.f32 %v7027_v47  ;;  %7152 = vmatmul.msk.bf16.gmra.mxu2 %vm3798_vm6, %v3991_v0  ;;  %v3051_v3 = vand.u32 2147483648, %v9308_v29  ;;  %v7106_v34 = vmul.f32 -1.442695, %v9318_v54 }
 0x16b   : > { %3916 = vst.msk [vmem:[#allocation2 + $0x3a8] sm:$0xff] %vm3798_vm6, %v3787_v41  ;;  %7604 = vpow2.f32 %v7094_v36  ;;  %v4434_v6 = vpack.c.bf16 %v4376_v48, %v4374_v62  ;;  %vm9335_vm4 = vcmp.eq.f32.partialorder %v2044_v25, 8.507059e+37  ;;  %v2047_v27 = vor.u32 1.1754944e-38, %v2046_v42  ;;  %v1138_v36 = vpop.f32.mrf.mxu1 }
 0x16c   : > { %v7599_v61 = vpop.eup %7598  ;;  %7606 = vrcp.f32 %v9325_v49  ;;  %v3229_v40 = vand.u32 2147483647, %v9325_v49  ;;  %v3231_v51 = vand.u32 2147483648, %v9325_v49  ;;  %v2037_v53 = vsub.f32 1.0, %v2036_v57 }
 0x16d   : > { %v9341_v10 = vadd.f32 1.0, %v7599_v61  ;;  %7168 = vmatmul.msk.bf16.gmra.mxu3 %vm3798_vm6, %v4434_v6  ;;  %vm3045_vm7 = vweird.f32 %v9308_v29  ;;  %vm2041_vm8 = vweird.f32 %v9312_v39  ;;  %7608 = vpow2.f32 %v7106_v34 }
 0x16e   : > { %v9347_v11 = vadd.f32 %v8784_v32, %v1215_v45  ;;  %vm9349_vm0 = vcmp.eq.f32.partialorder %v3049_v43, 8.507059e+37  ;;  %v3052_v52 = vor.u32 1.1754944e-38, %v3051_v3  ;;  %vm3225_vm3 = vweird.f32 %v9325_v49  ;;  %vm2042_vm11 = vmor %vm2040_vm2, %vm2041_vm8 }
 0x16f   : > { %v7601_v13 = vpop.eup %7600  ;;  %7610 = vrcp.f32 %v9341_v10  ;;  %v3529_v63 = vand.u32 2147483647, %v9341_v10  ;;  %v2038_v20 = vmul.f32 %v9312_v39, %v2037_v53  ;;  %v9360_v5 = vadd.f32 %v8784_v32, %v9293_v2  ;;  %v1170_v53 = vpop.f32.mrf.mxu2 }
 0x170   : > { %v7603_v56 = vpop.eup %7602  ;;  %v3041_v21 = vmul.f32 %v7601_v13, %v9308_v29  ;;  %vm9362_vm9 = vcmp.eq.f32.partialorder %v3229_v40, 8.507059e+37  ;;  %v3232_v8 = vor.u32 1.1754944e-38, %v3231_v51  ;;  %vm3525_vm10 = vweird.f32 %v9341_v10  ;;  %v9404_v29 = vld [vmem:[%s11978_s2] ss:$0 sm:$0xff] }
 0x171   : > { %v7605_v31 = vpop.eup %7604  ;;  %v7126_v33 = vmul.f32 -1.442695, %v9347_v11  ;;  %v9369_v1 = vadd.f32 %v8784_v32, %v973_v12  ;;  %vm3046_vm5 = vweird.f32 %v7601_v13  ;;  %v2039_v17 = vadd.f32 %v9312_v39, %v2038_v20 }
 0x172   : > { %v7607_v4 = vpop.eup %7606  ;;  %v3042_v16 = vsub.f32 1.0, %v3041_v21  ;;  %v9372_v2 = vadd.f32 1.0, %v7605_v31  ;;  %v3531_v15 = vand.u32 2147483648, %v9341_v10  ;;  %v9380_v44 = vadd.f32 1.0, %v7603_v56  ;;  %vm9391_vm14 = vmor %vm3045_vm7, %vm3046_vm5 }
 0x173   : > { %v3221_v38 = vmul.f32 %v7607_v4, %v9325_v49  ;;  %7612 = vpow2.f32 %v7126_v33  ;;  %v7609_v32 = vpop.eup %7608  ;;  %vm3226_vm12 = vweird.f32 %v7607_v4  ;;  %vm9382_vm13 = vcmp.eq.f32.partialorder %v3529_v63, 8.507059e+37 }
 0x174   : > { %v3043_v23 = vmul.f32 %v7601_v13, %v3042_v16  ;;  %v2043_v47 = vsel %vm2042_vm11, %v9312_v39, %v2039_v17  ;;  %7614 = vrcp.f32 %v9372_v2  ;;  %v3064_v19 = vand.u32 2147483647, %v9372_v2  ;;  %vm9417_vm2 = vmor %vm3225_vm3, %vm3226_vm12 }
 0x175   : > { %v7611_v9 = vpop.eup %7610  ;;  %v3222_v24 = vsub.f32 1.0, %v3221_v38  ;;  %v2048_v26 = vsel %vm9335_vm4, %v2047_v27, %v2043_v47  ;;  %v3066_v25 = vand.u32 2147483648, %v9372_v2  ;;  %v9407_v42 = vadd.f32 %v9404_v29, %v1138_v36 }
 0x176   : > { %v3044_v50 = vadd.f32 %v7601_v13, %v3043_v23  ;;  %v3521_v39 = vmul.f32 %v7611_v9, %v9341_v10  ;;  %v3689_v28 = vmul.f32 %v2048_v26, %v9138_v18  ;;  %v3532_v48 = vor.u32 1.1754944e-38, %v3531_v15 }
 0x177   : > { %v3223_v0 = vmul.f32 %v7607_v4, %v3222_v24  ;;  %vm3060_vm15 = vweird.f32 %v9372_v2  ;;  %v9410_v58 = vadd.f32 1.0, %v7609_v32  ;;  %vm3526_vm4 = vweird.f32 %v7611_v9 }
 0x178   : > { %v3048_v41 = vsel %vm9391_vm14, %v7601_v13, %v3044_v50  ;;  %v3522_v43 = vsub.f32 1.0, %v3521_v39  ;;  %3818 = vst.msk [vmem:[#allocation2 + $0x98] sm:$0xff] %vm3798_vm6, %v3689_v28  ;;  %7616 = vrcp.f32 %v9380_v44  ;;  %vm9425_vm7 = vcmp.eq.f32.partialorder %v3064_v19, 8.507059e+37  ;;  %vm9438_vm8 = vmor %vm3525_vm10, %vm3526_vm4 }
 0x179   : > { %v7613_v57 = vpop.eup %7612  ;;  %v3053_v62 = vsel %vm9349_vm0, %v3052_v52, %v3048_v41  ;;  %v3224_v3 = vadd.f32 %v7607_v4, %v3223_v0  ;;  %v3067_v49 = vor.u32 1.1754944e-38, %v3066_v25  ;;  %7618 = vrcp.f32 %v9410_v58  ;;  %v548_v41 = vld [vmem:[%s8285_s27 + $0x138] sm:$0xff] }
 0x17a   : > { %v7615_v6 = vpop.eup %7614  ;;  %v3756_v61 = vmul.f32 %v3053_v62, %v9180_v59  ;;  %v3523_v60 = vmul.f32 %v7611_v9, %v3522_v43  ;;  %v3244_v27 = vand.u32 2147483647, %v9410_v58  ;;  %v3246_v40 = vand.u32 2147483648, %v9410_v58 }
 0x17b   : > { %v3228_v51 = vsel %vm9417_vm2, %v7607_v4, %v3224_v3  ;;  %v3056_v45 = vmul.f32 %v7615_v6, %v9372_v2  ;;  %v9443_v12 = vadd.f32 1.0, %v7613_v57  ;;  %v2059_v59 = vand.u32 2147483647, %v9380_v44  ;;  %v1218_v3 = vpop.f32.mrf.mxu3 }
 0x17c   : > { %3885 = vst.msk [vmem:[#allocation2 + $0x2b0] sm:$0xff] %vm3798_vm6, %v3756_v61  ;;  %v3233_v13 = vsel %vm9362_vm9, %v3232_v8, %v3228_v51  ;;  %v3524_v7 = vadd.f32 %v7611_v9, %v3523_v60  ;;  %vm3061_vm0 = vweird.f32 %v7615_v6  ;;  %vm3240_vm3 = vweird.f32 %v9410_v58 }
 0x17d   : > { %v3768_v10 = vmul.f32 %v3233_v13, %v9251_v55  ;;  %v3057_v52 = vsub.f32 1.0, %v3056_v45  ;;  %v9451_v56 = vor.u32 1.1754944e-38, %v3246_v40  ;;  %7620 = vrcp.f32 %v9443_v12  ;;  %vm9476_vm12 = vmor %vm3060_vm15, %vm3061_vm0  ;;  %v975_v45 = vpop.f32.mrf.mxu0 }
 0x17e   : > { %vm2055_vm10 = vweird.f32 %v9380_v44  ;;  %v7617_v21 = vpop.eup %7616  ;;  %v3528_v63 = vsel %vm9438_vm8, %v7611_v9, %v3524_v7  ;;  %vm9457_vm5 = vcmp.eq.f32.partialorder %v3244_v27, 8.507059e+37  ;;  %vm3540_vm9 = vweird.f32 %v9443_v12 }
 0x17f   : > { %v3544_v31 = vand.u32 2147483647, %v9443_v12  ;;  %v3546_v55 = vand.u32 2147483648, %v9443_v12  ;;  %v7619_v8 = vpop.eup %7618  ;;  %3897 = vst.msk [vmem:[#allocation2 + $0x310] sm:$0xff] %vm3798_vm6, %v3768_v10  ;;  %v3533_v33 = vsel %vm9382_vm13, %v3532_v48, %v3528_v63  ;;  %v3058_v4 = vmul.f32 %v7615_v6, %v3057_v52  ;;  %v547_v48 = vld [vmem:[%s8285_s27 + $0x130] sm:$0xff] }
 0x180   : > { %v2051_v16 = vmul.f32 %v7617_v21, %v9380_v44  ;;  %vm9468_vm11 = vcmp.eq.f32.partialorder %v2059_v59, 8.507059e+37  ;;  %v3788_v38 = vmul.f32 %v3533_v33, %v9274_v35  ;;  %v3236_v32 = vmul.f32 %v7619_v8, %v9410_v58  ;;  %v1140_v58 = vpop.f32.mrf.mxu1 }
 0x181   : > { %vm3241_vm14 = vweird.f32 %v7619_v8  ;;  %vm2056_vm13 = vweird.f32 %v7617_v21  ;;  %v3059_v23 = vadd.f32 %v7615_v6, %v3058_v4  ;;  %v9481_v46 = vor.u32 1.1754944e-38, %v3546_v55 }
 0x182   : > { %v2052_v47 = vsub.f32 1.0, %v2051_v16  ;;  %v2061_v9 = vand.u32 2147483648, %v9380_v44  ;;  %3917 = vst.msk [vmem:[#allocation2 + $0x3b0] sm:$0xff] %vm3798_vm6, %v3788_v38  ;;  %v3237_v35 = vsub.f32 1.0, %v3236_v32  ;;  %v7095_v2 = vmul.f32 -1.442695, %v9407_v42  ;;  %vm9502_vm2 = vmor %vm3240_vm3, %vm3241_vm14 }
 0x183   : > { %v9487_v37 = vadd.f32 %v9404_v29, %v1168_v22  ;;  %v7028_v24 = vmul.f32 -1.442695, %v9360_v5  ;;  %v7621_v26 = vpop.eup %7620  ;;  %v3063_v19 = vsel %vm9476_vm12, %v7615_v6, %v3059_v23  ;;  %v7029_v50 = vmul.f32 -1.442695, %v9369_v1  ;;  %vm2057_vm4 = vmor %vm2055_vm10, %vm2056_vm13  ;;  %v1220_v23 = vpop.f32.mrf.mxu3 }
 0x184   : > { %v2053_v25 = vmul.f32 %v7617_v21, %v2052_v47  ;;  %v2062_v36 = vor.u32 1.1754944e-38, %v2061_v9  ;;  %v3068_v39 = vsel %vm9425_vm7, %v3067_v49, %v3063_v19  ;;  %v3238_v28 = vmul.f32 %v7619_v8, %v3237_v35 }
 0x185   : > { %v3536_v0 = vmul.f32 %v7621_v26, %v9443_v12  ;;  %vm3541_vm15 = vweird.f32 %v7621_v26  ;;  %v3757_v18 = vmul.f32 %v3068_v39, %v9301_v30  ;;  %7622 = vpow2.f32 %v7095_v2 }
 0x186   : > { %v2054_v57 = vadd.f32 %v7617_v21, %v2053_v25  ;;  %v7107_v62 = vmul.f32 -1.442695, %v9487_v37  ;;  %v3239_v34 = vadd.f32 %v7619_v8, %v3238_v28  ;;  %v9511_v30 = vadd.f32 %v9404_v29, %v1218_v3  ;;  %vm9528_vm7 = vmor %vm3540_vm9, %vm3541_vm15 }
 0x187   : > { %v3537_v49 = vsub.f32 1.0, %v3536_v0  ;;  %7624 = vpow2.f32 %v7028_v24  ;;  %3886 = vst.msk [vmem:[#allocation2 + $0x2b8] sm:$0xff] %vm3798_vm6, %v3757_v18  ;;  %v9515_v61 = vadd.f32 %v9404_v29, %v1140_v58  ;;  %v656_v60 = vpack.c.bf16 %v548_v41, %v547_v48  ;;  %v978_v18 = vpop.f32.mrf.mxu0 }
 0x188   : > { %v2058_v6 = vsel %vm2057_vm4, %v7617_v21, %v2054_v57  ;;  %7626 = vpow2.f32 %v7107_v62  ;;  %v3243_v27 = vsel %vm9502_vm2, %v7619_v8, %v3239_v34  ;;  %v7127_v51 = vmul.f32 -1.442695, %v9511_v30 }
 0x189   : > { %v3538_v40 = vmul.f32 %v7621_v26, %v3537_v49  ;;  %v2063_v44 = vsel %vm9468_vm11, %v2062_v36, %v2058_v6  ;;  %v3248_v59 = vsel %vm9457_vm5, %v9451_v56, %v3243_v27  ;;  %v7096_v10 = vmul.f32 -1.442695, %v9515_v61  ;;  %6962 = vmatmul.msk.bf16.gmra.mxu0 %vm712_vm1, %v656_v60 }
 0x18a   : > { %v3690_v7 = vmul.f32 %v2063_v44, %v9163_v14  ;;  %v9535_v52 = vadd.f32 %v9404_v29, %v1170_v53  ;;  %v3769_v21 = vmul.f32 %v3248_v59, %v9318_v54  ;;  %vm3545_vm8 = vcmp.eq.f32.partialorder %v3544_v31, 8.507059e+37 }
 0x18b   : > { %v3539_v63 = vadd.f32 %v7621_v26, %v3538_v40  ;;  %7628 = vpow2.f32 %v7127_v51  ;;  %v7623_v56 = vpop.eup %7622  ;;  %v9544_v20 = vadd.f32 %v9404_v29, %v975_v45 }
 0x18c   : > { %3819 = vst.msk [vmem:[#allocation2 + $0xa0] sm:$0xff] %vm3798_vm6, %v3690_v7  ;;  %7630 = vpow2.f32 %v7096_v10  ;;  %v7108_v14 = vmul.f32 -1.442695, %v9535_v52  ;;  %v1710_v22 = vadd.f32 1.0, %v7623_v56 }
 0x18d   : > { %v7625_v55 = vpop.eup %7624  ;;  %3898 = vst.msk [vmem:[#allocation2 + $0x318] sm:$0xff] %vm3798_vm6, %v3769_v21  ;;  %v3543_v54 = vsel %vm9528_vm7, %v7621_v26, %v3539_v63  ;;  %7632 = vpow2.f32 %v7029_v50  ;;  %v7030_v17 = vmul.f32 -1.442695, %v9544_v20 }
 0x18e   : > { %v7627_v12 = vpop.eup %7626  ;;  %v3548_v31 = vsel %vm3545_vm8, %v9481_v46, %v3543_v54  ;;  %v9550_v8 = vadd.f32 1.0, %v7625_v55  ;;  %7634 = vpow2.f32 %v7108_v14  ;;  %v3079_v4 = vand.u32 2147483647, %v1710_v22 }
 0x18f   : > { %v3789_v33 = vmul.f32 %v3548_v31, %v9347_v11  ;;  %7636 = vrcp.f32 %v1710_v22  ;;  %v9553_v16 = vadd.f32 1.0, %v7627_v12  ;;  %v3081_v15 = vand.u32 2147483648, %v1710_v22 }
 0x190   : > { %7638 = vrcp.f32 %v9550_v8  ;;  %v2076_v32 = vand.u32 2147483648, %v9550_v8  ;;  %vm3075_vm0 = vweird.f32 %v1710_v22  ;;  %v9561_v11 = vadd.f32 %v9404_v29, %v1220_v23 }
 0x191   : > { %v7629_v38 = vpop.eup %7628  ;;  %3918 = vst.msk [vmem:[#allocation2 + $0x3b8] sm:$0xff] %vm3798_vm6, %v3789_v33  ;;  %7640 = vrcp.f32 %v9553_v16  ;;  %v3259_v9 = vand.u32 2147483647, %v9553_v16  ;;  %v3261_v35 = vand.u32 2147483648, %v9553_v16  ;;  %v2074_v24 = vand.u32 2147483647, %v9550_v8 }
 0x192   : > { %v7631_v46 = vpop.eup %7630  ;;  %v9565_v2 = vadd.f32 1.0, %v7629_v38  ;;  %vm9568_vm3 = vcmp.eq.f32.partialorder %v3079_v4, 8.507059e+37  ;;  %vm2070_vm10 = vweird.f32 %v9550_v8  ;;  %7642 = vpow2.f32 %v7030_v17 }
 0x193   : > { %v7633_v47 = vpop.eup %7632  ;;  %v9573_v25 = vadd.f32 1.0, %v7631_v46  ;;  %v3082_v50 = vor.u32 1.1754944e-38, %v3081_v15  ;;  %vm3255_vm5 = vweird.f32 %v9553_v16  ;;  %v2077_v39 = vor.u32 1.1754944e-38, %v2076_v32 }
 0x194   : > { %v7635_v26 = vpop.eup %7634  ;;  %7644 = vrcp.f32 %v9565_v2  ;;  %v3559_v48 = vand.u32 2147483647, %v9565_v2  ;;  %v7128_v41 = vmul.f32 -1.442695, %v9561_v11  ;;  %vm9580_vm9 = vcmp.eq.f32.partialorder %v3259_v9, 8.507059e+37 }
 0x195   : > { %v7637_v36 = vpop.eup %7636  ;;  %7646 = vrcp.f32 %v9573_v25  ;;  %v3262_v43 = vor.u32 1.1754944e-38, %v3261_v35  ;;  %vm9585_vm11 = vcmp.eq.f32.partialorder %v2074_v24, 8.507059e+37  ;;  %v9589_v3 = vadd.f32 1.0, %v7633_v47 }
 0x196   : > { %v7639_v28 = vpop.eup %7638  ;;  %v3071_v0 = vmul.f32 %v7637_v36, %v1710_v22  ;;  %vm3076_vm12 = vweird.f32 %v7637_v36  ;;  %vm3555_vm14 = vweird.f32 %v9565_v2  ;;  %v3561_v58 = vand.u32 2147483648, %v9565_v2 }
 0x197   : > { %v2066_v57 = vmul.f32 %v7639_v28, %v9550_v8  ;;  %v7641_v34 = vpop.eup %7640  ;;  %v3094_v27 = vand.u32 2147483647, %v9573_v25  ;;  %v9595_v40 = vadd.f32 1.0, %v7635_v26  ;;  %vm9599_vm13 = vcmp.eq.f32.partialorder %v3559_v48, 8.507059e+37  ;;  %vm9605_vm4 = vmor %vm3075_vm0, %vm3076_vm12 }
 0x198   : > { %v3072_v49 = vsub.f32 1.0, %v3071_v0  ;;  %v3251_v6 = vmul.f32 %v7641_v34, %v9553_v16  ;;  %v9597_v44 = vpop.eup %7642  ;;  %vm2071_vm15 = vweird.f32 %v7639_v28  ;;  %vm3090_vm2 = vweird.f32 %v9573_v25 }
 0x199   : > { %v2067_v60 = vsub.f32 1.0, %v2066_v57  ;;  %7648 = vpow2.f32 %v7128_v41  ;;  %vm3256_vm7 = vweird.f32 %v7641_v34  ;;  %v3562_v56 = vor.u32 1.1754944e-38, %v3561_v58  ;;  %vm9615_vm8 = vmor %vm2070_vm10, %vm2071_vm15  ;;  %v1143_v57 = vpop.f32.mrf.mxu1 }
 0x19a   : > { %v3073_v51 = vmul.f32 %v7637_v36, %v3072_v49  ;;  %v7645_v45 = vpop.eup %7644  ;;  %v3252_v13 = vsub.f32 1.0, %v3251_v6  ;;  %7650 = vrcp.f32 %v9595_v40  ;;  %v3096_v14 = vand.u32 2147483648, %v9573_v25  ;;  %vm9628_vm12 = vmor %vm3255_vm5, %vm3256_vm7  ;;  %v1173_v6 = vpop.f32.mrf.mxu2 }
 0x19b   : > { %v2068_v7 = vmul.f32 %v7639_v28, %v2067_v60  ;;  %v7647_v10 = vpop.eup %7646  ;;  %v3551_v63 = vmul.f32 %v7645_v45, %v9565_v2  ;;  %vm9620_vm0 = vcmp.eq.f32.partialorder %v3094_v27, 8.507059e+37  ;;  %vm3556_vm10 = vweird.f32 %v7645_v45  ;;  %v549_v27 = vld [vmem:[%s8285_s27 + $0x140] sm:$0xff] }
 0x19c   : > { %v3074_v21 = vadd.f32 %v7637_v36, %v3073_v51  ;;  %v3253_v55 = vmul.f32 %v7641_v34, %v3252_v13  ;;  %v3086_v12 = vmul.f32 %v7647_v10, %v9573_v25  ;;  %vm3091_vm15 = vweird.f32 %v7647_v10  ;;  %v550_v51 = vld [vmem:[%s8285_s27 + $0x148] sm:$0xff] }
 0x19d   : > { %v2069_v54 = vadd.f32 %v7639_v28, %v2068_v7  ;;  %v3552_v8 = vsub.f32 1.0, %v3551_v63  ;;  %v3097_v9 = vor.u32 1.1754944e-38, %v3096_v14  ;;  %vm9656_vm5 = vmor %vm3090_vm2, %vm3091_vm15  ;;  %v3276_v41 = vand.u32 2147483648, %v9595_v40 }
 0x19e   : > { %v3078_v33 = vsel %vm9605_vm4, %v7637_v36, %v3074_v21  ;;  %v3254_v38 = vadd.f32 %v7641_v34, %v3253_v55  ;;  %v3087_v32 = vsub.f32 1.0, %v3086_v12  ;;  %v9679_v60 = vadd.f32 %v9404_v29, %v978_v18 }
 0x19f   : > { %v3083_v17 = vsel %vm9568_vm3, %v3082_v50, %v3078_v33  ;;  %v2073_v15 = vsel %vm9615_vm8, %v7639_v28, %v2069_v54  ;;  %v7649_v23 = vpop.eup %7648  ;;  %v3553_v47 = vmul.f32 %v7645_v45, %v3552_v8  ;;  %vm9643_vm3 = vmor %vm3555_vm14, %vm3556_vm10  ;;  %v3277_v59 = vor.u32 1.1754944e-38, %v3276_v41 }
 0x1a0   : > { %v3758_v46 = vmul.f32 %v3083_v17, %v9407_v42  ;;  %v2078_v16 = vsel %vm9585_vm11, %v2077_v39, %v2073_v15  ;;  %v7651_v35 = vpop.eup %7650  ;;  %v3258_v24 = vsel %vm9628_vm12, %v7641_v34, %v3254_v38  ;;  %v3088_v36 = vmul.f32 %v7647_v10, %v3087_v32 }
 0x1a1   : > { %v3691_v19 = vmul.f32 %v2078_v16, %v9360_v5  ;;  %v9648_v50 = vadd.f32 1.0, %v7649_v23  ;;  %v3263_v42 = vsel %vm9580_vm9, %v3262_v43, %v3258_v24  ;;  %v3554_v39 = vadd.f32 %v7645_v45, %v3553_v47  ;;  %v1145_v16 = vpop.f32.mrf.mxu1 }
 0x1a2   : > { %3887 = vst.msk [vmem:[#allocation2 + $0x2c0] sm:$0xff] %vm3798_vm6, %v3758_v46  ;;  %v3266_v28 = vmul.f32 %v7651_v35, %v9595_v40  ;;  %v3274_v5 = vand.u32 2147483647, %v9595_v40  ;;  %v3770_v0 = vmul.f32 %v3263_v42, %v9487_v37  ;;  %v3089_v48 = vadd.f32 %v7647_v10, %v3088_v36  ;;  %v1175_v36 = vpop.f32.mrf.mxu2 }
 0x1a3   : > { %3820 = vst.msk [vmem:[#allocation2 + $0xa8] sm:$0xff] %vm3798_vm6, %v3691_v19  ;;  %7652 = vrcp.f32 %v9648_v50  ;;  %v3558_v25 = vsel %vm9643_vm3, %v7645_v45, %v3554_v39  ;;  %vm3270_vm9 = vweird.f32 %v9595_v40  ;;  %vm3271_vm11 = vweird.f32 %v7651_v35 }
 0x1a4   : > { %v3267_v43 = vsub.f32 1.0, %v3266_v28  ;;  %3899 = vst.msk [vmem:[#allocation2 + $0x320] sm:$0xff] %vm3798_vm6, %v3770_v0  ;;  %v3563_v37 = vsel %vm9599_vm13, %v3562_v56, %v3558_v25  ;;  %v3093_v62 = vsel %vm9656_vm5, %v7647_v10, %v3089_v48  ;;  %7654 = vrcp.f32 %v9589_v3  ;;  %vm9686_vm14 = vmor %vm3270_vm9, %vm3271_vm11 }
 0x1a5   : > { %v3790_v34 = vmul.f32 %v3563_v37, %v9511_v30  ;;  %v3098_v49 = vsel %vm9620_vm0, %v3097_v9, %v3093_v62  ;;  %vm9690_vm13 = vcmp.eq.f32.partialorder %v3274_v5, 8.507059e+37  ;;  %vm3570_vm2 = vweird.f32 %v9648_v50  ;;  %v980_v37 = vpop.f32.mrf.mxu0 }
 0x1a6   : > { %v3268_v58 = vmul.f32 %v7651_v35, %v3267_v43  ;;  %v3759_v53 = vmul.f32 %v3098_v49, %v9515_v61  ;;  %v9697_v7 = vadd.f32 %v9404_v29, %v1143_v57  ;;  %v9700_v61 = vadd.f32 1.0, %v9597_v44  ;;  %v1223_v44 = vpop.f32.mrf.mxu3 }
 0x1a7   : > { %3919 = vst.msk [vmem:[#allocation2 + $0x3c0] sm:$0xff] %vm3798_vm6, %v3790_v34  ;;  %v3574_v10 = vand.u32 2147483647, %v9648_v50  ;;  %v3576_v21 = vand.u32 2147483648, %v9648_v50  ;;  %v9706_v63 = vadd.f32 %v9404_v29, %v1173_v6  ;;  %v657_v56 = vpack.c.bf16 %v550_v51, %v549_v27 }
 0x1a8   : > { %v3269_v13 = vadd.f32 %v7651_v35, %v3268_v58  ;;  %3888 = vst.msk [vmem:[#allocation2 + $0x2c8] sm:$0xff] %vm3798_vm6, %v3759_v53  ;;  %v7097_v54 = vmul.f32 -1.442695, %v9697_v7  ;;  %v7031_v22 = vmul.f32 -1.442695, %v9679_v60  ;;  %v9717_v4 = vadd.f32 %v9404_v29, %v1223_v44 }
 0x1a9   : > { %v7653_v40 = vpop.eup %7652  ;;  %v7109_v33 = vmul.f32 -1.442695, %v9706_v63  ;;  %7656 = vrcp.f32 %v9700_v61  ;;  %6963 = vmatmul.msk.bf16.gmra.mxu0 %vm712_vm1, %v657_v56  ;;  %v2089_v15 = vand.u32 2147483647, %v9589_v3  ;;  %v2091_v32 = vand.u32 2147483648, %v9589_v3 }
 0x1aa   : > { %v3273_v14 = vsel %vm9686_vm14, %v7651_v35, %v3269_v13  ;;  %v3566_v55 = vmul.f32 %v7653_v40, %v9648_v50  ;;  %v7655_v12 = vpop.eup %7654  ;;  %vm3571_vm4 = vweird.f32 %v7653_v40  ;;  %7658 = vpow2.f32 %v7097_v54 }
 0x1ab   : > { %v3278_v31 = vsel %vm9690_vm13, %v3277_v59, %v3273_v14  ;;  %v2081_v38 = vmul.f32 %v7655_v12, %v9589_v3  ;;  %v7129_v23 = vmul.f32 -1.442695, %v9717_v4  ;;  %vm2085_vm7 = vweird.f32 %v9589_v3  ;;  %vm9730_vm8 = vmor %vm3570_vm2, %vm3571_vm4 }
 0x1ac   : > { %v3771_v8 = vmul.f32 %v3278_v31, %v9535_v52  ;;  %v3567_v17 = vsub.f32 1.0, %v3566_v55  ;;  %7660 = vpow2.f32 %v7109_v33  ;;  %vm9734_vm0 = vcmp.eq.f32.partialorder %v3574_v10, 8.507059e+37 }
 0x1ad   : > { %v2082_v47 = vsub.f32 1.0, %v2081_v38  ;;  %v3577_v35 = vor.u32 1.1754944e-38, %v3576_v21  ;;  %7662 = vpow2.f32 %v7129_v23  ;;  %v9739_v24 = vadd.f32 %v9404_v29, %v1145_v16 }
 0x1ae   : > { %3900 = vst.msk [vmem:[#allocation2 + $0x328] sm:$0xff] %vm3798_vm6, %v3771_v8  ;;  %v3568_v46 = vmul.f32 %v7653_v40, %v3567_v17  ;;  %vm2086_vm12 = vweird.f32 %v7655_v12  ;;  %7664 = vpow2.f32 %v7031_v22  ;;  %vm9743_vm10 = vcmp.eq.f32.partialorder %v2089_v15, 8.507059e+37  ;;  %v1225_v27 = vpop.f32.mrf.mxu3 }
 0x1af   : > { %v2083_v19 = vmul.f32 %v7655_v12, %v2082_v47  ;;  %v9741_v42 = vpop.eup %7656  ;;  %v2092_v39 = vor.u32 1.1754944e-38, %v2091_v32  ;;  %v7098_v2 = vmul.f32 -1.442695, %v9739_v24  ;;  %v9749_v28 = vadd.f32 %v9404_v29, %v1175_v36  ;;  %vm2087_vm15 = vmor %vm2085_vm7, %vm2086_vm12 }
 0x1b0   : > { %v3569_v26 = vadd.f32 %v7653_v40, %v3568_v46  ;;  %v2096_v48 = vmul.f32 %v9741_v42, %v9700_v61  ;;  %v2104_v41 = vand.u32 2147483647, %v9700_v61  ;;  %v7659_v18 = vpop.eup %7658  ;;  %v2106_v43 = vand.u32 2147483648, %v9700_v61 }
 0x1b1   : > { %v2084_v0 = vadd.f32 %v7655_v12, %v2083_v19  ;;  %7666 = vpow2.f32 %v7098_v2  ;;  %v7110_v57 = vmul.f32 -1.442695, %v9749_v28  ;;  %v9763_v58 = vadd.f32 1.0, %v7659_v18 }
 0x1b2   : > { %v3573_v5 = vsel %vm9730_vm8, %v7653_v40, %v3569_v26  ;;  %v7661_v62 = vpop.eup %7660  ;;  %v2097_v6 = vsub.f32 1.0, %v2096_v48  ;;  %v9770_v45 = vadd.f32 %v9404_v29, %v1225_v27  ;;  %vm2100_vm3 = vweird.f32 %v9700_v61  ;;  %v9865_v27 = vpop.f32.mrf.mxu0 }
 0x1b3   : > { %v3578_v25 = vsel %vm9734_vm0, %v3577_v35, %v3573_v5  ;;  %v2088_v49 = vsel %vm2087_vm15, %v7655_v12, %v2084_v0  ;;  %v7663_v51 = vpop.eup %7662  ;;  %v9767_v3 = vadd.f32 1.0, %v7661_v62  ;;  %7668 = vpow2.f32 %v7110_v57 }
 0x1b4   : > { %v3791_v34 = vmul.f32 %v3578_v25, %v9561_v11  ;;  %v2093_v53 = vsel %vm9743_vm10, %v2092_v39, %v2088_v49  ;;  %v7665_v30 = vpop.eup %7664  ;;  %7670 = vrcp.f32 %v9763_v58  ;;  %v9777_v59 = vadd.f32 %v9404_v29, %v980_v37 }
 0x1b5   : > { %v3692_v11 = vmul.f32 %v2093_v53, %v9369_v1  ;;  %v3109_v13 = vand.u32 2147483647, %v9763_v58  ;;  %7672 = vrcp.f32 %v9767_v3  ;;  %vm9781_vm5 = vcmp.eq.f32.partialorder %v2104_v41, 8.507059e+37 }
 0x1b6   : > { %3920 = vst.msk [vmem:[#allocation2 + $0x3c8] sm:$0xff] %vm3798_vm6, %v3791_v34  ;;  %v2107_v10 = vor.u32 1.1754944e-38, %v2106_v43  ;;  %v3111_v1 = vand.u32 2147483648, %v9763_v58  ;;  %v3289_v21 = vand.u32 2147483647, %v9767_v3  ;;  %v9788_v56 = vadd.f32 1.0, %v7663_v51 }
 0x1b7   : > { %3821 = vst.msk [vmem:[#allocation2 + $0xb0] sm:$0xff] %vm3798_vm6, %v3692_v11  ;;  %v2098_v14 = vmul.f32 %v9741_v42, %v2097_v6  ;;  %v7667_v55 = vpop.eup %7666  ;;  %v3291_v54 = vand.u32 2147483648, %v9767_v3  ;;  %vm2101_vm9 = vweird.f32 %v9741_v42  ;;  %v7130_v44 = vmul.f32 -1.442695, %v9770_v45 }
 0x1b8   : > { %v9794_v22 = vadd.f32 1.0, %v7665_v30  ;;  %vm3105_vm11 = vweird.f32 %v9763_v58  ;;  %vm3285_vm14 = vweird.f32 %v9767_v3  ;;  %7674 = vrcp.f32 %v9788_v56  ;;  %vm2102_vm4 = vmor %vm2100_vm3, %vm2101_vm9 }
 0x1b9   : > { %v9800_v12 = vmul.f32 -1.442695, %v9777_v59  ;;  %v7669_v31 = vpop.eup %7668  ;;  %vm9802_vm13 = vcmp.eq.f32.partialorder %v3109_v13, 8.507059e+37  ;;  %v3589_v8 = vand.u32 2147483647, %v9788_v56  ;;  %v2099_v17 = vadd.f32 %v9741_v42, %v2098_v14 }
 0x1ba   : > { %v9808_v38 = vadd.f32 1.0, %v7667_v55  ;;  %7676 = vpow2.f32 %v7130_v44  ;;  %v7671_v15 = vpop.eup %7670  ;;  %v3112_v32 = vor.u32 1.1754944e-38, %v3111_v1  ;;  %vm9810_vm2 = vcmp.eq.f32.partialorder %v3289_v21, 8.507059e+37 }
 0x1bb   : > { %v9818_v46 = vadd.f32 1.0, %v7669_v31  ;;  %7678 = vrcp.f32 %v9794_v22  ;;  %v7673_v47 = vpop.eup %7672  ;;  %v3101_v16 = vmul.f32 %v7671_v15, %v9763_v58  ;;  %v3292_v52 = vor.u32 1.1754944e-38, %v3291_v54 }
 0x1bc   : > { %v3591_v9 = vand.u32 2147483648, %v9788_v56  ;;  %v2103_v35 = vsel %vm2102_vm4, %v9741_v42, %v2099_v17  ;;  %v3281_v26 = vmul.f32 %v7673_v47, %v9767_v3  ;;  %vm3585_vm7 = vweird.f32 %v9788_v56  ;;  %v1148_v17 = vpop.f32.mrf.mxu1 }
 0x1bd   : > { %v2108_v61 = vsel %vm9781_vm5, %v2107_v10, %v2103_v35  ;;  %7680 = vrcp.f32 %v9808_v38  ;;  %v3102_v19 = vsub.f32 1.0, %v3101_v16  ;;  %vm3106_vm8 = vweird.f32 %v7671_v15 }
 0x1be   : > { %vm9829_vm0 = vcmp.eq.f32.partialorder %v3589_v8, 8.507059e+37  ;;  %v3693_v50 = vmul.f32 %v2108_v61, %v9544_v20  ;;  %v3124_v39 = vand.u32 2147483647, %v9808_v38  ;;  %v7675_v42 = vpop.eup %7674  ;;  %v3282_v2 = vsub.f32 1.0, %v3281_v26  ;;  %vm9845_vm15 = vmor %vm3105_vm11, %vm3106_vm8  ;;  %v1178_v26 = vpop.f32.mrf.mxu2 }
 0x1bf   : > { %vm3286_vm12 = vweird.f32 %v7673_v47  ;;  %v3126_v5 = vand.u32 2147483648, %v9808_v38  ;;  %7682 = vrcp.f32 %v9818_v46  ;;  %v3103_v48 = vmul.f32 %v7671_v15, %v3102_v19 }
 0x1c0   : > { %v7677_v0 = vpop.eup %7676  ;;  %v3581_v41 = vmul.f32 %v7675_v42, %v9788_v56  ;;  %v3592_v18 = vor.u32 1.1754944e-38, %v3591_v9  ;;  %3822 = vst.msk [vmem:[#allocation2 + $0xb8] sm:$0xff] %vm3798_vm6, %v3693_v50  ;;  %vm3120_vm10 = vweird.f32 %v9808_v38  ;;  %v3283_v43 = vmul.f32 %v7673_v47, %v3282_v2  ;;  %vm9855_vm9 = vmor %vm3285_vm14, %vm3286_vm12 }
 0x1c1   : > { %v9840_v25 = vpop.eup %7678  ;;  %vm3586_vm3 = vweird.f32 %v7675_v42  ;;  %vm3300_vm5 = vweird.f32 %v9818_v46  ;;  %v3304_v57 = vand.u32 2147483647, %v9818_v46  ;;  %v3306_v37 = vand.u32 2147483648, %v9818_v46 }
 0x1c2   : > { %v3104_v62 = vadd.f32 %v7671_v15, %v3103_v48  ;;  %v3582_v49 = vsub.f32 1.0, %v3581_v41  ;;  %vm9859_vm11 = vcmp.eq.f32.partialorder %v3124_v39, 8.507059e+37  ;;  %v9863_v6 = vadd.f32 1.0, %v7677_v0  ;;  %vm9885_vm8 = vmor %vm3585_vm7, %vm3586_vm3  ;;  %v1228_v39 = vpop.f32.mrf.mxu3 }
 0x1c3   : > { %v7681_v51 = vpop.eup %7680  ;;  %v3284_v53 = vadd.f32 %v7673_v47, %v3283_v43  ;;  %v3127_v30 = vor.u32 1.1754944e-38, %v3126_v5  ;;  %v9867_v11 = vor.u32 1.1754944e-38, %v3306_v37  ;;  %v2111_v3 = vmul.f32 %v9840_v25, %v9794_v22  ;;  %v985_v43 = vpop.f32.mrf.mxu0 }
 0x1c4   : > { %v3108_v13 = vsel %vm9845_vm15, %v7671_v15, %v3104_v62  ;;  %v3583_v40 = vmul.f32 %v7675_v42, %v3582_v49  ;;  %v3116_v10 = vmul.f32 %v7681_v51, %v9808_v38  ;;  %vm2115_vm14 = vweird.f32 %v9794_v22 }
 0x1c5   : > { %vm2116_vm4 = vweird.f32 %v9840_v25  ;;  %v9876_v1 = vpop.eup %7682  ;;  %v3113_v21 = vsel %vm9802_vm13, %v3112_v32, %v3108_v13  ;;  %v3288_v14 = vsel %vm9855_vm9, %v7673_v47, %v3284_v53  ;;  %vm3121_vm12 = vweird.f32 %v7681_v51  ;;  %v552_v13 = vld [vmem:[%s8285_s27 + $0x158] sm:$0xff] }
 0x1c6   : > { %vm9889_vm15 = vcmp.eq.f32.partialorder %v3304_v57, 8.507059e+37  ;;  %7684 = vrcp.f32 %v9863_v6  ;;  %v3760_v44 = vmul.f32 %v3113_v21, %v9697_v7  ;;  %v3293_v31 = vsel %vm9810_vm2, %v3292_v52, %v3288_v14  ;;  %vm9912_vm2 = vmor %vm3120_vm10, %vm3121_vm12  ;;  %v10079_v14 = vld [vmem:[%s11978_s2] ss:$0 sm:$0xff] }
 0x1c7   : > { %v3584_v33 = vadd.f32 %v7675_v42, %v3583_v40  ;;  %v3117_v8 = vsub.f32 1.0, %v3116_v10  ;;  %v3772_v56 = vmul.f32 %v3293_v31, %v9706_v63  ;;  %v3296_v15 = vmul.f32 %v9876_v1, %v9818_v46 }
 0x1c8   : > { %vm3600_vm13 = vweird.f32 %v9863_v6  ;;  %v3604_v32 = vand.u32 2147483647, %v9863_v6  ;;  %3889 = vst.msk [vmem:[#allocation2 + $0x2d0] sm:$0xff] %vm3798_vm6, %v3760_v44  ;;  %v3606_v23 = vand.u32 2147483648, %v9863_v6  ;;  %v2112_v16 = vsub.f32 1.0, %v2111_v3  ;;  %v551_v3 = vld [vmem:[%s8285_s27 + $0x150] sm:$0xff]  ;;  %v1180_v44 = vpop.f32.mrf.mxu2 }
 0x1c9   : > { %v3588_v7 = vsel %vm9885_vm8, %v7675_v42, %v3584_v33  ;;  %v3118_v47 = vmul.f32 %v7681_v51, %v3117_v8  ;;  %3901 = vst.msk [vmem:[#allocation2 + $0x330] sm:$0xff] %vm3798_vm6, %v3772_v56  ;;  %v3297_v9 = vsub.f32 1.0, %v3296_v15  ;;  %vm3301_vm7 = vweird.f32 %v9876_v1 }
 0x1ca   : > { %v3593_v63 = vsel %vm9829_vm0, %v3592_v18, %v3588_v7  ;;  %v2119_v35 = vand.u32 2147483647, %v9794_v22  ;;  %vm9919_vm3 = vcmp.eq.f32.partialorder %v3604_v32, 8.507059e+37  ;;  %v3607_v36 = vor.u32 1.1754944e-38, %v3606_v23  ;;  %vm9940_vm10 = vmor %vm3300_vm5, %vm3301_vm7  ;;  %v1230_v8 = vpop.f32.mrf.mxu3 }
 0x1cb   : > { %v3792_v61 = vmul.f32 %v3593_v63, %v9717_v4  ;;  %v3119_v19 = vadd.f32 %v7681_v51, %v3118_v47  ;;  %v2113_v38 = vmul.f32 %v9840_v25, %v2112_v16  ;;  %v3298_v2 = vmul.f32 %v9876_v1, %v3297_v9  ;;  %vm2117_vm5 = vmor %vm2115_vm14, %vm2116_vm4  ;;  %v988_v32 = vpop.f32.mrf.mxu0 }
 0x1cc   : > { %v7685_v42 = vpop.eup %7684  ;;  %vm9925_vm0 = vcmp.eq.f32.partialorder %v2119_v35, 8.507059e+37  ;;  %v2121_v0 = vand.u32 2147483648, %v9794_v22  ;;  %v9931_v4 = vadd.f32 %v9404_v29, %v1148_v17  ;;  %v9957_v53 = vadd.f32 %v9404_v29, %v1178_v26 }
 0x1cd   : > { %3921 = vst.msk [vmem:[#allocation2 + $0x3d0] sm:$0xff] %vm3798_vm6, %v3792_v61  ;;  %v3123_v48 = vsel %vm9912_vm2, %v7681_v51, %v3119_v19  ;;  %v3596_v18 = vmul.f32 %v7685_v42, %v9863_v6  ;;  %vm3601_vm9 = vweird.f32 %v7685_v42  ;;  %v2114_v20 = vadd.f32 %v9840_v25, %v2113_v38 }
 0x1ce   : > { %v3128_v57 = vsel %vm9859_vm11, %v3127_v30, %v3123_v48  ;;  %v3299_v37 = vadd.f32 %v9876_v1, %v3298_v2  ;;  %v2122_v46 = vor.u32 1.1754944e-38, %v2121_v0  ;;  %v7099_v62 = vmul.f32 -1.442695, %v9931_v4  ;;  %vm9979_vm11 = vmor %vm3600_vm13, %vm3601_vm9 }
 0x1cf   : > { %v3761_v34 = vmul.f32 %v3128_v57, %v9739_v24  ;;  %v3597_v49 = vsub.f32 1.0, %v3596_v18  ;;  %v2118_v51 = vsel %vm2117_vm5, %v9840_v25, %v2114_v20  ;;  %v9965_v22 = vadd.f32 %v9404_v29, %v1228_v39 }
 0x1d0   : > { %v3303_v58 = vsel %vm9940_vm10, %v9876_v1, %v3299_v37  ;;  %v2123_v30 = vsel %vm9925_vm0, %v2122_v46, %v2118_v51  ;;  %7686 = vpow2.f32 %v7099_v62  ;;  %v7111_v10 = vmul.f32 -1.442695, %v9957_v53  ;;  %v1150_v1 = vpop.f32.mrf.mxu1 }
 0x1d1   : > { %3890 = vst.msk [vmem:[#allocation2 + $0x2d8] sm:$0xff] %vm3798_vm6, %v3761_v34  ;;  %v3308_v24 = vsel %vm9889_vm15, %v9867_v11, %v3303_v58  ;;  %v3598_v25 = vmul.f32 %v7685_v42, %v3597_v49  ;;  %v3694_v40 = vmul.f32 %v2123_v30, %v9679_v60  ;;  %v7131_v55 = vmul.f32 -1.442695, %v9965_v22 }
 0x1d2   : > { %v3773_v21 = vmul.f32 %v3308_v24, %v9749_v28  ;;  %7688 = vpow2.f32 %v9800_v12  ;;  %v9986_v11 = vadd.f32 %v9404_v29, %v1150_v1  ;;  %v9991_v28 = vadd.f32 %v9404_v29, %v9865_v27 }
 0x1d3   : > { %v3599_v60 = vadd.f32 %v7685_v42, %v3598_v25  ;;  %3823 = vst.msk [vmem:[#allocation2 + $0xc0] sm:$0xff] %vm3798_vm6, %v3694_v40  ;;  %7690 = vpow2.f32 %v7111_v10  ;;  %v658_v6 = vpack.c.bf16 %v552_v13, %v551_v3  ;;  %v9996_v12 = vadd.f32 %v9404_v29, %v985_v43 }
 0x1d4   : > { %3902 = vst.msk [vmem:[#allocation2 + $0x338] sm:$0xff] %vm3798_vm6, %v3773_v21  ;;  %7692 = vpow2.f32 %v7131_v55  ;;  %v7100_v54 = vmul.f32 -1.442695, %v9986_v11  ;;  %v10001_v33 = vadd.f32 %v9404_v29, %v1180_v44  ;;  %v7033_v27 = vmul.f32 -1.442695, %v9991_v28 }
 0x1d5   : > { %v3603_v31 = vsel %vm9979_vm11, %v7685_v42, %v3599_v60  ;;  %6964 = vmatmul.msk.bf16.gmra.mxu0 %vm712_vm1, %v658_v6  ;;  %v10008_v15 = vadd.f32 %v9404_v29, %v1230_v8  ;;  %v7034_v16 = vmul.f32 -1.442695, %v9996_v12  ;;  %v10018_v9 = vadd.f32 %v9404_v29, %v988_v32 }
 0x1d6   : > { %v7687_v17 = vpop.eup %7686  ;;  %v3608_v56 = vsel %vm9919_vm3, %v3607_v36, %v3603_v31  ;;  %7694 = vpow2.f32 %v7100_v54  ;;  %v7112_v23 = vmul.f32 -1.442695, %v10001_v33 }
 0x1d7   : > { %v3793_v7 = vmul.f32 %v3608_v56, %v9770_v45  ;;  %v10011_v47 = vadd.f32 1.0, %v7687_v17  ;;  %7696 = vpow2.f32 %v7033_v27  ;;  %v7132_v36 = vmul.f32 -1.442695, %v10008_v15 }
 0x1d8   : > { %v7689_v63 = vpop.eup %7688  ;;  %v10042_v48 = vmul.f32 -1.442695, %v10018_v9  ;;  %v1153_v40 = vpop.f32.mrf.mxu1 }
 0x1d9   : > { %v7691_v52 = vpop.eup %7690  ;;  %3922 = vst.msk [vmem:[#allocation2 + $0x3d8] sm:$0xff] %vm3798_vm6, %v3793_v7  ;;  %7698 = vrcp.f32 %v10011_v47  ;;  %v3139_v26 = vand.u32 2147483647, %v10011_v47  ;;  %v10023_v61 = vadd.f32 1.0, %v7689_v63  ;;  %v3141_v19 = vand.u32 2147483648, %v10011_v47 }
 0x1da   : > { %v7693_v35 = vpop.eup %7692  ;;  %v10021_v45 = vadd.f32 1.0, %v7691_v52  ;;  %7700 = vpow2.f32 %v7112_v23  ;;  %vm3135_vm14 = vweird.f32 %v10011_v47  ;;  %v10082_v55 = vadd.f32 %v10079_v14, %v1153_v40 }
 0x1db   : > { %v10026_v50 = vadd.f32 1.0, %v7693_v35  ;;  %7702 = vpow2.f32 %v7034_v16  ;;  %vm10035_vm4 = vcmp.eq.f32.partialorder %v3139_v26, 8.507059e+37  ;;  %v3142_v18 = vor.u32 1.1754944e-38, %v3141_v19  ;;  %v10099_v16 = vpop.f32.mrf.mxu2 }
 0x1dc   : > { %v7695_v38 = vpop.eup %7694  ;;  %7704 = vrcp.f32 %v10021_v45  ;;  %v3321_v29 = vand.u32 2147483648, %v10021_v45  ;;  %v3319_v39 = vand.u32 2147483647, %v10021_v45  ;;  %vm3315_vm8 = vweird.f32 %v10021_v45 }
 0x1dd   : > { %7706 = vrcp.f32 %v10026_v50  ;;  %v3621_v42 = vand.u32 2147483648, %v10026_v50  ;;  %v7697_v2 = vpop.eup %7696  ;;  %v3619_v0 = vand.u32 2147483647, %v10026_v50  ;;  %v2136_v20 = vand.u32 2147483648, %v10023_v61 }
 0x1de   : > { %7708 = vrcp.f32 %v10023_v61  ;;  %v10047_v37 = vor.u32 1.1754944e-38, %v3321_v29  ;;  %vm3615_vm12 = vweird.f32 %v10026_v50  ;;  %v10050_v46 = vadd.f32 1.0, %v7695_v38 }
 0x1df   : > { %v7699_v41 = vpop.eup %7698  ;;  %7710 = vpow2.f32 %v7132_v36  ;;  %vm10054_vm13 = vcmp.eq.f32.partialorder %v3319_v39, 8.507059e+37  ;;  %v10058_v49 = vor.u32 1.1754944e-38, %v3621_v42  ;;  %v2134_v51 = vand.u32 2147483647, %v10023_v61 }
 0x1e0   : > { %v7701_v43 = vpop.eup %7700  ;;  %v3131_v57 = vmul.f32 %v7699_v41, %v10011_v47  ;;  %vm3136_vm15 = vweird.f32 %v7699_v41  ;;  %vm10063_vm2 = vcmp.eq.f32.partialorder %v3619_v0, 8.507059e+37  ;;  %v10067_v24 = vor.u32 1.1754944e-38, %v2136_v20 }
 0x1e1   : > { %v10052_v62 = vpop.eup %7702  ;;  %v10061_v58 = vadd.f32 1.0, %v7701_v43  ;;  %7712 = vrcp.f32 %v10050_v46  ;;  %v10070_v25 = vadd.f32 1.0, %v7697_v2  ;;  %vm2130_vm7 = vweird.f32 %v10023_v61  ;;  %vm10090_vm0 = vmor %vm3135_vm14, %vm3136_vm15 }
 0x1e2   : > { %v7705_v30 = vpop.eup %7704  ;;  %v3132_v3 = vsub.f32 1.0, %v3131_v57  ;;  %v3156_v21 = vand.u32 2147483648, %v10050_v46  ;;  %vm3150_vm3 = vweird.f32 %v10050_v46  ;;  %v3154_v44 = vand.u32 2147483647, %v10050_v46 }
 0x1e3   : > { %v7707_v10 = vpop.eup %7706  ;;  %v3311_v1 = vmul.f32 %v7705_v30, %v10021_v45  ;;  %7714 = vrcp.f32 %v10061_v58  ;;  %vm3316_vm10 = vweird.f32 %v7705_v30  ;;  %vm10095_vm5 = vcmp.eq.f32.partialorder %v2134_v51, 8.507059e+37 }
 0x1e4   : > { %v7709_v60 = vpop.eup %7708  ;;  %v3133_v6 = vmul.f32 %v7699_v41, %v3132_v3  ;;  %v3611_v54 = vmul.f32 %v7707_v10, %v10026_v50  ;;  %vm3616_vm9 = vweird.f32 %v7707_v10  ;;  %v3157_v23 = vor.u32 1.1754944e-38, %v3156_v21  ;;  %vm10108_vm15 = vmor %vm3315_vm8, %vm3316_vm10 }
 0x1e5   : > { %v7711_v31 = vpop.eup %7710  ;;  %v3312_v27 = vsub.f32 1.0, %v3311_v1  ;;  %v2126_v17 = vmul.f32 %v7709_v60, %v10023_v61  ;;  %vm2131_vm11 = vweird.f32 %v7709_v60  ;;  %vm3330_vm14 = vweird.f32 %v10061_v58 }
 0x1e6   : > { %v3134_v32 = vadd.f32 %v7699_v41, %v3133_v6  ;;  %v3612_v7 = vsub.f32 1.0, %v3611_v54  ;;  %v3334_v52 = vand.u32 2147483647, %v10061_v58  ;;  %v3336_v38 = vand.u32 2147483648, %v10061_v58  ;;  %vm2132_vm8 = vmor %vm2130_vm7, %vm2131_vm11 }
 0x1e7   : > { %v3313_v47 = vmul.f32 %v7705_v30, %v3312_v27  ;;  %v2127_v63 = vsub.f32 1.0, %v2126_v17  ;;  %v7713_v35 = vpop.eup %7712  ;;  %7716 = vrcp.f32 %v10070_v25  ;;  %v10126_v57 = vadd.f32 1.0, %v7711_v31  ;;  %v1155_v27 = vpop.f32.mrf.mxu1 }
 0x1e8   : > { %v3138_v26 = vsel %vm10090_vm0, %v7699_v41, %v3134_v32  ;;  %v3613_v36 = vmul.f32 %v7707_v10, %v3612_v7  ;;  %vm10119_vm0 = vmor %vm3615_vm12, %vm3616_vm9  ;;  %v3146_v0 = vmul.f32 %v7713_v35, %v10050_v46  ;;  %v3337_v46 = vor.u32 1.1754944e-38, %v3336_v38 }
 0x1e9   : > { %v7715_v29 = vpop.eup %7714  ;;  %v3143_v39 = vsel %vm10035_vm4, %v3142_v18, %v3138_v26  ;;  %v3314_v42 = vadd.f32 %v7705_v30, %v3313_v47  ;;  %v2128_v45 = vmul.f32 %v7709_v60, %v2127_v63  ;;  %vm3151_vm4 = vweird.f32 %v7713_v35  ;;  %v1233_v47 = vpop.f32.mrf.mxu3 }
 0x1ea   : > { %v3762_v41 = vmul.f32 %v3143_v39, %v9931_v4  ;;  %v3614_v20 = vadd.f32 %v7707_v10, %v3613_v36  ;;  %v3326_v43 = vmul.f32 %v7715_v29, %v10061_v58  ;;  %v3147_v51 = vsub.f32 1.0, %v3146_v0  ;;  %v553_v0 = vld [vmem:[%s8285_s27 + $0x160] sm:$0xff] }
 0x1eb   : > { %v3318_v5 = vsel %vm10108_vm15, %v7705_v30, %v3314_v42  ;;  %v2129_v18 = vadd.f32 %v7709_v60, %v2128_v45  ;;  %vm3331_vm12 = vweird.f32 %v7715_v29  ;;  %7718 = vrcp.f32 %v10126_v57 }
 0x1ec   : > { %3891 = vst.msk [vmem:[#allocation2 + $0x2e0] sm:$0xff] %vm3798_vm6, %v3762_v41  ;;  %v3323_v50 = vsel %vm10054_vm13, %v10047_v37, %v3318_v5  ;;  %v3618_v4 = vsel %vm10119_vm0, %v7707_v10, %v3614_v20  ;;  %v3327_v3 = vsub.f32 1.0, %v3326_v43  ;;  %v3148_v21 = vmul.f32 %v7713_v35, %v3147_v51  ;;  %vm10149_vm13 = vmor %vm3150_vm3, %vm3151_vm4  ;;  %v554_v41 = vld [vmem:[%s8285_s27 + $0x168] sm:$0xff] }
 0x1ed   : > { %v3774_v30 = vmul.f32 %v3323_v50, %v9957_v53  ;;  %v3623_v40 = vsel %vm10063_vm2, %v10058_v49, %v3618_v4  ;;  %v2133_v1 = vsel %vm2132_vm8, %v7709_v60, %v2129_v18  ;;  %v7717_v6 = vpop.eup %7716  ;;  %vm3155_vm2 = vcmp.eq.f32.partialorder %v3154_v44, 8.507059e+37  ;;  %vm10159_vm7 = vmor %vm3330_vm14, %vm3331_vm12  ;;  %v1185_v60 = vpop.f32.mrf.mxu2  ;;  %v4018_v43 = vld [vmem:[#allocation2 + $0xa1] ss:$4 sm:$0xff]  ;;  %v3937_v5 = vld [vmem:[#allocation2 + $0xa0] ss:$4 sm:$0xff] }
 0x1ee   : > { %v3794_v37 = vmul.f32 %v3623_v40, %v9965_v22  ;;  %v2138_v34 = vsel %vm10095_vm5, %v10067_v24, %v2133_v1  ;;  %v3328_v53 = vmul.f32 %v7715_v29, %v3327_v3  ;;  %v3149_v13 = vadd.f32 %v7713_v35, %v3148_v21  ;;  %v4016_v4 = vld [vmem:[#allocation2 + $0x81] ss:$4 sm:$0xff]  ;;  %v3935_v21 = vld [vmem:[#allocation2 + $0x80] ss:$4 sm:$0xff] }
 0x1ef   : > { %3903 = vst.msk [vmem:[#allocation2 + $0x340] sm:$0xff] %vm3798_vm6, %v3774_v30  ;;  %v3695_v49 = vmul.f32 %v2138_v34, %v9777_v59  ;;  %vm3335_vm3 = vcmp.eq.f32.partialorder %v3334_v52, 8.507059e+37  ;;  %vm3630_vm10 = vweird.f32 %v10126_v57  ;;  %v2141_v10 = vmul.f32 %v7717_v6, %v10070_v25 }
 0x1f0   : > { %3923 = vst.msk [vmem:[#allocation2 + $0x3e0] sm:$0xff] %vm3798_vm6, %v3794_v37  ;;  %v3329_v24 = vadd.f32 %v7715_v29, %v3328_v53  ;;  %v3153_v59 = vsel %vm10149_vm13, %v7713_v35, %v3149_v13  ;;  %v3634_v58 = vand.u32 2147483647, %v10126_v57  ;;  %v3636_v54 = vand.u32 2147483648, %v10126_v57 }
 0x1f1   : > { %3824 = vst.msk [vmem:[#allocation2 + $0xc8] sm:$0xff] %vm3798_vm6, %v3695_v49  ;;  %vm2145_vm9 = vweird.f32 %v10070_v25  ;;  %v3158_v44 = vsel %vm3155_vm2, %v3157_v23, %v3153_v59  ;;  %v2142_v8 = vsub.f32 1.0, %v2141_v10  ;;  %vm2146_vm5 = vweird.f32 %v7717_v6  ;;  %v10177_v63 = vpop.eup %7718 }
 0x1f2   : > { %v3333_v31 = vsel %vm10159_vm7, %v7715_v29, %v3329_v24  ;;  %v3763_v17 = vmul.f32 %v3158_v44, %v9986_v11  ;;  %v2149_v32 = vand.u32 2147483647, %v10070_v25  ;;  %v2151_v7 = vand.u32 2147483648, %v10070_v25  ;;  %vm2147_vm14 = vmor %vm2145_vm9, %vm2146_vm5  ;;  %v4380_v25 = vld [vmem:[#allocation2 + $0xa2] ss:$4 sm:$0xff]  ;;  %v1235_v24 = vpop.f32.mrf.mxu3 }
 0x1f3   : > { %v3338_v56 = vsel %vm3335_vm3, %v3337_v46, %v3333_v31  ;;  %v2143_v35 = vmul.f32 %v7717_v6, %v2142_v8  ;;  %v7101_v23 = vmul.f32 -1.442695, %v10082_v55  ;;  %v10183_v26 = vadd.f32 %v10079_v14, %v10099_v16 }
 0x1f4   : > { %v3775_v52 = vmul.f32 %v3338_v56, %v10001_v33  ;;  %3892 = vst.msk [vmem:[#allocation2 + $0x2e8] sm:$0xff] %vm3798_vm6, %v3763_v17  ;;  %v3626_v11 = vmul.f32 %v10177_v63, %v10126_v57  ;;  %vm3631_vm11 = vweird.f32 %v10177_v63  ;;  %v2152_v19 = vor.u32 1.1754944e-38, %v2151_v7  ;;  %v10192_v33 = vpop.f32.mrf.mxu0 }
 0x1f5   : > { %v10190_v36 = vadd.f32 %v10079_v14, %v1233_v47  ;;  %v2144_v38 = vadd.f32 %v7717_v6, %v2143_v35  ;;  %7720 = vpow2.f32 %v7101_v23  ;;  %v7113_v16 = vmul.f32 -1.442695, %v10183_v26  ;;  %vm10214_vm0 = vmor %vm3630_vm10, %vm3631_vm11  ;;  %v4289_v3 = vpop.f32.mrf.mxu2 }
 0x1f6   : > { %3904 = vst.msk [vmem:[#allocation2 + $0x348] sm:$0xff] %vm3798_vm6, %v3775_v52  ;;  %v10197_v29 = vadd.f32 1.0, %v10052_v62  ;;  %v3627_v39 = vsub.f32 1.0, %v3626_v11  ;;  %v10204_v2 = vadd.f32 %v10079_v14, %v1155_v27  ;;  %7722 = vpow2.f32 %v10042_v48 }
 0x1f7   : > { %v7133_v42 = vmul.f32 -1.442695, %v10190_v36  ;;  %v2148_v45 = vsel %vm2147_vm14, %v7717_v6, %v2144_v38  ;;  %vm2150_vm15 = vcmp.eq.f32.partialorder %v2149_v32, 8.507059e+37  ;;  %7724 = vpow2.f32 %v7113_v16  ;;  %v4378_v6 = vld [vmem:[#allocation2 + $0x82] ss:$4 sm:$0xff] }
 0x1f8   : > { %v3628_v62 = vmul.f32 %v10177_v63, %v3627_v39  ;;  %v2153_v20 = vsel %vm2150_vm15, %v2152_v19, %v2148_v45  ;;  %v3637_v48 = vor.u32 1.1754944e-38, %v3636_v54  ;;  %v7102_v50 = vmul.f32 -1.442695, %v10204_v2 }
 0x1f9   : > { %7726 = vpow2.f32 %v7133_v42  ;;  %v3696_v51 = vmul.f32 %v2153_v20, %v9991_v28  ;;  %vm10222_vm4 = vcmp.eq.f32.partialorder %v3634_v58, 8.507059e+37  ;;  %v10227_v57 = vadd.f32 %v10079_v14, %v1185_v60  ;;  %v4149_v28 = vpop.f32.mrf.mxu1 }
 0x1fa   : > { %7728 = vrcp.f32 %v10197_v29  ;;  %v3629_v30 = vadd.f32 %v10177_v63, %v3628_v62  ;;  %v659_v1 = vpack.c.bf16 %v554_v41, %v553_v0  ;;  %v4073_v34 = vpack.c.bf16 %v4018_v43, %v4016_v4 }
 0x1fb   : > { %v7721_v37 = vpop.eup %7720  ;;  %3825 = vst.msk [vmem:[#allocation2 + $0xd0] sm:$0xff] %vm3798_vm6, %v3696_v51  ;;  %7730 = vpow2.f32 %v7102_v50  ;;  %v3992_v61 = vpack.c.bf16 %v3937_v5, %v3935_v21  ;;  %v4435_v53 = vpack.c.bf16 %v4380_v25, %v4378_v6  ;;  %v7114_v46 = vmul.f32 -1.442695, %v10227_v57 }
 0x1fc   : > { %v7723_v49 = vpop.eup %7722  ;;  %v3633_v13 = vsel %vm10214_vm0, %v10177_v63, %v3629_v30  ;;  %v10233_v22 = vadd.f32 1.0, %v7721_v37  ;;  %6965 = vmatmul.msk.bf16.gmra.mxu0 %vm712_vm1, %v659_v1  ;;  %v10237_v10 = vadd.f32 %v4289_v3, %v4149_v28  ;;  %v10239_v60 = vpop.f32.mrf.mxu0  ;;  %v2164_v54 = vand.u32 2147483647, %v10197_v29  ;;  %7137 = vmatmul.msk.bf16.gmra.mxu1 %vm3798_vm6, %v4073_v34 }
 0x1fd   : > { %v7725_v59 = vpop.eup %7724  ;;  %v3638_v58 = vsel %vm10222_vm4, %v3637_v48, %v3633_v13  ;;  %v2166_v44 = vand.u32 2147483648, %v10197_v29  ;;  %v10246_v31 = vadd.f32 %v10079_v14, %v1235_v24  ;;  %7153 = vmatmul.msk.bf16.gmra.mxu2 %vm3798_vm6, %v3992_v61  ;;  %7169 = vmatmul.msk.bf16.gmra.mxu3 %vm3798_vm6, %v4435_v53  ;;  %vm2160_vm8 = vweird.f32 %v10197_v29 }
 0x1fe   : > { %v3795_v27 = vmul.f32 %v3638_v58, %v10008_v15  ;;  %7732 = vrcp.f32 %v10233_v22  ;;  %v3169_v56 = vand.u32 2147483647, %v10233_v22  ;;  %v10254_v32 = vadd.f32 1.0, %v7725_v59 }
 0x1ff   : > { %v7727_v8 = vpop.eup %7726  ;;  %7734 = vpow2.f32 %v7114_v46  ;;  %v3171_v47 = vand.u32 2147483648, %v10233_v22  ;;  %v7134_v15 = vmul.f32 -1.442695, %v10246_v31  ;;  %vm10264_vm12 = vcmp.eq.f32.partialorder %v2164_v54, 8.507059e+37 }
 0x200   : > { %v7729_v17 = vpop.eup %7728  ;;  %v10256_v7 = vadd.f32 1.0, %v7727_v8  ;;  %3924 = vst.msk [vmem:[#allocation2 + $0x3e8] sm:$0xff] %vm3798_vm6, %v3795_v27  ;;  %7736 = vrcp.f32 %v10254_v32  ;;  %v2167_v23 = vor.u32 1.1754944e-38, %v2166_v44  ;;  %v10268_v11 = vadd.f32 1.0, %v7723_v49 }
 0x201   : > { %v2156_v63 = vmul.f32 %v7729_v17, %v10197_v29  ;;  %v7731_v52 = vpop.eup %7730  ;;  %v10272_v19 = vadd.f32 %v10079_v14, %v10192_v33  ;;  %vm3165_vm13 = vweird.f32 %v10233_v22  ;;  %v3349_v38 = vand.u32 2147483647, %v10254_v32 }
 0x202   : > { %v3351_v16 = vand.u32 2147483648, %v10254_v32  ;;  %7738 = vrcp.f32 %v10256_v7  ;;  %vm10278_vm2 = vcmp.eq.f32.partialorder %v3169_v56, 8.507059e+37  ;;  %v3649_v42 = vand.u32 2147483647, %v10256_v7 }
 0x203   : > { %v2157_v45 = vsub.f32 1.0, %v2156_v63  ;;  %v10283_v0 = vadd.f32 1.0, %v7731_v52  ;;  %v3172_v33 = vor.u32 1.1754944e-38, %v3171_v47  ;;  %v3651_v62 = vand.u32 2147483648, %v10256_v7 }
 0x204   : > { %v7733_v41 = vpop.eup %7732  ;;  %vm2161_vm7 = vweird.f32 %v7729_v17  ;;  %7740 = vpow2.f32 %v7134_v15  ;;  %v10286_v20 = vpop.f32.mrf.mxu0  ;;  %vm3345_vm3 = vweird.f32 %v10254_v32  ;;  %vm3645_vm10 = vweird.f32 %v10256_v7 }
 0x205   : > { %v7735_v43 = vpop.eup %7734  ;;  %v3161_v5 = vmul.f32 %v7733_v41, %v10233_v22  ;;  %v2158_v25 = vmul.f32 %v7729_v17, %v2157_v45  ;;  %vm3166_vm9 = vweird.f32 %v7733_v41  ;;  %vm10291_vm5 = vcmp.eq.f32.partialorder %v3349_v38, 8.507059e+37  ;;  %vm2162_vm14 = vmor %vm2160_vm8, %vm2161_vm7 }
 0x206   : > { %v3352_v48 = vor.u32 1.1754944e-38, %v3351_v16  ;;  %7742 = vrcp.f32 %v10283_v0  ;;  %v7737_v51 = vpop.eup %7736  ;;  %vm10296_vm11 = vcmp.eq.f32.partialorder %v3649_v42, 8.507059e+37  ;;  %v3184_v30 = vand.u32 2147483647, %v10283_v0  ;;  %vm10314_vm0 = vmor %vm3165_vm13, %vm3166_vm9 }
 0x207   : > { %v3162_v50 = vsub.f32 1.0, %v3161_v5  ;;  %v2159_v3 = vadd.f32 %v7729_v17, %v2158_v25  ;;  %v10301_v40 = vadd.f32 1.0, %v7735_v43  ;;  %v3341_v21 = vmul.f32 %v7737_v51, %v10254_v32 }
 0x208   : > { %v7739_v1 = vpop.eup %7738  ;;  %v3652_v6 = vor.u32 1.1754944e-38, %v3651_v62  ;;  %vm3180_vm15 = vweird.f32 %v10283_v0  ;;  %v3186_v37 = vand.u32 2147483648, %v10283_v0  ;;  %7744 = vrcp.f32 %v10268_v11 }
 0x209   : > { %v3163_v28 = vmul.f32 %v7733_v41, %v3162_v50  ;;  %v3641_v34 = vmul.f32 %v7739_v1, %v10256_v7  ;;  %v2163_v61 = vsel %vm2162_vm14, %v7729_v17, %v2159_v3  ;;  %v3342_v29 = vsub.f32 1.0, %v3341_v21  ;;  %v4510_v21 = vpop.f32.mrf.mxu3 }
 0x20a   : > { %v7741_v53 = vpop.eup %7740  ;;  %vm3346_vm4 = vweird.f32 %v7737_v51  ;;  %v2168_v13 = vsel %vm10264_vm12, %v2167_v23, %v2163_v61  ;;  %7746 = vrcp.f32 %v10301_v40  ;;  %vm3646_vm8 = vweird.f32 %v7739_v1 }
 0x20b   : > { %v3164_v46 = vadd.f32 %v7733_v41, %v3163_v28  ;;  %v3642_v24 = vsub.f32 1.0, %v3641_v34  ;;  %v3697_v59 = vmul.f32 %v2168_v13, %v9996_v12  ;;  %vm10322_vm7 = vcmp.eq.f32.partialorder %v3184_v30, 8.507059e+37  ;;  %vm10336_vm12 = vmor %vm3345_vm3, %vm3346_vm4 }
 0x20c   : > { %v7743_v22 = vpop.eup %7742  ;;  %v3343_v54 = vmul.f32 %v7737_v51, %v3342_v29  ;;  %v3187_v44 = vor.u32 1.1754944e-38, %v3186_v37  ;;  %vm3360_vm13 = vweird.f32 %v10301_v40  ;;  %v10327_v8 = vadd.f32 1.0, %v7741_v53  ;;  %v10329_v27 = vpop.f32.mrf.mxu0  ;;  %vm10348_vm9 = vmor %vm3645_vm10, %vm3646_vm8 }
 0x20d   : > { %v3168_v17 = vsel %vm10314_vm0, %v7733_v41, %v3164_v46  ;;  %v3643_v56 = vmul.f32 %v7739_v1, %v3642_v24  ;;  %3826 = vst.msk [vmem:[#allocation2 + $0xd8] sm:$0xff] %vm3798_vm6, %v3697_v59  ;;  %v3176_v47 = vmul.f32 %v7743_v22, %v10283_v0  ;;  %v3364_v63 = vand.u32 2147483647, %v10301_v40  ;;  %v555_v24 = vld [vmem:[%s8285_s27 + $0x170] sm:$0xff] }
 0x20e   : > { %v3173_v15 = vsel %vm10278_vm2, %v3172_v33, %v3168_v17  ;;  %v3344_v52 = vadd.f32 %v7737_v51, %v3343_v54  ;;  %vm3181_vm3 = vweird.f32 %v7743_v22  ;;  %v3366_v35 = vand.u32 2147483648, %v10301_v40  ;;  %v10353_v23 = vpop.eup %7744 }
 0x20f   : > { %v3764_v38 = vmul.f32 %v3173_v15, %v10082_v55  ;;  %v3644_v16 = vadd.f32 %v7739_v1, %v3643_v56  ;;  %v3177_v42 = vsub.f32 1.0, %v3176_v47  ;;  %7748 = vrcp.f32 %v10327_v8  ;;  %vm10375_vm10 = vmor %vm3180_vm15, %vm3181_vm3 }
 0x210   : > { %v7747_v39 = vpop.eup %7746  ;;  %v3348_v45 = vsel %vm10336_vm12, %v7737_v51, %v3344_v52  ;;  %v3664_v7 = vand.u32 2147483647, %v10327_v8  ;;  %v3666_v41 = vand.u32 2147483648, %v10327_v8  ;;  %v2179_v33 = vand.u32 2147483647, %v10268_v11 }
 0x211   : > { %3893 = vst.msk [vmem:[#allocation2 + $0x2f0] sm:$0xff] %vm3798_vm6, %v3764_v38  ;;  %v3353_v62 = vsel %vm10291_vm5, %v3352_v48, %v3348_v45  ;;  %v3648_v55 = vsel %vm10348_vm9, %v7739_v1, %v3644_v16  ;;  %v3178_v43 = vmul.f32 %v7743_v22, %v3177_v42  ;;  %v3356_v5 = vmul.f32 %v7747_v39, %v10301_v40 }
 0x212   : > { %vm2175_vm2 = vweird.f32 %v10268_v11  ;;  %v3776_v25 = vmul.f32 %v3353_v62, %v10183_v26  ;;  %v3653_v51 = vsel %vm10296_vm11, %v3652_v6, %v3648_v55  ;;  %vm10379_vm5 = vcmp.eq.f32.partialorder %v3364_v63, 8.507059e+37 }
 0x213   : > { %v3367_v48 = vor.u32 1.1754944e-38, %v3366_v35  ;;  %v3796_v3 = vmul.f32 %v3653_v51, %v10190_v36  ;;  %v3179_v30 = vadd.f32 %v7743_v22, %v3178_v43  ;;  %v3357_v1 = vsub.f32 1.0, %v3356_v5  ;;  %v558_v51 = vld [vmem:[%s8285_s27 + $0x188] sm:$0xff] }
 0x214   : > { %vm3361_vm14 = vweird.f32 %v7747_v39  ;;  %3905 = vst.msk [vmem:[#allocation2 + $0x350] sm:$0xff] %vm3798_vm6, %v3776_v25  ;;  %vm3660_vm11 = vweird.f32 %v10327_v8  ;;  %vm10386_vm0 = vcmp.eq.f32.partialorder %v3664_v7, 8.507059e+37  ;;  %v3667_v0 = vor.u32 1.1754944e-38, %v3666_v41  ;;  %v1000_v6 = vpop.f32.mrf.mxu0  ;;  %v557_v25 = vld [vmem:[%s8285_s27 + $0x180] sm:$0xff] }
 0x215   : > { %v2171_v4 = vmul.f32 %v10353_v23, %v10268_v11  ;;  %v7749_v36 = vpop.eup %7748  ;;  %3925 = vst.msk [vmem:[#allocation2 + $0x3f0] sm:$0xff] %vm3798_vm6, %v3796_v3  ;;  %v3183_v37 = vsel %vm10375_vm10, %v7743_v22, %v3179_v30  ;;  %v3358_v28 = vmul.f32 %v7747_v39, %v3357_v1  ;;  %v10396_v34 = vadd.f32 %v4510_v21, %v10237_v10  ;;  %vm10404_vm15 = vmor %vm3360_vm13, %vm3361_vm14  ;;  %v556_v10 = vld [vmem:[%s8285_s27 + $0x178] sm:$0xff]  ;;  %v10479_v3 = vld [vmem:[%s8285_s27 + $0x190] sm:$0xff] }
 0x216   : > { %v7036_v61 = vmul.f32 -1.442695, %v10272_v19  ;;  %v3188_v53 = vsel %vm10322_vm7, %v3187_v44, %v3183_v37  ;;  %v3656_v29 = vmul.f32 %v7749_v36, %v10327_v8  ;;  %v2181_v46 = vand.u32 2147483648, %v10268_v11 }
 0x217   : > { %v2172_v13 = vsub.f32 1.0, %v2171_v4  ;;  %v3765_v59 = vmul.f32 %v3188_v53, %v10204_v2  ;;  %v3359_v22 = vadd.f32 %v7747_v39, %v3358_v28  ;;  %vm2176_vm4 = vweird.f32 %v10353_v23 }
 0x218   : > { %7750 = vpow2.f32 %v7036_v61  ;;  %v3657_v58 = vsub.f32 1.0, %v3656_v29  ;;  %vm3661_vm8 = vweird.f32 %v7749_v36  ;;  %v10417_v54 = vadd.f32 %v10079_v14, %v10239_v60  ;;  %vm10435_vm7 = vmor %vm2175_vm2, %vm2176_vm4 }
 0x219   : > { %v2173_v40 = vmul.f32 %v10353_v23, %v2172_v13  ;;  %3894 = vst.msk [vmem:[#allocation2 + $0x2f8] sm:$0xff] %vm3798_vm6, %v3765_v59  ;;  %v3363_v44 = vsel %vm10404_vm15, %v7747_v39, %v3359_v22  ;;  %v660_v17 = vpack.c.bf16 %v556_v10, %v555_v24  ;;  %v10424_v2 = vadd.f32 %v10079_v14, %v10286_v20  ;;  %vm10442_vm13 = vmor %vm3660_vm11, %vm3661_vm8  ;;  %v10499_v24 = vpop.f32.mrf.mxu2 }
 0x21a   : > { %v10428_v12 = vadd.f32 %v10079_v14, %v10329_v27  ;;  %v3368_v56 = vsel %vm10379_vm5, %v3367_v48, %v3363_v44  ;;  %v3658_v47 = vmul.f32 %v7749_v36, %v3657_v58  ;;  %v2182_v15 = vor.u32 1.1754944e-38, %v2181_v46 }
 0x21b   : > { %v2174_v60 = vadd.f32 %v10353_v23, %v2173_v40  ;;  %v3777_v20 = vmul.f32 %v3368_v56, %v10227_v57  ;;  %v7037_v52 = vmul.f32 -1.442695, %v10417_v54  ;;  %6966 = vmatmul.msk.bf16.gmra.mxu0 %vm712_vm1, %v660_v17  ;;  %v7038_v32 = vmul.f32 -1.442695, %v10424_v2  ;;  %v10506_v40 = vpop.f32.mrf.mxu1 }
 0x21c   : > { %v7039_v35 = vmul.f32 -1.442695, %v10428_v12  ;;  %v3659_v38 = vadd.f32 %v7749_v36, %v3658_v47  ;;  %vm2180_vm12 = vcmp.eq.f32.partialorder %v2179_v33, 8.507059e+37  ;;  %v10456_v57 = vadd.f32 %v10079_v14, %v1000_v6  ;;  %v1003_v8 = vpop.f32.mrf.mxu0 }
 0x21d   : > { %v2178_v16 = vsel %vm10435_vm7, %v10353_v23, %v2174_v60  ;;  %3906 = vst.msk [vmem:[#allocation2 + $0x358] sm:$0xff] %vm3798_vm6, %v3777_v20  ;;  %7752 = vpow2.f32 %v7037_v52  ;;  %v10460_v45 = vadd.f32 %v10079_v14, %v1003_v8  ;;  %v661_v21 = vpack.c.bf16 %v558_v51, %v557_v25 }
 0x21e   : > { %v7751_v42 = vpop.eup %7750  ;;  %v2183_v39 = vsel %vm2180_vm12, %v2182_v15, %v2178_v16  ;;  %v3663_v7 = vsel %vm10442_vm13, %v7749_v36, %v3659_v38  ;;  %7754 = vpow2.f32 %v7038_v32  ;;  %v7040_v33 = vmul.f32 -1.442695, %v10456_v57 }
 0x21f   : > { %v3698_v23 = vmul.f32 %v2183_v39, %v10018_v9  ;;  %v1651_v11 = vadd.f32 1.0, %v7751_v42  ;;  %v3668_v41 = vsel %vm10386_vm0, %v3667_v0, %v3663_v7  ;;  %7756 = vpow2.f32 %v7039_v35  ;;  %v10533_v7 = vpop.f32.mrf.mxu3 }
 0x220   : > { %v7041_v62 = vmul.f32 -1.442695, %v10460_v45  ;;  %v3797_v55 = vmul.f32 %v3668_v41, %v10246_v31  ;;  %v10482_v31 = vld [vmem:[%s8285_s27 + $0x198] sm:$0xff] }
 0x221   : > { %3827 = vst.msk [vmem:[#allocation2 + $0xe0] sm:$0xff] %vm3798_vm6, %v3698_v23  ;;  %7758 = vrcp.f32 %v1651_v11  ;;  %v2194_v1 = vand.u32 2147483647, %v1651_v11  ;;  %v2196_v26 = vand.u32 2147483648, %v1651_v11  ;;  %v662_v28 = vpack.c.bf16 %v10482_v31, %v10479_v3 }
 0x222   : > { %7760 = vpow2.f32 %v7040_v33  ;;  %3926 = vst.msk [vmem:[#allocation2 + $0x3f8] sm:$0xff] %vm3798_vm6, %v3797_v55  ;;  %vm2190_vm9 = vweird.f32 %v1651_v11 }
 0x223   : > { %7762 = vpow2.f32 %v7041_v62  ;;  %v7753_v9 = vpop.eup %7752  ;;  %vm10495_vm3 = vcmp.eq.f32.partialorder %v2194_v1, 8.507059e+37  ;;  %v2197_v46 = vor.u32 1.1754944e-38, %v2196_v26 }
 0x224   : > { %v7755_v43 = vpop.eup %7754  ;;  %v10472_v5 = vadd.f32 1.0, %v7753_v9  ;;  %v1005_v50 = vpop.f32.mrf.mxu0 }
 0x225   : > { %v7757_v18 = vpop.eup %7756  ;;  %v10476_v48 = vadd.f32 1.0, %v7755_v43  ;;  %v10512_v44 = vadd.f32 %v10079_v14, %v1005_v50  ;;  %v4294_v50 = vpop.f32.mrf.mxu2 }
 0x226   : > { %7764 = vrcp.f32 %v10472_v5  ;;  %v2209_v36 = vand.u32 2147483647, %v10472_v5  ;;  %v2211_v37 = vand.u32 2147483648, %v10472_v5  ;;  %v10491_v49 = vadd.f32 1.0, %v7757_v18 }
 0x227   : > { %v7759_v30 = vpop.eup %7758  ;;  %7766 = vrcp.f32 %v10476_v48  ;;  %v2226_v53 = vand.u32 2147483648, %v10476_v48  ;;  %v2224_v10 = vand.u32 2147483647, %v10476_v48  ;;  %vm2205_vm10 = vweird.f32 %v10472_v5 }
 0x228   : > { %v7761_v0 = vpop.eup %7760  ;;  %v2186_v4 = vmul.f32 %v7759_v30, %v1651_v11  ;;  %vm2191_vm2 = vweird.f32 %v7759_v30  ;;  %7768 = vrcp.f32 %v10491_v49  ;;  %vm2220_vm5 = vweird.f32 %v10476_v48 }
 0x229   : > { %v7763_v6 = vpop.eup %7762  ;;  %v10493_v29 = vadd.f32 1.0, %v7761_v0  ;;  %vm10515_vm14 = vcmp.eq.f32.partialorder %v2209_v36, 8.507059e+37  ;;  %v2212_v15 = vor.u32 1.1754944e-38, %v2211_v37  ;;  %v2227_v20 = vor.u32 1.1754944e-38, %v2226_v53  ;;  %vm2192_vm11 = vmor %vm2190_vm9, %vm2191_vm2 }
 0x22a   : > { %v2187_v61 = vsub.f32 1.0, %v2186_v4  ;;  %v10504_v22 = vadd.f32 1.0, %v7763_v6  ;;  %vm10522_vm0 = vcmp.eq.f32.partialorder %v2224_v10, 8.507059e+37  ;;  %v2239_v32 = vand.u32 2147483647, %v10491_v49  ;;  %v4154_v6 = vpop.f32.mrf.mxu1 }
 0x22b   : > { %6967 = vmatmul.msk.bf16.gmra.mxu0 %vm712_vm1, %v661_v21  ;;  %7770 = vrcp.f32 %v10493_v29  ;;  %v2241_v35 = vand.u32 2147483648, %v10491_v49  ;;  %v2254_v38 = vand.u32 2147483647, %v10493_v29  ;;  %v2256_v42 = vand.u32 2147483648, %v10493_v29 }
 0x22c   : > { %v2188_v59 = vmul.f32 %v7759_v30, %v2187_v61  ;;  %v7765_v58 = vpop.eup %7764  ;;  %v1008_v17 = vpop.f32.mrf.mxu0  ;;  %7772 = vrcp.f32 %v10504_v22  ;;  %vm2235_vm15 = vweird.f32 %v10491_v49  ;;  %v7042_v11 = vmul.f32 -1.442695, %v10512_v44 }
 0x22d   : > { %v7767_v56 = vpop.eup %7766  ;;  %v2201_v60 = vmul.f32 %v7765_v58, %v10472_v5  ;;  %vm2206_vm4 = vweird.f32 %v7765_v58  ;;  %vm2250_vm8 = vweird.f32 %v10493_v29  ;;  %vm10540_vm13 = vcmp.eq.f32.partialorder %v2239_v32, 8.507059e+37 }
 0x22e   : > { %v2189_v47 = vadd.f32 %v7759_v30, %v2188_v59  ;;  %v2216_v27 = vmul.f32 %v7767_v56, %v10476_v48  ;;  %v7769_v41 = vpop.eup %7768  ;;  %vm2221_vm7 = vweird.f32 %v7767_v56  ;;  %v2242_v51 = vor.u32 1.1754944e-38, %v2241_v35  ;;  %vm2207_vm9 = vmor %vm2205_vm10, %vm2206_vm4  ;;  %v4515_v35 = vpop.f32.mrf.mxu3 }
 0x22f   : > { %v2202_v8 = vsub.f32 1.0, %v2201_v60  ;;  %v2231_v43 = vmul.f32 %v7769_v41, %v10491_v49  ;;  %vm10546_vm12 = vcmp.eq.f32.partialorder %v2254_v38, 8.507059e+37  ;;  %v2257_v1 = vor.u32 1.1754944e-38, %v2256_v42 }
 0x230   : > { %v2193_v16 = vsel %vm2192_vm11, %v7759_v30, %v2189_v47  ;;  %v2217_v23 = vsub.f32 1.0, %v2216_v27  ;;  %v2269_v26 = vand.u32 2147483647, %v10504_v22  ;;  %7774 = vpow2.f32 %v7042_v11 }
 0x231   : > { %v2198_v39 = vsel %vm10495_vm3, %v2197_v46, %v2193_v16  ;;  %v2203_v62 = vmul.f32 %v7765_v58, %v2202_v8  ;;  %v7771_v55 = vpop.eup %7770  ;;  %v2232_v4 = vsub.f32 1.0, %v2231_v43  ;;  %v10555_v21 = vadd.f32 %v10079_v14, %v1008_v17  ;;  %vm2222_vm3 = vmor %vm2220_vm5, %vm2221_vm7 }
 0x232   : > { %v3699_v33 = vmul.f32 %v2198_v39, %v10272_v19  ;;  %v2218_v9 = vmul.f32 %v7767_v56, %v2217_v23  ;;  %v2246_v19 = vmul.f32 %v7771_v55, %v10493_v29  ;;  %v7773_v37 = vpop.eup %7772  ;;  %vm2236_vm2 = vweird.f32 %v7769_v41 }
 0x233   : > { %v2204_v18 = vadd.f32 %v7765_v58, %v2203_v62  ;;  %v4295_v13 = vadd.f32 %v4294_v50, %v4154_v6  ;;  %v2233_v10 = vmul.f32 %v7769_v41, %v2232_v4  ;;  %v2261_v59 = vmul.f32 %v7773_v37, %v10504_v22  ;;  %vm2237_vm5 = vmor %vm2235_vm15, %vm2236_vm2 }
 0x234   : > { %3828 = vst.msk [vmem:[#allocation2 + $0xe8] sm:$0xff] %vm3798_vm6, %v3699_v33  ;;  %v2219_v0 = vadd.f32 %v7767_v56, %v2218_v9  ;;  %v1010_v36 = vpop.f32.mrf.mxu0  ;;  %v2247_v53 = vsub.f32 1.0, %v2246_v19  ;;  %vm2251_vm10 = vweird.f32 %v7771_v55  ;;  %v7043_v32 = vmul.f32 -1.442695, %v10555_v21  ;;  %v3939_v33 = vld [vmem:[#allocation2 + $0xc0] ss:$4 sm:$0xff] }
 0x235   : > { %v2208_v61 = vsel %vm2207_vm9, %v7765_v58, %v2204_v18  ;;  %v2234_v60 = vadd.f32 %v7769_v41, %v2233_v10  ;;  %v2262_v27 = vsub.f32 1.0, %v2261_v59  ;;  %v10573_v63 = vadd.f32 %v4515_v35, %v4295_v13  ;;  %v4382_v19 = vld [vmem:[#allocation2 + $0xc2] ss:$4 sm:$0xff] }
 0x236   : > { %v2213_v5 = vsel %vm10515_vm14, %v2212_v15, %v2208_v61  ;;  %v2223_v46 = vsel %vm2222_vm3, %v7767_v56, %v2219_v0  ;;  %v2248_v58 = vmul.f32 %v7771_v55, %v2247_v53  ;;  %v10576_v15 = vadd.f32 %v10079_v14, %v1010_v36  ;;  %vm2252_vm14 = vmor %vm2250_vm8, %vm2251_vm10 }
 0x237   : > { %v3700_v17 = vmul.f32 %v2213_v5, %v10417_v54  ;;  %v2228_v47 = vsel %vm10522_vm0, %v2227_v20, %v2223_v46  ;;  %v2271_v54 = vand.u32 2147483648, %v10504_v22  ;;  %v2238_v20 = vsel %vm2237_vm5, %v7769_v41, %v2234_v60 }
 0x238   : > { %v3701_v48 = vmul.f32 %v2228_v47, %v10424_v2  ;;  %v2249_v56 = vadd.f32 %v7771_v55, %v2248_v58  ;;  %v7775_v2 = vpop.eup %7774  ;;  %v2263_v52 = vmul.f32 %v7773_v37, %v2262_v27  ;;  %vm2266_vm11 = vweird.f32 %v7773_v37 }
 0x239   : > { %3829 = vst.msk [vmem:[#allocation2 + $0xf0] sm:$0xff] %vm3798_vm6, %v3700_v17  ;;  %7776 = vpow2.f32 %v7043_v32  ;;  %v2243_v49 = vsel %vm10540_vm13, %v2242_v51, %v2238_v20  ;;  %v10588_v16 = vadd.f32 1.0, %v7775_v2  ;;  %v7044_v8 = vmul.f32 -1.442695, %v10576_v15 }
 0x23a   : > { %3830 = vst.msk [vmem:[#allocation2 + $0xf8] sm:$0xff] %vm3798_vm6, %v3701_v48  ;;  %v2253_v38 = vsel %vm2252_vm14, %v7771_v55, %v2249_v56  ;;  %v3702_v42 = vmul.f32 %v2243_v49, %v10428_v12  ;;  %v2264_v39 = vadd.f32 %v7773_v37, %v2263_v52  ;;  %vm2265_vm0 = vweird.f32 %v10504_v22  ;;  %v10636_v49 = vld [vmem:[%s11978_s2] ss:$0 sm:$0xff] }
 0x23b   : > { %6968 = vmatmul.msk.bf16.gmra.mxu0 %vm712_vm1, %v662_v28  ;;  %v2258_v29 = vsel %vm10546_vm12, %v2257_v1, %v2253_v38  ;;  %vm2267_vm15 = vmor %vm2265_vm0, %vm2266_vm11  ;;  %v2272_v41 = vor.u32 1.1754944e-38, %v2271_v54  ;;  %7778 = vrcp.f32 %v10588_v16  ;;  %vm2270_vm4 = vcmp.eq.f32.partialorder %v2269_v26, 8.507059e+37  ;;  %v561_v1 = vld [vmem:[%s8285_s27 + $0x1a0] sm:$0xff]  ;;  %v562_v26 = vld [vmem:[%s8285_s27 + $0x1a8] sm:$0xff] }
 0x23c   : > { %v1013_v23 = vpop.f32.mrf.mxu0  ;;  %v3703_v11 = vmul.f32 %v2258_v29, %v10456_v57  ;;  %3831 = vst.msk [vmem:[#allocation2 + $0x100] sm:$0xff] %vm3798_vm6, %v3702_v42  ;;  %v2268_v3 = vsel %vm2267_vm15, %v7773_v37, %v2264_v39  ;;  %7780 = vpow2.f32 %v7044_v8  ;;  %v4020_v57 = vld [vmem:[#allocation2 + $0xc1] ss:$4 sm:$0xff]  ;;  %v2286_v61 = vand.u32 2147483648, %v10588_v16 }
 0x23d   : > { %v2273_v12 = vsel %vm2270_vm4, %v2272_v41, %v2268_v3  ;;  %v10600_v31 = vadd.f32 %v10079_v14, %v1013_v23  ;;  %v663_v53 = vpack.c.bf16 %v562_v26, %v561_v1  ;;  %v2284_v5 = vand.u32 2147483647, %v10588_v16 }
 0x23e   : > { %3832 = vst.msk [vmem:[#allocation2 + $0x108] sm:$0xff] %vm3798_vm6, %v3703_v11  ;;  %v3704_v22 = vmul.f32 %v2273_v12, %v10460_v45  ;;  %vm2280_vm7 = vweird.f32 %v10588_v16  ;;  %v2287_v47 = vor.u32 1.1754944e-38, %v2286_v61 }
 0x23f   : > { %v7777_v28 = vpop.eup %7776  ;;  %v7045_v50 = vmul.f32 -1.442695, %v10600_v31  ;;  %vm2285_vm12 = vcmp.eq.f32.partialorder %v2284_v5, 8.507059e+37 }
 0x240   : > { %v10603_v62 = vadd.f32 1.0, %v7777_v28  ;;  %3833 = vst.msk [vmem:[#allocation2 + $0x110] sm:$0xff] %vm3798_vm6, %v3704_v22 }
 0x241   : > { %v4022_v55 = vld [vmem:[#allocation2 + $0xe1] ss:$4 sm:$0xff]  ;;  %v3941_v9 = vld [vmem:[#allocation2 + $0xe0] ss:$4 sm:$0xff]  ;;  %v4384_v51 = vld [vmem:[#allocation2 + $0xe2] ss:$4 sm:$0xff]  ;;  %v7779_v18 = vpop.eup %7778 }
 0x242   : > { %v4074_v43 = vpack.c.bf16 %v4022_v55, %v4020_v57  ;;  %v3993_v25 = vpack.c.bf16 %v3941_v9, %v3939_v33  ;;  %7782 = vrcp.f32 %v10603_v62  ;;  %v7781_v45 = vpop.eup %7780  ;;  %v2276_v30 = vmul.f32 %v7779_v18, %v10588_v16  ;;  %v564_v55 = vld [vmem:[%s8285_s27 + $0x1b8] sm:$0xff] }
 0x243   : > { %v4436_v0 = vpack.c.bf16 %v4384_v51, %v4382_v19  ;;  %7784 = vpow2.f32 %v7045_v50  ;;  %v10613_v6 = vadd.f32 1.0, %v7781_v45  ;;  %vm2281_vm8 = vweird.f32 %v7779_v18 }
 0x244   : > { %7138 = vmatmul.msk.bf16.gmra.mxu1 %vm3798_vm6, %v4074_v43  ;;  %7154 = vmatmul.msk.bf16.gmra.mxu2 %vm3798_vm6, %v3993_v25  ;;  %v1015_v4 = vpop.f32.mrf.mxu0  ;;  %v2277_v37 = vsub.f32 1.0, %v2276_v30  ;;  %vm2282_vm13 = vmor %vm2280_vm7, %vm2281_vm8  ;;  %v2299_v27 = vand.u32 2147483647, %v10603_v62  ;;  %v2301_v54 = vand.u32 2147483648, %v10603_v62  ;;  %vm2295_vm3 = vweird.f32 %v10603_v62 }
 0x245   : > { %v10616_v36 = vadd.f32 %v10079_v14, %v1015_v4  ;;  %7170 = vmatmul.msk.bf16.gmra.mxu3 %vm3798_vm6, %v4436_v0  ;;  %7786 = vrcp.f32 %v10613_v6  ;;  %v2316_v29 = vand.u32 2147483648, %v10613_v6  ;;  %v2314_v3 = vand.u32 2147483647, %v10613_v6 }
 0x246   : > { %v2278_v13 = vmul.f32 %v7779_v18, %v2277_v37  ;;  %vm2300_vm2 = vcmp.eq.f32.partialorder %v2299_v27, 8.507059e+37  ;;  %v2302_v42 = vor.u32 1.1754944e-38, %v2301_v54  ;;  %vm2310_vm14 = vweird.f32 %v10613_v6 }
 0x247   : > { %v7046_v46 = vmul.f32 -1.442695, %v10616_v36  ;;  %v2317_v43 = vor.u32 1.1754944e-38, %v2316_v29  ;;  %vm2315_vm0 = vcmp.eq.f32.partialorder %v2314_v3, 8.507059e+37 }
 0x248   : > { %v7783_v10 = vpop.eup %7782  ;;  %v2279_v17 = vadd.f32 %v7779_v18, %v2278_v13 }
 0x249   : > { %v7785_v59 = vpop.eup %7784  ;;  %v2291_v14 = vmul.f32 %v7783_v10, %v10603_v62  ;;  %7788 = vpow2.f32 %v7046_v46  ;;  %vm2296_vm9 = vweird.f32 %v7783_v10  ;;  %v563_v62 = vld [vmem:[%s8285_s27 + $0x1b0] sm:$0xff] }
 0x24a   : > { %v10626_v58 = vadd.f32 1.0, %v7785_v59  ;;  %v2283_v48 = vsel %vm2282_vm13, %v7779_v18, %v2279_v17  ;;  %vm2297_vm10 = vmor %vm2295_vm3, %vm2296_vm9  ;;  %v664_v19 = vpack.c.bf16 %v564_v55, %v563_v62 }
 0x24b   : > { %6969 = vmatmul.msk.bf16.gmra.mxu0 %vm712_vm1, %v663_v53  ;;  %v2292_v60 = vsub.f32 1.0, %v2291_v14  ;;  %v7787_v35 = vpop.eup %7786  ;;  %v2288_v56 = vsel %vm2285_vm12, %v2287_v47, %v2283_v48 }
 0x24c   : > { %v1018_v32 = vpop.f32.mrf.mxu0  ;;  %7790 = vrcp.f32 %v10626_v58  ;;  %v3705_v2 = vmul.f32 %v2288_v56, %v10512_v44  ;;  %v2306_v52 = vmul.f32 %v7787_v35, %v10613_v6  ;;  %vm2311_vm5 = vweird.f32 %v7787_v35 }
 0x24d   : > { %v2293_v20 = vmul.f32 %v7783_v10, %v2292_v60  ;;  %v10639_v38 = vadd.f32 %v10636_v49, %v1018_v32  ;;  %vm2312_vm11 = vmor %vm2310_vm14, %vm2311_vm5  ;;  %v2331_v18 = vand.u32 2147483648, %v10626_v58  ;;  %v2329_v26 = vand.u32 2147483647, %v10626_v58 }
 0x24e   : > { %3834 = vst.msk [vmem:[#allocation2 + $0x118] sm:$0xff] %vm3798_vm6, %v3705_v2  ;;  %v2307_v44 = vsub.f32 1.0, %v2306_v52  ;;  %vm2325_vm4 = vweird.f32 %v10626_v58  ;;  %v565_v2 = vld [vmem:[%s8285_s27 + $0x1c0] sm:$0xff] }
 0x24f   : > { %v7789_v16 = vpop.eup %7788  ;;  %v2294_v8 = vadd.f32 %v7783_v10, %v2293_v20  ;;  %v7047_v23 = vmul.f32 -1.442695, %v10639_v38  ;;  %v2332_v61 = vor.u32 1.1754944e-38, %v2331_v18  ;;  %vm2330_vm7 = vcmp.eq.f32.partialorder %v2329_v26, 8.507059e+37  ;;  %v566_v20 = vld [vmem:[%s8285_s27 + $0x1c8] sm:$0xff] }
 0x250   : > { %v10644_v39 = vadd.f32 1.0, %v7789_v16  ;;  %v2308_v41 = vmul.f32 %v7787_v35, %v2307_v44  ;;  %v665_v29 = vpack.c.bf16 %v566_v20, %v565_v2  ;;  %v10711_v2 = vpop.f32.mrf.mxu3 }
 0x251   : > { %v2298_v11 = vsel %vm2297_vm10, %v7783_v10, %v2294_v8 }
 0x252   : > { %v7791_v12 = vpop.eup %7790  ;;  %v2303_v28 = vsel %vm2300_vm2, %v2302_v42, %v2298_v11  ;;  %7792 = vrcp.f32 %v10644_v39  ;;  %v2309_v57 = vadd.f32 %v7787_v35, %v2308_v41  ;;  %v2344_v10 = vand.u32 2147483647, %v10644_v39 }
 0x253   : > { %v3706_v22 = vmul.f32 %v2303_v28, %v10555_v21  ;;  %v2321_v33 = vmul.f32 %v7791_v12, %v10626_v58  ;;  %7794 = vpow2.f32 %v7047_v23  ;;  %vm2326_vm15 = vweird.f32 %v7791_v12 }
 0x254   : > { %v1020_v9 = vpop.f32.mrf.mxu0  ;;  %v2313_v51 = vsel %vm2312_vm11, %v7787_v35, %v2309_v57  ;;  %vm2327_vm8 = vmor %vm2325_vm4, %vm2326_vm15  ;;  %v2346_v59 = vand.u32 2147483648, %v10644_v39  ;;  %vm2340_vm12 = vweird.f32 %v10644_v39  ;;  %vm2345_vm3 = vcmp.eq.f32.partialorder %v2344_v10, 8.507059e+37 }
 0x255   : > { %v10655_v25 = vadd.f32 %v10636_v49, %v1020_v9  ;;  %3835 = vst.msk [vmem:[#allocation2 + $0x120] sm:$0xff] %vm3798_vm6, %v3706_v22  ;;  %v2322_v50 = vsub.f32 1.0, %v2321_v33  ;;  %v2318_v21 = vsel %vm2315_vm0, %v2317_v43, %v2313_v51  ;;  %v4024_v57 = vld [vmem:[#allocation2 + $0x101] ss:$4 sm:$0xff]  ;;  %v3943_v33 = vld [vmem:[#allocation2 + $0x100] ss:$4 sm:$0xff] }
 0x256   : > { %v3707_v30 = vmul.f32 %v2318_v21, %v10576_v15  ;;  %v2347_v32 = vor.u32 1.1754944e-38, %v2346_v59  ;;  %v4386_v62 = vld [vmem:[#allocation2 + $0x102] ss:$4 sm:$0xff] }
 0x257   : > { %v7048_v45 = vmul.f32 -1.442695, %v10655_v25  ;;  %v2323_v1 = vmul.f32 %v7791_v12, %v2322_v50  ;;  %v567_v59 = vld [vmem:[%s8285_s27 + $0x1d0] sm:$0xff] }
 0x258   : > { %v7793_v0 = vpop.eup %7792  ;;  %3836 = vst.msk [vmem:[#allocation2 + $0x128] sm:$0xff] %vm3798_vm6, %v3707_v30 }
 0x259   : > { %7796 = vpow2.f32 %v7048_v45  ;;  %v2324_v4 = vadd.f32 %v7791_v12, %v2323_v1  ;;  %v2336_v6 = vmul.f32 %v7793_v0, %v10644_v39  ;;  %v7795_v37 = vpop.eup %7794  ;;  %vm2341_vm13 = vweird.f32 %v7793_v0 }
 0x25a   : > { %v1662_v13 = vadd.f32 1.0, %v7795_v37  ;;  %vm2342_vm9 = vmor %vm2340_vm12, %vm2341_vm13 }
 0x25b   : > { %6970 = vmatmul.msk.bf16.gmra.mxu0 %vm712_vm1, %v664_v19  ;;  %v2328_v53 = vsel %vm2327_vm8, %v7791_v12, %v2324_v4  ;;  %v2337_v15 = vsub.f32 1.0, %v2336_v6 }
 0x25c   : > { %v1023_v5 = vpop.f32.mrf.mxu0  ;;  %v2333_v46 = vsel %vm2330_vm7, %v2332_v61, %v2328_v53  ;;  %7798 = vrcp.f32 %v1662_v13  ;;  %v2359_v11 = vand.u32 2147483647, %v1662_v13  ;;  %v2361_v41 = vand.u32 2147483648, %v1662_v13 }
 0x25d   : > { %v10669_v17 = vadd.f32 %v10636_v49, %v1023_v5  ;;  %v3708_v14 = vmul.f32 %v2333_v46, %v10600_v31  ;;  %v2338_v47 = vmul.f32 %v7793_v0, %v2337_v15  ;;  %vm2355_vm10 = vweird.f32 %v1662_v13 }
 0x25e   : > { %vm2360_vm14 = vcmp.eq.f32.partialorder %v2359_v11, 8.507059e+37  ;;  %v2362_v55 = vor.u32 1.1754944e-38, %v2361_v41 }
 0x25f   : > { %v7797_v58 = vpop.eup %7796  ;;  %v7049_v48 = vmul.f32 -1.442695, %v10669_v17  ;;  %3837 = vst.msk [vmem:[#allocation2 + $0x130] sm:$0xff] %vm3798_vm6, %v3708_v14  ;;  %v2339_v60 = vadd.f32 %v7793_v0, %v2338_v47  ;;  %v568_v14 = vld [vmem:[%s8285_s27 + $0x1d8] sm:$0xff] }
 0x260   : > { %v10675_v27 = vadd.f32 1.0, %v7797_v58 }
 0x261   : > { %7800 = vpow2.f32 %v7049_v48  ;;  %v2343_v35 = vsel %vm2342_vm9, %v7793_v0, %v2339_v60  ;;  %v666_v60 = vpack.c.bf16 %v568_v14, %v567_v59 }
 0x262   : > { %7802 = vrcp.f32 %v10675_v27  ;;  %v2348_v31 = vsel %vm2345_vm3, %v2347_v32, %v2343_v35  ;;  %v7799_v56 = vpop.eup %7798  ;;  %v2374_v9 = vand.u32 2147483647, %v10675_v27  ;;  %v2376_v43 = vand.u32 2147483648, %v10675_v27  ;;  %v10707_v32 = vpop.f32.mrf.mxu1 }
 0x263   : > { %v3709_v54 = vmul.f32 %v2348_v31, %v10616_v36  ;;  %v2351_v16 = vmul.f32 %v7799_v56, %v1662_v13  ;;  %vm2356_vm2 = vweird.f32 %v7799_v56  ;;  %vm2370_vm0 = vweird.f32 %v10675_v27  ;;  %v10709_v35 = vpop.f32.mrf.mxu2 }
 0x264   : > { %v1025_v52 = vpop.f32.mrf.mxu0  ;;  %vm2357_vm5 = vmor %vm2355_vm10, %vm2356_vm2  ;;  %v2377_v61 = vor.u32 1.1754944e-38, %v2376_v43  ;;  %vm2375_vm4 = vcmp.eq.f32.partialorder %v2374_v9, 8.507059e+37  ;;  %v569_v43 = vld [vmem:[%s8285_s27 + $0x1e0] sm:$0xff] }
 0x265   : > { %v10682_v8 = vadd.f32 %v10636_v49, %v1025_v52  ;;  %3838 = vst.msk [vmem:[#allocation2 + $0x138] sm:$0xff] %vm3798_vm6, %v3709_v54  ;;  %v2352_v42 = vsub.f32 1.0, %v2351_v16 }
 0x267   : > { %v7801_v44 = vpop.eup %7800  ;;  %v7050_v39 = vmul.f32 -1.442695, %v10682_v8  ;;  %v2353_v36 = vmul.f32 %v7799_v56, %v2352_v42 }
 0x268   : > { %v7803_v23 = vpop.eup %7802  ;;  %v10686_v3 = vadd.f32 1.0, %v7801_v44 }
 0x269   : > { %v2366_v12 = vmul.f32 %v7803_v23, %v10675_v27  ;;  %7804 = vpow2.f32 %v7050_v39  ;;  %v2354_v28 = vadd.f32 %v7799_v56, %v2353_v36  ;;  %vm2371_vm11 = vweird.f32 %v7803_v23 }
 0x26a   : > { %7806 = vrcp.f32 %v10686_v3  ;;  %vm2372_vm15 = vmor %vm2370_vm0, %vm2371_vm11  ;;  %v2391_v10 = vand.u32 2147483648, %v10686_v3  ;;  %v2389_v58 = vand.u32 2147483647, %v10686_v3  ;;  %vm2385_vm7 = vweird.f32 %v10686_v3 }
 0x26b   : > { %6971 = vmatmul.msk.bf16.gmra.mxu0 %vm712_vm1, %v665_v29  ;;  %v2367_v22 = vsub.f32 1.0, %v2366_v12  ;;  %v2358_v51 = vsel %vm2357_vm5, %v7799_v56, %v2354_v28 }
 0x26c   : > { %v4026_v21 = vld [vmem:[#allocation2 + $0x121] ss:$4 sm:$0xff]  ;;  %v3945_v18 = vld [vmem:[#allocation2 + $0x120] ss:$4 sm:$0xff]  ;;  %v4388_v19 = vld [vmem:[#allocation2 + $0x122] ss:$4 sm:$0xff]  ;;  %v2363_v45 = vsel %vm2360_vm14, %v2362_v55, %v2358_v51 }
 0x26d   : > { %v2368_v50 = vmul.f32 %v7803_v23, %v2367_v22  ;;  %v4075_v30 = vpack.c.bf16 %v4026_v21, %v4024_v57  ;;  %v3994_v1 = vpack.c.bf16 %v3945_v18, %v3943_v33  ;;  %v4437_v26 = vpack.c.bf16 %v4388_v19, %v4386_v62  ;;  %v570_v51 = vld [vmem:[%s8285_s27 + $0x1e8] sm:$0xff] }
 0x26e   : > { %v3710_v4 = vmul.f32 %v2363_v45, %v10639_v38  ;;  %vm2390_vm12 = vcmp.eq.f32.partialorder %v2389_v58, 8.507059e+37  ;;  %v667_v18 = vpack.c.bf16 %v570_v51, %v569_v43 }
 0x26f   : > { %v7805_v0 = vpop.eup %7804  ;;  %v2369_v6 = vadd.f32 %v7803_v23, %v2368_v50  ;;  %7139 = vmatmul.msk.bf16.gmra.mxu1 %vm3798_vm6, %v4075_v30  ;;  %7155 = vmatmul.msk.bf16.gmra.mxu2 %vm3798_vm6, %v3994_v1 }
 0x270   : > { %v7807_v37 = vpop.eup %7806  ;;  %v1665_v53 = vadd.f32 1.0, %v7805_v0  ;;  %3839 = vst.msk [vmem:[#allocation2 + $0x140] sm:$0xff] %vm3798_vm6, %v3710_v4  ;;  %7171 = vmatmul.msk.bf16.gmra.mxu3 %vm3798_vm6, %v4437_v26 }
 0x271   : > { %v2373_v15 = vsel %vm2372_vm15, %v7803_v23, %v2369_v6  ;;  %v2381_v13 = vmul.f32 %v7807_v37, %v10686_v3  ;;  %vm2386_vm8 = vweird.f32 %v7807_v37 }
 0x272   : > { %v2378_v38 = vsel %vm2375_vm4, %v2377_v61, %v2373_v15  ;;  %7808 = vrcp.f32 %v1665_v53  ;;  %vm2387_vm13 = vmor %vm2385_vm7, %vm2386_vm8  ;;  %v2406_v42 = vand.u32 2147483648, %v1665_v53  ;;  %v2404_v23 = vand.u32 2147483647, %v1665_v53  ;;  %v572_v61 = vld [vmem:[%s8285_s27 + $0x1f8] sm:$0xff] }
 0x273   : > { %v3711_v5 = vmul.f32 %v2378_v38, %v10655_v25  ;;  %v2382_v46 = vsub.f32 1.0, %v2381_v13  ;;  %v2392_v25 = vor.u32 1.1754944e-38, %v2391_v10  ;;  %vm2400_vm3 = vweird.f32 %v1665_v53 }
 0x274   : > { %v2407_v41 = vor.u32 1.1754944e-38, %v2406_v42  ;;  %vm2405_vm10 = vcmp.eq.f32.partialorder %v2404_v23, 8.507059e+37  ;;  %v574_v23 = vld [vmem:[%s8285_s27 + $0x208] sm:$0xff] }
 0x275   : > { %3840 = vst.msk [vmem:[#allocation2 + $0x148] sm:$0xff] %vm3798_vm6, %v3711_v5  ;;  %v2383_v47 = vmul.f32 %v7807_v37, %v2382_v46 }
 0x277   : > { %v2384_v48 = vadd.f32 %v7807_v37, %v2383_v47 }
 0x278   : > { %v7809_v27 = vpop.eup %7808 }
 0x279   : > { %v2388_v31 = vsel %vm2387_vm13, %v7807_v37, %v2384_v48  ;;  %v2396_v56 = vmul.f32 %v7809_v27, %v1665_v53  ;;  %v1028_v54 = vpop.f32.mrf.mxu0  ;;  %vm2401_vm9 = vweird.f32 %v7809_v27  ;;  %v4159_v3 = vpop.f32.mrf.mxu1  ;;  %v571_v37 = vld [vmem:[%s8285_s27 + $0x1f0] sm:$0xff] }
 0x27a   : > { %v2393_v20 = vsel %vm2390_vm12, %v2392_v25, %v2388_v31  ;;  %v1029_v52 = vadd.f32 %v10636_v49, %v1028_v54  ;;  %vm2402_vm2 = vmor %vm2400_vm3, %vm2401_vm9  ;;  %v668_v46 = vpack.c.bf16 %v572_v61, %v571_v37 }
 0x27b   : > { %v3712_v16 = vmul.f32 %v2393_v20, %v10669_v17  ;;  %6972 = vmatmul.msk.bf16.gmra.mxu0 %vm712_vm1, %v666_v60  ;;  %v2397_v44 = vsub.f32 1.0, %v2396_v56 }
 0x27c   : > { %v7051_v29 = vmul.f32 -1.442695, %v1029_v52 }
 0x27d   : > { %3841 = vst.msk [vmem:[#allocation2 + $0x150] sm:$0xff] %vm3798_vm6, %v3712_v16  ;;  %v2398_v39 = vmul.f32 %v7809_v27, %v2397_v44 }
 0x27e   : > { %7810 = vpow2.f32 %v7051_v29 }
 0x27f   : > { %v2399_v11 = vadd.f32 %v7809_v27, %v2398_v39  ;;  %v573_v39 = vld [vmem:[%s8285_s27 + $0x200] sm:$0xff] }
 0x280   : > { %v4299_v36 = vpop.f32.mrf.mxu2  ;;  %v4520_v57 = vpop.f32.mrf.mxu3 }
 0x281   : > { %v2403_v17 = vsel %vm2402_vm2, %v7809_v27, %v2399_v11  ;;  %v4300_v12 = vadd.f32 %v4299_v36, %v4159_v3  ;;  %v1030_v28 = vpop.f32.mrf.mxu0  ;;  %v669_v11 = vpack.c.bf16 %v574_v23, %v573_v39 }
 0x282   : > { %v2408_v22 = vsel %vm2405_vm10, %v2407_v41, %v2403_v17  ;;  %v1031_v33 = vadd.f32 %v10636_v49, %v1030_v28 }
 0x283   : > { %v3713_v62 = vmul.f32 %v2408_v22, %v10682_v8  ;;  %v10719_v55 = vadd.f32 %v4520_v57, %v4300_v12 }
 0x284   : > { %v7811_v9 = vpop.eup %7810  ;;  %v7052_v50 = vmul.f32 -1.442695, %v1031_v33 }
 0x285   : > { %3842 = vst.msk [vmem:[#allocation2 + $0x158] sm:$0xff] %vm3798_vm6, %v3713_v62  ;;  %v1666_v21 = vadd.f32 1.0, %v7811_v9 }
 0x286   : > { %7812 = vpow2.f32 %v7052_v50 }
 0x287   : > { %7814 = vrcp.f32 %v1666_v21  ;;  %v2421_v26 = vand.u32 2147483648, %v1666_v21  ;;  %v2419_v4 = vand.u32 2147483647, %v1666_v21  ;;  %vm2415_vm14 = vweird.f32 %v1666_v21 }
 0x289   : > { %v2422_v15 = vor.u32 1.1754944e-38, %v2421_v26  ;;  %vm2420_vm0 = vcmp.eq.f32.partialorder %v2419_v4, 8.507059e+37 }
 0x28b   : > { %6973 = vmatmul.msk.bf16.gmra.mxu0 %vm712_vm1, %v667_v18 }
 0x28c   : > { %v7813_v19 = vpop.eup %7812 }
 0x28d   : > { %v7815_v45 = vpop.eup %7814  ;;  %v1667_v30 = vadd.f32 1.0, %v7813_v19 }
 0x28e   : > { %v2411_v8 = vmul.f32 %v7815_v45, %v1666_v21  ;;  %vm2416_vm5 = vweird.f32 %v7815_v45 }
 0x28f   : > { %7816 = vrcp.f32 %v1667_v30  ;;  %vm2417_vm11 = vmor %vm2415_vm14, %vm2416_vm5  ;;  %v2436_v47 = vand.u32 2147483648, %v1667_v30  ;;  %v2434_v60 = vand.u32 2147483647, %v1667_v30  ;;  %vm2430_vm4 = vweird.f32 %v1667_v30 }
 0x290   : > { %v2412_v1 = vsub.f32 1.0, %v2411_v8  ;;  %v575_v8 = vld [vmem:[%s8285_s27 + $0x210] sm:$0xff] }
 0x291   : > { %v2437_v31 = vor.u32 1.1754944e-38, %v2436_v47  ;;  %vm2435_vm7 = vcmp.eq.f32.partialorder %v2434_v60, 8.507059e+37 }
 0x292   : > { %v2413_v0 = vmul.f32 %v7815_v45, %v2412_v1  ;;  %v576_v1 = vld [vmem:[%s8285_s27 + $0x218] sm:$0xff] }
 0x293   : > { %v670_v61 = vpack.c.bf16 %v576_v1, %v575_v8 }
 0x294   : > { %v2414_v6 = vadd.f32 %v7815_v45, %v2413_v0 }
 0x295   : > { %v7817_v53 = vpop.eup %7816 }
 0x296   : > { %v2418_v13 = vsel %vm2417_vm11, %v7815_v45, %v2414_v6  ;;  %v2426_v38 = vmul.f32 %v7817_v53, %v1667_v30  ;;  %vm2431_vm15 = vweird.f32 %v7817_v53 }
 0x297   : > { %v2423_v5 = vsel %vm2420_vm0, %v2422_v15, %v2418_v13  ;;  %vm2432_vm8 = vmor %vm2430_vm4, %vm2431_vm15 }
 0x298   : > { %v3714_v10 = vmul.f32 %v2423_v5, %v1029_v52  ;;  %v2427_v59 = vsub.f32 1.0, %v2426_v38  ;;  %v1033_v14 = vpop.f32.mrf.mxu0 }
 0x299   : > { %v1034_v58 = vadd.f32 %v10636_v49, %v1033_v14 }
 0x29a   : > { %3843 = vst.msk [vmem:[#allocation2 + $0x160] sm:$0xff] %vm3798_vm6, %v3714_v10  ;;  %v2428_v48 = vmul.f32 %v7817_v53, %v2427_v59 }
 0x29b   : > { %v7053_v27 = vmul.f32 -1.442695, %v1034_v58  ;;  %6974 = vmatmul.msk.bf16.gmra.mxu0 %vm712_vm1, %v668_v46 }
 0x29c   : > { %v2429_v25 = vadd.f32 %v7817_v53, %v2428_v48 }
 0x29d   : > { %7818 = vpow2.f32 %v7053_v27 }
 0x29e   : > { %v2433_v56 = vsel %vm2432_vm8, %v7817_v53, %v2429_v25  ;;  %v10757_v25 = vpop.f32.mrf.mxu1 }
 0x29f   : > { %v2438_v54 = vsel %vm2435_vm7, %v2437_v31, %v2433_v56  ;;  %v10759_v31 = vpop.f32.mrf.mxu2 }
 0x2a0   : > { %v3715_v20 = vmul.f32 %v2438_v54, %v1031_v33  ;;  %v1035_v52 = vpop.f32.mrf.mxu0 }
 0x2a1   : > { %v10731_v16 = vadd.f32 %v10636_v49, %v1035_v52 }
 0x2a2   : > { %3844 = vst.msk [vmem:[#allocation2 + $0x168] sm:$0xff] %vm3798_vm6, %v3715_v20 }
 0x2a3   : > { %v7819_v44 = vpop.eup %7818  ;;  %v7054_v42 = vmul.f32 -1.442695, %v10731_v16 }
 0x2a4   : > { %v1668_v29 = vadd.f32 1.0, %v7819_v44  ;;  %v10762_v44 = vpop.f32.mrf.mxu3 }
 0x2a5   : > { %7820 = vpow2.f32 %v7054_v42 }
 0x2a6   : > { %7822 = vrcp.f32 %v1668_v29  ;;  %v2451_v33 = vand.u32 2147483648, %v1668_v29  ;;  %v2449_v43 = vand.u32 2147483647, %v1668_v29  ;;  %vm2445_vm12 = vweird.f32 %v1668_v29 }
 0x2a8   : > { %v1038_v41 = vpop.f32.mrf.mxu0  ;;  %v2452_v45 = vor.u32 1.1754944e-38, %v2451_v33  ;;  %vm2450_vm3 = vcmp.eq.f32.partialorder %v2449_v43, 8.507059e+37 }
 0x2a9   : > { %v10738_v3 = vadd.f32 %v10636_v49, %v1038_v41 }
 0x2ab   : > { %v7821_v36 = vpop.eup %7820  ;;  %v7055_v17 = vmul.f32 -1.442695, %v10738_v3  ;;  %6975 = vmatmul.msk.bf16.gmra.mxu0 %vm712_vm1, %v669_v11 }
 0x2ac   : > { %v7823_v12 = vpop.eup %7822  ;;  %v1669_v28 = vadd.f32 1.0, %v7821_v36 }
 0x2ad   : > { %v2441_v22 = vmul.f32 %v7823_v12, %v1668_v29  ;;  %7824 = vpow2.f32 %v7055_v17  ;;  %vm2446_vm13 = vweird.f32 %v7823_v12 }
 0x2ae   : > { %7826 = vrcp.f32 %v1669_v28  ;;  %vm2447_vm9 = vmor %vm2445_vm12, %vm2446_vm13  ;;  %v2466_v53 = vand.u32 2147483648, %v1669_v28  ;;  %v2464_v38 = vand.u32 2147483647, %v1669_v28  ;;  %vm2460_vm10 = vweird.f32 %v1669_v28 }
 0x2af   : > { %v2442_v57 = vsub.f32 1.0, %v2441_v22 }
 0x2b0   : > { %v1040_v62 = vpop.f32.mrf.mxu0  ;;  %v2467_v47 = vor.u32 1.1754944e-38, %v2466_v53  ;;  %vm2465_vm14 = vcmp.eq.f32.partialorder %v2464_v38, 8.507059e+37 }
 0x2b1   : > { %v2443_v9 = vmul.f32 %v7823_v12, %v2442_v57  ;;  %v10743_v51 = vadd.f32 %v10636_v49, %v1040_v62  ;;  %v4028_v62 = vld [vmem:[#allocation2 + $0x141] ss:$4 sm:$0xff] }
 0x2b3   : > { %v7825_v50 = vpop.eup %7824  ;;  %v2444_v21 = vadd.f32 %v7823_v12, %v2443_v9  ;;  %v7056_v18 = vmul.f32 -1.442695, %v10743_v51 }
 0x2b4   : > { %v7827_v19 = vpop.eup %7826  ;;  %v1670_v30 = vadd.f32 1.0, %v7825_v50 }
 0x2b5   : > { %v2448_v26 = vsel %vm2447_vm9, %v7823_v12, %v2444_v21  ;;  %v2456_v0 = vmul.f32 %v7827_v19, %v1669_v28  ;;  %7828 = vpow2.f32 %v7056_v18  ;;  %vm2461_vm2 = vweird.f32 %v7827_v19  ;;  %v577_v12 = vld [vmem:[%s8285_s27 + $0x220] sm:$0xff]  ;;  %v578_v28 = vld [vmem:[%s8285_s27 + $0x228] sm:$0xff] }
 0x2b6   : > { %v2453_v4 = vsel %vm2450_vm3, %v2452_v45, %v2448_v26  ;;  %7830 = vrcp.f32 %v1670_v30  ;;  %vm2462_vm5 = vmor %vm2460_vm10, %vm2461_vm2  ;;  %v2481_v20 = vand.u32 2147483648, %v1670_v30  ;;  %v2479_v29 = vand.u32 2147483647, %v1670_v30 }
 0x2b7   : > { %v3716_v6 = vmul.f32 %v2453_v4, %v1034_v58  ;;  %v2457_v37 = vsub.f32 1.0, %v2456_v0  ;;  %vm2475_vm0 = vweird.f32 %v1670_v30  ;;  %v671_v18 = vpack.c.bf16 %v578_v28, %v577_v12  ;;  %v579_v28 = vld [vmem:[%s8285_s27 + $0x230] sm:$0xff] }
 0x2b8   : > { %v1043_v15 = vpop.f32.mrf.mxu0  ;;  %v2482_v36 = vor.u32 1.1754944e-38, %v2481_v20  ;;  %vm2480_vm4 = vcmp.eq.f32.partialorder %v2479_v29, 8.507059e+37 }
 0x2b9   : > { %3845 = vst.msk [vmem:[#allocation2 + $0x170] sm:$0xff] %vm3798_vm6, %v3716_v6  ;;  %v2458_v13 = vmul.f32 %v7827_v19, %v2457_v37  ;;  %v10750_v5 = vadd.f32 %v10636_v49, %v1043_v15  ;;  %v4390_v37 = vld [vmem:[#allocation2 + $0x142] ss:$4 sm:$0xff] }
 0x2bb   : > { %v7829_v46 = vpop.eup %7828  ;;  %v2459_v10 = vadd.f32 %v7827_v19, %v2458_v13  ;;  %v7057_v59 = vmul.f32 -1.442695, %v10750_v5  ;;  %6976 = vmatmul.msk.bf16.gmra.mxu0 %vm712_vm1, %v670_v61 }
 0x2bc   : > { %v7831_v14 = vpop.eup %7830  ;;  %v10754_v58 = vadd.f32 1.0, %v7829_v46 }
 0x2bd   : > { %v2463_v48 = vsel %vm2462_vm5, %v7827_v19, %v2459_v10  ;;  %v2471_v60 = vmul.f32 %v7831_v14, %v1670_v30  ;;  %7832 = vpow2.f32 %v7057_v59  ;;  %vm2476_vm11 = vweird.f32 %v7831_v14  ;;  %v3947_v19 = vld [vmem:[#allocation2 + $0x140] ss:$4 sm:$0xff] }
 0x2be   : > { %v2468_v27 = vsel %vm2465_vm14, %v2467_v47, %v2463_v48  ;;  %7834 = vrcp.f32 %v10754_v58  ;;  %vm2477_vm15 = vmor %vm2475_vm0, %vm2476_vm11  ;;  %v2494_v50 = vand.u32 2147483647, %v10754_v58  ;;  %v2496_v30 = vand.u32 2147483648, %v10754_v58 }
 0x2bf   : > { %v3717_v56 = vmul.f32 %v2468_v27, %v10731_v16  ;;  %v2472_v54 = vsub.f32 1.0, %v2471_v60  ;;  %vm2490_vm7 = vweird.f32 %v10754_v58 }
 0x2c0   : > { %v1045_v52 = vpop.f32.mrf.mxu0  ;;  %v2497_v47 = vor.u32 1.1754944e-38, %v2496_v30  ;;  %vm2495_vm12 = vcmp.eq.f32.partialorder %v2494_v50, 8.507059e+37 }
 0x2c1   : > { %3846 = vst.msk [vmem:[#allocation2 + $0x178] sm:$0xff] %vm3798_vm6, %v3717_v56  ;;  %v2473_v42 = vmul.f32 %v7831_v14, %v2472_v54  ;;  %v10766_v39 = vadd.f32 %v10636_v49, %v1045_v52  ;;  %v4164_v21 = vpop.f32.mrf.mxu1 }
 0x2c3   : > { %v7833_v23 = vpop.eup %7832  ;;  %v2474_v11 = vadd.f32 %v7831_v14, %v2473_v42  ;;  %v7058_v16 = vmul.f32 -1.442695, %v10766_v39 }
 0x2c4   : > { %v7835_v41 = vpop.eup %7834  ;;  %v10769_v17 = vadd.f32 1.0, %v7833_v23 }
 0x2c5   : > { %v2478_v22 = vsel %vm2477_vm15, %v7831_v14, %v2474_v11  ;;  %v2486_v57 = vmul.f32 %v7835_v41, %v10754_v58  ;;  %7836 = vpow2.f32 %v7058_v16  ;;  %vm2491_vm8 = vweird.f32 %v7835_v41 }
 0x2c6   : > { %v2483_v33 = vsel %vm2480_vm4, %v2482_v36, %v2478_v22  ;;  %7838 = vrcp.f32 %v10769_v17  ;;  %vm2492_vm13 = vmor %vm2490_vm7, %vm2491_vm8  ;;  %v2511_v20 = vand.u32 2147483648, %v10769_v17  ;;  %v2509_v29 = vand.u32 2147483647, %v10769_v17  ;;  %v580_v22 = vld [vmem:[%s8285_s27 + $0x238] sm:$0xff] }
 0x2c7   : > { %v3718_v9 = vmul.f32 %v2483_v33, %v10738_v3  ;;  %v2487_v43 = vsub.f32 1.0, %v2486_v57  ;;  %v4304_v45 = vpop.f32.mrf.mxu2  ;;  %vm2505_vm3 = vweird.f32 %v10769_v17  ;;  %v672_v50 = vpack.c.bf16 %v580_v22, %v579_v28 }
 0x2c8   : > { %v1048_v8 = vpop.f32.mrf.mxu0  ;;  %v4030_v1 = vld [vmem:[#allocation2 + $0x161] ss:$4 sm:$0xff]  ;;  %v3949_v26 = vld [vmem:[#allocation2 + $0x160] ss:$4 sm:$0xff]  ;;  %v4305_v0 = vadd.f32 %v4304_v45, %v4164_v21  ;;  %v4392_v61 = vld [vmem:[#allocation2 + $0x162] ss:$4 sm:$0xff]  ;;  %v4525_v53 = vpop.f32.mrf.mxu3 }
 0x2c9   : > { %3847 = vst.msk [vmem:[#allocation2 + $0x180] sm:$0xff] %vm3798_vm6, %v3718_v9  ;;  %v2488_v4 = vmul.f32 %v7835_v41, %v2487_v43  ;;  %v10780_v6 = vadd.f32 %v10636_v49, %v1048_v8  ;;  %v4076_v3 = vpack.c.bf16 %v4030_v1, %v4028_v62  ;;  %v3995_v15 = vpack.c.bf16 %v3949_v26, %v3947_v19 }
 0x2ca   : > { %v4438_v13 = vpack.c.bf16 %v4392_v61, %v4390_v37  ;;  %v10782_v38 = vadd.f32 %v4525_v53, %v4305_v0  ;;  %v2512_v36 = vor.u32 1.1754944e-38, %v2511_v20  ;;  %vm2510_vm10 = vcmp.eq.f32.partialorder %v2509_v29, 8.507059e+37 }
 0x2cb   : > { %v7837_v46 = vpop.eup %7836  ;;  %v2489_v10 = vadd.f32 %v7835_v41, %v2488_v4  ;;  %v7059_v59 = vmul.f32 -1.442695, %v10780_v6  ;;  %6977 = vmatmul.msk.bf16.gmra.mxu0 %vm712_vm1, %v671_v18  ;;  %7140 = vmatmul.msk.bf16.gmra.mxu1 %vm3798_vm6, %v4076_v3 }
 0x2cc   : > { %v7839_v14 = vpop.eup %7838  ;;  %v1673_v48 = vadd.f32 1.0, %v7837_v46  ;;  %7156 = vmatmul.msk.bf16.gmra.mxu2 %vm3798_vm6, %v3995_v15  ;;  %7172 = vmatmul.msk.bf16.gmra.mxu3 %vm3798_vm6, %v4438_v13 }
 0x2cd   : > { %v2493_v60 = vsel %vm2492_vm13, %v7835_v41, %v2489_v10  ;;  %v2501_v27 = vmul.f32 %v7839_v14, %v10769_v17  ;;  %7840 = vpow2.f32 %v7059_v59  ;;  %vm2506_vm9 = vweird.f32 %v7839_v14 }
 0x2ce   : > { %v2498_v58 = vsel %vm2495_vm12, %v2497_v47, %v2493_v60  ;;  %7842 = vrcp.f32 %v1673_v48  ;;  %vm2507_vm2 = vmor %vm2505_vm3, %vm2506_vm9  ;;  %v2526_v21 = vand.u32 2147483648, %v1673_v48  ;;  %v2524_v19 = vand.u32 2147483647, %v1673_v48 }
 0x2cf   : > { %v3719_v56 = vmul.f32 %v2498_v58, %v10743_v51  ;;  %v2502_v54 = vsub.f32 1.0, %v2501_v27  ;;  %vm2520_vm14 = vweird.f32 %v1673_v48  ;;  %v581_v58 = vld [vmem:[%s8285_s27 + $0x240] sm:$0xff] }
 0x2d0   : > { %v1050_v52 = vpop.f32.mrf.mxu0  ;;  %v2527_v26 = vor.u32 1.1754944e-38, %v2526_v21  ;;  %vm2525_vm0 = vcmp.eq.f32.partialorder %v2524_v19, 8.507059e+37 }
 0x2d1   : > { %3848 = vst.msk [vmem:[#allocation2 + $0x188] sm:$0xff] %vm3798_vm6, %v3719_v56  ;;  %v2503_v42 = vmul.f32 %v7839_v14, %v2502_v54  ;;  %v10797_v23 = vadd.f32 %v10636_v49, %v1050_v52  ;;  %v582_v56 = vld [vmem:[%s8285_s27 + $0x248] sm:$0xff] }
 0x2d3   : > { %v7841_v11 = vpop.eup %7840  ;;  %v2504_v16 = vadd.f32 %v7839_v14, %v2503_v42  ;;  %v7060_v51 = vmul.f32 -1.442695, %v10797_v23 }
 0x2d4   : > { %v7843_v41 = vpop.eup %7842  ;;  %v1674_v12 = vadd.f32 1.0, %v7841_v11  ;;  %v673_v11 = vpack.c.bf16 %v582_v56, %v581_v58 }
 0x2d5   : > { %v2508_v57 = vsel %vm2507_vm2, %v7839_v14, %v2504_v16  ;;  %v2516_v33 = vmul.f32 %v7843_v41, %v1673_v48  ;;  %7844 = vpow2.f32 %v7060_v51  ;;  %vm2521_vm5 = vweird.f32 %v7843_v41 }
 0x2d6   : > { %v2513_v62 = vsel %vm2510_vm10, %v2512_v36, %v2508_v57  ;;  %7846 = vrcp.f32 %v1674_v12  ;;  %vm2522_vm11 = vmor %vm2520_vm14, %vm2521_vm5  ;;  %v2541_v15 = vand.u32 2147483648, %v1674_v12  ;;  %v2539_v10 = vand.u32 2147483647, %v1674_v12 }
 0x2d7   : > { %v3720_v9 = vmul.f32 %v2513_v62, %v10750_v5  ;;  %v2517_v43 = vsub.f32 1.0, %v2516_v33  ;;  %vm2535_vm4 = vweird.f32 %v1674_v12 }
 0x2d8   : > { %v1053_v17 = vpop.f32.mrf.mxu0  ;;  %vm2540_vm7 = vcmp.eq.f32.partialorder %v2539_v10, 8.507059e+37 }
 0x2d9   : > { %3849 = vst.msk [vmem:[#allocation2 + $0x190] sm:$0xff] %vm3798_vm6, %v3720_v9  ;;  %v2518_v18 = vmul.f32 %v7843_v41, %v2517_v43  ;;  %v10806_v45 = vadd.f32 %v10636_v49, %v1053_v17 }
 0x2db   : > { %v7845_v30 = vpop.eup %7844  ;;  %v2519_v8 = vadd.f32 %v7843_v41, %v2518_v18  ;;  %v7061_v1 = vmul.f32 -1.442695, %v10806_v45  ;;  %6978 = vmatmul.msk.bf16.gmra.mxu0 %vm712_vm1, %v672_v50 }
 0x2dc   : > { %v7847_v5 = vpop.eup %7846  ;;  %v1675_v0 = vadd.f32 1.0, %v7845_v30 }
 0x2dd   : > { %v2523_v4 = vsel %vm2522_vm11, %v7843_v41, %v2519_v8  ;;  %v2531_v3 = vmul.f32 %v7847_v5, %v1674_v12  ;;  %7848 = vpow2.f32 %v7061_v1  ;;  %vm2536_vm15 = vweird.f32 %v7847_v5 }
 0x2de   : > { %v2528_v37 = vsel %vm2525_vm0, %v2527_v26, %v2523_v4  ;;  %7850 = vrcp.f32 %v1675_v0  ;;  %vm2537_vm8 = vmor %vm2535_vm4, %vm2536_vm15  ;;  %v2556_v16 = vand.u32 2147483648, %v1675_v0  ;;  %v2554_v36 = vand.u32 2147483647, %v1675_v0 }
 0x2df   : > { %v3721_v61 = vmul.f32 %v2528_v37, %v10766_v39  ;;  %v2532_v53 = vsub.f32 1.0, %v2531_v3  ;;  %v2542_v39 = vor.u32 1.1754944e-38, %v2541_v15  ;;  %vm2550_vm12 = vweird.f32 %v1675_v0  ;;  %v583_v37 = vld [vmem:[%s8285_s27 + $0x250] sm:$0xff] }
 0x2e0   : > { %v1055_v13 = vpop.f32.mrf.mxu0  ;;  %v2557_v33 = vor.u32 1.1754944e-38, %v2556_v16  ;;  %vm2555_vm3 = vcmp.eq.f32.partialorder %v2554_v36, 8.507059e+37 }
 0x2e1   : > { %3850 = vst.msk [vmem:[#allocation2 + $0x198] sm:$0xff] %vm3798_vm6, %v3721_v61  ;;  %v2533_v46 = vmul.f32 %v7847_v5, %v2532_v53  ;;  %v10813_v59 = vadd.f32 %v10636_v49, %v1055_v13  ;;  %v584_v61 = vld [vmem:[%s8285_s27 + $0x258] sm:$0xff] }
 0x2e2   : > { %v674_v10 = vpack.c.bf16 %v584_v61, %v583_v37 }
 0x2e3   : > { %v7849_v14 = vpop.eup %7848  ;;  %v2534_v47 = vadd.f32 %v7847_v5, %v2533_v46  ;;  %v7062_v48 = vmul.f32 -1.442695, %v10813_v59 }
 0x2e4   : > { %v7851_v60 = vpop.eup %7850  ;;  %v1676_v27 = vadd.f32 1.0, %v7849_v14 }
 0x2e5   : > { %v2538_v54 = vsel %vm2537_vm8, %v7847_v5, %v2534_v47  ;;  %v2546_v20 = vmul.f32 %v7851_v60, %v1675_v0  ;;  %7852 = vpow2.f32 %v7062_v48  ;;  %vm2551_vm13 = vweird.f32 %v7851_v60 }
 0x2e6   : > { %v2543_v52 = vsel %vm2540_vm7, %v2542_v39, %v2538_v54  ;;  %7854 = vrcp.f32 %v1676_v27  ;;  %vm2552_vm9 = vmor %vm2550_vm12, %vm2551_vm13  ;;  %v2571_v18 = vand.u32 2147483648, %v1676_v27  ;;  %v2569_v8 = vand.u32 2147483647, %v1676_v27  ;;  %v10838_v39 = vld [vmem:[%s11978_s2] ss:$0 sm:$0xff] }
 0x2e7   : > { %v3722_v42 = vmul.f32 %v2543_v52, %v10780_v6  ;;  %v2547_v29 = vsub.f32 1.0, %v2546_v20  ;;  %vm2565_vm10 = vweird.f32 %v1676_v27 }
 0x2e8   : > { %v1058_v51 = vpop.f32.mrf.mxu0  ;;  %vm2570_vm14 = vcmp.eq.f32.partialorder %v2569_v8, 8.507059e+37 }
 0x2e9   : > { %3851 = vst.msk [vmem:[#allocation2 + $0x1a0] sm:$0xff] %vm3798_vm6, %v3722_v42  ;;  %v2548_v41 = vmul.f32 %v7851_v60, %v2547_v29  ;;  %v10821_v12 = vadd.f32 %v10636_v49, %v1058_v51 }
 0x2eb   : > { %v7853_v28 = vpop.eup %7852  ;;  %v2549_v22 = vadd.f32 %v7851_v60, %v2548_v41  ;;  %v7063_v57 = vmul.f32 -1.442695, %v10821_v12  ;;  %6979 = vmatmul.msk.bf16.gmra.mxu0 %vm712_vm1, %v673_v11 }
 0x2ec   : > { %v7855_v6 = vpop.eup %7854  ;;  %v1677_v62 = vadd.f32 1.0, %v7853_v28 }
 0x2ed   : > { %v2553_v9 = vsel %vm2552_vm9, %v7851_v60, %v2549_v22  ;;  %v2561_v43 = vmul.f32 %v7855_v6, %v1676_v27  ;;  %7856 = vpow2.f32 %v7063_v57  ;;  %vm2566_vm2 = vweird.f32 %v7855_v6 }
 0x2ee   : > { %v2558_v50 = vsel %vm2555_vm3, %v2557_v33, %v2553_v9  ;;  %7858 = vrcp.f32 %v1677_v62  ;;  %vm2567_vm5 = vmor %vm2565_vm10, %vm2566_vm2  ;;  %v2586_v14 = vand.u32 2147483648, %v1677_v62  ;;  %v2584_v60 = vand.u32 2147483647, %v1677_v62 }
 0x2ef   : > { %v3723_v21 = vmul.f32 %v2558_v50, %v10797_v23  ;;  %v2562_v17 = vsub.f32 1.0, %v2561_v43  ;;  %v2572_v23 = vor.u32 1.1754944e-38, %v2571_v18  ;;  %vm2580_vm0 = vweird.f32 %v1677_v62  ;;  %v585_v50 = vld [vmem:[%s8285_s27 + $0x260] sm:$0xff] }
 0x2f0   : > { %v1060_v19 = vpop.f32.mrf.mxu0  ;;  %v2587_v20 = vor.u32 1.1754944e-38, %v2586_v14  ;;  %vm2585_vm4 = vcmp.eq.f32.partialorder %v2584_v60, 8.507059e+37 }
 0x2f1   : > { %3852 = vst.msk [vmem:[#allocation2 + $0x1a8] sm:$0xff] %vm3798_vm6, %v3723_v21  ;;  %v2563_v30 = vmul.f32 %v7855_v6, %v2562_v17  ;;  %v10828_v1 = vadd.f32 %v10636_v49, %v1060_v19  ;;  %v586_v21 = vld [vmem:[%s8285_s27 + $0x268] sm:$0xff] }
 0x2f3   : > { %v7857_v5 = vpop.eup %7856  ;;  %v2564_v26 = vadd.f32 %v7855_v6, %v2563_v30  ;;  %v7064_v0 = vmul.f32 -1.442695, %v10828_v1  ;;  %v4032_v30 = vld [vmem:[#allocation2 + $0x181] ss:$4 sm:$0xff] }
 0x2f4   : > { %v7859_v4 = vpop.eup %7858  ;;  %v1678_v3 = vadd.f32 1.0, %v7857_v5 }
 0x2f5   : > { %v2568_v53 = vsel %vm2567_vm5, %v7855_v6, %v2564_v26  ;;  %v2576_v15 = vmul.f32 %v7859_v4, %v1677_v62  ;;  %7860 = vpow2.f32 %v7064_v0  ;;  %vm2581_vm11 = vweird.f32 %v7859_v4 }
 0x2f6   : > { %v2573_v13 = vsel %vm2570_vm14, %v2572_v23, %v2568_v53  ;;  %7862 = vrcp.f32 %v1678_v3  ;;  %vm2582_vm15 = vmor %vm2580_vm0, %vm2581_vm11  ;;  %v2601_v41 = vand.u32 2147483648, %v1678_v3  ;;  %v2599_v22 = vand.u32 2147483647, %v1678_v3 }
 0x2f7   : > { %v3724_v49 = vmul.f32 %v2573_v13, %v10806_v45  ;;  %v2577_v46 = vsub.f32 1.0, %v2576_v15  ;;  %vm2595_vm7 = vweird.f32 %v1678_v3  ;;  %v675_v0 = vpack.c.bf16 %v586_v21, %v585_v50 }
 0x2f8   : > { %v1063_v47 = vpop.f32.mrf.mxu0  ;;  %vm2600_vm12 = vcmp.eq.f32.partialorder %v2599_v22, 8.507059e+37 }
 0x2f9   : > { %3853 = vst.msk [vmem:[#allocation2 + $0x1b0] sm:$0xff] %vm3798_vm6, %v3724_v49  ;;  %v2578_v48 = vmul.f32 %v7859_v4, %v2577_v46  ;;  %v10841_v27 = vadd.f32 %v10838_v39, %v1063_v47  ;;  %v4394_v49 = vld [vmem:[#allocation2 + $0x182] ss:$4 sm:$0xff] }
 0x2fb   : > { %v7861_v58 = vpop.eup %7860  ;;  %v2579_v56 = vadd.f32 %v7859_v4, %v2578_v48  ;;  %v7065_v45 = vmul.f32 -1.442695, %v10841_v27  ;;  %6980 = vmatmul.msk.bf16.gmra.mxu0 %vm712_vm1, %v674_v10 }
 0x2fc   : > { %v7863_v54 = vpop.eup %7862  ;;  %v10845_v52 = vadd.f32 1.0, %v7861_v58 }
 0x2fd   : > { %v2583_v42 = vsel %vm2582_vm15, %v7859_v4, %v2579_v56  ;;  %v2591_v29 = vmul.f32 %v7863_v54, %v1678_v3  ;;  %7864 = vpow2.f32 %v7065_v45  ;;  %vm2596_vm8 = vweird.f32 %v7863_v54  ;;  %v3951_v4 = vld [vmem:[#allocation2 + $0x180] ss:$4 sm:$0xff] }
 0x2fe   : > { %v2588_v11 = vsel %vm2585_vm4, %v2587_v20, %v2583_v42  ;;  %7866 = vrcp.f32 %v10845_v52  ;;  %vm2597_vm13 = vmor %vm2595_vm7, %vm2596_vm8  ;;  %v2614_v26 = vand.u32 2147483647, %v10845_v52  ;;  %v2616_v23 = vand.u32 2147483648, %v10845_v52 }
 0x2ff   : > { %v3725_v16 = vmul.f32 %v2588_v11, %v10813_v59  ;;  %v2592_v51 = vsub.f32 1.0, %v2591_v29  ;;  %v2602_v59 = vor.u32 1.1754944e-38, %v2601_v41  ;;  %vm2610_vm3 = vweird.f32 %v10845_v52 }
 0x300   : > { %v1065_v36 = vpop.f32.mrf.mxu0  ;;  %v2617_v58 = vor.u32 1.1754944e-38, %v2616_v23  ;;  %vm2615_vm10 = vcmp.eq.f32.partialorder %v2614_v26, 8.507059e+37 }
 0x301   : > { %3854 = vst.msk [vmem:[#allocation2 + $0x1b8] sm:$0xff] %vm3798_vm6, %v3725_v16  ;;  %v2593_v28 = vmul.f32 %v7863_v54, %v2592_v51  ;;  %v10851_v57 = vadd.f32 %v10838_v39, %v1065_v36 }
 0x303   : > { %v7865_v6 = vpop.eup %7864  ;;  %v2594_v33 = vadd.f32 %v7863_v54, %v2593_v28  ;;  %v7066_v62 = vmul.f32 -1.442695, %v10851_v57 }
 0x304   : > { %v7867_v9 = vpop.eup %7866  ;;  %v10854_v43 = vadd.f32 1.0, %v7865_v6 }
 0x305   : > { %v2598_v17 = vsel %vm2597_vm13, %v7863_v54, %v2594_v33  ;;  %v2606_v18 = vmul.f32 %v7867_v9, %v10845_v52  ;;  %7868 = vpow2.f32 %v7066_v62  ;;  %vm2611_vm9 = vweird.f32 %v7867_v9  ;;  %v587_v62 = vld [vmem:[%s8285_s27 + $0x270] sm:$0xff] }
 0x306   : > { %v2603_v19 = vsel %vm2600_vm12, %v2602_v59, %v2598_v17  ;;  %7870 = vrcp.f32 %v10854_v43  ;;  %vm2612_vm2 = vmor %vm2610_vm3, %vm2611_vm9  ;;  %v2631_v29 = vand.u32 2147483648, %v10854_v43  ;;  %v2629_v51 = vand.u32 2147483647, %v10854_v43 }
 0x307   : > { %v3726_v8 = vmul.f32 %v2603_v19, %v10821_v12  ;;  %v2607_v5 = vsub.f32 1.0, %v2606_v18  ;;  %vm2625_vm14 = vweird.f32 %v10854_v43 }
 0x308   : > { %v1068_v3 = vpop.f32.mrf.mxu0  ;;  %v4034_v37 = vld [vmem:[#allocation2 + $0x1a1] ss:$4 sm:$0xff]  ;;  %v3953_v61 = vld [vmem:[#allocation2 + $0x1a0] ss:$4 sm:$0xff]  ;;  %v4396_v12 = vld [vmem:[#allocation2 + $0x1a2] ss:$4 sm:$0xff] }
 0x309   : > { %3855 = vst.msk [vmem:[#allocation2 + $0x1c0] sm:$0xff] %vm3798_vm6, %v3726_v8  ;;  %v2608_v53 = vmul.f32 %v7867_v9, %v2607_v5  ;;  %v10865_v15 = vadd.f32 %v10838_v39, %v1068_v3  ;;  %v4077_v13 = vpack.c.bf16 %v4034_v37, %v4032_v30  ;;  %v3996_v46 = vpack.c.bf16 %v3953_v61, %v3951_v4 }
 0x30a   : > { %v4439_v10 = vpack.c.bf16 %v4396_v12, %v4394_v49  ;;  %v2632_v6 = vor.u32 1.1754944e-38, %v2631_v29  ;;  %vm2630_vm0 = vcmp.eq.f32.partialorder %v2629_v51, 8.507059e+37 }
 0x30b   : > { %v7869_v14 = vpop.eup %7868  ;;  %v2609_v47 = vadd.f32 %v7867_v9, %v2608_v53  ;;  %v7067_v48 = vmul.f32 -1.442695, %v10865_v15  ;;  %6981 = vmatmul.msk.bf16.gmra.mxu0 %vm712_vm1, %v675_v0  ;;  %7141 = vmatmul.msk.bf16.gmra.mxu1 %vm3798_vm6, %v4077_v13 }
 0x30c   : > { %v7871_v60 = vpop.eup %7870  ;;  %v1681_v56 = vadd.f32 1.0, %v7869_v14  ;;  %7157 = vmatmul.msk.bf16.gmra.mxu2 %vm3798_vm6, %v3996_v46  ;;  %7173 = vmatmul.msk.bf16.gmra.mxu3 %vm3798_vm6, %v4439_v10 }
 0x30d   : > { %v2613_v45 = vsel %vm2612_vm2, %v7867_v9, %v2609_v47  ;;  %v2621_v54 = vmul.f32 %v7871_v60, %v10854_v43  ;;  %7872 = vpow2.f32 %v7067_v48  ;;  %vm2626_vm5 = vweird.f32 %v7871_v60  ;;  %v588_v9 = vld [vmem:[%s8285_s27 + $0x278] sm:$0xff]  ;;  %s7425_s27 = smul.u32 88, %s12239_s19 }
 0x30e   : > { %v2618_v20 = vsel %vm2615_vm10, %v2617_v58, %v2613_v45  ;;  %7874 = vrcp.f32 %v1681_v56  ;;  %vm2627_vm11 = vmor %vm2625_vm14, %vm2626_vm5  ;;  %v676_v19 = vpack.c.bf16 %v588_v9, %v587_v62  ;;  %v2646_v30 = vand.u32 2147483648, %v1681_v56 }
 0x30f   : > { %v3727_v52 = vmul.f32 %v2618_v20, %v10828_v1  ;;  %v2622_v42 = vsub.f32 1.0, %v2621_v54  ;;  %v2644_v5 = vand.u32 2147483647, %v1681_v56  ;;  %vm2640_vm4 = vweird.f32 %v1681_v56  ;;  %s11753_s28 = scalar_lea.vmem %s11990_s14, %s7425_s27  ;;  %s11834_s23 = scalar_lea.vmem %s11991_s15, %s7425_s27 }
 0x310   : > { %v1070_v11 = vpop.f32.mrf.mxu0  ;;  %v2647_v3 = vor.u32 1.1754944e-38, %v2646_v30 }
 0x311   : > { %3856 = vst.msk [vmem:[#allocation2 + $0x1c8] sm:$0xff] %vm3798_vm6, %v3727_v52  ;;  %v2623_v16 = vmul.f32 %v7871_v60, %v2622_v42  ;;  %v10879_v41 = vadd.f32 %v10838_v39, %v1070_v11  ;;  %vm2645_vm7 = vcmp.eq.f32.partialorder %v2644_v5, 8.507059e+37 }
 0x313   : > { %v7873_v36 = vpop.eup %7872  ;;  %v2624_v28 = vadd.f32 %v7871_v60, %v2623_v16  ;;  %v7068_v1 = vmul.f32 -1.442695, %v10879_v41 }
 0x314   : > { %v7875_v22 = vpop.eup %7874  ;;  %v1682_v33 = vadd.f32 1.0, %v7873_v36 }
 0x315   : > { %v2628_v59 = vsel %vm2627_vm11, %v7871_v60, %v2624_v28  ;;  %v2636_v50 = vmul.f32 %v7875_v22, %v1681_v56  ;;  %7876 = vpow2.f32 %v7068_v1  ;;  %vm2641_vm15 = vweird.f32 %v7875_v22 }
 0x316   : > { %v2633_v21 = vsel %vm2630_vm0, %v2632_v6, %v2628_v59  ;;  %7878 = vrcp.f32 %v1682_v33  ;;  %vm2642_vm8 = vmor %vm2640_vm4, %vm2641_vm15  ;;  %v2661_v46 = vand.u32 2147483648, %v1682_v33  ;;  %v2659_v47 = vand.u32 2147483647, %v1682_v33 }
 0x317   : > { %v3728_v17 = vmul.f32 %v2633_v21, %v10841_v27  ;;  %v2637_v18 = vsub.f32 1.0, %v2636_v50 }
 0x318   : > { %v1073_v43 = vpop.f32.mrf.mxu0  ;;  %v2662_v54 = vor.u32 1.1754944e-38, %v2661_v46  ;;  %vm2660_vm9 = vcmp.eq.f32.partialorder %v2659_v47, 8.507059e+37 }
 0x319   : > { %3857 = vst.msk [vmem:[#allocation2 + $0x1d0] sm:$0xff] %vm3798_vm6, %v3728_v17  ;;  %v2638_v8 = vmul.f32 %v7875_v22, %v2637_v18  ;;  %v10888_v26 = vadd.f32 %v10838_v39, %v1073_v43 }
 0x31b   : > { %v7877_v0 = vpop.eup %7876  ;;  %v2639_v4 = vadd.f32 %v7875_v22, %v2638_v8  ;;  %v7069_v23 = vmul.f32 -1.442695, %v10888_v26  ;;  %6982 = vmatmul.msk.bf16.gmra.mxu0 %vm712_vm1, %v676_v19  ;;  %vm2655_vm1 = vweird.f32 %v1682_v33 }
 0x31c   : > { %v7879_v27 = vpop.eup %7878  ;;  %v1683_v37 = vadd.f32 1.0, %v7877_v0 }
 0x31d   : > { %v2643_v61 = vsel %vm2642_vm8, %v7875_v22, %v2639_v4  ;;  %v2651_v53 = vmul.f32 %v7879_v27, %v1682_v33  ;;  %7880 = vpow2.f32 %v7069_v23  ;;  %vm2656_vm13 = vweird.f32 %v7879_v27 }
 0x31e   : > { %v2648_v13 = vsel %vm2645_vm7, %v2647_v3, %v2643_v61  ;;  %7882 = vrcp.f32 %v1683_v37  ;;  %vm2657_vm12 = vmor %vm2655_vm1, %vm2656_vm13  ;;  %v2676_v16 = vand.u32 2147483648, %v1683_v37  ;;  %v2674_v28 = vand.u32 2147483647, %v1683_v37 }
 0x31f   : > { %v3729_v49 = vmul.f32 %v2648_v13, %v10851_v57  ;;  %v2652_v12 = vsub.f32 1.0, %v2651_v53  ;;  %vm2670_vm2 = vweird.f32 %v1683_v37  ;;  %vm12227_vm8 = vcmask 1043456  }
 0x320   : > { %v1075_v10 = vpop.f32.mrf.mxu0  ;;  %v2677_v9 = vor.u32 1.1754944e-38, %v2676_v16  ;;  %vm2675_vm5 = vcmp.eq.f32.partialorder %v2674_v28, 8.507059e+37 }
 0x321   : > { %3858 = vst.msk [vmem:[#allocation2 + $0x1d8] sm:$0xff] %vm3798_vm6, %v3729_v49  ;;  %v2653_v14 = vmul.f32 %v7879_v27, %v2652_v12  ;;  %v10895_v48 = vadd.f32 %v10838_v39, %v1075_v10 }
 0x323   : > { %v7881_v60 = vpop.eup %7880  ;;  %v2654_v58 = vadd.f32 %v7879_v27, %v2653_v14  ;;  %v7070_v56 = vmul.f32 -1.442695, %v10895_v48 }
 0x324   : > { %v7883_v45 = vpop.eup %7882  ;;  %v1684_v57 = vadd.f32 1.0, %v7881_v60  ;;  %v4702_v60 = vld [vmem:[%s11979_s3 + $0xc] sm:$0xf] }
 0x325   : > { %v2658_v20 = vsel %vm2657_vm12, %v7879_v27, %v2654_v58  ;;  %v2666_v52 = vmul.f32 %v7883_v45, %v1683_v37  ;;  %7884 = vpow2.f32 %v7070_v56  ;;  %vm2671_vm3 = vweird.f32 %v7883_v45 }
 0x326   : > { %v2663_v42 = vsel %vm2660_vm9, %v2662_v54, %v2658_v20  ;;  %7886 = vrcp.f32 %v1684_v57  ;;  %vm2672_vm10 = vmor %vm2670_vm2, %vm2671_vm3  ;;  %v2691_v19 = vand.u32 2147483648, %v1684_v57  ;;  %v2689_v8 = vand.u32 2147483647, %v1684_v57 }
 0x327   : > { %v3730_v29 = vmul.f32 %v2663_v42, %v10865_v15  ;;  %v2667_v11 = vsub.f32 1.0, %v2666_v52  ;;  %vm2685_vm11 = vweird.f32 %v1684_v57  ;;  %v4752_v58 = vsel %vm12227_vm8, %v4702_v60, 0 }
 0x328   : > { %v1078_v51 = vpop.f32.mrf.mxu0  ;;  %v2692_v3 = vor.u32 1.1754944e-38, %v2691_v19  ;;  %vm2690_vm15 = vcmp.eq.f32.partialorder %v2689_v8, 8.507059e+37  ;;  %4761 = vmatpush.bf16.msra.mxu1 %v4752_v58  ;;  %v3955_v8 = vld [vmem:[#allocation2 + $0x1c0] ss:$4 sm:$0xff] }
 0x329   : > { %3859 = vst.msk [vmem:[#allocation2 + $0x1e0] sm:$0xff] %vm3798_vm6, %v3730_v29  ;;  %v2668_v36 = vmul.f32 %v7883_v45, %v2667_v11  ;;  %v10901_v1 = vadd.f32 %v10838_v39, %v1078_v51 }
 0x32b   : > { %v7885_v22 = vpop.eup %7884  ;;  %v2669_v6 = vadd.f32 %v7883_v45, %v2668_v36  ;;  %v7071_v33 = vmul.f32 -1.442695, %v10901_v1 }
 0x32c   : > { %v7887_v62 = vpop.eup %7886  ;;  %v1685_v15 = vadd.f32 1.0, %v7885_v22 }
 0x32d   : > { %v2673_v59 = vsel %vm2672_vm10, %v7883_v45, %v2669_v6  ;;  %v2681_v50 = vmul.f32 %v7887_v62, %v1684_v57  ;;  %7888 = vpow2.f32 %v7071_v33  ;;  %vm2686_vm14 = vweird.f32 %v7887_v62 }
 0x32e   : > { %v2678_v21 = vsel %vm2675_vm5, %v2677_v9, %v2673_v59  ;;  %7890 = vrcp.f32 %v1685_v15  ;;  %vm2687_vm0 = vmor %vm2685_vm11, %vm2686_vm14  ;;  %v2706_v12 = vand.u32 2147483648, %v1685_v15  ;;  %v2704_v14 = vand.u32 2147483647, %v1685_v15 }
 0x32f   : > { %v3731_v17 = vmul.f32 %v2678_v21, %v10879_v41  ;;  %v2682_v18 = vsub.f32 1.0, %v2681_v50  ;;  %vm2700_vm7 = vweird.f32 %v1685_v15 }
 0x330   : > { %v1080_v30 = vpop.f32.mrf.mxu0  ;;  %v2707_v57 = vor.u32 1.1754944e-38, %v2706_v12  ;;  %vm2705_vm1 = vcmp.eq.f32.partialorder %v2704_v14, 8.507059e+37 }
 0x331   : > { %3860 = vst.msk [vmem:[#allocation2 + $0x1e8] sm:$0xff] %vm3798_vm6, %v3731_v17  ;;  %v2683_v43 = vmul.f32 %v7887_v62, %v2682_v18  ;;  %v10907_v5 = vadd.f32 %v10838_v39, %v1080_v30  ;;  %v4036_v18 = vld [vmem:[#allocation2 + $0x1c1] ss:$4 sm:$0xff] }
 0x333   : > { %v7889_v0 = vpop.eup %7888  ;;  %v2684_v4 = vadd.f32 %v7887_v62, %v2683_v43  ;;  %v7072_v23 = vmul.f32 -1.442695, %v10907_v5 }
 0x334   : > { %v7891_v27 = vpop.eup %7890  ;;  %v1686_v41 = vadd.f32 1.0, %v7889_v0 }
 0x335   : > { %v2688_v37 = vsel %vm2687_vm0, %v7887_v62, %v2684_v4  ;;  %v2696_v61 = vmul.f32 %v7891_v27, %v1685_v15  ;;  %7892 = vpow2.f32 %v7072_v23  ;;  %vm2701_vm4 = vweird.f32 %v7891_v27 }
 0x336   : > { %v2693_v53 = vsel %vm2690_vm15, %v2692_v3, %v2688_v37  ;;  %7894 = vrcp.f32 %v1686_v41  ;;  %vm2702_vm13 = vmor %vm2700_vm7, %vm2701_vm4  ;;  %v2721_v51 = vand.u32 2147483648, %v1686_v41  ;;  %v2719_v22 = vand.u32 2147483647, %v1686_v41 }
 0x337   : > { %v3732_v13 = vmul.f32 %v2693_v53, %v10888_v26  ;;  %v2697_v49 = vsub.f32 1.0, %v2696_v61  ;;  %vm2715_vm9 = vweird.f32 %v1686_v41  ;;  %v4398_v61 = vld [vmem:[#allocation2 + $0x1c2] ss:$4 sm:$0xff] }
 0x338   : > { %v1083_v46 = vpop.f32.mrf.mxu0  ;;  %v2722_v59 = vor.u32 1.1754944e-38, %v2721_v51  ;;  %vm2720_vm2 = vcmp.eq.f32.partialorder %v2719_v22, 8.507059e+37 }
 0x339   : > { %3861 = vst.msk [vmem:[#allocation2 + $0x1f0] sm:$0xff] %vm3798_vm6, %v3732_v13  ;;  %v2698_v10 = vmul.f32 %v7891_v27, %v2697_v49  ;;  %v10913_v47 = vadd.f32 %v10838_v39, %v1083_v46 }
 0x33b   : > { %v7893_v56 = vpop.eup %7892  ;;  %v2699_v45 = vadd.f32 %v7891_v27, %v2698_v10  ;;  %v7073_v26 = vmul.f32 -1.442695, %v10913_v47 }
 0x33c   : > { %v7895_v54 = vpop.eup %7894  ;;  %v1687_v20 = vadd.f32 1.0, %v7893_v56 }
 0x33d   : > { %v2703_v52 = vsel %vm2702_vm13, %v7891_v27, %v2699_v45  ;;  %v2711_v42 = vmul.f32 %v7895_v54, %v1686_v41  ;;  %7896 = vpow2.f32 %v7073_v26  ;;  %vm2716_vm12 = vweird.f32 %v7895_v54 }
 0x33e   : > { %v2708_v29 = vsel %vm2705_vm1, %v2707_v57, %v2703_v52  ;;  %7898 = vrcp.f32 %v1687_v20  ;;  %vm2717_vm3 = vmor %vm2715_vm9, %vm2716_vm12  ;;  %v2734_v43 = vand.u32 2147483647, %v1687_v20  ;;  %v2736_v0 = vand.u32 2147483648, %v1687_v20 }
 0x33f   : > { %v3733_v11 = vmul.f32 %v2708_v29, %v10895_v48  ;;  %v2712_v16 = vsub.f32 1.0, %v2711_v42  ;;  %vm2730_vm5 = vweird.f32 %v1687_v20 }
 0x340   : > { %v1085_v36 = vpop.f32.mrf.mxu0  ;;  %v2737_v14 = vor.u32 1.1754944e-38, %v2736_v0  ;;  %vm2735_vm11 = vcmp.eq.f32.partialorder %v2734_v43, 8.507059e+37 }
 0x341   : > { %3862 = vst.msk [vmem:[#allocation2 + $0x1f8] sm:$0xff] %vm3798_vm6, %v3733_v11  ;;  %v2713_v28 = vmul.f32 %v7895_v54, %v2712_v16  ;;  %v10923_v6 = vadd.f32 %v10838_v39, %v1085_v36 }
 0x343   : > { %v7897_v33 = vpop.eup %7896  ;;  %v2714_v62 = vadd.f32 %v7895_v54, %v2713_v28  ;;  %v7074_v9 = vmul.f32 -1.442695, %v10923_v6 }
 0x344   : > { %v7899_v15 = vpop.eup %7898  ;;  %v1688_v48 = vadd.f32 1.0, %v7897_v33 }
 0x345   : > { %v2718_v50 = vsel %vm2717_vm3, %v7895_v54, %v2714_v62  ;;  %v2726_v21 = vmul.f32 %v7899_v15, %v1687_v20  ;;  %7900 = vpow2.f32 %v7074_v9  ;;  %vm2731_vm10 = vweird.f32 %v7899_v15 }
 0x346   : > { %v2723_v17 = vsel %vm2720_vm2, %v2722_v59, %v2718_v50  ;;  %7902 = vrcp.f32 %v1688_v48  ;;  %vm2732_vm14 = vmor %vm2730_vm5, %vm2731_vm10  ;;  %v2751_v57 = vand.u32 2147483648, %v1688_v48  ;;  %v2749_v42 = vand.u32 2147483647, %v1688_v48 }
 0x347   : > { %v3734_v19 = vmul.f32 %v2723_v17, %v10901_v1  ;;  %v2727_v30 = vsub.f32 1.0, %v2726_v21  ;;  %vm2745_vm15 = vweird.f32 %v1688_v48 }
 0x348   : > { %v1088_v4 = vpop.f32.mrf.mxu0  ;;  %v4038_v23 = vld [vmem:[#allocation2 + $0x1e1] ss:$4 sm:$0xff]  ;;  %v3957_v27 = vld [vmem:[#allocation2 + $0x1e0] ss:$4 sm:$0xff]  ;;  %v4400_v53 = vld [vmem:[#allocation2 + $0x1e2] ss:$4 sm:$0xff] }
 0x349   : > { %3863 = vst.msk [vmem:[#allocation2 + $0x200] sm:$0xff] %vm3798_vm6, %v3734_v19  ;;  %v2728_v3 = vmul.f32 %v7899_v15, %v2727_v30  ;;  %v10929_v41 = vadd.f32 %v10838_v39, %v1088_v4  ;;  %v4078_v37 = vpack.c.bf16 %v4038_v23, %v4036_v18  ;;  %v3997_v13 = vpack.c.bf16 %v3957_v27, %v3955_v8 }
 0x34a   : > { %v4440_v49 = vpack.c.bf16 %v4400_v53, %v4398_v61  ;;  %v2752_v28 = vor.u32 1.1754944e-38, %v2751_v57  ;;  %vm2750_vm8 = vcmp.eq.f32.partialorder %v2749_v42, 8.507059e+37 }
 0x34b   : > { %v7901_v1 = vpop.eup %7900  ;;  %v2729_v12 = vadd.f32 %v7899_v15, %v2728_v3  ;;  %v7075_v46 = vmul.f32 -1.442695, %v10929_v41  ;;  %7142 = vmatmul.msk.bf16.gmra.mxu1 %vm3798_vm6, %v4078_v37  ;;  %7158 = vmatmul.msk.bf16.gmra.mxu2 %vm3798_vm6, %v3997_v13 }
 0x34c   : > { %v7903_v10 = vpop.eup %7902  ;;  %v1689_v60 = vadd.f32 1.0, %v7901_v1  ;;  %7174 = vmatmul.msk.bf16.gmra.mxu3 %vm3798_vm6, %v4440_v49 }
 0x34d   : > { %v2733_v58 = vsel %vm2732_vm14, %v7899_v15, %v2729_v12  ;;  %v2741_v56 = vmul.f32 %v7903_v10, %v1688_v48  ;;  %7904 = vpow2.f32 %v7075_v46  ;;  %vm2746_vm0 = vweird.f32 %v7903_v10 }
 0x34e   : > { %v2738_v45 = vsel %vm2735_vm11, %v2737_v14, %v2733_v58  ;;  %7906 = vrcp.f32 %v1689_v60  ;;  %vm2747_vm4 = vmor %vm2745_vm15, %vm2746_vm0  ;;  %v2766_v59 = vand.u32 2147483648, %v1689_v60  ;;  %v2764_v21 = vand.u32 2147483647, %v1689_v60 }
 0x34f   : > { %v3735_v26 = vmul.f32 %v2738_v45, %v10907_v5  ;;  %v2742_v54 = vsub.f32 1.0, %v2741_v56  ;;  %vm2760_vm13 = vweird.f32 %v1689_v60 }
 0x350   : > { %v1090_v20 = vpop.f32.mrf.mxu0  ;;  %v2767_v8 = vor.u32 1.1754944e-38, %v2766_v59  ;;  %vm2765_vm12 = vcmp.eq.f32.partialorder %v2764_v21, 8.507059e+37 }
 0x351   : > { %3864 = vst.msk [vmem:[#allocation2 + $0x208] sm:$0xff] %vm3798_vm6, %v3735_v26  ;;  %v2743_v52 = vmul.f32 %v7903_v10, %v2742_v54  ;;  %v10938_v29 = vadd.f32 %v10838_v39, %v1090_v20 }
 0x353   : > { %v7905_v11 = vpop.eup %7904  ;;  %v2744_v16 = vadd.f32 %v7903_v10, %v2743_v52  ;;  %v7076_v51 = vmul.f32 -1.442695, %v10938_v29 }
 0x354   : > { %v7907_v36 = vpop.eup %7906  ;;  %v1690_v5 = vadd.f32 1.0, %v7905_v11 }
 0x355   : > { %v2748_v22 = vsel %vm2747_vm4, %v7903_v10, %v2744_v16  ;;  %v2756_v33 = vmul.f32 %v7907_v36, %v1689_v60  ;;  %7908 = vpow2.f32 %v7076_v51  ;;  %vm2761_vm7 = vweird.f32 %v7907_v36 }
 0x356   : > { %v2753_v62 = vsel %vm2750_vm8, %v2752_v28, %v2748_v22  ;;  %7910 = vrcp.f32 %v1690_v5  ;;  %vm2762_vm1 = vmor %vm2760_vm13, %vm2761_vm7  ;;  %v2781_v37 = vand.u32 2147483648, %v1690_v5  ;;  %v2779_v13 = vand.u32 2147483647, %v1690_v5 }
 0x357   : > { %v3736_v9 = vmul.f32 %v2753_v62, %v10913_v47  ;;  %v2757_v15 = vsub.f32 1.0, %v2756_v33  ;;  %vm2775_vm3 = vweird.f32 %v1690_v5 }
 0x358   : > { %v1093_v50 = vpop.f32.mrf.mxu0  ;;  %v2782_v14 = vor.u32 1.1754944e-38, %v2781_v37  ;;  %vm2780_vm10 = vcmp.eq.f32.partialorder %v2779_v13, 8.507059e+37 }
 0x359   : > { %3865 = vst.msk [vmem:[#allocation2 + $0x210] sm:$0xff] %vm3798_vm6, %v3736_v9  ;;  %v2758_v48 = vmul.f32 %v7907_v36, %v2757_v15  ;;  %v10944_v17 = vadd.f32 %v10838_v39, %v1093_v50 }
 0x35b   : > { %v7909_v18 = vpop.eup %7908  ;;  %v2759_v19 = vadd.f32 %v7907_v36, %v2758_v48  ;;  %v7077_v30 = vmul.f32 -1.442695, %v10944_v17 }
 0x35c   : > { %v7911_v43 = vpop.eup %7910  ;;  %v1691_v47 = vadd.f32 1.0, %v7909_v18 }
 0x35d   : > { %v2763_v0 = vsel %vm2762_vm1, %v7907_v36, %v2759_v19  ;;  %v2771_v4 = vmul.f32 %v7911_v43, %v1690_v5  ;;  %7912 = vpow2.f32 %v7077_v30  ;;  %vm2776_vm9 = vweird.f32 %v7911_v43 }
 0x35e   : > { %v2768_v23 = vsel %vm2765_vm12, %v2767_v8, %v2763_v0  ;;  %7914 = vrcp.f32 %v1691_v47  ;;  %vm2777_vm2 = vmor %vm2775_vm3, %vm2776_vm9  ;;  %v2796_v54 = vand.u32 2147483648, %v1691_v47  ;;  %v2794_v52 = vand.u32 2147483647, %v1691_v47 }
 0x35f   : > { %v3737_v27 = vmul.f32 %v2768_v23, %v10923_v6  ;;  %v2772_v3 = vsub.f32 1.0, %v2771_v4  ;;  %vm2790_vm14 = vweird.f32 %v1691_v47 }
 0x360   : > { %v1095_v61 = vpop.f32.mrf.mxu0  ;;  %v2797_v28 = vor.u32 1.1754944e-38, %v2796_v54  ;;  %vm2795_vm0 = vcmp.eq.f32.partialorder %v2794_v52, 8.507059e+37 }
 0x361   : > { %3866 = vst.msk [vmem:[#allocation2 + $0x218] sm:$0xff] %vm3798_vm6, %v3737_v27  ;;  %v2773_v53 = vmul.f32 %v7911_v43, %v2772_v3  ;;  %v10950_v49 = vadd.f32 %v10838_v39, %v1095_v61 }
 0x363   : > { %v7913_v1 = vpop.eup %7912  ;;  %v2774_v12 = vadd.f32 %v7911_v43, %v2773_v53  ;;  %v7078_v46 = vmul.f32 -1.442695, %v10950_v49 }
 0x364   : > { %v7915_v10 = vpop.eup %7914  ;;  %v1692_v6 = vadd.f32 1.0, %v7913_v1 }
 0x365   : > { %v2778_v60 = vsel %vm2777_vm2, %v7911_v43, %v2774_v12  ;;  %v2786_v58 = vmul.f32 %v7915_v10, %v1691_v47  ;;  %7916 = vpow2.f32 %v7078_v46  ;;  %vm2791_vm5 = vweird.f32 %v7915_v10 }
 0x366   : > { %v2783_v56 = vsel %vm2780_vm10, %v2782_v14, %v2778_v60  ;;  %7918 = vrcp.f32 %v1692_v6  ;;  %vm2792_vm11 = vmor %vm2790_vm14, %vm2791_vm5  ;;  %v2811_v15 = vand.u32 2147483648, %v1692_v6  ;;  %v2809_v48 = vand.u32 2147483647, %v1692_v6 }
 0x367   : > { %v3738_v45 = vmul.f32 %v2783_v56, %v10929_v41  ;;  %v2787_v26 = vsub.f32 1.0, %v2786_v58  ;;  %vm2805_vm4 = vweird.f32 %v1692_v6 }
 0x368   : > { %v1098_v57 = vpop.f32.mrf.mxu0  ;;  %v2812_v8 = vor.u32 1.1754944e-38, %v2811_v15  ;;  %vm2810_vm7 = vcmp.eq.f32.partialorder %v2809_v48, 8.507059e+37 }
 0x369   : > { %3867 = vst.msk [vmem:[#allocation2 + $0x220] sm:$0xff] %vm3798_vm6, %v3738_v45  ;;  %v2788_v20 = vmul.f32 %v7915_v10, %v2787_v26  ;;  %v10956_v42 = vadd.f32 %v10838_v39, %v1098_v57 }
 0x36b   : > { %v7917_v11 = vpop.eup %7916  ;;  %v2789_v16 = vadd.f32 %v7915_v10, %v2788_v20  ;;  %v7079_v51 = vmul.f32 -1.442695, %v10956_v42 }
 0x36c   : > { %v7919_v36 = vpop.eup %7918  ;;  %v1693_v41 = vadd.f32 1.0, %v7917_v11 }
 0x36d   : > { %v2793_v5 = vsel %vm2792_vm11, %v7915_v10, %v2789_v16  ;;  %v2801_v22 = vmul.f32 %v7919_v36, %v1692_v6  ;;  %7920 = vpow2.f32 %v7079_v51  ;;  %vm2806_vm15 = vweird.f32 %v7919_v36 }
 0x36e   : > { %v2798_v33 = vsel %vm2795_vm0, %v2797_v28, %v2793_v5  ;;  %7922 = vrcp.f32 %v1693_v41  ;;  %vm2807_vm8 = vmor %vm2805_vm4, %vm2806_vm15  ;;  %v2826_v3 = vand.u32 2147483648, %v1693_v41  ;;  %v2824_v53 = vand.u32 2147483647, %v1693_v41 }
 0x36f   : > { %v3739_v62 = vmul.f32 %v2798_v33, %v10938_v29  ;;  %v2802_v9 = vsub.f32 1.0, %v2801_v22  ;;  %vm2820_vm1 = vweird.f32 %v1693_v41  ;;  %v4040_v33 = vld [vmem:[#allocation2 + $0x201] ss:$4 sm:$0xff] }
 0x370   : > { %v1100_v59 = vpop.f32.mrf.mxu0  ;;  %v2827_v14 = vor.u32 1.1754944e-38, %v2826_v3  ;;  %vm2825_vm9 = vcmp.eq.f32.partialorder %v2824_v53, 8.507059e+37 }
 0x371   : > { %3868 = vst.msk [vmem:[#allocation2 + $0x228] sm:$0xff] %vm3798_vm6, %v3739_v62  ;;  %v2803_v50 = vmul.f32 %v7919_v36, %v2802_v9  ;;  %v10962_v21 = vadd.f32 %v10838_v39, %v1100_v59  ;;  %v3959_v59 = vld [vmem:[#allocation2 + $0x200] ss:$4 sm:$0xff] }
 0x373   : > { %v7921_v18 = vpop.eup %7920  ;;  %v2804_v19 = vadd.f32 %v7919_v36, %v2803_v50  ;;  %v7080_v30 = vmul.f32 -1.442695, %v10962_v21 }
 0x374   : > { %v7923_v43 = vpop.eup %7922  ;;  %v1694_v29 = vadd.f32 1.0, %v7921_v18 }
 0x375   : > { %v2808_v47 = vsel %vm2807_vm8, %v7919_v36, %v2804_v19  ;;  %v2816_v0 = vmul.f32 %v7923_v43, %v1693_v41  ;;  %7924 = vpow2.f32 %v7080_v30  ;;  %vm2821_vm13 = vweird.f32 %v7923_v43 }
 0x376   : > { %v2813_v4 = vsel %vm2810_vm7, %v2812_v8, %v2808_v47  ;;  %7926 = vrcp.f32 %v1694_v29  ;;  %vm2822_vm12 = vmor %vm2820_vm1, %vm2821_vm13  ;;  %v2841_v26 = vand.u32 2147483648, %v1694_v29  ;;  %v2839_v20 = vand.u32 2147483647, %v1694_v29 }
 0x377   : > { %v3740_v23 = vmul.f32 %v2813_v4, %v10944_v17  ;;  %v2817_v27 = vsub.f32 1.0, %v2816_v0  ;;  %vm2835_vm2 = vweird.f32 %v1694_v29 }
 0x378   : > { %v1103_v37 = vpop.f32.mrf.mxu0  ;;  %v2842_v28 = vor.u32 1.1754944e-38, %v2841_v26  ;;  %vm2840_vm5 = vcmp.eq.f32.partialorder %v2839_v20, 8.507059e+37 }
 0x379   : > { %3869 = vst.msk [vmem:[#allocation2 + $0x230] sm:$0xff] %vm3798_vm6, %v3740_v23  ;;  %v2818_v61 = vmul.f32 %v7923_v43, %v2817_v27  ;;  %v10968_v13 = vadd.f32 %v10838_v39, %v1103_v37 }
 0x37b   : > { %v7925_v1 = vpop.eup %7924  ;;  %v2819_v12 = vadd.f32 %v7923_v43, %v2818_v61  ;;  %v7081_v46 = vmul.f32 -1.442695, %v10968_v13 }
 0x37c   : > { %v7927_v10 = vpop.eup %7926  ;;  %v1695_v17 = vadd.f32 1.0, %v7925_v1 }
 0x37d   : > { %v2823_v6 = vsel %vm2822_vm12, %v7923_v43, %v2819_v12  ;;  %v2831_v60 = vmul.f32 %v7927_v10, %v1694_v29  ;;  %7928 = vpow2.f32 %v7081_v46  ;;  %vm2836_vm3 = vweird.f32 %v7927_v10  ;;  %v4402_v29 = vld [vmem:[#allocation2 + $0x202] ss:$4 sm:$0xff] }
 0x37e   : > { %v2828_v58 = vsel %vm2825_vm9, %v2827_v14, %v2823_v6  ;;  %7930 = vrcp.f32 %v1695_v17  ;;  %vm2837_vm10 = vmor %vm2835_vm2, %vm2836_vm3  ;;  %v2854_v15 = vand.u32 2147483647, %v1695_v17  ;;  %v2856_v50 = vand.u32 2147483648, %v1695_v17 }
 0x37f   : > { %v3741_v56 = vmul.f32 %v2828_v58, %v10950_v49  ;;  %v2832_v45 = vsub.f32 1.0, %v2831_v60  ;;  %vm2850_vm11 = vweird.f32 %v1695_v17 }
 0x380   : > { %v1105_v54 = vpop.f32.mrf.mxu0  ;;  %v2857_v37 = vor.u32 1.1754944e-38, %v2856_v50  ;;  %vm2855_vm15 = vcmp.eq.f32.partialorder %v2854_v15, 8.507059e+37 }
 0x381   : > { %3870 = vst.msk [vmem:[#allocation2 + $0x238] sm:$0xff] %vm3798_vm6, %v3741_v56  ;;  %v2833_v57 = vmul.f32 %v7927_v10, %v2832_v45  ;;  %v10974_v52 = vadd.f32 %v10838_v39, %v1105_v54 }
 0x383   : > { %v7929_v11 = vpop.eup %7928  ;;  %v2834_v16 = vadd.f32 %v7927_v10, %v2833_v57  ;;  %v7082_v51 = vmul.f32 -1.442695, %v10974_v52 }
 0x384   : > { %v7931_v36 = vpop.eup %7930  ;;  %v1696_v49 = vadd.f32 1.0, %v7929_v11 }
 0x385   : > { %v2838_v41 = vsel %vm2837_vm10, %v7927_v10, %v2834_v16  ;;  %v2846_v5 = vmul.f32 %v7931_v36, %v1695_v17  ;;  %7932 = vpow2.f32 %v7082_v51  ;;  %vm2851_vm14 = vweird.f32 %v7931_v36 }
 0x386   : > { %v2843_v22 = vsel %vm2840_vm5, %v2842_v28, %v2838_v41  ;;  %7934 = vrcp.f32 %v1696_v49  ;;  %vm2852_vm0 = vmor %vm2850_vm11, %vm2851_vm14  ;;  %v2871_v14 = vand.u32 2147483648, %v1696_v49  ;;  %v2869_v60 = vand.u32 2147483647, %v1696_v49 }
 0x387   : > { %v3742_v62 = vmul.f32 %v2843_v22, %v10956_v42  ;;  %v2847_v9 = vsub.f32 1.0, %v2846_v5  ;;  %vm2865_vm8 = vweird.f32 %v1696_v49 }
 0x388   : > { %v1108_v48 = vpop.f32.mrf.mxu0  ;;  %v4042_v18 = vld [vmem:[#allocation2 + $0x221] ss:$4 sm:$0xff]  ;;  %v3961_v19 = vld [vmem:[#allocation2 + $0x220] ss:$4 sm:$0xff]  ;;  %v4404_v47 = vld [vmem:[#allocation2 + $0x222] ss:$4 sm:$0xff] }
 0x389   : > { %3871 = vst.msk [vmem:[#allocation2 + $0x240] sm:$0xff] %vm3798_vm6, %v3742_v62  ;;  %v2848_v30 = vmul.f32 %v7931_v36, %v2847_v9  ;;  %v10980_v43 = vadd.f32 %v10838_v39, %v1108_v48  ;;  %v4079_v8 = vpack.c.bf16 %v4042_v18, %v4040_v33  ;;  %v3998_v0 = vpack.c.bf16 %v3961_v19, %v3959_v59 }
 0x38a   : > { %v4441_v4 = vpack.c.bf16 %v4404_v47, %v4402_v29  ;;  %v2872_v57 = vor.u32 1.1754944e-38, %v2871_v14  ;;  %vm2870_vm13 = vcmp.eq.f32.partialorder %v2869_v60, 8.507059e+37 }
 0x38b   : > { %v7933_v42 = vpop.eup %7932  ;;  %v2849_v23 = vadd.f32 %v7931_v36, %v2848_v30  ;;  %v7083_v27 = vmul.f32 -1.442695, %v10980_v43  ;;  %7143 = vmatmul.msk.bf16.gmra.mxu1 %vm3798_vm6, %v4079_v8  ;;  %7159 = vmatmul.msk.bf16.gmra.mxu2 %vm3798_vm6, %v3998_v0  ;;  %v8175_v0 = vld [vmem:[%s11978_s2] ss:$0 sm:$0xff] }
 0x38c   : > { %v7935_v3 = vpop.eup %7934  ;;  %v1697_v61 = vadd.f32 1.0, %v7933_v42  ;;  %7175 = vmatmul.msk.bf16.gmra.mxu3 %vm3798_vm6, %v4441_v4 }
 0x38d   : > { %v2853_v53 = vsel %vm2852_vm0, %v7931_v36, %v2849_v23  ;;  %v2861_v1 = vmul.f32 %v7935_v3, %v1696_v49  ;;  %7936 = vpow2.f32 %v7083_v27  ;;  %vm2866_vm4 = vweird.f32 %v7935_v3 }
 0x38e   : > { %v2858_v12 = vsel %vm2855_vm15, %v2857_v37, %v2853_v53  ;;  %7938 = vrcp.f32 %v1697_v61  ;;  %vm2867_vm7 = vmor %vm2865_vm8, %vm2866_vm4  ;;  %v2886_v28 = vand.u32 2147483648, %v1697_v61  ;;  %v2884_v5 = vand.u32 2147483647, %v1697_v61 }
 0x38f   : > { %v3743_v46 = vmul.f32 %v2858_v12, %v10962_v21  ;;  %v2862_v10 = vsub.f32 1.0, %v2861_v1  ;;  %vm2880_vm12 = vweird.f32 %v1697_v61 }
 0x390   : > { %v1110_v17 = vpop.f32.mrf.mxu0  ;;  %v2887_v59 = vor.u32 1.1754944e-38, %v2886_v28  ;;  %vm2885_vm3 = vcmp.eq.f32.partialorder %v2884_v5, 8.507059e+37 }
 0x391   : > { %3872 = vst.msk [vmem:[#allocation2 + $0x248] sm:$0xff] %vm3798_vm6, %v3743_v46  ;;  %v2863_v6 = vmul.f32 %v7935_v3, %v2862_v10  ;;  %v10989_v58 = vadd.f32 %v10838_v39, %v1110_v17 }
 0x393   : > { %v7937_v56 = vpop.eup %7936  ;;  %v2864_v45 = vadd.f32 %v7935_v3, %v2863_v6  ;;  %v7084_v26 = vmul.f32 -1.442695, %v10989_v58 }
 0x394   : > { %v7939_v54 = vpop.eup %7938  ;;  %v1698_v21 = vadd.f32 1.0, %v7937_v56 }
 0x395   : > { %v2868_v20 = vsel %vm2867_vm7, %v7935_v3, %v2864_v45  ;;  %v2876_v11 = vmul.f32 %v7939_v54, %v1697_v61  ;;  %7940 = vpow2.f32 %v7084_v26  ;;  %vm2881_vm1 = vweird.f32 %v7939_v54 }
 0x396   : > { %v2873_v16 = vsel %vm2870_vm13, %v2872_v57, %v2868_v20  ;;  %7942 = vrcp.f32 %v1698_v21  ;;  %vm2882_vm9 = vmor %vm2880_vm12, %vm2881_vm1  ;;  %v2899_v47 = vand.u32 2147483647, %v1698_v21  ;;  %vm2895_vm10 = vweird.f32 %v1698_v21 }
 0x397   : > { %v3744_v51 = vmul.f32 %v2873_v16, %v10968_v13  ;;  %v2877_v36 = vsub.f32 1.0, %v2876_v11 }
 0x398   : > { %v1113_v41 = vpop.f32.mrf.mxu0  ;;  %vm2900_vm14 = vcmp.eq.f32.partialorder %v2899_v47, 8.507059e+37 }
 0x399   : > { %3873 = vst.msk [vmem:[#allocation2 + $0x250] sm:$0xff] %vm3798_vm6, %v3744_v51  ;;  %v2878_v49 = vmul.f32 %v7939_v54, %v2877_v36  ;;  %v10995_v22 = vadd.f32 %v10838_v39, %v1113_v41  ;;  %v2901_v39 = vand.u32 2147483648, %v1698_v21 }
 0x39b   : > { %v7941_v33 = vpop.eup %7940  ;;  %v2879_v62 = vadd.f32 %v7939_v54, %v2878_v49  ;;  %v7085_v9 = vmul.f32 -1.442695, %v10995_v22  ;;  %v2902_v3 = vor.u32 1.1754944e-38, %v2901_v39 }
 0x39c   : > { %v7943_v15 = vpop.eup %7942  ;;  %v1699_v13 = vadd.f32 1.0, %v7941_v33 }
 0x39d   : > { %v2883_v50 = vsel %vm2882_vm9, %v7939_v54, %v2879_v62  ;;  %v2891_v48 = vmul.f32 %v7943_v15, %v1698_v21  ;;  %7944 = vpow2.f32 %v7085_v9  ;;  %vm2896_vm2 = vweird.f32 %v7943_v15 }
 0x39e   : > { %v2888_v18 = vsel %vm2885_vm3, %v2887_v59, %v2883_v50  ;;  %7946 = vrcp.f32 %v1699_v13  ;;  %vm2897_vm5 = vmor %vm2895_vm10, %vm2896_vm2  ;;  %v2916_v10 = vand.u32 2147483648, %v1699_v13  ;;  %v2914_v17 = vand.u32 2147483647, %v1699_v13 }
 0x39f   : > { %v3745_v19 = vmul.f32 %v2888_v18, %v10974_v52  ;;  %v2892_v30 = vsub.f32 1.0, %v2891_v48  ;;  %vm2910_vm0 = vweird.f32 %v1699_v13 }
 0x3a0   : > { %v1115_v8 = vpop.f32.mrf.mxu0  ;;  %v2917_v45 = vor.u32 1.1754944e-38, %v2916_v10  ;;  %vm2915_vm4 = vcmp.eq.f32.partialorder %v2914_v17, 8.507059e+37  ;;  %v11020_v10 = vpop.f32.mrf.mxu1  ;;  %v3971_v17 = vld [vmem:[#allocation2 + $0x2c0] ss:$4 sm:$0xff] }
 0x3a1   : > { %3874 = vst.msk [vmem:[#allocation2 + $0x258] sm:$0xff] %vm3798_vm6, %v3745_v19  ;;  %v2893_v29 = vmul.f32 %v7943_v15, %v2892_v30  ;;  %v11003_v4 = vadd.f32 %v8175_v0, %v1115_v8 }
 0x3a3   : > { %v7945_v42 = vpop.eup %7944  ;;  %v2894_v23 = vadd.f32 %v7943_v15, %v2893_v29  ;;  %v7086_v27 = vmul.f32 -1.442695, %v11003_v4 }
 0x3a4   : > { %v7947_v52 = vpop.eup %7946  ;;  %v1700_v37 = vadd.f32 1.0, %v7945_v42 }
 0x3a5   : > { %v2898_v61 = vsel %vm2897_vm5, %v7943_v15, %v2894_v23  ;;  %v2906_v53 = vmul.f32 %v7947_v52, %v1699_v13  ;;  %7948 = vpow2.f32 %v7086_v27  ;;  %vm2911_vm11 = vweird.f32 %v7947_v52  ;;  %v4048_v27 = vld [vmem:[#allocation2 + $0x281] ss:$4 sm:$0xff] }
 0x3a6   : > { %v2903_v1 = vsel %vm2900_vm14, %v2902_v3, %v2898_v61  ;;  %7950 = vrcp.f32 %v1700_v37  ;;  %vm2912_vm15 = vmor %vm2910_vm0, %vm2911_vm11  ;;  %v2931_v11 = vand.u32 2147483648, %v1700_v37  ;;  %v2929_v51 = vand.u32 2147483647, %v1700_v37  ;;  %v3969_v3 = vld [vmem:[#allocation2 + $0x2a0] ss:$4 sm:$0xff] }
 0x3a7   : > { %v3746_v12 = vmul.f32 %v2903_v1, %v10980_v43  ;;  %v2907_v46 = vsub.f32 1.0, %v2906_v53  ;;  %vm2925_vm7 = vweird.f32 %v1700_v37  ;;  %v4412_v61 = vld [vmem:[#allocation2 + $0x2a2] ss:$4 sm:$0xff]  ;;  %vm5551_vm0 = vcmask 130048  }
 0x3a8   : > { %v2932_v41 = vor.u32 1.1754944e-38, %v2931_v11  ;;  %vm2930_vm1 = vcmp.eq.f32.partialorder %v2929_v51, 8.507059e+37  ;;  %v4044_v30 = vld [vmem:[#allocation2 + $0x241] ss:$4 sm:$0xff]  ;;  %v4406_v39 = vld [vmem:[#allocation2 + $0x242] ss:$4 sm:$0xff] }
 0x3a9   : > { %3875 = vst.msk [vmem:[#allocation2 + $0x260] sm:$0xff] %vm3798_vm6, %v3746_v12  ;;  %v2908_v14 = vmul.f32 %v7947_v52, %v2907_v46  ;;  %v4052_v46 = vld [vmem:[#allocation2 + $0x2c1] ss:$4 sm:$0xff]  ;;  %v3977_v11 = vld [vmem:[#allocation2 + $0x320] ss:$4 sm:$0xff] }
 0x3aa   : > { %v4420_v51 = vld [vmem:[#allocation2 + $0x322] ss:$4 sm:$0xff] }
 0x3ab   : > { %v7949_v6 = vpop.eup %7948  ;;  %v2909_v60 = vadd.f32 %v7947_v52, %v2908_v14  ;;  %v4054_v14 = vld [vmem:[#allocation2 + $0x2e1] ss:$4 sm:$0xff] }
 0x3ac   : > { %v7951_v56 = vpop.eup %7950  ;;  %v1701_v26 = vadd.f32 1.0, %v7949_v6  ;;  %v3973_v6 = vld [vmem:[#allocation2 + $0x2e0] ss:$4 sm:$0xff] }
 0x3ad   : > { %v2913_v54 = vsel %vm2912_vm15, %v7947_v52, %v2909_v60  ;;  %v2921_v57 = vmul.f32 %v7951_v56, %v1700_v37  ;;  %vm2926_vm8 = vweird.f32 %v7951_v56  ;;  %v4050_v52 = vld [vmem:[#allocation2 + $0x2a1] ss:$4 sm:$0xff]  ;;  %v4410_v37 = vld [vmem:[#allocation2 + $0x282] ss:$4 sm:$0xff] }
 0x3ae   : > { %v2918_v21 = vsel %vm2915_vm4, %v2917_v45, %v2913_v54  ;;  %7952 = vrcp.f32 %v1701_v26  ;;  %vm2927_vm13 = vmor %vm2925_vm7, %vm2926_vm8  ;;  %v2944_v59 = vand.u32 2147483647, %v1701_v26  ;;  %vm2940_vm9 = vweird.f32 %v1701_v26  ;;  %v4414_v60 = vld [vmem:[#allocation2 + $0x2c2] ss:$4 sm:$0xff] }
 0x3af   : > { %v3747_v43 = vmul.f32 %v2918_v21, %v10989_v58  ;;  %v2922_v20 = vsub.f32 1.0, %v2921_v57  ;;  %v2946_v58 = vand.u32 2147483648, %v1701_v26  ;;  %v4081_v53 = vpack.c.bf16 %v4050_v52, %v4048_v27  ;;  %v11025_v57 = vpop.f32.mrf.mxu1  ;;  %v4056_v21 = vld [vmem:[#allocation2 + $0x301] ss:$4 sm:$0xff] }
 0x3b0   : > { %vm2945_vm2 = vcmp.eq.f32.partialorder %v2944_v59, 8.507059e+37  ;;  %v4443_v12 = vpack.c.bf16 %v4412_v61, %v4410_v37  ;;  %v4082_v45 = vpack.c.bf16 %v4054_v14, %v4052_v46  ;;  %v4424_v59 = vld [vmem:[#allocation2 + $0x362] ss:$4 sm:$0xff]  ;;  %v3987_v37 = vld [vmem:[#allocation2 + $0x3c0] ss:$4 sm:$0xff] }
 0x3b1   : > { %3876 = vst.msk [vmem:[#allocation2 + $0x268] sm:$0xff] %vm3798_vm6, %v3747_v43  ;;  %v2923_v16 = vmul.f32 %v7951_v56, %v2922_v20  ;;  %v2947_v50 = vor.u32 1.1754944e-38, %v2946_v58  ;;  %v4058_v43 = vld [vmem:[#allocation2 + $0x321] ss:$4 sm:$0xff]  ;;  %v3975_v20 = vld [vmem:[#allocation2 + $0x300] ss:$4 sm:$0xff] }
 0x3b2   : > { %v3981_v58 = vld [vmem:[#allocation2 + $0x360] ss:$4 sm:$0xff] }
 0x3b3   : > { %v2924_v36 = vadd.f32 %v7951_v56, %v2923_v16  ;;  %v4418_v16 = vld [vmem:[#allocation2 + $0x302] ss:$4 sm:$0xff]  ;;  %v3989_v61 = vld [vmem:[#allocation2 + $0x3e0] ss:$4 sm:$0xff] }
 0x3b4   : > { %v7953_v28 = vpop.eup %7952  ;;  %v4005_v46 = vpack.c.bf16 %v3989_v61, %v3987_v37  ;;  %v4647_v61 = vld [vmem:[#allocation2 + $0x183] ss:$4 sm:$0xff] }
 0x3b5   : > { %v2928_v49 = vsel %vm2927_vm13, %v7951_v56, %v2924_v36  ;;  %v2936_v5 = vmul.f32 %v7953_v28, %v1701_v26  ;;  %vm2941_vm12 = vweird.f32 %v7953_v28  ;;  %v4416_v56 = vld [vmem:[#allocation2 + $0x2e2] ss:$4 sm:$0xff]  ;;  %v4001_v26 = vpack.c.bf16 %v3973_v6, %v3971_v17  ;;  %v11048_v17 = vpop.f32.mrf.mxu2  ;;  %v11052_v6 = vpop.f32.mrf.mxu3 }
 0x3b6   : > { %v2933_v33 = vsel %vm2930_vm1, %v2932_v41, %v2928_v49  ;;  %vm2942_vm3 = vmor %vm2940_vm9, %vm2941_vm12  ;;  %v4444_v54 = vpack.c.bf16 %v4416_v56, %v4414_v60  ;;  %v4002_v41 = vpack.c.bf16 %v3977_v11, %v3975_v20  ;;  %v4445_v49 = vpack.c.bf16 %v4420_v51, %v4418_v16  ;;  %v4627_v11 = vld [vmem:[#allocation2 + $0x43] ss:$4 sm:$0xff] }
 0x3b7   : > { %v3748_v62 = vmul.f32 %v2933_v33, %v10995_v22  ;;  %v2937_v9 = vsub.f32 1.0, %v2936_v5  ;;  %v3963_v22 = vld [vmem:[#allocation2 + $0x240] ss:$4 sm:$0xff]  ;;  %v11027_v36 = vpop.f32.mrf.mxu1  ;;  %v4060_v33 = vld [vmem:[#allocation2 + $0x341] ss:$4 sm:$0xff] }
 0x3b9   : > { %3877 = vst.msk [vmem:[#allocation2 + $0x270] sm:$0xff] %vm3798_vm6, %v3748_v62  ;;  %v2938_v15 = vmul.f32 %v7953_v28, %v2937_v9  ;;  %v4062_v62 = vld [vmem:[#allocation2 + $0x361] ss:$4 sm:$0xff]  ;;  %v3979_v9 = vld [vmem:[#allocation2 + $0x340] ss:$4 sm:$0xff] }
 0x3bb   : > { %v2939_v13 = vadd.f32 %v7953_v28, %v2938_v15  ;;  %v4422_v15 = vld [vmem:[#allocation2 + $0x342] ss:$4 sm:$0xff] }
 0x3bd   : > { %v2943_v48 = vsel %vm2942_vm3, %v7953_v28, %v2939_v13  ;;  %v4083_v28 = vpack.c.bf16 %v4058_v43, %v4056_v21  ;;  %v4084_v13 = vpack.c.bf16 %v4062_v62, %v4060_v33  ;;  %v4629_v43 = vld [vmem:[#allocation2 + $0x63] ss:$4 sm:$0xff] }
 0x3be   : > { %v2948_v18 = vsel %vm2945_vm2, %v2947_v50, %v2943_v48  ;;  %v4003_v50 = vpack.c.bf16 %v3981_v58, %v3979_v9  ;;  %v4687_v16 = vpack.c.bf16 %v4629_v43, %v4627_v11  ;;  %v4637_v9 = vld [vmem:[#allocation2 + $0xe3] ss:$4 sm:$0xff]  ;;  %v11106_v43 = vld [vmem:[%s11980_s4] ss:$0 sm:$0xff] }
 0x3bf   : > { %v3749_v19 = vmul.f32 %v2948_v18, %v11003_v4  ;;  %v3967_v4 = vld [vmem:[#allocation2 + $0x280] ss:$4 sm:$0xff]  ;;  %v11032_v5 = vpop.f32.mrf.mxu1  ;;  %v4446_v18 = vpack.c.bf16 %v4424_v59, %v4422_v15  ;;  %v4635_v15 = vld [vmem:[#allocation2 + $0xc3] ss:$4 sm:$0xff] }
 0x3c0   : > { %v4000_v1 = vpack.c.bf16 %v3969_v3, %v3967_v4  ;;  %v4068_v4 = vld [vmem:[#allocation2 + $0x3c1] ss:$4 sm:$0xff]  ;;  %v4689_v59 = vpack.c.bf16 %v4637_v9, %v4635_v15 }
 0x3c1   : > { %3878 = vst.msk [vmem:[#allocation2 + $0x278] sm:$0xff] %vm3798_vm6, %v3749_v19  ;;  %v4070_v3 = vld [vmem:[#allocation2 + $0x3e1] ss:$4 sm:$0xff] }
 0x3c7   : > { %v11034_v48 = vpop.f32.mrf.mxu1 }
 0x3c8   : > { %v4046_v8 = vld [vmem:[#allocation2 + $0x261] ss:$4 sm:$0xff]  ;;  %v3965_v29 = vld [vmem:[#allocation2 + $0x260] ss:$4 sm:$0xff]  ;;  %v4408_v47 = vld [vmem:[#allocation2 + $0x262] ss:$4 sm:$0xff] }
 0x3c9   : > { %v4080_v0 = vpack.c.bf16 %v4046_v8, %v4044_v30  ;;  %v3999_v42 = vpack.c.bf16 %v3965_v29, %v3963_v22  ;;  %v4442_v23 = vpack.c.bf16 %v4408_v47, %v4406_v39  ;;  %v4064_v30 = vld [vmem:[#allocation2 + $0x381] ss:$4 sm:$0xff]  ;;  %v3983_v39 = vld [vmem:[#allocation2 + $0x380] ss:$4 sm:$0xff]  ;;  %v4426_v29 = vld [vmem:[#allocation2 + $0x382] ss:$4 sm:$0xff] }
 0x3ca   : > { %v4066_v22 = vld [vmem:[#allocation2 + $0x3a1] ss:$4 sm:$0xff]  ;;  %v3985_v8 = vld [vmem:[#allocation2 + $0x3a0] ss:$4 sm:$0xff]  ;;  %v4428_v47 = vld [vmem:[#allocation2 + $0x3a2] ss:$4 sm:$0xff] }
 0x3cb   : > { %7144 = vmatmul.msk.bf16.gmra.mxu1 %vm3798_vm6, %v4080_v0  ;;  %7160 = vmatmul.msk.bf16.gmra.mxu2 %vm3798_vm6, %v3999_v42  ;;  %v4085_v0 = vpack.c.bf16 %v4066_v22, %v4064_v30  ;;  %v4004_v42 = vpack.c.bf16 %v3985_v8, %v3983_v39  ;;  %v4639_v30 = vld [vmem:[#allocation2 + $0x103] ss:$4 sm:$0xff] }
 0x3cc   : > { %7176 = vmatmul.msk.bf16.gmra.mxu3 %vm3798_vm6, %v4442_v23  ;;  %v4447_v23 = vpack.c.bf16 %v4428_v47, %v4426_v29  ;;  %v4645_v8 = vld [vmem:[#allocation2 + $0x163] ss:$4 sm:$0xff] }
 0x3cd   : > { %v4643_v47 = vld [vmem:[#allocation2 + $0x143] ss:$4 sm:$0xff] }
 0x3cf   : > { %v11039_v19 = vpop.f32.mrf.mxu1 }
 0x3d7   : > { %v11043_v27 = vpop.f32.mrf.mxu1 }
 0x3db   : > { %7145 = vmatmul.msk.bf16.gmra.mxu1 %vm3798_vm6, %v4081_v53  ;;  %7161 = vmatmul.msk.bf16.gmra.mxu2 %vm3798_vm6, %v4000_v1  ;;  %v4430_v53 = vld [vmem:[#allocation2 + $0x3c2] ss:$4 sm:$0xff] }
 0x3dc   : > { %7177 = vmatmul.msk.bf16.gmra.mxu3 %vm3798_vm6, %v4443_v12  ;;  %v4432_v1 = vld [vmem:[#allocation2 + $0x3e2] ss:$4 sm:$0xff]  ;;  %v4086_v12 = vpack.c.bf16 %v4070_v3, %v4068_v4  ;;  %v4649_v3 = vld [vmem:[#allocation2 + $0x1a3] ss:$4 sm:$0xff] }
 0x3dd   : > { %v4448_v14 = vpack.c.bf16 %v4432_v1, %v4430_v53  ;;  %v7401_v4 = vld [vmem:[%s11981_s5] sm:$0xff]  ;;  %v4692_v53 = vpack.c.bf16 %v4649_v3, %v4647_v61  ;;  %v11121_v3 = vpop.f32.mrf.mxu2 }
 0x3de   : > { %5699 = vmatpush.bf16.msra.mxu3 %v7401_v4 }
 0x3df   : > { %v11046_v52 = vpop.f32.mrf.mxu1 }
 0x3e7   : > { %v11055_v60 = vpop.f32.mrf.mxu1 }
 0x3eb   : > { %7146 = vmatmul.msk.bf16.gmra.mxu1 %vm3798_vm6, %v4082_v45  ;;  %7162 = vmatmul.msk.bf16.gmra.mxu2 %vm3798_vm6, %v4001_v26  ;;  %v4625_v45 = vld [vmem:[#allocation2 + $0x23] ss:$4 sm:$0xff] }
 0x3ec   : > { %7178 = vmatmul.msk.bf16.gmra.mxu3 %vm3798_vm6, %v4444_v54  ;;  %v4623_v26 = vld [vmem:[#allocation2 + $0x3] ss:$4 sm:$0xff] }
 0x3ed   : > { %v4686_v54 = vpack.c.bf16 %v4625_v45, %v4623_v26 }
 0x3fb   : > { %7147 = vmatmul.msk.bf16.gmra.mxu1 %vm3798_vm6, %v4083_v28  ;;  %7163 = vmatmul.msk.bf16.gmra.mxu2 %vm3798_vm6, %v4002_v41  ;;  %v4633_v28 = vld [vmem:[#allocation2 + $0xa3] ss:$4 sm:$0xff] }
 0x3fc   : > { %7179 = vmatmul.msk.bf16.gmra.mxu3 %vm3798_vm6, %v4445_v49  ;;  %v4631_v49 = vld [vmem:[#allocation2 + $0x83] ss:$4 sm:$0xff] }
 0x3fd   : > { %v4688_v33 = vpack.c.bf16 %v4633_v28, %v4631_v49 }
 0x408   : > { %v11057_v56 = vpop.f32.mrf.mxu1 }
 0x40b   : > { %7148 = vmatmul.msk.bf16.gmra.mxu1 %vm3798_vm6, %v4084_v13  ;;  %7164 = vmatmul.msk.bf16.gmra.mxu2 %vm3798_vm6, %v4003_v50  ;;  %v4641_v50 = vld [vmem:[#allocation2 + $0x123] ss:$4 sm:$0xff] }
 0x40c   : > { %7180 = vmatmul.msk.bf16.gmra.mxu3 %vm3798_vm6, %v4446_v18  ;;  %v4690_v22 = vpack.c.bf16 %v4641_v50, %v4639_v30 }
 0x410   : > { %v11060_v21 = vpop.f32.mrf.mxu1 }
 0x41b   : > { %7149 = vmatmul.msk.bf16.gmra.mxu1 %vm3798_vm6, %v4085_v0  ;;  %7165 = vmatmul.msk.bf16.gmra.mxu2 %vm3798_vm6, %v4004_v42  ;;  %v4691_v0 = vpack.c.bf16 %v4645_v8, %v4643_v47  ;;  %v7402_v42 = vld [vmem:[%s11981_s5 + $0x8] sm:$0xff] }
 0x41c   : > { %7181 = vmatmul.msk.bf16.gmra.mxu3 %vm3798_vm6, %v4447_v23  ;;  %5652 = vmatpush.bf16.msra.mxu2 %v7402_v42 }
 0x42b   : > { %7150 = vmatmul.msk.bf16.gmra.mxu1 %vm3798_vm6, %v4086_v12  ;;  %7166 = vmatmul.msk.bf16.gmra.mxu2 %vm3798_vm6, %v4005_v46  ;;  %v4653_v12 = vld [vmem:[#allocation2 + $0x1e3] ss:$4 sm:$0xff] }
 0x42c   : > { %7182 = vmatmul.msk.bf16.gmra.mxu3 %vm3798_vm6, %v4448_v14  ;;  %v4651_v14 = vld [vmem:[#allocation2 + $0x1c3] ss:$4 sm:$0xff] }
 0x42d   : > { %v4693_v45 = vpack.c.bf16 %v4653_v12, %v4651_v14 }
 0x43b   : > { %7183 = vmatmul.msk.bf16.vlgmr.msra.gmra.mxu1 %vm3798_vm6, %v4686_v54  ;;  %v4657_v54 = vld [vmem:[#allocation2 + $0x223] ss:$4 sm:$0xff] }
 0x448   : > { %v11062_v20 = vpop.f32.mrf.mxu1 }
 0x44b   : > { %7184 = vmatmul.msk.bf16.gmra.mxu1 %vm3798_vm6, %v4687_v16  ;;  %v4655_v16 = vld [vmem:[#allocation2 + $0x203] ss:$4 sm:$0xff] }
 0x44c   : > { %v4694_v49 = vpack.c.bf16 %v4657_v54, %v4655_v16  ;;  %v11129_v16 = vpop.f32.mrf.mxu3 }
 0x450   : > { %v11065_v51 = vpop.f32.mrf.mxu1 }
 0x458   : > { %v11067_v41 = vpop.f32.mrf.mxu1 }
 0x45b   : > { %7185 = vmatmul.msk.bf16.gmra.mxu1 %vm3798_vm6, %v4688_v33  ;;  %v4292_v33 = vadd.f32 %v10499_v24, %v10506_v40  ;;  %v4659_v40 = vld [vmem:[#allocation2 + $0x243] ss:$4 sm:$0xff] }
 0x460   : > { %v11070_v62 = vpop.f32.mrf.mxu1 }
 0x468   : > { %v11072_v58 = vpop.f32.mrf.mxu1 }
 0x46b   : > { %7186 = vmatmul.msk.bf16.gmra.mxu1 %vm3798_vm6, %v4689_v59  ;;  %v4591_v59 = vadd.f32 %v10533_v7, %v4292_v33  ;;  %v4297_v7 = vadd.f32 %v10709_v35, %v10707_v32 }
 0x46d   : > { %v4593_v54 = vadd.f32 %v10711_v2, %v4297_v7 }
 0x470   : > { %v11075_v13 = vpop.f32.mrf.mxu1 }
 0x478   : > { %v11077_v18 = vpop.f32.mrf.mxu1 }
 0x47b   : > { %7187 = vmatmul.msk.bf16.gmra.mxu1 %vm3798_vm6, %v4690_v22 }
 0x480   : > { %v11080_v39 = vpop.f32.mrf.mxu1 }
 0x488   : > { %v11082_v29 = vpop.f32.mrf.mxu1 }
 0x48b   : > { %7188 = vmatmul.msk.bf16.gmra.mxu1 %vm3798_vm6, %v4691_v0  ;;  %v4661_v0 = vld [vmem:[#allocation2 + $0x263] ss:$4 sm:$0xff] }
 0x48c   : > { %v4695_v4 = vpack.c.bf16 %v4661_v0, %v4659_v40  ;;  %v4665_v40 = vld [vmem:[#allocation2 + $0x2a3] ss:$4 sm:$0xff] }
 0x490   : > { %v11088_v23 = vpop.f32.mrf.mxu1 }
 0x498   : > { %v11093_v37 = vpop.f32.mrf.mxu1 }
 0x49b   : > { %7189 = vmatmul.msk.bf16.gmra.mxu1 %vm3798_vm6, %v4692_v53 }
 0x4a0   : > { %v11096_v1 = vpop.f32.mrf.mxu1 }
 0x4a8   : > { %v11098_v46 = vpop.f32.mrf.mxu1 }
 0x4ab   : > { %7190 = vmatmul.msk.bf16.gmra.mxu1 %vm3798_vm6, %v4693_v45 }
 0x4b0   : > { %v11101_v26 = vpop.f32.mrf.mxu1 }
 0x4b8   : > { %v4763_v11 = vpop.f32.mrf.mxu1 }
 0x4b9   : > { %v4843_v28 = vadd.f32 %v4763_v11, %v10396_v34 }
 0x4bb   : > { %v4879_v9 = vadd.f32 %v11106_v43, %v4843_v28  ;;  %7191 = vmatmul.msk.bf16.gmra.mxu1 %vm3798_vm6, %v4694_v49 }
 0x4bd   : > { %v7199_v15 = vmul.f32 -1.442695, %v4879_v9 }
 0x4bf   : > { %7954 = vpow2.f32 %v7199_v15 }
 0x4c0   : > { %v4765_v50 = vpop.f32.mrf.mxu1 }
 0x4c1   : > { %v4844_v30 = vadd.f32 %v4765_v50, %v4591_v59  ;;  %v11134_v50 = vpop.f32.mrf.mxu2 }
 0x4c3   : > { %v11115_v22 = vadd.f32 %v11106_v43, %v4844_v30 }
 0x4c5   : > { %v7955_v8 = vpop.eup %7954  ;;  %v7200_v34 = vmul.f32 -1.442695, %v11115_v22 }
 0x4c6   : > { %v5007_v47 = vadd.f32 1.0, %v7955_v8 }
 0x4c7   : > { %7956 = vpow2.f32 %v7200_v34 }
 0x4c8   : > { %7958 = vrcp.f32 %v5007_v47  ;;  %v4768_v24 = vpop.f32.mrf.mxu1  ;;  %v5050_v28 = vand.u32 2147483648, %v5007_v47  ;;  %v5048_v33 = vand.u32 2147483647, %v5007_v47  ;;  %vm5044_vm5 = vweird.f32 %v5007_v47 }
 0x4c9   : > { %v4845_v42 = vadd.f32 %v4768_v24, %v10573_v63  ;;  %v4663_v24 = vld [vmem:[#allocation2 + $0x283] ss:$4 sm:$0xff] }
 0x4ca   : > { %v5051_v34 = vor.u32 1.1754944e-38, %v5050_v28  ;;  %vm5049_vm11 = vcmp.eq.f32.partialorder %v5048_v33, 8.507059e+37  ;;  %v11150_v33 = vpop.f32.mrf.mxu2 }
 0x4cb   : > { %v11124_v61 = vadd.f32 %v11106_v43, %v4845_v42  ;;  %7192 = vmatmul.msk.bf16.gmra.mxu1 %vm3798_vm6, %v4695_v4 }
 0x4cd   : > { %v7957_v53 = vpop.eup %7956  ;;  %v7201_v12 = vmul.f32 -1.442695, %v11124_v61 }
 0x4ce   : > { %v7959_v14 = vpop.eup %7958  ;;  %v5008_v45 = vadd.f32 1.0, %v7957_v53 }
 0x4cf   : > { %v5040_v11 = vmul.f32 %v7959_v14, %v5007_v47  ;;  %7960 = vpow2.f32 %v7201_v12  ;;  %vm5045_vm10 = vweird.f32 %v7959_v14 }
 0x4d0   : > { %7962 = vrcp.f32 %v5008_v45  ;;  %v4770_v63 = vpop.f32.mrf.mxu1  ;;  %vm5046_vm14 = vmor %vm5044_vm5, %vm5045_vm10  ;;  %v5063_v28 = vand.u32 2147483647, %v5008_v45  ;;  %vm5059_vm4 = vweird.f32 %v5008_v45 }
 0x4d1   : > { %v5041_v32 = vsub.f32 1.0, %v5040_v11  ;;  %v4846_v35 = vadd.f32 %v4770_v63, %v4593_v54  ;;  %v4696_v11 = vpack.c.bf16 %v4665_v40, %v4663_v24  ;;  %v4302_v63 = vadd.f32 %v10759_v31, %v10757_v25 }
 0x4d2   : > { %vm5064_vm7 = vcmp.eq.f32.partialorder %v5063_v28, 8.507059e+37  ;;  %v4667_v28 = vld [vmem:[#allocation2 + $0x2c3] ss:$4 sm:$0xff] }
 0x4d3   : > { %v5042_v49 = vmul.f32 %v7959_v14, %v5041_v32  ;;  %v11132_v15 = vadd.f32 %v11106_v43, %v4846_v35  ;;  %v5065_v32 = vand.u32 2147483648, %v5008_v45  ;;  %v11143_v35 = vpop.f32.mrf.mxu3 }
 0x4d5   : > { %v7961_v59 = vpop.eup %7960  ;;  %v5043_v30 = vadd.f32 %v7959_v14, %v5042_v49  ;;  %v7202_v2 = vmul.f32 -1.442695, %v11132_v15 }
 0x4d6   : > { %v7963_v8 = vpop.eup %7962  ;;  %v11137_v0 = vadd.f32 1.0, %v7961_v59  ;;  %v4595_v59 = vadd.f32 %v10762_v44, %v4302_v63 }
 0x4d7   : > { %v5047_v42 = vsel %vm5046_vm14, %v7959_v14, %v5043_v30  ;;  %v5055_v4 = vmul.f32 %v7963_v8, %v5008_v45  ;;  %7964 = vpow2.f32 %v7202_v2  ;;  %vm5060_vm15 = vweird.f32 %v7963_v8 }
 0x4d8   : > { %v5052_v7 = vsel %vm5049_vm11, %v5051_v34, %v5047_v42  ;;  %7966 = vrcp.f32 %v11137_v0  ;;  %v4773_v53 = vpop.f32.mrf.mxu1  ;;  %vm5061_vm8 = vmor %vm5059_vm4, %vm5060_vm15  ;;  %v5066_v30 = vor.u32 1.1754944e-38, %v5065_v32  ;;  %vm5074_vm1 = vweird.f32 %v11137_v0 }
 0x4d9   : > { %v5519_v12 = vmul.f32 %v5052_v7, %v4879_v9  ;;  %v5056_v47 = vsub.f32 1.0, %v5055_v4  ;;  %v4847_v54 = vadd.f32 %v4773_v53, %v10719_v55  ;;  %v5080_v53 = vand.u32 2147483648, %v11137_v0 }
 0x4db   : > { %5552 = vst.msk [vmem:[#allocation3] sm:$0xff] %vm5551_vm0, %v5519_v12  ;;  %v5057_v14 = vmul.f32 %v7963_v8, %v5056_v47  ;;  %v11147_v49 = vadd.f32 %v11106_v43, %v4847_v54  ;;  %7193 = vmatmul.msk.bf16.gmra.mxu1 %vm3798_vm6, %v4696_v11  ;;  %v11157_v12 = vpop.f32.mrf.mxu3  ;;  %v5081_v32 = vor.u32 1.1754944e-38, %v5080_v53 }
 0x4dd   : > { %v7965_v9 = vpop.eup %7964  ;;  %v5058_v55 = vadd.f32 %v7963_v8, %v5057_v14  ;;  %v7203_v25 = vmul.f32 -1.442695, %v11147_v49 }
 0x4de   : > { %v7967_v31 = vpop.eup %7966  ;;  %v5010_v2 = vadd.f32 1.0, %v7965_v9  ;;  %v4669_v9 = vld [vmem:[#allocation2 + $0x2e3] ss:$4 sm:$0xff] }
 0x4df   : > { %v5062_v34 = vsel %vm5061_vm8, %v7963_v8, %v5058_v55  ;;  %v5070_v24 = vmul.f32 %v7967_v31, %v11137_v0  ;;  %7968 = vpow2.f32 %v7203_v25  ;;  %vm5075_vm13 = vweird.f32 %v7967_v31  ;;  %v11168_v55 = vpop.f32.mrf.mxu2 }
 0x4e0   : > { %v5067_v40 = vsel %vm5064_vm7, %v5066_v30, %v5062_v34  ;;  %7970 = vrcp.f32 %v5010_v2  ;;  %v4775_v42 = vpop.f32.mrf.mxu1  ;;  %v5078_v8 = vand.u32 2147483647, %v11137_v0  ;;  %vm5076_vm12 = vmor %vm5074_vm1, %vm5075_vm13  ;;  %vm5089_vm2 = vweird.f32 %v5010_v2 }
 0x4e1   : > { %v5520_v4 = vmul.f32 %v5067_v40, %v11115_v22  ;;  %v5071_v7 = vsub.f32 1.0, %v5070_v24  ;;  %v4848_v45 = vadd.f32 %v4775_v42, %v4595_v59  ;;  %v4697_v42 = vpack.c.bf16 %v4669_v9, %v4667_v28 }
 0x4e2   : > { %vm5079_vm9 = vcmp.eq.f32.partialorder %v5078_v8, 8.507059e+37 }
 0x4e3   : > { %5553 = vst.msk [vmem:[#allocation3 + $0x8] sm:$0xff] %vm5551_vm0, %v5520_v4  ;;  %v5072_v44 = vmul.f32 %v7967_v31, %v5071_v7  ;;  %v11162_v47 = vadd.f32 %v11106_v43, %v4848_v45  ;;  %v4307_v4 = vadd.f32 %v11048_v17, %v11020_v10  ;;  %v5095_v7 = vand.u32 2147483648, %v5010_v2 }
 0x4e4   : > { %v5093_v45 = vand.u32 2147483647, %v5010_v2 }
 0x4e5   : > { %v7969_v54 = vpop.eup %7968  ;;  %v5073_v11 = vadd.f32 %v7967_v31, %v5072_v44  ;;  %v7204_v22 = vmul.f32 -1.442695, %v11162_v47  ;;  %v4597_v10 = vadd.f32 %v11052_v6, %v4307_v4  ;;  %v5096_v17 = vor.u32 1.1754944e-38, %v5095_v7 }
 0x4e6   : > { %v7971_v63 = vpop.eup %7970  ;;  %v11166_v14 = vadd.f32 1.0, %v7969_v54  ;;  %vm5094_vm5 = vcmp.eq.f32.partialorder %v5093_v45, 8.507059e+37  ;;  %v4310_v6 = vadd.f32 %v11121_v3, %v11025_v57  ;;  %v4671_v45 = vld [vmem:[#allocation2 + $0x303] ss:$4 sm:$0xff] }
 0x4e7   : > { %v5077_v25 = vsel %vm5076_vm12, %v7967_v31, %v5073_v11  ;;  %v5085_v59 = vmul.f32 %v7971_v63, %v5010_v2  ;;  %7972 = vpow2.f32 %v7204_v22  ;;  %vm5090_vm3 = vweird.f32 %v7971_v63  ;;  %v11186_v22 = vpop.f32.mrf.mxu2 }
 0x4e8   : > { %v5082_v30 = vsel %vm5079_vm9, %v5081_v32, %v5077_v25  ;;  %7974 = vrcp.f32 %v11166_v14  ;;  %v4778_v34 = vpop.f32.mrf.mxu1  ;;  %vm5091_vm10 = vmor %vm5089_vm2, %vm5090_vm3  ;;  %vm5104_vm11 = vweird.f32 %v11166_v14  ;;  %v4598_v3 = vadd.f32 %v11129_v16, %v4310_v6 }
 0x4e9   : > { %v5521_v0 = vmul.f32 %v5082_v30, %v11124_v61  ;;  %v5086_v24 = vsub.f32 1.0, %v5085_v59  ;;  %v4849_v40 = vadd.f32 %v4778_v34, %v10782_v38  ;;  %v11180_v61 = vpop.f32.mrf.mxu3  ;;  %v5110_v34 = vand.u32 2147483648, %v11166_v14 }
 0x4eb   : > { %5554 = vst.msk [vmem:[#allocation3 + $0x10] sm:$0xff] %vm5551_vm0, %v5521_v0  ;;  %v5087_v31 = vmul.f32 %v7971_v63, %v5086_v24  ;;  %v11177_v53 = vadd.f32 %v11106_v43, %v4849_v40  ;;  %7194 = vmatmul.msk.bf16.gmra.mxu1 %vm3798_vm6, %v4697_v42  ;;  %v5108_v0 = vand.u32 2147483647, %v11166_v14  ;;  %v5111_v7 = vor.u32 1.1754944e-38, %v5110_v34 }
 0x4ed   : > { %v7973_v44 = vpop.eup %7972  ;;  %v5088_v8 = vadd.f32 %v7971_v63, %v5087_v31  ;;  %v7205_v38 = vmul.f32 -1.442695, %v11177_v53  ;;  %vm5109_vm4 = vcmp.eq.f32.partialorder %v5108_v0, 8.507059e+37 }
 0x4ee   : > { %v7975_v54 = vpop.eup %7974  ;;  %v11184_v11 = vadd.f32 1.0, %v7973_v44  ;;  %v4673_v44 = vld [vmem:[#allocation2 + $0x323] ss:$4 sm:$0xff] }
 0x4ef   : > { %v5092_v32 = vsel %vm5091_vm10, %v7971_v63, %v5088_v8  ;;  %v5100_v28 = vmul.f32 %v7975_v54, %v11166_v14  ;;  %7976 = vpow2.f32 %v7205_v38  ;;  %vm5105_vm14 = vweird.f32 %v7975_v54 }
 0x4f0   : > { %v5097_v9 = vsel %vm5094_vm5, %v5096_v17, %v5092_v32  ;;  %7978 = vrcp.f32 %v11184_v11  ;;  %v4780_v2 = vpop.f32.mrf.mxu1  ;;  %vm5106_vm15 = vmor %vm5104_vm11, %vm5105_vm14  ;;  %v11208_v17 = vpop.f32.mrf.mxu2  ;;  %vm5119_vm7 = vweird.f32 %v11184_v11 }
 0x4f1   : > { %v5522_v25 = vmul.f32 %v5097_v9, %v11132_v15  ;;  %v5101_v59 = vsub.f32 1.0, %v5100_v28  ;;  %v4850_v30 = vadd.f32 %v4780_v2, %v4597_v10  ;;  %v11199_v42 = vpop.f32.mrf.mxu3  ;;  %v4698_v9 = vpack.c.bf16 %v4673_v44, %v4671_v45 }
 0x4f2   : > { %v4312_v2 = vadd.f32 %v11134_v50, %v11027_v36 }
 0x4f3   : > { %5555 = vst.msk [vmem:[#allocation3 + $0x18] sm:$0xff] %vm5551_vm0, %v5522_v25  ;;  %v5102_v63 = vmul.f32 %v7975_v54, %v5101_v59  ;;  %v11197_v24 = vadd.f32 %v11106_v43, %v4850_v30  ;;  %v5123_v59 = vand.u32 2147483647, %v11184_v11 }
 0x4f4   : > { %v4599_v50 = vadd.f32 %v11143_v35, %v4312_v2  ;;  %v4675_v2 = vld [vmem:[#allocation2 + $0x343] ss:$4 sm:$0xff] }
 0x4f5   : > { %v7977_v40 = vpop.eup %7976  ;;  %v5103_v15 = vadd.f32 %v7975_v54, %v5102_v63  ;;  %v7206_v4 = vmul.f32 -1.442695, %v11197_v24  ;;  %vm5124_vm1 = vcmp.eq.f32.partialorder %v5123_v59, 8.507059e+37 }
 0x4f6   : > { %v7979_v57 = vpop.eup %7978  ;;  %v11204_v31 = vadd.f32 1.0, %v7977_v40 }
 0x4f7   : > { %v5107_v8 = vsel %vm5106_vm15, %v7975_v54, %v5103_v15  ;;  %v5115_v38 = vmul.f32 %v7979_v57, %v11184_v11  ;;  %7980 = vpow2.f32 %v7206_v4  ;;  %v5125_v54 = vand.u32 2147483648, %v11184_v11 }
 0x4f8   : > { %v5112_v10 = vsel %vm5109_vm4, %v5111_v7, %v5107_v8  ;;  %7982 = vrcp.f32 %v11204_v31  ;;  %v4783_v14 = vpop.f32.mrf.mxu1  ;;  %vm5120_vm8 = vweird.f32 %v7979_v57  ;;  %v11229_v7 = vpop.f32.mrf.mxu2  ;;  %v4315_v8 = vadd.f32 %v11150_v33, %v11032_v5 }
 0x4f9   : > { %v5523_v32 = vmul.f32 %v5112_v10, %v11147_v49  ;;  %v5116_v16 = vsub.f32 1.0, %v5115_v38  ;;  %v4851_v28 = vadd.f32 %v4783_v14, %v4598_v3  ;;  %vm5121_vm13 = vmor %vm5119_vm7, %vm5120_vm8  ;;  %v5126_v63 = vor.u32 1.1754944e-38, %v5125_v54  ;;  %v11225_v40 = vpop.f32.mrf.mxu3  ;;  %v4677_v54 = vld [vmem:[#allocation2 + $0x363] ss:$4 sm:$0xff] }
 0x4fa   : > { %v5140_v38 = vand.u32 2147483648, %v11204_v31  ;;  %v5138_v10 = vand.u32 2147483647, %v11204_v31  ;;  %vm5134_vm9 = vweird.f32 %v11204_v31  ;;  %v4600_v5 = vadd.f32 %v11157_v12, %v4315_v8 }
 0x4fb   : > { %5556 = vst.msk [vmem:[#allocation3 + $0x20] sm:$0xff] %vm5551_vm0, %v5523_v32  ;;  %v5117_v25 = vmul.f32 %v7979_v57, %v5116_v16  ;;  %v11217_v30 = vadd.f32 %v11106_v43, %v4851_v28  ;;  %7195 = vmatmul.msk.bf16.gmra.mxu1 %vm3798_vm6, %v4698_v9 }
 0x4fc   : > { %v5141_v33 = vor.u32 1.1754944e-38, %v5140_v38  ;;  %vm5139_vm2 = vcmp.eq.f32.partialorder %v5138_v10, 8.507059e+37 }
 0x4fd   : > { %v7981_v49 = vpop.eup %7980  ;;  %v5118_v6 = vadd.f32 %v7979_v57, %v5117_v25  ;;  %v7207_v34 = vmul.f32 -1.442695, %v11217_v30 }
 0x4fe   : > { %v7983_v36 = vpop.eup %7982  ;;  %v11223_v0 = vadd.f32 1.0, %v7981_v49 }
 0x4ff   : > { %v5122_v15 = vsel %vm5121_vm13, %v7979_v57, %v5118_v6  ;;  %v5130_v4 = vmul.f32 %v7983_v36, %v11204_v31  ;;  %7984 = vpow2.f32 %v7207_v34  ;;  %vm5135_vm12 = vweird.f32 %v7983_v36 }
 0x500   : > { %v5127_v3 = vsel %vm5124_vm1, %v5126_v63, %v5122_v15  ;;  %7986 = vrcp.f32 %v11223_v0  ;;  %v4785_v11 = vpop.f32.mrf.mxu1  ;;  %vm5136_vm3 = vmor %vm5134_vm9, %vm5135_vm12  ;;  %v4699_v63 = vpack.c.bf16 %v4677_v54, %v4675_v2  ;;  %v4317_v15 = vadd.f32 %v11168_v55, %v11034_v48 }
 0x501   : > { %v5524_v45 = vmul.f32 %v5127_v3, %v11162_v47  ;;  %v5131_v35 = vsub.f32 1.0, %v5130_v4  ;;  %v4852_v44 = vadd.f32 %v4785_v11, %v4599_v50  ;;  %v11245_v25 = vpop.f32.mrf.mxu3  ;;  %v5155_v4 = vand.u32 2147483648, %v11223_v0  ;;  %v11253_v3 = vpop.f32.mrf.mxu2 }
 0x502   : > { %v5153_v11 = vand.u32 2147483647, %v11223_v0  ;;  %vm5149_vm5 = vweird.f32 %v11223_v0 }
 0x503   : > { %5557 = vst.msk [vmem:[#allocation3 + $0x28] sm:$0xff] %vm5551_vm0, %v5524_v45  ;;  %v5132_v57 = vmul.f32 %v7983_v36, %v5131_v35  ;;  %v11238_v14 = vadd.f32 %v11106_v43, %v4852_v44  ;;  %v4601_v44 = vadd.f32 %v11180_v61, %v4317_v15  ;;  %v5156_v8 = vor.u32 1.1754944e-38, %v5155_v4 }
 0x504   : > { %vm5154_vm11 = vcmp.eq.f32.partialorder %v5153_v11, 8.507059e+37  ;;  %v4320_v61 = vadd.f32 %v11186_v22, %v11039_v19  ;;  %v4679_v19 = vld [vmem:[#allocation2 + $0x383] ss:$4 sm:$0xff] }
 0x505   : > { %v7985_v32 = vpop.eup %7984  ;;  %v5133_v16 = vadd.f32 %v7983_v36, %v5132_v57  ;;  %v7208_v47 = vmul.f32 -1.442695, %v11238_v14  ;;  %v4681_v22 = vld [vmem:[#allocation2 + $0x3a3] ss:$4 sm:$0xff] }
 0x506   : > { %v7987_v28 = vpop.eup %7986  ;;  %v11243_v9 = vadd.f32 1.0, %v7985_v32  ;;  %v4700_v11 = vpack.c.bf16 %v4681_v22, %v4679_v19 }
 0x507   : > { %v5137_v59 = vsel %vm5136_vm3, %v7983_v36, %v5133_v16  ;;  %v5145_v49 = vmul.f32 %v7987_v28, %v11223_v0  ;;  %7988 = vpow2.f32 %v7208_v47  ;;  %vm5150_vm10 = vweird.f32 %v7987_v28 }
 0x508   : > { %v5142_v6 = vsel %vm5139_vm2, %v5141_v33, %v5137_v59  ;;  %7990 = vrcp.f32 %v11243_v9  ;;  %v4788_v31 = vpop.f32.mrf.mxu1  ;;  %vm5151_vm14 = vmor %vm5149_vm5, %vm5150_vm10  ;;  %v5170_v2 = vand.u32 2147483648, %v11243_v9  ;;  %v5168_v59 = vand.u32 2147483647, %v11243_v9 }
 0x509   : > { %v5525_v34 = vmul.f32 %v5142_v6, %v11177_v53  ;;  %v5146_v12 = vsub.f32 1.0, %v5145_v49  ;;  %v4853_v50 = vadd.f32 %v4788_v31, %v4600_v5  ;;  %v11268_v47 = vpop.f32.mrf.mxu3  ;;  %vm5164_vm4 = vweird.f32 %v11243_v9 }
 0x50a   : > { %vm5169_vm7 = vcmp.eq.f32.partialorder %v5168_v59, 8.507059e+37 }
 0x50b   : > { %5558 = vst.msk [vmem:[#allocation3 + $0x30] sm:$0xff] %vm5551_vm0, %v5525_v34  ;;  %v5147_v36 = vmul.f32 %v7987_v28, %v5146_v12  ;;  %v11258_v45 = vadd.f32 %v11106_v43, %v4853_v50  ;;  %7196 = vmatmul.msk.bf16.gmra.mxu1 %vm3798_vm6, %v4699_v63  ;;  %v4602_v12 = vadd.f32 %v11199_v42, %v4320_v61  ;;  %v5171_v50 = vor.u32 1.1754944e-38, %v5170_v2 }
 0x50d   : > { %v7989_v53 = vpop.eup %7988  ;;  %v5148_v35 = vadd.f32 %v7987_v28, %v5147_v36  ;;  %v7209_v48 = vmul.f32 -1.442695, %v11258_v45 }
 0x50e   : > { %v7991_v55 = vpop.eup %7990  ;;  %v11264_v38 = vadd.f32 1.0, %v7989_v53 }
 0x50f   : > { %v5152_v57 = vsel %vm5151_vm14, %v7987_v28, %v5148_v35  ;;  %v5160_v10 = vmul.f32 %v7991_v55, %v11243_v9  ;;  %7992 = vpow2.f32 %v7209_v48  ;;  %v11274_v28 = vpop.f32.mrf.mxu2  ;;  %vm5165_vm15 = vweird.f32 %v7991_v55 }
 0x510   : > { %v5157_v32 = vsel %vm5154_vm11, %v5156_v8, %v5152_v57  ;;  %7994 = vrcp.f32 %v11264_v38  ;;  %v4790_v16 = vpop.f32.mrf.mxu1  ;;  %vm5166_vm8 = vmor %vm5164_vm4, %vm5165_vm15  ;;  %v5183_v42 = vand.u32 2147483647, %v11264_v38  ;;  %v5606_v8 = vld [vmem:[#allocation3 + $0x1] ss:$4 sm:$0xff]  ;;  %v5185_v57 = vand.u32 2147483648, %v11264_v38 }
 0x511   : > { %v5526_v0 = vmul.f32 %v5157_v32, %v11197_v24  ;;  %v5161_v5 = vsub.f32 1.0, %v5160_v10  ;;  %v4854_v33 = vadd.f32 %v4790_v16, %v4601_v44  ;;  %v11288_v53 = vpop.f32.mrf.mxu3  ;;  %vm5179_vm1 = vweird.f32 %v11264_v38 }
 0x512   : > { %vm5184_vm9 = vcmp.eq.f32.partialorder %v5183_v42, 8.507059e+37 }
 0x513   : > { %5559 = vst.msk [vmem:[#allocation3 + $0x38] sm:$0xff] %vm5551_vm0, %v5526_v0  ;;  %v5162_v54 = vmul.f32 %v7991_v55, %v5161_v5  ;;  %v11279_v49 = vadd.f32 %v11106_v43, %v4854_v33  ;;  %v5584_v5 = vld [vmem:[#allocation3] ss:$4 sm:$0xff] }
 0x515   : > { %v7993_v6 = vpop.eup %7992  ;;  %v5163_v24 = vadd.f32 %v7991_v55, %v5162_v54  ;;  %v7210_v31 = vmul.f32 -1.442695, %v11279_v49 }
 0x516   : > { %v7995_v34 = vpop.eup %7994  ;;  %v11284_v63 = vadd.f32 1.0, %v7993_v6  ;;  %v5186_v6 = vor.u32 1.1754944e-38, %v5185_v57  ;;  %v4685_v57 = vld [vmem:[#allocation2 + $0x3e3] ss:$4 sm:$0xff] }
 0x517   : > { %v5167_v15 = vsel %vm5166_vm8, %v7991_v55, %v5163_v24  ;;  %v5175_v4 = vmul.f32 %v7995_v34, %v11264_v38  ;;  %7996 = vpow2.f32 %v7210_v31  ;;  %v4322_v55 = vadd.f32 %v11208_v17, %v11043_v27  ;;  %v11300_v2 = vpop.f32.mrf.mxu2 }
 0x518   : > { %v5172_v36 = vsel %vm5169_vm7, %v5171_v50, %v5167_v15  ;;  %7998 = vrcp.f32 %v11284_v63  ;;  %v4793_v9 = vpop.f32.mrf.mxu1  ;;  %vm5180_vm13 = vweird.f32 %v7995_v34  ;;  %vm5194_vm2 = vweird.f32 %v11284_v63 }
 0x519   : > { %v5527_v35 = vmul.f32 %v5172_v36, %v11217_v30  ;;  %v5176_v48 = vsub.f32 1.0, %v5175_v4  ;;  %v4855_v44 = vadd.f32 %v4793_v9, %v4602_v12  ;;  %v4603_v59 = vadd.f32 %v11225_v40, %v4322_v55  ;;  %vm5181_vm12 = vmor %vm5179_vm1, %vm5180_vm13  ;;  %v11315_v36 = vpop.f32.mrf.mxu3  ;;  %v4683_v55 = vld [vmem:[#allocation2 + $0x3c3] ss:$4 sm:$0xff] }
 0x51a   : > { %v5608_v10 = vld [vmem:[#allocation3 + $0x21] ss:$4 sm:$0xff]  ;;  %v5586_v32 = vld [vmem:[#allocation3 + $0x20] ss:$4 sm:$0xff]  ;;  %v4325_v40 = vadd.f32 %v11229_v7, %v11046_v52  ;;  %v5200_v4 = vand.u32 2147483648, %v11284_v63 }
 0x51b   : > { %5560 = vst.msk [vmem:[#allocation3 + $0x40] sm:$0xff] %vm5551_vm0, %v5527_v35  ;;  %v5177_v16 = vmul.f32 %v7995_v34, %v5176_v48  ;;  %v11297_v0 = vadd.f32 %v11106_v43, %v4855_v44  ;;  %7197 = vmatmul.msk.bf16.gmra.mxu1 %vm3798_vm6, %v4700_v11  ;;  %v5621_v30 = vpack.c.bf16 %v5608_v10, %v5606_v8  ;;  %v5198_v9 = vand.u32 2147483647, %v11284_v63 }
 0x51c   : > { %v5599_v33 = vpack.c.bf16 %v5586_v32, %v5584_v5  ;;  %v4604_v42 = vadd.f32 %v11245_v25, %v4325_v40  ;;  %v5201_v44 = vor.u32 1.1754944e-38, %v5200_v4  ;;  %v4327_v25 = vadd.f32 %v11253_v3, %v11055_v60 }
 0x51d   : > { %v7997_v61 = vpop.eup %7996  ;;  %v5178_v27 = vadd.f32 %v7995_v34, %v5177_v16  ;;  %v7211_v17 = vmul.f32 -1.442695, %v11297_v0  ;;  %7235 = vmatmul.msk.bf16.vlgmr.msra.gmra.mxu2 %vm5551_vm0, %v5621_v30  ;;  %vm5199_vm5 = vcmp.eq.f32.partialorder %v5198_v9, 8.507059e+37 }
 0x51e   : > { %v7999_v54 = vpop.eup %7998  ;;  %v11306_v24 = vadd.f32 1.0, %v7997_v61  ;;  %7243 = vmatmul.msk.bf16.vlgmr.msra.gmra.mxu3 %vm5551_vm0, %v5599_v33  ;;  %v4701_v61 = vpack.c.bf16 %v4685_v57, %v4683_v55 }
 0x51f   : > { %v5182_v31 = vsel %vm5181_vm12, %v7995_v34, %v5178_v27  ;;  %v5190_v19 = vmul.f32 %v7999_v54, %v11284_v63  ;;  %8000 = vpow2.f32 %v7211_v17  ;;  %vm5195_vm3 = vweird.f32 %v7999_v54 }
 0x520   : > { %v5187_v22 = vsel %vm5184_vm9, %v5186_v6, %v5182_v31  ;;  %8002 = vrcp.f32 %v11306_v24  ;;  %v4795_v38 = vpop.f32.mrf.mxu1  ;;  %vm5196_vm10 = vmor %vm5194_vm2, %vm5195_vm3  ;;  %v5215_v27 = vand.u32 2147483648, %v11306_v24  ;;  %vm5209_vm11 = vweird.f32 %v11306_v24 }
 0x521   : > { %v5528_v12 = vmul.f32 %v5187_v22, %v11238_v14  ;;  %v5191_v50 = vsub.f32 1.0, %v5190_v19  ;;  %v4856_v15 = vadd.f32 %v4795_v38, %v4603_v59  ;;  %v11322_v14 = vpop.f32.mrf.mxu2  ;;  %v11332_v17 = vpop.f32.mrf.mxu3  ;;  %v5213_v59 = vand.u32 2147483647, %v11306_v24 }
 0x522   : > { %v4605_v19 = vadd.f32 %v11268_v47, %v4327_v25  ;;  %v5216_v22 = vor.u32 1.1754944e-38, %v5215_v27  ;;  %v4332_v25 = vadd.f32 %v11300_v2, %v11060_v21 }
 0x523   : > { %5561 = vst.msk [vmem:[#allocation3 + $0x48] sm:$0xff] %vm5551_vm0, %v5528_v12  ;;  %v5192_v34 = vmul.f32 %v7999_v54, %v5191_v50  ;;  %v11320_v11 = vadd.f32 %v11106_v43, %v4856_v15  ;;  %vm5214_vm4 = vcmp.eq.f32.partialorder %v5213_v59, 8.507059e+37 }
 0x525   : > { %v8001_v35 = vpop.eup %8000  ;;  %v5193_v48 = vadd.f32 %v7999_v54, %v5192_v34  ;;  %v7212_v52 = vmul.f32 -1.442695, %v11320_v11 }
 0x526   : > { %v8003_v7 = vpop.eup %8002  ;;  %v5019_v8 = vadd.f32 1.0, %v8001_v35  ;;  %v4330_v35 = vadd.f32 %v11274_v28, %v11057_v56 }
 0x527   : > { %v5197_v10 = vsel %vm5196_vm10, %v7999_v54, %v5193_v48  ;;  %v5205_v32 = vmul.f32 %v8003_v7, %v11306_v24  ;;  %8004 = vpow2.f32 %v7212_v52  ;;  %vm5210_vm14 = vweird.f32 %v8003_v7 }
 0x528   : > { %v5202_v16 = vsel %vm5199_vm5, %v5201_v44, %v5197_v10  ;;  %8006 = vrcp.f32 %v5019_v8  ;;  %v4798_v30 = vpop.f32.mrf.mxu1  ;;  %vm5211_vm15 = vmor %vm5209_vm11, %vm5210_vm14  ;;  %v5230_v47 = vand.u32 2147483648, %v5019_v8  ;;  %v5228_v52 = vand.u32 2147483647, %v5019_v8 }
 0x529   : > { %v5529_v63 = vmul.f32 %v5202_v16, %v11258_v45  ;;  %v5206_v5 = vsub.f32 1.0, %v5205_v32  ;;  %v4857_v33 = vadd.f32 %v4798_v30, %v4604_v42  ;;  %v11343_v12 = vpop.f32.mrf.mxu2  ;;  %v11352_v44 = vpop.f32.mrf.mxu3  ;;  %vm5224_vm8 = vweird.f32 %v5019_v8 }
 0x52a   : > { %v4606_v10 = vadd.f32 %v11288_v53, %v4330_v35  ;;  %v5231_v56 = vor.u32 1.1754944e-38, %v5230_v47  ;;  %vm5229_vm13 = vcmp.eq.f32.partialorder %v5228_v52, 8.507059e+37 }
 0x52b   : > { %5562 = vst.msk [vmem:[#allocation3 + $0x50] sm:$0xff] %vm5551_vm0, %v5529_v63  ;;  %v5207_v54 = vmul.f32 %v8003_v7, %v5206_v5  ;;  %v11337_v6 = vadd.f32 %v11106_v43, %v4857_v33  ;;  %7198 = vmatmul.msk.bf16.gmra.mxu1 %vm3798_vm6, %v4701_v61 }
 0x52d   : > { %v8005_v45 = vpop.eup %8004  ;;  %v5208_v31 = vadd.f32 %v8003_v7, %v5207_v54  ;;  %v7213_v60 = vmul.f32 -1.442695, %v11337_v6 }
 0x52e   : > { %v8007_v3 = vpop.eup %8006  ;;  %v5020_v38 = vadd.f32 1.0, %v8005_v45 }
 0x52f   : > { %v5212_v50 = vsel %vm5211_vm15, %v8003_v7, %v5208_v31  ;;  %v5220_v15 = vmul.f32 %v8007_v3, %v5019_v8  ;;  %8008 = vpow2.f32 %v7213_v60  ;;  %vm5225_vm6 = vweird.f32 %v8007_v3 }
 0x530   : > { %v5217_v40 = vsel %vm5214_vm4, %v5216_v22, %v5212_v50  ;;  %8010 = vrcp.f32 %v5020_v38  ;;  %v4800_v4 = vpop.f32.mrf.mxu1  ;;  %vm5226_vm7 = vmor %vm5224_vm8, %vm5225_vm6  ;;  %v5245_v53 = vand.u32 2147483648, %v5020_v38  ;;  %v5243_v54 = vand.u32 2147483647, %v5020_v38 }
 0x531   : > { %v5530_v34 = vmul.f32 %v5217_v40, %v11279_v49  ;;  %v5221_v24 = vsub.f32 1.0, %v5220_v15  ;;  %v4858_v9 = vadd.f32 %v4800_v4, %v4605_v19  ;;  %v11356_v5 = vpop.f32.mrf.mxu2  ;;  %vm5239_vm12 = vweird.f32 %v5020_v38  ;;  %v11367_v2 = vpop.f32.mrf.mxu3 }
 0x532   : > { %v5246_v19 = vor.u32 1.1754944e-38, %v5245_v53  ;;  %vm5244_vm3 = vcmp.eq.f32.partialorder %v5243_v54, 8.507059e+37 }
 0x533   : > { %5563 = vst.msk [vmem:[#allocation3 + $0x58] sm:$0xff] %vm5551_vm0, %v5530_v34  ;;  %v5222_v48 = vmul.f32 %v8007_v3, %v5221_v24  ;;  %v11350_v7 = vadd.f32 %v11106_v43, %v4858_v9  ;;  %v4335_v24 = vadd.f32 %v11322_v14, %v11062_v20 }
 0x535   : > { %v8009_v42 = vpop.eup %8008  ;;  %v5223_v55 = vadd.f32 %v8007_v3, %v5222_v48  ;;  %v7214_v49 = vmul.f32 -1.442695, %v11350_v7 }
 0x536   : > { %v8011_v57 = vpop.eup %8010  ;;  %v5021_v28 = vadd.f32 1.0, %v8009_v42 }
 0x537   : > { %v5227_v32 = vsel %vm5226_vm7, %v8007_v3, %v5223_v55  ;;  %v5235_v16 = vmul.f32 %v8011_v57, %v5020_v38  ;;  %8012 = vpow2.f32 %v7214_v49  ;;  %vm5240_vm1 = vweird.f32 %v8011_v57 }
 0x538   : > { %v5232_v30 = vsel %vm5229_vm13, %v5231_v56, %v5227_v32  ;;  %8014 = vrcp.f32 %v5021_v28  ;;  %v4803_v63 = vpop.f32.mrf.mxu1  ;;  %v4607_v3 = vadd.f32 %v11315_v36, %v4332_v25  ;;  %vm5241_vm9 = vmor %vm5239_vm12, %vm5240_vm1  ;;  %v5260_v36 = vand.u32 2147483648, %v5021_v28 }
 0x539   : > { %v5531_v33 = vmul.f32 %v5232_v30, %v11297_v0  ;;  %v5236_v8 = vsub.f32 1.0, %v5235_v16  ;;  %v4859_v61 = vadd.f32 %v4803_v63, %v4606_v10  ;;  %v11372_v9 = vpop.f32.mrf.mxu2  ;;  %v5258_v47 = vand.u32 2147483647, %v5021_v28  ;;  %v11380_v16 = vpop.f32.mrf.mxu3 }
 0x53a   : > { %vm5254_vm10 = vweird.f32 %v5021_v28  ;;  %v4608_v49 = vadd.f32 %v11332_v17, %v4335_v24  ;;  %v5261_v20 = vor.u32 1.1754944e-38, %v5260_v36 }
 0x53b   : > { %5564 = vst.msk [vmem:[#allocation3 + $0x60] sm:$0xff] %vm5551_vm0, %v5531_v33  ;;  %v5237_v27 = vmul.f32 %v8011_v57, %v5236_v8  ;;  %v11363_v59 = vadd.f32 %v11106_v43, %v4859_v61  ;;  %vm5259_vm14 = vcmp.eq.f32.partialorder %v5258_v47, 8.507059e+37  ;;  %v4337_v33 = vadd.f32 %v11343_v12, %v11065_v51 }
 0x53d   : > { %v8013_v45 = vpop.eup %8012  ;;  %v5238_v31 = vadd.f32 %v8011_v57, %v5237_v27  ;;  %v7215_v60 = vmul.f32 -1.442695, %v11363_v59 }
 0x53e   : > { %v8015_v0 = vpop.eup %8014  ;;  %v5022_v21 = vadd.f32 1.0, %v8013_v45 }
 0x53f   : > { %v5242_v22 = vsel %vm5241_vm9, %v8011_v57, %v5238_v31  ;;  %v5250_v50 = vmul.f32 %v8015_v0, %v5021_v28  ;;  %8016 = vpow2.f32 %v7215_v60  ;;  %vm5255_vm2 = vweird.f32 %v8015_v0 }
 0x540   : > { %v5247_v15 = vsel %vm5244_vm3, %v5246_v19, %v5242_v22  ;;  %8018 = vrcp.f32 %v5022_v21  ;;  %v4805_v40 = vpop.f32.mrf.mxu1  ;;  %vm5256_vm5 = vmor %vm5254_vm10, %vm5255_vm2  ;;  %v5275_v17 = vand.u32 2147483648, %v5022_v21  ;;  %v5273_v61 = vand.u32 2147483647, %v5022_v21 }
 0x541   : > { %v5532_v4 = vmul.f32 %v5247_v15, %v11320_v11  ;;  %v5251_v38 = vsub.f32 1.0, %v5250_v50  ;;  %v4860_v34 = vadd.f32 %v4805_v40, %v4607_v3  ;;  %v11389_v27 = vpop.f32.mrf.mxu2  ;;  %vm5269_vm15 = vweird.f32 %v5022_v21  ;;  %v11399_v15 = vpop.f32.mrf.mxu3 }
 0x542   : > { %v4609_v31 = vadd.f32 %v11352_v44, %v4337_v33  ;;  %v5276_v51 = vor.u32 1.1754944e-38, %v5275_v17  ;;  %vm5274_vm6 = vcmp.eq.f32.partialorder %v5273_v61, 8.507059e+37  ;;  %v4340_v50 = vadd.f32 %v11356_v5, %v11067_v41  ;;  %v5588_v17 = vld [vmem:[#allocation3 + $0x40] ss:$4 sm:$0xff] }
 0x543   : > { %5565 = vst.msk [vmem:[#allocation3 + $0x68] sm:$0xff] %vm5551_vm0, %v5532_v4  ;;  %v5252_v35 = vmul.f32 %v8015_v0, %v5251_v38  ;;  %v11376_v48 = vadd.f32 %v11106_v43, %v4860_v34  ;;  %v11405_v38 = vld [vmem:[%s11980_s4] ss:$0 sm:$0xff] }
 0x544   : > { %v4610_v36 = vadd.f32 %v11367_v2, %v4340_v50 }
 0x545   : > { %v8017_v52 = vpop.eup %8016  ;;  %v5253_v42 = vadd.f32 %v8015_v0, %v5252_v35  ;;  %v7216_v11 = vmul.f32 -1.442695, %v11376_v48 }
 0x546   : > { %v8019_v55 = vpop.eup %8018  ;;  %v5023_v14 = vadd.f32 1.0, %v8017_v52 }
 0x547   : > { %v5257_v57 = vsel %vm5256_vm5, %v8015_v0, %v5253_v42  ;;  %v5265_v10 = vmul.f32 %v8019_v55, %v5022_v21  ;;  %8020 = vpow2.f32 %v7216_v11  ;;  %vm5270_vm11 = vweird.f32 %v8019_v55 }
 0x548   : > { %v5262_v56 = vsel %vm5259_vm14, %v5261_v20, %v5257_v57  ;;  %8022 = vrcp.f32 %v5023_v14  ;;  %v4808_v32 = vpop.f32.mrf.mxu1  ;;  %vm5271_vm4 = vmor %vm5269_vm15, %vm5270_vm11  ;;  %v5290_v44 = vand.u32 2147483648, %v5023_v14  ;;  %v5288_v4 = vand.u32 2147483647, %v5023_v14 }
 0x549   : > { %v5533_v30 = vmul.f32 %v5262_v56, %v11337_v6  ;;  %v5266_v28 = vsub.f32 1.0, %v5265_v10  ;;  %v4861_v63 = vadd.f32 %v4808_v32, %v4608_v49  ;;  %vm5284_vm7 = vweird.f32 %v5023_v14  ;;  %v11414_v52 = vpop.f32.mrf.mxu2  ;;  %v5610_v10 = vld [vmem:[#allocation3 + $0x41] ss:$4 sm:$0xff] }
 0x54a   : > { %v5291_v35 = vor.u32 1.1754944e-38, %v5290_v44  ;;  %vm5289_vm1 = vcmp.eq.f32.partialorder %v5288_v4, 8.507059e+37  ;;  %v4342_v56 = vadd.f32 %v11372_v9, %v11070_v62 }
 0x54b   : > { %5566 = vst.msk [vmem:[#allocation3 + $0x70] sm:$0xff] %vm5551_vm0, %v5533_v30  ;;  %v5267_v8 = vmul.f32 %v8019_v55, %v5266_v28  ;;  %v11387_v25 = vadd.f32 %v11106_v43, %v4861_v63 }
 0x54d   : > { %v8021_v53 = vpop.eup %8020  ;;  %v5268_v54 = vadd.f32 %v8019_v55, %v5267_v8  ;;  %v7217_v6 = vmul.f32 -1.442695, %v11387_v25 }
 0x54e   : > { %v8023_v45 = vpop.eup %8022  ;;  %v11393_v12 = vadd.f32 1.0, %v8021_v53  ;;  %v4567_v53 = vpop.f32.mrf.mxu3 }
 0x54f   : > { %v5272_v60 = vsel %vm5271_vm4, %v8019_v55, %v5268_v54  ;;  %v5280_v0 = vmul.f32 %v8023_v45, %v5023_v14  ;;  %8024 = vpow2.f32 %v7217_v6  ;;  %vm5285_vm8 = vweird.f32 %v8023_v45 }
 0x550   : > { %v5277_v43 = vsel %vm5274_vm6, %v5276_v51, %v5272_v60  ;;  %8026 = vrcp.f32 %v11393_v12  ;;  %v4810_v3 = vpop.f32.mrf.mxu1  ;;  %vm5286_vm13 = vmor %vm5284_vm7, %vm5285_vm8  ;;  %v5303_v2 = vand.u32 2147483647, %v11393_v12  ;;  %v5305_v32 = vand.u32 2147483648, %v11393_v12 }
 0x551   : > { %v5534_v19 = vmul.f32 %v5277_v43, %v11350_v7  ;;  %v5281_v21 = vsub.f32 1.0, %v5280_v0  ;;  %v4862_v22 = vadd.f32 %v4810_v3, %v4609_v31  ;;  %vm5299_vm9 = vweird.f32 %v11393_v12  ;;  %v4349_v43 = vpop.f32.mrf.mxu2 }
 0x552   : > { %v4611_v6 = vadd.f32 %v11380_v16, %v4342_v56  ;;  %vm5304_vm2 = vcmp.eq.f32.partialorder %v5303_v2, 8.507059e+37  ;;  %v4345_v16 = vadd.f32 %v11389_v27, %v11072_v58 }
 0x553   : > { %5567 = vst.msk [vmem:[#allocation3 + $0x78] sm:$0xff] %vm5551_vm0, %v5534_v19  ;;  %v5282_v40 = vmul.f32 %v8023_v45, %v5281_v21  ;;  %v11408_v7 = vadd.f32 %v11405_v38, %v4862_v22 }
 0x554   : > { %v4612_v58 = vadd.f32 %v11399_v15, %v4345_v16 }
 0x555   : > { %v8025_v34 = vpop.eup %8024  ;;  %v5283_v24 = vadd.f32 %v8023_v45, %v5282_v40  ;;  %v7218_v41 = vmul.f32 -1.442695, %v11408_v7 }
 0x556   : > { %v8027_v5 = vpop.eup %8026  ;;  %v11412_v47 = vadd.f32 1.0, %v8025_v34 }
 0x557   : > { %v5287_v42 = vsel %vm5286_vm13, %v8023_v45, %v5283_v24  ;;  %v5295_v11 = vmul.f32 %v8027_v5, %v11393_v12  ;;  %8028 = vpow2.f32 %v7218_v41  ;;  %vm5300_vm12 = vweird.f32 %v8027_v5 }
 0x558   : > { %v5292_v55 = vsel %vm5289_vm1, %v5291_v35, %v5287_v42  ;;  %8030 = vrcp.f32 %v11412_v47  ;;  %v4813_v49 = vpop.f32.mrf.mxu1  ;;  %vm5301_vm3 = vmor %vm5299_vm9, %vm5300_vm12  ;;  %v5306_v45 = vor.u32 1.1754944e-38, %v5305_v32  ;;  %v5320_v22 = vand.u32 2147483648, %v11412_v47 }
 0x559   : > { %v5535_v20 = vmul.f32 %v5292_v55, %v11363_v59  ;;  %v5296_v14 = vsub.f32 1.0, %v5295_v11  ;;  %v4863_v57 = vadd.f32 %v4813_v49, %v4610_v36  ;;  %v5318_v44 = vand.u32 2147483647, %v11412_v47  ;;  %v4351_v15 = vpop.f32.mrf.mxu2 }
 0x55a   : > { %v5612_v30 = vld [vmem:[#allocation3 + $0x61] ss:$4 sm:$0xff]  ;;  %v5590_v28 = vld [vmem:[#allocation3 + $0x60] ss:$4 sm:$0xff]  ;;  %vm5314_vm5 = vweird.f32 %v11412_v47  ;;  %v5321_v27 = vor.u32 1.1754944e-38, %v5320_v22 }
 0x55b   : > { %5568 = vst.msk [vmem:[#allocation3 + $0x80] sm:$0xff] %vm5551_vm0, %v5535_v20  ;;  %v5297_v63 = vmul.f32 %v8027_v5, %v5296_v14  ;;  %v11425_v33 = vadd.f32 %v11405_v38, %v4863_v57  ;;  %v5622_v59 = vpack.c.bf16 %v5612_v30, %v5610_v10  ;;  %v5600_v8 = vpack.c.bf16 %v5590_v28, %v5588_v17 }
 0x55c   : > { %vm5319_vm11 = vcmp.eq.f32.partialorder %v5318_v44, 8.507059e+37  ;;  %v4347_v20 = vadd.f32 %v11414_v52, %v11075_v13 }
 0x55d   : > { %v8029_v61 = vpop.eup %8028  ;;  %v5298_v54 = vadd.f32 %v8027_v5, %v5297_v63  ;;  %v7219_v62 = vmul.f32 -1.442695, %v11425_v33  ;;  %7236 = vmatmul.msk.bf16.gmra.mxu2 %vm5551_vm0, %v5622_v59  ;;  %7244 = vmatmul.msk.bf16.gmra.mxu3 %vm5551_vm0, %v5600_v8 }
 0x55e   : > { %v8031_v9 = vpop.eup %8030  ;;  %v5026_v31 = vadd.f32 1.0, %v8029_v61  ;;  %v4613_v28 = vadd.f32 %v4567_v53, %v4347_v20 }
 0x55f   : > { %v5302_v51 = vsel %vm5301_vm3, %v8027_v5, %v5298_v54  ;;  %v5310_v60 = vmul.f32 %v8031_v9, %v11412_v47  ;;  %8032 = vpow2.f32 %v7219_v62  ;;  %vm5315_vm10 = vweird.f32 %v8031_v9  ;;  %v4570_v5 = vpop.f32.mrf.mxu3 }
 0x560   : > { %v5307_v0 = vsel %vm5304_vm2, %v5306_v45, %v5302_v51  ;;  %8034 = vrcp.f32 %v5026_v31  ;;  %v4815_v12 = vpop.f32.mrf.mxu1  ;;  %vm5316_vm14 = vmor %vm5314_vm5, %vm5315_vm10  ;;  %v5335_v14 = vand.u32 2147483648, %v5026_v31  ;;  %v5333_v57 = vand.u32 2147483647, %v5026_v31 }
 0x561   : > { %v5536_v3 = vmul.f32 %v5307_v0, %v11376_v48  ;;  %v5311_v19 = vsub.f32 1.0, %v5310_v60  ;;  %v4864_v21 = vadd.f32 %v4815_v12, %v4611_v6  ;;  %vm5329_vm4 = vweird.f32 %v5026_v31  ;;  %v4354_v0 = vpop.f32.mrf.mxu2 }
 0x562   : > { %v5336_v63 = vor.u32 1.1754944e-38, %v5335_v14  ;;  %vm5334_vm8 = vcmp.eq.f32.partialorder %v5333_v57, 8.507059e+37  ;;  %v4350_v6 = vadd.f32 %v4349_v43, %v11077_v18 }
 0x563   : > { %5569 = vst.msk [vmem:[#allocation3 + $0x88] sm:$0xff] %vm5551_vm0, %v5536_v3  ;;  %v5312_v50 = vmul.f32 %v8031_v9, %v5311_v19  ;;  %v11440_v40 = vadd.f32 %v11405_v38, %v4864_v21 }
 0x564   : > { %v4614_v19 = vadd.f32 %v4570_v5, %v4350_v6 }
 0x565   : > { %v8033_v4 = vpop.eup %8032  ;;  %v5313_v34 = vadd.f32 %v8031_v9, %v5312_v50  ;;  %v7220_v48 = vmul.f32 -1.442695, %v11440_v40 }
 0x566   : > { %v8035_v24 = vpop.eup %8034  ;;  %v5027_v41 = vadd.f32 1.0, %v8033_v4 }
 0x567   : > { %v5317_v36 = vsel %vm5316_vm14, %v8031_v9, %v5313_v34  ;;  %v5325_v35 = vmul.f32 %v8035_v24, %v5026_v31  ;;  %8036 = vpow2.f32 %v7220_v48  ;;  %vm5330_vm15 = vweird.f32 %v8035_v24  ;;  %v4572_v61 = vpop.f32.mrf.mxu3 }
 0x568   : > { %v5322_v42 = vsel %vm5319_vm11, %v5321_v27, %v5317_v36  ;;  %8038 = vrcp.f32 %v5027_v41  ;;  %v4818_v11 = vpop.f32.mrf.mxu1  ;;  %vm5331_vm6 = vmor %vm5329_vm4, %vm5330_vm15  ;;  %v5350_v45 = vand.u32 2147483648, %v5027_v41  ;;  %v5348_v31 = vand.u32 2147483647, %v5027_v41 }
 0x569   : > { %v5537_v55 = vmul.f32 %v5322_v42, %v11387_v25  ;;  %v5326_v49 = vsub.f32 1.0, %v5325_v35  ;;  %v4865_v47 = vadd.f32 %v4818_v11, %v4612_v58  ;;  %vm5344_vm13 = vweird.f32 %v5027_v41 }
 0x56a   : > { %v5351_v21 = vor.u32 1.1754944e-38, %v5350_v45  ;;  %vm5349_vm12 = vcmp.eq.f32.partialorder %v5348_v31, 8.507059e+37  ;;  %v4352_v48 = vadd.f32 %v4351_v15, %v11080_v39 }
 0x56b   : > { %5570 = vst.msk [vmem:[#allocation3 + $0x90] sm:$0xff] %vm5551_vm0, %v5537_v55  ;;  %v5327_v2 = vmul.f32 %v8035_v24, %v5326_v49  ;;  %v11450_v10 = vadd.f32 %v11405_v38, %v4865_v47  ;;  %v4356_v49 = vpop.f32.mrf.mxu2 }
 0x56c   : > { %v4615_v11 = vadd.f32 %v4572_v61, %v4352_v48 }
 0x56d   : > { %v8037_v56 = vpop.eup %8036  ;;  %v5328_v32 = vadd.f32 %v8035_v24, %v5327_v2  ;;  %v7221_v25 = vmul.f32 -1.442695, %v11450_v10 }
 0x56e   : > { %v8039_v30 = vpop.eup %8038  ;;  %v5028_v13 = vadd.f32 1.0, %v8037_v56 }
 0x56f   : > { %v5332_v52 = vsel %vm5331_vm6, %v8035_v24, %v5328_v32  ;;  %v5340_v59 = vmul.f32 %v8039_v30, %v5027_v41  ;;  %8040 = vpow2.f32 %v7221_v25  ;;  %vm5345_vm7 = vweird.f32 %v8039_v30  ;;  %v4575_v58 = vpop.f32.mrf.mxu3 }
 0x570   : > { %v5337_v17 = vsel %vm5334_vm8, %v5336_v63, %v5332_v52  ;;  %8042 = vrcp.f32 %v5028_v13  ;;  %v4820_v8 = vpop.f32.mrf.mxu1  ;;  %vm5346_vm1 = vmor %vm5344_vm13, %vm5345_vm7  ;;  %v5365_v24 = vand.u32 2147483648, %v5028_v13  ;;  %v5363_v41 = vand.u32 2147483647, %v5028_v13 }
 0x571   : > { %v5538_v54 = vmul.f32 %v5337_v17, %v11408_v7  ;;  %v5341_v62 = vsub.f32 1.0, %v5340_v59  ;;  %v4866_v9 = vadd.f32 %v4820_v8, %v4613_v28  ;;  %vm5359_vm3 = vweird.f32 %v5028_v13 }
 0x572   : > { %v5366_v55 = vor.u32 1.1754944e-38, %v5365_v24  ;;  %vm5364_vm10 = vcmp.eq.f32.partialorder %v5363_v41, 8.507059e+37  ;;  %v4355_v32 = vadd.f32 %v4354_v0, %v11082_v29  ;;  %v4357_v0 = vadd.f32 %v4356_v49, %v11088_v23 }
 0x573   : > { %5571 = vst.msk [vmem:[#allocation3 + $0x98] sm:$0xff] %vm5551_vm0, %v5538_v54  ;;  %v5342_v53 = vmul.f32 %v8039_v30, %v5341_v62  ;;  %v11457_v51 = vadd.f32 %v11405_v38, %v4866_v9  ;;  %v4359_v45 = vpop.f32.mrf.mxu2 }
 0x574   : > { %v4616_v8 = vadd.f32 %v4575_v58, %v4355_v32  ;;  %v4360_v41 = vadd.f32 %v4359_v45, %v11093_v37 }
 0x575   : > { %v8041_v60 = vpop.eup %8040  ;;  %v5343_v12 = vadd.f32 %v8039_v30, %v5342_v53  ;;  %v7222_v3 = vmul.f32 -1.442695, %v11457_v51 }
 0x576   : > { %v8043_v7 = vpop.eup %8042  ;;  %v5029_v18 = vadd.f32 1.0, %v8041_v60 }
 0x577   : > { %v5347_v43 = vsel %vm5346_vm1, %v8039_v30, %v5343_v12  ;;  %v5355_v16 = vmul.f32 %v8043_v7, %v5028_v13  ;;  %8044 = vpow2.f32 %v7222_v3  ;;  %vm5360_vm9 = vweird.f32 %v8043_v7  ;;  %v4577_v52 = vpop.f32.mrf.mxu3 }
 0x578   : > { %v5352_v22 = vsel %vm5349_vm12, %v5351_v21, %v5347_v43  ;;  %8046 = vrcp.f32 %v5029_v18  ;;  %v4823_v50 = vpop.f32.mrf.mxu1  ;;  %vm5361_vm2 = vmor %vm5359_vm3, %vm5360_vm9  ;;  %v5380_v25 = vand.u32 2147483648, %v5029_v18  ;;  %v5378_v28 = vand.u32 2147483647, %v5029_v18 }
 0x579   : > { %v5539_v44 = vmul.f32 %v5352_v22, %v11425_v33  ;;  %v5356_v4 = vsub.f32 1.0, %v5355_v16  ;;  %v4867_v34 = vadd.f32 %v4823_v50, %v4614_v19  ;;  %vm5374_vm14 = vweird.f32 %v5029_v18 }
 0x57a   : > { %v5381_v61 = vor.u32 1.1754944e-38, %v5380_v25  ;;  %vm5379_vm15 = vcmp.eq.f32.partialorder %v5378_v28, 8.507059e+37 }
 0x57b   : > { %5572 = vst.msk [vmem:[#allocation3 + $0xa0] sm:$0xff] %vm5551_vm0, %v5539_v44  ;;  %v5357_v27 = vmul.f32 %v8043_v7, %v5356_v4  ;;  %v11464_v5 = vadd.f32 %v11405_v38, %v4867_v34 }
 0x57d   : > { %v8045_v36 = vpop.eup %8044  ;;  %v5358_v35 = vadd.f32 %v8043_v7, %v5357_v27  ;;  %v7223_v42 = vmul.f32 -1.442695, %v11464_v5 }
 0x57e   : > { %v8047_v33 = vpop.eup %8046  ;;  %v5030_v39 = vadd.f32 1.0, %v8045_v36 }
 0x57f   : > { %v5362_v47 = vsel %vm5361_vm2, %v8043_v7, %v5358_v35  ;;  %v5370_v20 = vmul.f32 %v8047_v33, %v5029_v18  ;;  %8048 = vpow2.f32 %v7223_v42  ;;  %vm5375_vm5 = vweird.f32 %v8047_v33  ;;  %v4580_v23 = vpop.f32.mrf.mxu3  ;;  %v4361_v35 = vpop.f32.mrf.mxu2 }
 0x580   : > { %v5367_v14 = vsel %vm5364_vm10, %v5366_v55, %v5362_v47  ;;  %8050 = vrcp.f32 %v5030_v39  ;;  %v4825_v15 = vpop.f32.mrf.mxu1  ;;  %vm5376_vm11 = vmor %vm5374_vm14, %vm5375_vm5  ;;  %v5395_v12 = vand.u32 2147483648, %v5030_v39  ;;  %v5393_v7 = vand.u32 2147483647, %v5030_v39 }
 0x581   : > { %v5540_v2 = vmul.f32 %v5367_v14, %v11440_v40  ;;  %v5371_v57 = vsub.f32 1.0, %v5370_v20  ;;  %v4868_v56 = vadd.f32 %v4825_v15, %v4615_v11  ;;  %vm5389_vm6 = vweird.f32 %v5030_v39 }
 0x582   : > { %v5396_v22 = vor.u32 1.1754944e-38, %v5395_v12  ;;  %vm5394_vm7 = vcmp.eq.f32.partialorder %v5393_v7, 8.507059e+37  ;;  %v4618_v47 = vadd.f32 %v4580_v23, %v4360_v41 }
 0x583   : > { %5573 = vst.msk [vmem:[#allocation3 + $0xa8] sm:$0xff] %vm5551_vm0, %v5540_v2  ;;  %v5372_v30 = vmul.f32 %v8047_v33, %v5371_v57  ;;  %v11471_v63 = vadd.f32 %v11405_v38, %v4868_v56 }
 0x585   : > { %v8049_v13 = vpop.eup %8048  ;;  %v5373_v59 = vadd.f32 %v8047_v33, %v5372_v30  ;;  %v7224_v17 = vmul.f32 -1.442695, %v11471_v63 }
 0x586   : > { %v8051_v40 = vpop.eup %8050  ;;  %v5031_v29 = vadd.f32 1.0, %v8049_v13  ;;  %v5614_v13 = vld [vmem:[#allocation3 + $0x81] ss:$4 sm:$0xff] }
 0x587   : > { %v5377_v54 = vsel %vm5376_vm11, %v8047_v33, %v5373_v59  ;;  %v5385_v62 = vmul.f32 %v8051_v40, %v5030_v39  ;;  %8052 = vpow2.f32 %v7224_v17  ;;  %vm5390_vm4 = vweird.f32 %v8051_v40  ;;  %v4582_v56 = vpop.f32.mrf.mxu3 }
 0x588   : > { %v5382_v9 = vsel %vm5379_vm15, %v5381_v61, %v5377_v54  ;;  %8054 = vrcp.f32 %v5031_v29  ;;  %v4828_v6 = vpop.f32.mrf.mxu1  ;;  %vm5391_vm8 = vmor %vm5389_vm6, %vm5390_vm4  ;;  %v5410_v36 = vand.u32 2147483648, %v5031_v29  ;;  %v5408_v33 = vand.u32 2147483647, %v5031_v29 }
 0x589   : > { %v5541_v53 = vmul.f32 %v5382_v9, %v11450_v10  ;;  %v5386_v31 = vsub.f32 1.0, %v5385_v62  ;;  %v4869_v60 = vadd.f32 %v4828_v6, %v4616_v8  ;;  %v4617_v10 = vadd.f32 %v4577_v52, %v4357_v0  ;;  %v4364_v9 = vpop.f32.mrf.mxu2 }
 0x58a   : > { %vm5404_vm1 = vweird.f32 %v5031_v29  ;;  %v5411_v20 = vor.u32 1.1754944e-38, %v5410_v36  ;;  %vm5409_vm9 = vcmp.eq.f32.partialorder %v5408_v33, 8.507059e+37  ;;  %v4362_v52 = vadd.f32 %v4361_v35, %v11096_v1 }
 0x58b   : > { %5574 = vst.msk [vmem:[#allocation3 + $0xb0] sm:$0xff] %vm5551_vm0, %v5541_v53  ;;  %v5387_v3 = vmul.f32 %v8051_v40, %v5386_v31  ;;  %v11478_v19 = vadd.f32 %v11405_v38, %v4869_v60 }
 0x58c   : > { %v4619_v53 = vadd.f32 %v4582_v56, %v4362_v52 }
 0x58d   : > { %v8053_v21 = vpop.eup %8052  ;;  %v5388_v18 = vadd.f32 %v8051_v40, %v5387_v3  ;;  %v7225_v43 = vmul.f32 -1.442695, %v11478_v19 }
 0x58e   : > { %v8055_v16 = vpop.eup %8054  ;;  %v11481_v50 = vadd.f32 1.0, %v8053_v21 }
 0x58f   : > { %v5392_v44 = vsel %vm5391_vm8, %v8051_v40, %v5388_v18  ;;  %v5400_v4 = vmul.f32 %v8055_v16, %v5031_v29  ;;  %8056 = vpow2.f32 %v7225_v43  ;;  %vm5405_vm13 = vweird.f32 %v8055_v16 }
 0x590   : > { %v5397_v34 = vsel %vm5394_vm7, %v5396_v22, %v5392_v44  ;;  %8058 = vrcp.f32 %v11481_v50  ;;  %v4830_v48 = vpop.f32.mrf.mxu1  ;;  %vm5406_vm12 = vmor %vm5404_vm1, %vm5405_vm13  ;;  %v5423_v30 = vand.u32 2147483647, %v11481_v50  ;;  %v5425_v59 = vand.u32 2147483648, %v11481_v50  ;;  %v4585_v22 = vpop.f32.mrf.mxu3 }
 0x591   : > { %v5542_v24 = vmul.f32 %v5397_v34, %v11457_v51  ;;  %v5401_v58 = vsub.f32 1.0, %v5400_v4  ;;  %v4870_v27 = vadd.f32 %v4830_v48, %v4617_v10  ;;  %vm5419_vm2 = vweird.f32 %v11481_v50 }
 0x592   : > { %v5426_v31 = vor.u32 1.1754944e-38, %v5425_v59  ;;  %vm5424_vm5 = vcmp.eq.f32.partialorder %v5423_v30, 8.507059e+37 }
 0x593   : > { %5575 = vst.msk [vmem:[#allocation3 + $0xb8] sm:$0xff] %vm5551_vm0, %v5542_v24  ;;  %v5402_v42 = vmul.f32 %v8055_v16, %v5401_v58  ;;  %v11488_v11 = vadd.f32 %v11405_v38, %v4870_v27  ;;  %v4366_v27 = vpop.f32.mrf.mxu2 }
 0x595   : > { %v8057_v55 = vpop.eup %8056  ;;  %v5403_v39 = vadd.f32 %v8055_v16, %v5402_v42  ;;  %v7226_v49 = vmul.f32 -1.442695, %v11488_v11 }
 0x596   : > { %v8059_v51 = vpop.eup %8058  ;;  %v11491_v37 = vadd.f32 1.0, %v8057_v55 }
 0x597   : > { %v5407_v14 = vsel %vm5406_vm12, %v8055_v16, %v5403_v39  ;;  %v5415_v15 = vmul.f32 %v8059_v51, %v11481_v50  ;;  %8060 = vpow2.f32 %v7226_v49  ;;  %vm5420_vm3 = vweird.f32 %v8059_v51 }
 0x598   : > { %v5412_v2 = vsel %vm5409_vm9, %v5411_v20, %v5407_v14  ;;  %8062 = vrcp.f32 %v11491_v37  ;;  %v4833_v57 = vpop.f32.mrf.mxu1  ;;  %vm5421_vm10 = vmor %vm5419_vm2, %vm5420_vm3  ;;  %v4365_v16 = vadd.f32 %v4364_v9, %v11098_v46  ;;  %v5440_v10 = vand.u32 2147483648, %v11491_v37  ;;  %v7403_v14 = vld [vmem:[%s11981_s5 + $0x10] sm:$0xff] }
 0x599   : > { %v5543_v32 = vmul.f32 %v5412_v2, %v11464_v5  ;;  %v5416_v25 = vsub.f32 1.0, %v5415_v15  ;;  %v4871_v28 = vadd.f32 %v4833_v57, %v4618_v47  ;;  %v5592_v5 = vld [vmem:[#allocation3 + $0x80] ss:$4 sm:$0xff]  ;;  %v5438_v23 = vand.u32 2147483647, %v11491_v37  ;;  %v4587_v15 = vpop.f32.mrf.mxu3  ;;  %5768 = vmatpush.bf16.msrb.mxu2 %v7403_v14 }
 0x59a   : > { %v5616_v17 = vld [vmem:[#allocation3 + $0xa1] ss:$4 sm:$0xff]  ;;  %v5594_v40 = vld [vmem:[#allocation3 + $0xa0] ss:$4 sm:$0xff]  ;;  %vm5434_vm11 = vweird.f32 %v11491_v37  ;;  %v4620_v46 = vadd.f32 %v4585_v22, %v4365_v16  ;;  %v5441_v24 = vor.u32 1.1754944e-38, %v5440_v10  ;;  %v4367_v49 = vadd.f32 %v4366_v27, %v11101_v26 }
 0x59b   : > { %5576 = vst.msk [vmem:[#allocation3 + $0xc0] sm:$0xff] %vm5551_vm0, %v5543_v32  ;;  %v5417_v8 = vmul.f32 %v8059_v51, %v5416_v25  ;;  %v11501_v61 = vadd.f32 %v11405_v38, %v4871_v28  ;;  %v5623_v29 = vpack.c.bf16 %v5616_v17, %v5614_v13  ;;  %v5601_v54 = vpack.c.bf16 %v5594_v40, %v5592_v5 }
 0x59c   : > { %vm5439_vm4 = vcmp.eq.f32.partialorder %v5438_v23, 8.507059e+37  ;;  %v4621_v32 = vadd.f32 %v4587_v15, %v4367_v49 }
 0x59d   : > { %v8061_v62 = vpop.eup %8060  ;;  %v5418_v6 = vadd.f32 %v8059_v51, %v5417_v8  ;;  %v7227_v1 = vmul.f32 -1.442695, %v11501_v61  ;;  %7237 = vmatmul.msk.bf16.gmra.mxu2 %vm5551_vm0, %v5623_v29  ;;  %7245 = vmatmul.msk.bf16.gmra.mxu3 %vm5551_vm0, %v5601_v54 }
 0x59e   : > { %v8063_v45 = vpop.eup %8062  ;;  %v11506_v60 = vadd.f32 1.0, %v8061_v62 }
 0x59f   : > { %v5422_v0 = vsel %vm5421_vm10, %v8059_v51, %v5418_v6  ;;  %v5430_v12 = vmul.f32 %v8063_v45, %v11491_v37  ;;  %8064 = vpow2.f32 %v7227_v1  ;;  %vm5435_vm14 = vweird.f32 %v8063_v45 }
 0x5a0   : > { %v5427_v3 = vsel %vm5424_vm5, %v5426_v31, %v5422_v0  ;;  %8066 = vrcp.f32 %v11506_v60  ;;  %v4835_v7 = vpop.f32.mrf.mxu1  ;;  %vm5436_vm15 = vmor %vm5434_vm11, %vm5435_vm14  ;;  %v5455_v51 = vand.u32 2147483648, %v11506_v60  ;;  %v5453_v20 = vand.u32 2147483647, %v11506_v60 }
 0x5a1   : > { %v5544_v21 = vmul.f32 %v5427_v3, %v11471_v63  ;;  %v5431_v18 = vsub.f32 1.0, %v5430_v12  ;;  %v4872_v43 = vadd.f32 %v4835_v7, %v4619_v53  ;;  %vm5449_vm8 = vweird.f32 %v11506_v60 }
 0x5a2   : > { %v5456_v25 = vor.u32 1.1754944e-38, %v5455_v51  ;;  %vm5454_vm13 = vcmp.eq.f32.partialorder %v5453_v20, 8.507059e+37 }
 0x5a3   : > { %5577 = vst.msk [vmem:[#allocation3 + $0xc8] sm:$0xff] %vm5551_vm0, %v5544_v21  ;;  %v5432_v50 = vmul.f32 %v8063_v45, %v5431_v18  ;;  %v11517_v44 = vadd.f32 %v11405_v38, %v4872_v43 }
 0x5a5   : > { %v8065_v4 = vpop.eup %8064  ;;  %v5433_v34 = vadd.f32 %v8063_v45, %v5432_v50  ;;  %v7228_v63 = vmul.f32 -1.442695, %v11517_v44 }
 0x5a6   : > { %v8067_v48 = vpop.eup %8066  ;;  %v5035_v58 = vadd.f32 1.0, %v8065_v4 }
 0x5a7   : > { %v5437_v41 = vsel %vm5436_vm15, %v8063_v45, %v5433_v34  ;;  %v5445_v36 = vmul.f32 %v8067_v48, %v11506_v60  ;;  %8068 = vpow2.f32 %v7228_v63  ;;  %vm5450_vm6 = vweird.f32 %v8067_v48 }
 0x5a8   : > { %v5442_v35 = vsel %vm5439_vm4, %v5441_v24, %v5437_v41  ;;  %8070 = vrcp.f32 %v5035_v58  ;;  %v4838_v42 = vpop.f32.mrf.mxu1  ;;  %vm5451_vm7 = vmor %vm5449_vm8, %vm5450_vm6  ;;  %v5470_v29 = vand.u32 2147483648, %v5035_v58  ;;  %v5468_v54 = vand.u32 2147483647, %v5035_v58 }
 0x5a9   : > { %v5545_v33 = vmul.f32 %v5442_v35, %v11478_v19  ;;  %v5446_v55 = vsub.f32 1.0, %v5445_v36  ;;  %v4873_v39 = vadd.f32 %v4838_v42, %v4620_v46  ;;  %v7404_v19 = vld [vmem:[%s11981_s5 + $0x18] sm:$0xff]  ;;  %vm5464_vm12 = vweird.f32 %v5035_v58 }
 0x5aa   : > { %5845 = vmatpush.bf16.msrb.mxu3 %v7404_v19  ;;  %v5471_v53 = vor.u32 1.1754944e-38, %v5470_v29  ;;  %vm5469_vm3 = vcmp.eq.f32.partialorder %v5468_v54, 8.507059e+37  ;;  %v5809_v54 = vld [vmem:[#allocation3 + $0xa3] ss:$4 sm:$0xff] }
 0x5ab   : > { %5578 = vst.msk [vmem:[#allocation3 + $0xd0] sm:$0xff] %vm5551_vm0, %v5545_v33  ;;  %v5447_v47 = vmul.f32 %v8067_v48, %v5446_v55  ;;  %v11528_v37 = vadd.f32 %v11405_v38, %v4873_v39 }
 0x5ad   : > { %v8069_v26 = vpop.eup %8068  ;;  %v5448_v2 = vadd.f32 %v8067_v48, %v5447_v47  ;;  %v7229_v57 = vmul.f32 -1.442695, %v11528_v37 }
 0x5ae   : > { %v8071_v56 = vpop.eup %8070  ;;  %v5036_v30 = vadd.f32 1.0, %v8069_v26 }
 0x5af   : > { %v5452_v28 = vsel %vm5451_vm7, %v8067_v48, %v5448_v2  ;;  %v5460_v13 = vmul.f32 %v8071_v56, %v5035_v58  ;;  %8072 = vpow2.f32 %v7229_v57  ;;  %vm5465_vm1 = vweird.f32 %v8071_v56 }
 0x5b0   : > { %v5457_v52 = vsel %vm5454_vm13, %v5456_v25, %v5452_v28  ;;  %8074 = vrcp.f32 %v5036_v30  ;;  %v4840_v59 = vpop.f32.mrf.mxu1  ;;  %vm5466_vm9 = vmor %vm5464_vm12, %vm5465_vm1  ;;  %v5483_v21 = vand.u32 2147483647, %v5036_v30  ;;  %vm5479_vm10 = vweird.f32 %v5036_v30  ;;  %v5722_v25 = vld [vmem:[#allocation3 + $0x2] ss:$4 sm:$0xff] }
 0x5b1   : > { %v5546_v17 = vmul.f32 %v5457_v52, %v11488_v11  ;;  %v5461_v40 = vsub.f32 1.0, %v5460_v13  ;;  %v4874_v8 = vadd.f32 %v4840_v59, %v4621_v32  ;;  %v5801_v32 = vld [vmem:[#allocation3 + $0x23] ss:$4 sm:$0xff]  ;;  %v5728_v52 = vld [vmem:[#allocation3 + $0x62] ss:$4 sm:$0xff] }
 0x5b2   : > { %vm5484_vm14 = vcmp.eq.f32.partialorder %v5483_v21, 8.507059e+37  ;;  %v5805_v59 = vld [vmem:[#allocation3 + $0x63] ss:$4 sm:$0xff] }
 0x5b3   : > { %5579 = vst.msk [vmem:[#allocation3 + $0xd8] sm:$0xff] %vm5551_vm0, %v5546_v17  ;;  %v5462_v5 = vmul.f32 %v8071_v56, %v5461_v40  ;;  %v11541_v62 = vadd.f32 %v11405_v38, %v4874_v8  ;;  %v5485_v38 = vand.u32 2147483648, %v5036_v30  ;;  %v5726_v17 = vld [vmem:[#allocation3 + $0x42] ss:$4 sm:$0xff]  ;;  %v5803_v40 = vld [vmem:[#allocation3 + $0x43] ss:$4 sm:$0xff] }
 0x5b4   : > { %v5738_v8 = vpack.c.bf16 %v5728_v52, %v5726_v17  ;;  %v5815_v29 = vpack.c.bf16 %v5805_v59, %v5803_v40 }
 0x5b5   : > { %v8073_v9 = vpop.eup %8072  ;;  %v5463_v6 = vadd.f32 %v8071_v56, %v5462_v5  ;;  %v7230_v1 = vmul.f32 -1.442695, %v11541_v62  ;;  %v5486_v10 = vor.u32 1.1754944e-38, %v5485_v38  ;;  %v5732_v5 = vld [vmem:[#allocation3 + $0xa2] ss:$4 sm:$0xff] }
 0x5b6   : > { %v8075_v45 = vpop.eup %8074  ;;  %v5037_v11 = vadd.f32 1.0, %v8073_v9  ;;  %v5807_v9 = vld [vmem:[#allocation3 + $0x83] ss:$4 sm:$0xff] }
 0x5b7   : > { %v5467_v31 = vsel %vm5466_vm9, %v8071_v56, %v5463_v6  ;;  %v5475_v60 = vmul.f32 %v8075_v45, %v5036_v30  ;;  %8076 = vpow2.f32 %v7230_v1  ;;  %vm5480_vm2 = vweird.f32 %v8075_v45  ;;  %v5724_v56 = vld [vmem:[#allocation3 + $0x22] ss:$4 sm:$0xff]  ;;  %v5799_v30 = vld [vmem:[#allocation3 + $0x3] ss:$4 sm:$0xff] }
 0x5b8   : > { %v5472_v0 = vsel %vm5469_vm3, %v5471_v53, %v5467_v31  ;;  %8078 = vrcp.f32 %v5037_v11  ;;  %vm5481_vm5 = vmor %vm5479_vm10, %vm5480_vm2  ;;  %v5500_v63 = vand.u32 2147483648, %v5037_v11  ;;  %v5498_v46 = vand.u32 2147483647, %v5037_v11 }
 0x5b9   : > { %v5547_v12 = vmul.f32 %v5472_v0, %v11501_v61  ;;  %v5476_v3 = vsub.f32 1.0, %v5475_v60  ;;  %vm5494_vm15 = vweird.f32 %v5037_v11  ;;  %v5737_v28 = vpack.c.bf16 %v5724_v56, %v5722_v25 }
 0x5ba   : > { %v5501_v27 = vor.u32 1.1754944e-38, %v5500_v63  ;;  %vm5499_vm6 = vcmp.eq.f32.partialorder %v5498_v46, 8.507059e+37  ;;  %v5618_v19 = vld [vmem:[#allocation3 + $0xc1] ss:$4 sm:$0xff]  ;;  %v5596_v26 = vld [vmem:[#allocation3 + $0xc0] ss:$4 sm:$0xff]  ;;  %v5814_v13 = vpack.c.bf16 %v5801_v32, %v5799_v30  ;;  %v5816_v1 = vpack.c.bf16 %v5809_v54, %v5807_v9 }
 0x5bb   : > { %5580 = vst.msk [vmem:[#allocation3 + $0xe0] sm:$0xff] %vm5551_vm0, %v5547_v12  ;;  %v5477_v7 = vmul.f32 %v8075_v45, %v5476_v3  ;;  %v5811_v31 = vld [vmem:[#allocation3 + $0xc3] ss:$4 sm:$0xff]  ;;  %v5654_v12 = vpop.f32.mrf.mxu2  ;;  %v5701_v3 = vpop.f32.mrf.mxu3 }
 0x5bd   : > { %v8077_v18 = vpop.eup %8076  ;;  %v5478_v43 = vadd.f32 %v8075_v45, %v5477_v7 }
 0x5be   : > { %v8079_v16 = vpop.eup %8078  ;;  %v5038_v22 = vadd.f32 1.0, %v8077_v18 }
 0x5bf   : > { %v5482_v50 = vsel %vm5481_vm5, %v8075_v45, %v5478_v43  ;;  %v5490_v23 = vmul.f32 %v8079_v16, %v5037_v11  ;;  %vm5495_vm11 = vweird.f32 %v8079_v16  ;;  %v5734_v11 = vld [vmem:[#allocation3 + $0xc2] ss:$4 sm:$0xff] }
 0x5c0   : > { %v5487_v4 = vsel %vm5484_vm14, %v5486_v10, %v5482_v50  ;;  %8080 = vrcp.f32 %v5038_v22  ;;  %vm5496_vm4 = vmor %vm5494_vm15, %vm5495_vm11  ;;  %v5513_v39 = vand.u32 2147483647, %v5038_v22  ;;  %vm5509_vm7 = vweird.f32 %v5038_v22 }
 0x5c1   : > { %v5548_v61 = vmul.f32 %v5487_v4, %v11517_v44  ;;  %v5491_v34 = vsub.f32 1.0, %v5490_v23  ;;  %v5515_v44 = vand.u32 2147483648, %v5038_v22 }
 0x5c2   : > { %vm5514_vm1 = vcmp.eq.f32.partialorder %v5513_v39, 8.507059e+37 }
 0x5c3   : > { %5581 = vst.msk [vmem:[#allocation3 + $0xe8] sm:$0xff] %vm5551_vm0, %v5548_v61  ;;  %v5492_v48 = vmul.f32 %v8079_v16, %v5491_v34  ;;  %v5516_v51 = vor.u32 1.1754944e-38, %v5515_v44  ;;  %v5656_v38 = vpop.f32.mrf.mxu2  ;;  %v5703_v7 = vpop.f32.mrf.mxu3 }
 0x5c5   : > { %v5493_v24 = vadd.f32 %v8079_v16, %v5492_v48  ;;  %v5702_v48 = vadd.f32 %v5701_v3, %v5654_v12 }
 0x5c6   : > { %v8081_v58 = vpop.eup %8080 }
 0x5c7   : > { %v5497_v41 = vsel %vm5496_vm4, %v8079_v16, %v5493_v24  ;;  %v5505_v36 = vmul.f32 %v8081_v58, %v5038_v22  ;;  %vm5510_vm8 = vweird.f32 %v8081_v58 }
 0x5c8   : > { %v5502_v35 = vsel %vm5499_vm6, %v5501_v27, %v5497_v41  ;;  %vm5511_vm13 = vmor %vm5509_vm7, %vm5510_vm8  ;;  %v11577_v27 = vld [vmem:[%s11982_s6] ss:$0 sm:$0xff] }
 0x5c9   : > { %v5549_v42 = vmul.f32 %v5502_v35, %v11528_v37  ;;  %v5506_v33 = vsub.f32 1.0, %v5505_v36  ;;  %v5704_v35 = vadd.f32 %v5703_v7, %v5656_v38 }
 0x5cb   : > { %5582 = vst.msk [vmem:[#allocation3 + $0xf0] sm:$0xff] %vm5551_vm0, %v5549_v42  ;;  %v5507_v55 = vmul.f32 %v8081_v58, %v5506_v33 }
 0x5cd   : > { %v5508_v49 = vadd.f32 %v8081_v58, %v5507_v55 }
 0x5cf   : > { %v5512_v47 = vsel %vm5511_vm13, %v8081_v58, %v5508_v49 }
 0x5d0   : > { %v5517_v20 = vsel %vm5514_vm1, %v5516_v51, %v5512_v47 }
 0x5d1   : > { %v5550_v14 = vmul.f32 %v5517_v20, %v11541_v62  ;;  %v5730_v62 = vld [vmem:[#allocation3 + $0x82] ss:$4 sm:$0xff] }
 0x5d2   : > { %v5739_v6 = vpack.c.bf16 %v5732_v5, %v5730_v62 }
 0x5d3   : > { %5583 = vst.msk [vmem:[#allocation3 + $0xf8] sm:$0xff] %vm5551_vm0, %v5550_v14 }
 0x5da   : > { %v5620_v37 = vld [vmem:[#allocation3 + $0xe1] ss:$4 sm:$0xff]  ;;  %v5598_v15 = vld [vmem:[#allocation3 + $0xe0] ss:$4 sm:$0xff]  ;;  %v5736_v45 = vld [vmem:[#allocation3 + $0xe2] ss:$4 sm:$0xff] }
 0x5db   : > { %v5624_v2 = vpack.c.bf16 %v5620_v37, %v5618_v19  ;;  %v5602_v57 = vpack.c.bf16 %v5598_v15, %v5596_v26  ;;  %v5813_v53 = vld [vmem:[#allocation3 + $0xe3] ss:$4 sm:$0xff]  ;;  %v5740_v60 = vpack.c.bf16 %v5736_v45, %v5734_v11 }
 0x5dc   : > { %v5817_v0 = vpack.c.bf16 %v5813_v53, %v5811_v31 }
 0x5dd   : > { %7238 = vmatmul.msk.bf16.gmra.mxu2 %vm5551_vm0, %v5624_v2  ;;  %7246 = vmatmul.msk.bf16.gmra.mxu3 %vm5551_vm0, %v5602_v57 }
 0x5e0   : > { %v5659_v21 = vpop.f32.mrf.mxu2  ;;  %v5706_v18 = vpop.f32.mrf.mxu3 }
 0x5e1   : > { %v5707_v47 = vadd.f32 %v5706_v18, %v5659_v21 }
 0x5e8   : > { %v5661_v43 = vpop.f32.mrf.mxu2  ;;  %v5708_v16 = vpop.f32.mrf.mxu3 }
 0x5e9   : > { %v5709_v56 = vadd.f32 %v5708_v16, %v5661_v43 }
 0x5ed   : > { %7251 = vmatmul.msk.bf16.vlgmr.msrb.gmra.mxu2 %vm5551_vm0, %v5737_v28  ;;  %7259 = vmatmul.msk.bf16.vlgmr.msrb.gmra.mxu3 %vm5551_vm0, %v5814_v13 }
 0x5fd   : > { %7252 = vmatmul.msk.bf16.gmra.mxu2 %vm5551_vm0, %v5738_v8  ;;  %7260 = vmatmul.msk.bf16.gmra.mxu3 %vm5551_vm0, %v5815_v29 }
 0x60d   : > { %7253 = vmatmul.msk.bf16.gmra.mxu2 %vm5551_vm0, %v5739_v6  ;;  %7261 = vmatmul.msk.bf16.gmra.mxu3 %vm5551_vm0, %v5816_v1 }
 0x61d   : > { %7254 = vmatmul.msk.bf16.gmra.mxu2 %vm5551_vm0, %v5740_v60  ;;  %7262 = vmatmul.msk.bf16.gmra.mxu3 %vm5551_vm0, %v5817_v0 }
 0x620   : > { %v5664_v10 = vpop.f32.mrf.mxu2  ;;  %v5711_v22 = vpop.f32.mrf.mxu3 }
 0x621   : > { %v5712_v45 = vadd.f32 %v5711_v22, %v5664_v10 }
 0x628   : > { %v11562_v50 = vpop.f32.mrf.mxu2  ;;  %v11564_v23 = vpop.f32.mrf.mxu3 }
 0x660   : > { %v11566_v4 = vpop.f32.mrf.mxu2  ;;  %v11568_v61 = vpop.f32.mrf.mxu3 }
 0x668   : > { %v11570_v34 = vpop.f32.mrf.mxu2  ;;  %v11572_v63 = vpop.f32.mrf.mxu3 }
 0x670   : > { %v5770_v46 = vpop.f32.mrf.mxu2  ;;  %v5847_v24 = vpop.f32.mrf.mxu3 }
 0x671   : > { %v5790_v58 = vadd.f32 %v5770_v46, %v5702_v48 }
 0x673   : > { %v5867_v41 = vadd.f32 %v5847_v24, %v5790_v58  ;;  %v7406_v24 = vld [vmem:[%s11983_s7 + $0x8] sm:$0xff] }
 0x674   : > { %6084 = vmatpush.bf16.msra.mxu2 %v7406_v24 }
 0x675   : > { %v5879_v36 = vadd.f32 %v11577_v27, %v5867_v41 }
 0x677   : > { %v7263_v42 = vmul.f32 -1.442695, %v5879_v36 }
 0x678   : > { %v5772_v33 = vpop.f32.mrf.mxu2  ;;  %v5849_v44 = vpop.f32.mrf.mxu3 }
 0x679   : > { %8082 = vpow2.f32 %v7263_v42  ;;  %v5791_v55 = vadd.f32 %v5772_v33, %v5704_v35 }
 0x67b   : > { %v5868_v39 = vadd.f32 %v5849_v44, %v5791_v55 }
 0x67d   : > { %v11581_v49 = vadd.f32 %v11577_v27, %v5868_v39  ;;  %v5714_v39 = vadd.f32 %v11564_v23, %v11562_v50  ;;  %v5717_v50 = vadd.f32 %v11568_v61, %v11566_v4 }
 0x67f   : > { %v8083_v51 = vpop.eup %8082  ;;  %v7264_v20 = vmul.f32 -1.442695, %v11581_v49 }
 0x680   : > { %v5911_v14 = vadd.f32 1.0, %v8083_v51  ;;  %v5775_v19 = vpop.f32.mrf.mxu2  ;;  %v5852_v37 = vpop.f32.mrf.mxu3 }
 0x681   : > { %8084 = vpow2.f32 %v7264_v20  ;;  %v5792_v26 = vadd.f32 %v5775_v19, %v5707_v47 }
 0x682   : > { %8086 = vrcp.f32 %v5911_v14  ;;  %v5930_v8 = vand.u32 2147483648, %v5911_v14  ;;  %v5928_v5 = vand.u32 2147483647, %v5911_v14  ;;  %vm5924_vm9 = vweird.f32 %v5911_v14 }
 0x683   : > { %v5869_v15 = vadd.f32 %v5852_v37, %v5792_v26 }
 0x684   : > { %v5931_v53 = vor.u32 1.1754944e-38, %v5930_v8  ;;  %vm5929_vm2 = vcmp.eq.f32.partialorder %v5928_v5, 8.507059e+37 }
 0x685   : > { %v11585_v2 = vadd.f32 %v11577_v27, %v5869_v15 }
 0x687   : > { %v8085_v57 = vpop.eup %8084  ;;  %v7265_v32 = vmul.f32 -1.442695, %v11585_v2 }
 0x688   : > { %v8087_v25 = vpop.eup %8086  ;;  %v5912_v30 = vadd.f32 1.0, %v8085_v57  ;;  %v5777_v28 = vpop.f32.mrf.mxu2 }
 0x689   : > { %v5854_v13 = vpop.f32.mrf.mxu3  ;;  %v5920_v52 = vmul.f32 %v8087_v25, %v5911_v14  ;;  %8088 = vpow2.f32 %v7265_v32  ;;  %v5793_v59 = vadd.f32 %v5777_v28, %v5709_v56  ;;  %vm5925_vm12 = vweird.f32 %v8087_v25 }
 0x68a   : > { %8090 = vrcp.f32 %v5912_v30  ;;  %vm5926_vm3 = vmor %vm5924_vm9, %vm5925_vm12  ;;  %v5945_v18 = vand.u32 2147483648, %v5912_v30  ;;  %v5943_v16 = vand.u32 2147483647, %v5912_v30  ;;  %vm5939_vm5 = vweird.f32 %v5912_v30 }
 0x68b   : > { %v5921_v17 = vsub.f32 1.0, %v5920_v52  ;;  %v5870_v40 = vadd.f32 %v5854_v13, %v5793_v59  ;;  %v7405_v59 = vld [vmem:[%s11983_s7] sm:$0xff] }
 0x68c   : > { %v5946_v41 = vor.u32 1.1754944e-38, %v5945_v18  ;;  %vm5944_vm11 = vcmp.eq.f32.partialorder %v5943_v16, 8.507059e+37  ;;  %6107 = vmatpush.bf16.msra.mxu3 %v7405_v59 }
 0x68d   : > { %v5922_v29 = vmul.f32 %v8087_v25, %v5921_v17  ;;  %v11589_v54 = vadd.f32 %v11577_v27, %v5870_v40 }
 0x68f   : > { %v8089_v62 = vpop.eup %8088  ;;  %v5923_v9 = vadd.f32 %v8087_v25, %v5922_v29  ;;  %v7266_v6 = vmul.f32 -1.442695, %v11589_v54 }
 0x690   : > { %v8091_v1 = vpop.eup %8090  ;;  %v5913_v11 = vadd.f32 1.0, %v8089_v62  ;;  %v5780_v31 = vpop.f32.mrf.mxu2 }
 0x691   : > { %v5857_v60 = vpop.f32.mrf.mxu3  ;;  %v5927_v0 = vsel %vm5926_vm3, %v8087_v25, %v5923_v9  ;;  %v5935_v12 = vmul.f32 %v8091_v1, %v5912_v30  ;;  %8092 = vpow2.f32 %v7266_v6  ;;  %v5794_v21 = vadd.f32 %v5780_v31, %v5712_v45 }
 0x692   : > { %v5932_v3 = vsel %vm5929_vm2, %v5931_v53, %v5927_v0  ;;  %8094 = vrcp.f32 %v5913_v11  ;;  %vm5940_vm10 = vweird.f32 %v8091_v1  ;;  %v5960_v14 = vand.u32 2147483648, %v5913_v11 }
 0x693   : > { %v11592_v38 = vmul.f32 %v5932_v3, %v5879_v36  ;;  %v5936_v7 = vsub.f32 1.0, %v5935_v12  ;;  %v5871_v10 = vadd.f32 %v5857_v60, %v5794_v21  ;;  %vm5941_vm14 = vmor %vm5939_vm5, %vm5940_vm10  ;;  %v5958_v15 = vand.u32 2147483647, %v5913_v11 }
 0x694   : > { %vm5954_vm4 = vweird.f32 %v5913_v11  ;;  %v5961_v56 = vor.u32 1.1754944e-38, %v5960_v14  ;;  %v5719_v45 = vadd.f32 %v11572_v63, %v11570_v34  ;;  %v7407_v14 = vld [vmem:[%s11983_s7 + $0x10] sm:$0xff] }
 0x695   : > { %6047 = vst.msk [vmem:[#allocation4] sm:$0xff] %vm5551_vm0, %v11592_v38  ;;  %v5937_v43 = vmul.f32 %v8091_v1, %v5936_v7  ;;  %v11597_v46 = vadd.f32 %v11577_v27, %v5871_v10  ;;  %vm5959_vm8 = vcmp.eq.f32.partialorder %v5958_v15, 8.507059e+37  ;;  %6137 = vmatpush.bf16.msrb.mxu2 %v7407_v14 }
 0x697   : > { %v8093_v22 = vpop.eup %8092  ;;  %v5938_v48 = vadd.f32 %v8091_v1, %v5937_v43  ;;  %v7267_v55 = vmul.f32 -1.442695, %v11597_v46 }
 0x698   : > { %v8095_v58 = vpop.eup %8094  ;;  %v5914_v36 = vadd.f32 1.0, %v8093_v22  ;;  %v5782_v35 = vpop.f32.mrf.mxu2 }
 0x699   : > { %v5859_v42 = vpop.f32.mrf.mxu3  ;;  %v5942_v33 = vsel %vm5941_vm14, %v8091_v1, %v5938_v48  ;;  %v5950_v44 = vmul.f32 %v8095_v58, %v5913_v11  ;;  %v5795_v19 = vadd.f32 %v5782_v35, %v5714_v39  ;;  %vm5955_vm15 = vweird.f32 %v8095_v58 }
 0x69a   : > { %v5947_v51 = vsel %vm5944_vm11, %v5946_v41, %v5942_v33  ;;  %8096 = vrcp.f32 %v5914_v36  ;;  %vm5956_vm6 = vmor %vm5954_vm4, %vm5955_vm15  ;;  %v5973_v62 = vand.u32 2147483647, %v5914_v36  ;;  %v5975_v9 = vand.u32 2147483648, %v5914_v36 }
 0x69b   : > { %v11606_v47 = vmul.f32 %v5947_v51, %v11581_v49  ;;  %v5951_v20 = vsub.f32 1.0, %v5950_v44  ;;  %8098 = vpow2.f32 %v7267_v55  ;;  %v5872_v57 = vadd.f32 %v5859_v42, %v5795_v19  ;;  %v7408_v19 = vld [vmem:[%s11983_s7 + $0x18] sm:$0xff] }
 0x69c   : > { %vm5969_vm13 = vweird.f32 %v5914_v36  ;;  %v5976_v11 = vor.u32 1.1754944e-38, %v5975_v9  ;;  %vm5974_vm12 = vcmp.eq.f32.partialorder %v5973_v62, 8.507059e+37  ;;  %6169 = vmatpush.bf16.msrb.mxu3 %v7408_v19 }
 0x69d   : > { %6048 = vst.msk [vmem:[#allocation4 + $0x8] sm:$0xff] %vm5551_vm0, %v11606_v47  ;;  %v6396_v37 = vpack.c.bf16 %v11606_v47, %v11592_v38  ;;  %v5952_v26 = vmul.f32 %v8095_v58, %v5951_v20  ;;  %v11615_v32 = vadd.f32 %v11577_v27, %v5872_v57 }
 0x69f   : > { %v5953_v23 = vadd.f32 %v8095_v58, %v5952_v26  ;;  %v7268_v40 = vmul.f32 -1.442695, %v11615_v32 }
 0x6a0   : > { %v8097_v49 = vpop.eup %8096  ;;  %v5785_v25 = vpop.f32.mrf.mxu2 }
 0x6a1   : > { %v5862_v30 = vpop.f32.mrf.mxu3  ;;  %v8099_v28 = vpop.eup %8098  ;;  %v5957_v13 = vsel %vm5956_vm6, %v8095_v58, %v5953_v23  ;;  %v5965_v52 = vmul.f32 %v8097_v49, %v5914_v36  ;;  %v5796_v17 = vadd.f32 %v5785_v25, %v5717_v50  ;;  %vm5970_vm7 = vweird.f32 %v8097_v49 }
 0x6a2   : > { %v5962_v4 = vsel %vm5959_vm8, %v5961_v56, %v5957_v13  ;;  %v5915_v61 = vadd.f32 1.0, %v8099_v28  ;;  %vm5971_vm1 = vmor %vm5969_vm13, %vm5970_vm7 }
 0x6a3   : > { %v11622_v8 = vmul.f32 %v5962_v4, %v11585_v2  ;;  %v5966_v29 = vsub.f32 1.0, %v5965_v52  ;;  %v5873_v5 = vadd.f32 %v5862_v30, %v5796_v17 }
 0x6a4   : > { %8100 = vrcp.f32 %v5915_v61  ;;  %v5990_v48 = vand.u32 2147483648, %v5915_v61  ;;  %vm5984_vm3 = vweird.f32 %v5915_v61 }
 0x6a5   : > { %6049 = vst.msk [vmem:[#allocation4 + $0x10] sm:$0xff] %vm5551_vm0, %v11622_v8  ;;  %v5967_v6 = vmul.f32 %v8097_v49, %v5966_v29  ;;  %8102 = vpow2.f32 %v7268_v40  ;;  %v11627_v1 = vadd.f32 %v11577_v27, %v5873_v5 }
 0x6a6   : > { %v5991_v42 = vor.u32 1.1754944e-38, %v5990_v48 }
 0x6a7   : > { %v5968_v2 = vadd.f32 %v8097_v49, %v5967_v6  ;;  %v7269_v53 = vmul.f32 -1.442695, %v11627_v1 }
 0x6a8   : > { %v5787_v31 = vpop.f32.mrf.mxu2 }
 0x6a9   : > { %v5972_v60 = vsel %vm5971_vm1, %v8097_v49, %v5968_v2  ;;  %8104 = vpow2.f32 %v7269_v53  ;;  %v5797_v0 = vadd.f32 %v5787_v31, %v5719_v45  ;;  %v5864_v7 = vpop.f32.mrf.mxu3 }
 0x6aa   : > { %v8101_v12 = vpop.eup %8100  ;;  %v5977_v3 = vsel %vm5974_vm12, %v5976_v11, %v5972_v60 }
 0x6ab   : > { %v8103_v21 = vpop.eup %8102  ;;  %v11633_v18 = vmul.f32 %v5977_v3, %v11589_v54  ;;  %v5980_v43 = vmul.f32 %v8101_v12, %v5915_v61  ;;  %v5874_v34 = vadd.f32 %v5864_v7, %v5797_v0  ;;  %vm5985_vm9 = vweird.f32 %v8101_v12 }
 0x6ac   : > { %v5916_v63 = vadd.f32 1.0, %v8103_v21  ;;  %v5988_v54 = vand.u32 2147483647, %v5915_v61  ;;  %vm5986_vm2 = vmor %vm5984_vm3, %vm5985_vm9 }
 0x6ad   : > { %6050 = vst.msk [vmem:[#allocation4 + $0x18] sm:$0xff] %vm5551_vm0, %v11633_v18  ;;  %v6397_v16 = vpack.c.bf16 %v11633_v18, %v11622_v8  ;;  %v5981_v10 = vsub.f32 1.0, %v5980_v43  ;;  %v11640_v22 = vadd.f32 %v11577_v27, %v5874_v34 }
 0x6ae   : > { %8106 = vrcp.f32 %v5916_v63  ;;  %vm5989_vm10 = vcmp.eq.f32.partialorder %v5988_v54, 8.507059e+37  ;;  %v6003_v15 = vand.u32 2147483647, %v5916_v63  ;;  %v6005_v57 = vand.u32 2147483648, %v5916_v63 }
 0x6af   : > { %v8105_v24 = vpop.eup %8104  ;;  %v5982_v58 = vmul.f32 %v8101_v12, %v5981_v10  ;;  %v7270_v41 = vmul.f32 -1.442695, %v11640_v22  ;;  %vm5999_vm14 = vweird.f32 %v5916_v63 }
 0x6b0   : > { %v5917_v36 = vadd.f32 1.0, %v8105_v24  ;;  %vm6004_vm15 = vcmp.eq.f32.partialorder %v6003_v15, 8.507059e+37  ;;  %v6006_v25 = vor.u32 1.1754944e-38, %v6005_v57 }
 0x6b1   : > { %v5983_v35 = vadd.f32 %v8101_v12, %v5982_v58  ;;  %8108 = vpow2.f32 %v7270_v41 }
 0x6b2   : > { %8110 = vrcp.f32 %v5917_v36  ;;  %v6020_v30 = vand.u32 2147483648, %v5917_v36  ;;  %v6018_v52 = vand.u32 2147483647, %v5917_v36  ;;  %vm6014_vm6 = vweird.f32 %v5917_v36 }
 0x6b3   : > { %v5987_v33 = vsel %vm5986_vm2, %v8101_v12, %v5983_v35 }
 0x6b4   : > { %v8107_v44 = vpop.eup %8106  ;;  %v5992_v27 = vsel %vm5989_vm10, %v5991_v42, %v5987_v33  ;;  %v6021_v40 = vor.u32 1.1754944e-38, %v6020_v30  ;;  %vm6019_vm7 = vcmp.eq.f32.partialorder %v6018_v52, 8.507059e+37  ;;  %v6062_v3 = vld [vmem:[#allocation4 + $0x1] ss:$4 sm:$0xff]  ;;  %v6055_v21 = vld [vmem:[#allocation4] ss:$4 sm:$0xff] }
 0x6b5   : > { %v11644_v55 = vmul.f32 %v5992_v27, %v11597_v46  ;;  %v5995_v39 = vmul.f32 %v8107_v44, %v5916_v63  ;;  %vm6000_vm5 = vweird.f32 %v8107_v44  ;;  %v6147_v24 = vld [vmem:[#allocation4 + $0x3] ss:$4 sm:$0xff] }
 0x6b6   : > { %vm6001_vm11 = vmor %vm5999_vm14, %vm6000_vm5  ;;  %vm6224_vm14 = vcmask 261120  }
 0x6b7   : > { %v8109_v51 = vpop.eup %8108  ;;  %6051 = vst.msk [vmem:[#allocation4 + $0x20] sm:$0xff] %vm5551_vm0, %v11644_v55  ;;  %v5996_v20 = vsub.f32 1.0, %v5995_v39 }
 0x6b8   : > { %v8111_v26 = vpop.eup %8110  ;;  %v5918_v50 = vadd.f32 1.0, %v8109_v51  ;;  %v7437_v51 = vld [vmem:[%s11984_s8] ss:$0 sm:$0xff] }
 0x6b9   : > { %v5997_v46 = vmul.f32 %v8107_v44, %v5996_v20  ;;  %v6010_v23 = vmul.f32 %v8111_v26, %v5917_v36  ;;  %vm6015_vm4 = vweird.f32 %v8111_v26 }
 0x6ba   : > { %8112 = vrcp.f32 %v5918_v50  ;;  %vm6016_vm8 = vmor %vm6014_vm6, %vm6015_vm4  ;;  %v6035_v45 = vand.u32 2147483648, %v5918_v50  ;;  %v6033_v53 = vand.u32 2147483647, %v5918_v50  ;;  %vm6029_vm1 = vweird.f32 %v5918_v50 }
 0x6bb   : > { %v5998_v49 = vadd.f32 %v8107_v44, %v5997_v46  ;;  %v6011_v56 = vsub.f32 1.0, %v6010_v23 }
 0x6bc   : > { %v6036_v31 = vor.u32 1.1754944e-38, %v6035_v45  ;;  %vm6034_vm9 = vcmp.eq.f32.partialorder %v6033_v53, 8.507059e+37 }
 0x6bd   : > { %v6002_v28 = vsel %vm6001_vm11, %v8107_v44, %v5998_v49  ;;  %v6012_v13 = vmul.f32 %v8111_v26, %v6011_v56  ;;  %v7412_v49 = vld [vmem:[%s11985_s9 + $0x18] sm:$0xff]  ;;  %v7410_v56 = vld [vmem:[%s11985_s9 + $0x8] sm:$0xff] }
 0x6be   : > { %v6007_v59 = vsel %vm6004_vm15, %v6006_v25, %v6002_v28  ;;  %v7411_v28 = vld [vmem:[%s11985_s9 + $0x10] sm:$0xff] }
 0x6bf   : > { %v11655_v17 = vmul.f32 %v6007_v59, %v11615_v32  ;;  %v6013_v4 = vadd.f32 %v8111_v26, %v6012_v13  ;;  %v7409_v13 = vld [vmem:[%s11985_s9] sm:$0xff] }
 0x6c0   : > { %v8113_v61 = vpop.eup %8112 }
 0x6c1   : > { %6052 = vst.msk [vmem:[#allocation4 + $0x28] sm:$0xff] %vm5551_vm0, %v11655_v17  ;;  %v6398_v29 = vpack.c.bf16 %v11655_v17, %v11644_v55  ;;  %v6017_v5 = vsel %vm6016_vm8, %v8111_v26, %v6013_v4  ;;  %v6025_v62 = vmul.f32 %v8113_v61, %v5918_v50  ;;  %vm6030_vm13 = vweird.f32 %v8113_v61  ;;  %v7414_v4 = vld [vmem:[%s11985_s9 + $0x28] sm:$0xff]  ;;  %v7438_v55 = vld [vmem:[%s11986_s10] ss:$0 sm:$0xff] }
 0x6c2   : > { %v6022_v9 = vsel %vm6019_vm7, %v6021_v40, %v6017_v5  ;;  %vm6031_vm12 = vmor %vm6029_vm1, %vm6030_vm13 }
 0x6c3   : > { %v11662_v6 = vmul.f32 %v6022_v9, %v11627_v1  ;;  %v6026_v32 = vsub.f32 1.0, %v6025_v62  ;;  %v7413_v9 = vld [vmem:[%s11985_s9 + $0x20] sm:$0xff] }
 0x6c5   : > { %6053 = vst.msk [vmem:[#allocation4 + $0x30] sm:$0xff] %vm5551_vm0, %v11662_v6  ;;  %v6027_v2 = vmul.f32 %v8113_v61, %v6026_v32  ;;  %v7415_v32 = vld [vmem:[%s11985_s9 + $0x30] sm:$0xff] }
 0x6c7   : > { %v6028_v11 = vadd.f32 %v8113_v61, %v6027_v2 }
 0x6c9   : > { %v6032_v60 = vsel %vm6031_vm12, %v8113_v61, %v6028_v11  ;;  %v7416_v61 = vld [vmem:[%s11985_s9 + $0x38] sm:$0xff] }
 0x6ca   : > { %v6037_v0 = vsel %vm6034_vm9, %v6036_v31, %v6032_v60 }
 0x6cb   : > { %v11667_v12 = vmul.f32 %v6037_v0, %v11640_v22  ;;  %v6115_v22 = vld [vmem:[#allocation4 + $0x2] ss:$4 sm:$0xff] }
 0x6cd   : > { %6054 = vst.msk [vmem:[#allocation4 + $0x38] sm:$0xff] %vm5551_vm0, %v11667_v12  ;;  %v6399_v1 = vpack.c.bf16 %v11667_v12, %v11662_v6 }
 0x6d4   : > { %v6064_v7 = vld [vmem:[#allocation4 + $0x21] ss:$4 sm:$0xff]  ;;  %v6057_v43 = vld [vmem:[#allocation4 + $0x20] ss:$4 sm:$0xff]  ;;  %v6117_v10 = vld [vmem:[#allocation4 + $0x22] ss:$4 sm:$0xff] }
 0x6d5   : > { %v6065_v34 = vpack.c.bf16 %v6064_v7, %v6062_v3  ;;  %v6058_v63 = vpack.c.bf16 %v6057_v43, %v6055_v21  ;;  %v6149_v48 = vld [vmem:[#allocation4 + $0x23] ss:$4 sm:$0xff]  ;;  %v6118_v58 = vpack.c.bf16 %v6117_v10, %v6115_v22 }
 0x6d6   : > { %v6150_v54 = vpack.c.bf16 %v6149_v48, %v6147_v24 }
 0x6d7   : > { %7275 = vmatmul.msk.bf16.vlgmr.msra.gmra.mxu2 %vm5551_vm0, %v6065_v34  ;;  %7280 = vmatmul.msk.bf16.vlgmr.msra.gmra.mxu3 %vm5551_vm0, %v6058_v63 }
 0x6d8   : > { %6261 = vmatpush.bf16.msra.mxu2 %v7412_v49  ;;  %6289 = vmatpush.bf16.msra.mxu3 %v7410_v56 }
 0x6dc   : > { %6262 = vmatpush.bf16.msra.mxu2 %v7411_v28  ;;  %6290 = vmatpush.bf16.msra.mxu3 %v7409_v13 }
 0x6e7   : > { %7285 = vmatmul.msk.bf16.vlgmr.msrb.gmra.mxu2 %vm5551_vm0, %v6118_v58  ;;  %7290 = vmatmul.msk.bf16.vlgmr.msrb.gmra.mxu3 %vm5551_vm0, %v6150_v54 }
 0x6e8   : > { %6324 = vmatpush.bf16.msrb.mxu2 %v7414_v4  ;;  %6360 = vmatpush.bf16.msrb.mxu3 %v7416_v61 }
 0x6ec   : > { %6325 = vmatpush.bf16.msrb.mxu2 %v7413_v9  ;;  %6361 = vmatpush.bf16.msrb.mxu3 %v7415_v32  ;;  %v7420_v32 = vld [vmem:[%s11987_s11 + $0x20] sm:$0xff] }
 0x75a   : > { %v6086_v41 = vpop.f32.mrf.mxu2  ;;  %v6109_v36 = vpop.f32.mrf.mxu3 }
 0x75b   : > { %v6110_v33 = vadd.f32 %v6109_v36, %v6086_v41  ;;  %v7419_v36 = vld [vmem:[%s11987_s11 + $0x18] sm:$0xff] }
 0x762   : > { %v6088_v35 = vpop.f32.mrf.mxu2  ;;  %v6111_v42 = vpop.f32.mrf.mxu3 }
 0x763   : > { %v6112_v19 = vadd.f32 %v6111_v42, %v6088_v35  ;;  %v7417_v35 = vld [vmem:[%s11987_s11] sm:$0xff] }
 0x76a   : > { %v6139_v44 = vpop.f32.mrf.mxu2  ;;  %v6171_v27 = vpop.f32.mrf.mxu3 }
 0x76b   : > { %v6144_v39 = vadd.f32 %v6139_v44, %v6110_v33 }
 0x76d   : > { %v6176_v20 = vadd.f32 %v6171_v27, %v6144_v39  ;;  %v7418_v39 = vld [vmem:[%s11987_s11 + $0x10] sm:$0xff] }
 0x76f   : > { %v6182_v14 = vadd.f32 %v7437_v51, %v6176_v20 }
 0x771   : > { %v7291_v26 = vmul.f32 -1.442695, %v6182_v14 }
 0x772   : > { %v6141_v15 = vpop.f32.mrf.mxu2  ;;  %v6173_v50 = vpop.f32.mrf.mxu3 }
 0x773   : > { %8114 = vpow2.f32 %v7291_v26  ;;  %v6145_v57 = vadd.f32 %v6141_v15, %v6112_v19 }
 0x775   : > { %v6177_v46 = vadd.f32 %v6173_v50, %v6145_v57 }
 0x777   : > { %v6183_v23 = vadd.f32 %v7437_v51, %v6177_v46  ;;  %v7440_v46 = vld [vmem:[%s11988_s12 + $0x1] ss:$0 sm:$0xff] }
 0x779   : > { %v8115_v25 = vpop.eup %8114  ;;  %v7292_v30 = vmul.f32 -1.442695, %v6183_v23 }
 0x77a   : > { %v6190_v52 = vadd.f32 1.0, %v8115_v25 }
 0x77b   : > { %8116 = vpow2.f32 %v7292_v30 }
 0x77c   : > { %8118 = vrcp.f32 %v6190_v52  ;;  %v6203_v2 = vand.u32 2147483648, %v6190_v52  ;;  %v6201_v11 = vand.u32 2147483647, %v6190_v52  ;;  %vm6197_vm2 = vweird.f32 %v6190_v52 }
 0x77e   : > { %v6204_v0 = vor.u32 1.1754944e-38, %v6203_v2  ;;  %vm6202_vm5 = vcmp.eq.f32.partialorder %v6201_v11, 8.507059e+37 }
 0x781   : > { %v8117_v59 = vpop.eup %8116 }
 0x782   : > { %v8119_v40 = vpop.eup %8118  ;;  %v6191_v5 = vadd.f32 1.0, %v8117_v59  ;;  %v7421_v59 = vld [vmem:[%s11987_s11 + $0x28] sm:$0xff] }
 0x783   : > { %v6193_v62 = vmul.f32 %v8119_v40, %v6190_v52  ;;  %vm6198_vm3 = vweird.f32 %v8119_v40 }
 0x784   : > { %8120 = vrcp.f32 %v6191_v5  ;;  %vm6199_vm10 = vmor %vm6197_vm2, %vm6198_vm3  ;;  %v6218_v63 = vand.u32 2147483648, %v6191_v5  ;;  %v6216_v48 = vand.u32 2147483647, %v6191_v5  ;;  %vm6212_vm15 = vweird.f32 %v6191_v5 }
 0x785   : > { %v6194_v45 = vsub.f32 1.0, %v6193_v62 }
 0x786   : > { %v6219_v24 = vor.u32 1.1754944e-38, %v6218_v63  ;;  %vm6217_vm6 = vcmp.eq.f32.partialorder %v6216_v48, 8.507059e+37 }
 0x787   : > { %v6195_v53 = vmul.f32 %v8119_v40, %v6194_v45 }
 0x789   : > { %v6196_v31 = vadd.f32 %v8119_v40, %v6195_v53 }
 0x78a   : > { %v8121_v60 = vpop.eup %8120 }
 0x78b   : > { %v6200_v3 = vsel %vm6199_vm10, %v8119_v40, %v6196_v31  ;;  %v6208_v7 = vmul.f32 %v8121_v60, %v6191_v5  ;;  %vm6213_vm11 = vweird.f32 %v8121_v60 }
 0x78c   : > { %v6205_v21 = vsel %vm6202_vm5, %v6204_v0, %v6200_v3  ;;  %vm6214_vm4 = vmor %vm6212_vm15, %vm6213_vm11 }
 0x78d   : > { %v6222_v43 = vmul.f32 %v6205_v21, %v6182_v14  ;;  %v6209_v34 = vsub.f32 1.0, %v6208_v7 }
 0x78f   : > { %6225 = vst.msk [vmem:[#allocation5] sm:$0xff] %vm6224_vm14, %v6222_v43  ;;  %v6210_v10 = vmul.f32 %v8121_v60, %v6209_v34 }
 0x791   : > { %v6211_v22 = vadd.f32 %v8121_v60, %v6210_v10 }
 0x793   : > { %v6215_v58 = vsel %vm6214_vm4, %v8121_v60, %v6211_v22 }
 0x794   : > { %v6220_v54 = vsel %vm6217_vm6, %v6219_v24, %v6215_v58 }
 0x795   : > { %v6223_v41 = vmul.f32 %v6220_v54, %v6183_v23 }
 0x797   : > { %6226 = vst.msk [vmem:[#allocation5 + $0x8] sm:$0xff] %vm6224_vm14, %v6223_v41  ;;  %v6688_v26 = vpack.c.bf16 %v6223_v41, %v6222_v43 }
 0x79e   : > { %v6234_v42 = vld [vmem:[#allocation5 + $0x1] ss:$4 sm:$0xf]  ;;  %v6227_v33 = vld [vmem:[#allocation5] ss:$4 sm:$0xf] }
 0x79f   : > { %v6235_v44 = vpack.c.bf16 %v6234_v42, %v6234_v42  ;;  %v6228_v27 = vpack.c.bf16 %v6227_v33, %v6227_v33  ;;  %v6297_v51 = vld [vmem:[#allocation5 + $0x2] ss:$4 sm:$0xf]  ;;  %v6333_v20 = vld [vmem:[#allocation5 + $0x3] ss:$4 sm:$0xf] }
 0x7a0   : > { %v6298_v14 = vpack.c.bf16 %v6297_v51, %v6297_v51  ;;  %v6334_v19 = vpack.c.bf16 %v6333_v20, %v6333_v20 }
 0x7a1   : > { %7301 = vmatmul.msk.bf16.vlgmr.msra.gmra.mxu2 %vm6224_vm14, %v6235_v44  ;;  %7310 = vmatmul.msk.bf16.vlgmr.msra.gmra.mxu3 %vm6224_vm14, %v6228_v27 }
 0x7a2   : > { %6711 = vmatpush.bf16.msra.mxu3 %v7419_v36  ;;  %6426 = vmatpush.bf16.msra.mxu2 %v7417_v35 }
 0x7a6   : > { %6712 = vmatpush.bf16.msra.mxu3 %v7418_v39 }
 0x7b1   : > { %7319 = vmatmul.msk.bf16.vlgmr.msrb.gmra.mxu2 %vm6224_vm14, %v6298_v14  ;;  %7328 = vmatmul.msk.bf16.vlgmr.msrb.gmra.mxu3 %vm6224_vm14, %v6334_v19 }
 0x7b2   : > { %6806 = vmatpush.bf16.msrb.mxu3 %v7421_v59  ;;  %v7346_v59 = vld [vmem:[%s11989_s13 + $0x58] sm:$0xff] }
 0x7b6   : > { %6807 = vmatpush.bf16.msrb.mxu3 %v7420_v32 }
 0x7c1   : > { %7334 = vmatmul.msk.bf16.vlgmr.msra.gmra.mxu2 %vm5551_vm0, %v6396_v37  ;;  %7374 = vmatmul.msk.bf16.vlgmr.msra.gmra.mxu3 %vm6224_vm14, %v6688_v26 }
 0x7d1   : > { %7335 = vmatmul.msk.bf16.gmra.mxu2 %vm5551_vm0, %v6397_v16 }
 0x7e1   : > { %7336 = vmatmul.msk.bf16.gmra.mxu2 %vm5551_vm0, %v6398_v29 }
 0x7f1   : > { %7337 = vmatmul.msk.bf16.gmra.mxu2 %vm5551_vm0, %v6399_v1  ;;  %v11743_v1 = vld [vmem:[%s11988_s12] ss:$0 sm:$0xff] }
 0x824   : > { %v6264_v38 = vpop.f32.mrf.mxu2  ;;  %v6292_v47 = vpop.f32.mrf.mxu3 }
 0x825   : > { %v6293_v57 = vadd.f32 %v6292_v47, %v6264_v38 }
 0x82c   : > { %v6266_v37 = vpop.f32.mrf.mxu2  ;;  %v6294_v15 = vpop.f32.mrf.mxu3 }
 0x834   : > { %v6327_v8 = vpop.f32.mrf.mxu2  ;;  %v6363_v18 = vpop.f32.mrf.mxu3 }
 0x835   : > { %v6331_v16 = vadd.f32 %v6327_v8, %v6293_v57 }
 0x837   : > { %v6367_v17 = vadd.f32 %v6363_v18, %v6331_v16 }
 0x839   : > { %v6372_v29 = vadd.f32 %v7438_v55, %v6367_v17 }
 0x83b   : > { %v7329_v50 = vmul.f32 -1.442695, %v6372_v29 }
 0x83c   : > { %v6329_v6 = vpop.f32.mrf.mxu2  ;;  %v6365_v12 = vpop.f32.mrf.mxu3 }
 0x83d   : > { %8122 = vpow2.f32 %v7329_v50  ;;  %v6608_v6 = vld [vmem:[%s11989_s13] sm:$0xff] }
 0x843   : > { %v8123_v23 = vpop.eup %8122 }
 0x844   : > { %v6376_v49 = vadd.f32 1.0, %v8123_v23  ;;  %v6428_v56 = vpop.f32.mrf.mxu2  ;;  %v6714_v25 = vpop.f32.mrf.mxu3 }
 0x845   : > { %v6429_v30 = vadd.f32 %v11743_v1, %v6428_v56  ;;  %v6715_v28 = vadd.f32 %v7440_v46, %v6714_v25  ;;  %v6759_v25 = vld [vmem:[%s11989_s13 + $0x40] sm:$0xff] }
 0x846   : > { %8124 = vrcp.f32 %v6376_v49  ;;  %v6386_v53 = vand.u32 2147483647, %v6376_v49  ;;  %v6388_v60 = vand.u32 2147483648, %v6376_v49  ;;  %vm6382_vm8 = vweird.f32 %v6376_v49 }
 0x847   : > { %6448 = vst [vmem:[%s11753_s28] sm:$0xff] %v6429_v30  ;;  %v7338_v13 = vmul.f32 -1.442695, %v6429_v30  ;;  %v7375_v52 = vmul.f32 -1.442695, %v6715_v28 }
 0x848   : > { %6719 = vst [vmem:[%s11753_s28 + $0x40] sm:$0xff] %v6715_v28  ;;  %v6389_v34 = vor.u32 1.1754944e-38, %v6388_v60  ;;  %vm6387_vm13 = vcmp.eq.f32.partialorder %v6386_v53, 8.507059e+37 }
 0x849   : > { %8126 = vpow2.f32 %v7338_v13 }
 0x84a   : > { %8128 = vpow2.f32 %v7375_v52 }
 0x84c   : > { %v8125_v4 = vpop.eup %8124  ;;  %v6430_v61 = vpop.f32.mrf.mxu2 }
 0x84d   : > { %v6716_v40 = vpop.f32.mrf.mxu3  ;;  %v6378_v5 = vmul.f32 %v8125_v4, %v6376_v49  ;;  %v6431_v62 = vadd.f32 %v11743_v1, %v6430_v61  ;;  %vm6383_vm0 = vweird.f32 %v8125_v4 }
 0x84e   : > { %v6717_v9 = vadd.f32 %v7440_v46, %v6716_v40  ;;  %vm6384_vm7 = vmor %vm6382_vm8, %vm6383_vm0 }
 0x84f   : > { %v8127_v45 = vpop.eup %8126  ;;  %v6379_v2 = vsub.f32 1.0, %v6378_v5  ;;  %6449 = vst [vmem:[%s11753_s28 + $0x8] sm:$0xff] %v6431_v62  ;;  %v7339_v11 = vmul.f32 -1.442695, %v6431_v62 }
 0x850   : > { %v8129_v31 = vpop.eup %8128  ;;  %v6480_v0 = vadd.f32 1.0, %v8127_v45  ;;  %6720 = vst [vmem:[%s11753_s28 + $0x48] sm:$0xff] %v6717_v9  ;;  %v7376_v3 = vmul.f32 -1.442695, %v6717_v9  ;;  %v7377_v45 = vld [vmem:[%s11989_s13 + $0x98] sm:$0xff] }
 0x851   : > { %v6380_v7 = vmul.f32 %v8125_v4, %v6379_v2  ;;  %v6727_v21 = vadd.f32 1.0, %v8129_v31  ;;  %8130 = vpow2.f32 %v7339_v11  ;;  %v7379_v2 = vld [vmem:[%s11989_s13 + $0xf0] sm:$0xff] }
 0x852   : > { %8132 = vrcp.f32 %v6480_v0  ;;  %v6497_v27 = vand.u32 2147483647, %v6480_v0  ;;  %v6499_v20 = vand.u32 2147483648, %v6480_v0  ;;  %vm6493_vm1 = vweird.f32 %v6480_v0 }
 0x853   : > { %v6381_v43 = vadd.f32 %v8125_v4, %v6380_v7  ;;  %8134 = vrcp.f32 %v6727_v21  ;;  %v6738_v14 = vand.u32 2147483647, %v6727_v21  ;;  %v6740_v38 = vand.u32 2147483648, %v6727_v21 }
 0x854   : > { %8136 = vpow2.f32 %v7376_v3  ;;  %v6433_v63 = vpop.f32.mrf.mxu2  ;;  %vm11777_vm9 = vcmp.eq.f32.partialorder %v6497_v27, 8.507059e+37  ;;  %vm6734_vm3 = vweird.f32 %v6727_v21  ;;  %v6500_v55 = vor.u32 1.1754944e-38, %v6499_v20  ;;  %v7355_v20 = vld [vmem:[%s11989_s13 + $0xb8] sm:$0xff] }
 0x855   : > { %v6385_v10 = vsel %vm6384_vm7, %v8125_v4, %v6381_v43  ;;  %v6434_v48 = vadd.f32 %v11743_v1, %v6433_v63  ;;  %vm11781_vm10 = vcmp.eq.f32.partialorder %v6738_v14, 8.507059e+37  ;;  %v6741_v46 = vor.u32 1.1754944e-38, %v6740_v38  ;;  %v7354_v4 = vld [vmem:[%s11989_s13 + $0xb0] sm:$0xff] }
 0x856   : > { %v6390_v22 = vsel %vm6387_vm13, %v6389_v34, %v6385_v10 }
 0x857   : > { %v8131_v24 = vpop.eup %8130  ;;  %v6392_v58 = vmul.f32 %v6390_v22, %v6372_v29  ;;  %6450 = vst [vmem:[%s11753_s28 + $0x10] sm:$0xff] %v6434_v48  ;;  %v7340_v54 = vmul.f32 -1.442695, %v6434_v48 }
 0x858   : > { %v8133_v41 = vpop.eup %8132  ;;  %v11769_v36 = vadd.f32 1.0, %v8131_v24 }
 0x859   : > { %v8135_v35 = vpop.eup %8134  ;;  %v6783_v42 = vpack.c.bf16 %v6392_v58, %v6392_v58  ;;  %v6489_v33 = vmul.f32 %v8133_v41, %v6480_v0  ;;  %8138 = vpow2.f32 %v7340_v54  ;;  %vm6494_vm12 = vweird.f32 %v8133_v41 }
 0x85a   : > { %v8137_v44 = vpop.eup %8136  ;;  %v6730_v39 = vmul.f32 %v8135_v35, %v6727_v21  ;;  %8140 = vrcp.f32 %v11769_v36  ;;  %v6512_v15 = vand.u32 2147483647, %v11769_v36  ;;  %vm6735_vm2 = vweird.f32 %v8135_v35  ;;  %vm6495_vm5 = vmor %vm6493_vm1, %vm6494_vm12 }
 0x85b   : > { %v6490_v51 = vsub.f32 1.0, %v6489_v33  ;;  %v11772_v19 = vadd.f32 1.0, %v8137_v44  ;;  %7393 = vmatmul.msk.bf16.vlgmr.msrb.gmra.mxu3 %vm6224_vm14, %v6783_v42  ;;  %vm6508_vm14 = vweird.f32 %v11769_v36  ;;  %vm11794_vm11 = vmor %vm6734_vm3, %vm6735_vm2  ;;  %v6514_v13 = vand.u32 2147483648, %v11769_v36 }
 0x85c   : > { %v6731_v26 = vsub.f32 1.0, %v6730_v39  ;;  %v6435_v47 = vpop.f32.mrf.mxu2  ;;  %vm11802_vm15 = vcmp.eq.f32.partialorder %v6512_v15, 8.507059e+37 }
 0x85d   : > { %v6491_v37 = vmul.f32 %v8133_v41, %v6490_v51  ;;  %8142 = vrcp.f32 %v11772_v19  ;;  %v6436_v29 = vadd.f32 %v11743_v1, %v6435_v47  ;;  %v6753_v0 = vand.u32 2147483647, %v11772_v19  ;;  %v7347_v51 = vld [vmem:[%s11989_s13 + $0x60] sm:$0xff] }
 0x85e   : > { %v6732_v8 = vmul.f32 %v8135_v35, %v6731_v26  ;;  %v6755_v48 = vand.u32 2147483648, %v11772_v19  ;;  %v6515_v58 = vor.u32 1.1754944e-38, %v6514_v13  ;;  %vm6749_vm8 = vweird.f32 %v11772_v19 }
 0x85f   : > { %v8139_v18 = vpop.eup %8138  ;;  %v6492_v16 = vadd.f32 %v8133_v41, %v6491_v37  ;;  %6451 = vst [vmem:[%s11753_s28 + $0x18] sm:$0xff] %v6436_v29  ;;  %v7341_v40 = vmul.f32 -1.442695, %v6436_v29  ;;  %vm11845_vm7 = vcmp.eq.f32.partialorder %v6753_v0, 8.507059e+37  ;;  %v6760_v37 = vld [vmem:[%s11989_s13 + $0x48] sm:$0xff] }
 0x860   : > { %v8141_v50 = vpop.eup %8140  ;;  %v6733_v12 = vadd.f32 %v8135_v35, %v6732_v8  ;;  %v11791_v23 = vadd.f32 1.0, %v8139_v18 }
 0x861   : > { %v6496_v49 = vsel %vm6495_vm5, %v8133_v41, %v6492_v16  ;;  %v6504_v30 = vmul.f32 %v8141_v50, %v11769_v36  ;;  %vm6509_vm4 = vweird.f32 %v8141_v50 }
 0x862   : > { %v6501_v52 = vsel %vm11777_vm9, %v6500_v55, %v6496_v49  ;;  %v6737_v61 = vsel %vm11794_vm11, %v8135_v35, %v6733_v12  ;;  %8144 = vrcp.f32 %v11791_v23  ;;  %vm6510_vm6 = vmor %vm6508_vm14, %vm6509_vm4  ;;  %v6609_v35 = vld [vmem:[%s11989_s13 + $0x8] sm:$0xff]  ;;  %v6527_v57 = vand.u32 2147483647, %v11791_v23  ;;  %v7380_v12 = vld [vmem:[%s11989_s13 + $0xf8] sm:$0xff] }
 0x863   : > { %v8143_v5 = vpop.eup %8142  ;;  %v6634_v62 = vmul.f32 %v6608_v6, %v6501_v52  ;;  %v6650_v9 = vmul.f32 %v6501_v52, %v6501_v52  ;;  %v6742_v32 = vsel %vm11781_vm10, %v6741_v46, %v6737_v61  ;;  %v6505_v53 = vsub.f32 1.0, %v6504_v30  ;;  %v7378_v6 = vld [vmem:[%s11989_s13 + $0xa0] sm:$0xff]  ;;  %v6610_v61 = vld [vmem:[%s11989_s13 + $0x10] sm:$0xff] }
 0x864   : > { %v6765_v11 = vmul.f32 %v6759_v25, %v6742_v32  ;;  %v6769_v31 = vmul.f32 %v6742_v32, %v6742_v32  ;;  %v6745_v60 = vmul.f32 %v8143_v5, %v11772_v19  ;;  %v6438_v3 = vpop.f32.mrf.mxu2  ;;  %8146 = vpow2.f32 %v7341_v40 }
 0x865   : > { %v6642_v7 = vadd.f32 %v7346_v59, %v6634_v62  ;;  %v6658_v21 = vmul.f32 %v7354_v4, %v6650_v9  ;;  %v6506_v43 = vmul.f32 %v8141_v50, %v6505_v53  ;;  %vm6750_vm0 = vweird.f32 %v8143_v5 }
 0x866   : > { %v6767_v34 = vadd.f32 %v7377_v45, %v6765_v11  ;;  %v6771_v63 = vmul.f32 %v7379_v2, %v6769_v31  ;;  %v6746_v10 = vsub.f32 1.0, %v6745_v60  ;;  %v6439_v33 = vadd.f32 %v11743_v1, %v6438_v3  ;;  %vm6751_vm13 = vmor %vm6749_vm8, %vm6750_vm0  ;;  %v7356_v45 = vld [vmem:[%s11989_s13 + $0xc0] sm:$0xff] }
 0x867   : > { %v6666_v22 = vadd.f32 %v6658_v21, %v6642_v7  ;;  %v6507_v24 = vadd.f32 %v8141_v50, %v6506_v43  ;;  %v6756_v19 = vor.u32 1.1754944e-38, %v6755_v48  ;;  %v6529_v18 = vand.u32 2147483648, %v11791_v23 }
 0x868   : > { %v8145_v54 = vpop.eup %8144  ;;  %v6773_v41 = vadd.f32 %v6771_v63, %v6767_v34  ;;  %v6747_v42 = vmul.f32 %v8143_v5, %v6746_v10  ;;  %v7342_v26 = vmul.f32 -1.442695, %v6439_v33  ;;  %6452 = vst [vmem:[%s11753_s28 + $0x20] sm:$0xff] %v6439_v33  ;;  %vm6523_vm12 = vweird.f32 %v11791_v23 }
 0x869   : > { %6674 = vst [vmem:[%s11834_s23] sm:$0xff] %v6666_v22  ;;  %v6511_v44 = vsel %vm6510_vm6, %v8141_v50, %v6507_v24  ;;  %v6519_v36 = vmul.f32 %v8145_v54, %v11791_v23  ;;  %vm6524_vm1 = vweird.f32 %v8145_v54  ;;  %v6530_v4 = vor.u32 1.1754944e-38, %v6529_v18  ;;  %v7348_v23 = vld [vmem:[%s11989_s13 + $0x68] sm:$0xff] }
 0x86a   : > { %6775 = vst [vmem:[%s11834_s23 + $0x40] sm:$0xff] %v6773_v41  ;;  %v6516_v39 = vsel %vm11802_vm15, %v6515_v58, %v6511_v44  ;;  %v6748_v14 = vadd.f32 %v8143_v5, %v6747_v42  ;;  %8148 = vpow2.f32 %v7342_v26  ;;  %v8147_v55 = vpop.eup %8146  ;;  %vm6525_vm9 = vmor %vm6523_vm12, %vm6524_vm1  ;;  %vm6528_vm3 = vcmp.eq.f32.partialorder %v6527_v57, 8.507059e+37  ;;  %v6611_v44 = vld [vmem:[%s11989_s13 + $0x18] sm:$0xff]  ;;  %v7357_v26 = vld [vmem:[%s11989_s13 + $0xc8] sm:$0xff] }
 0x86b   : > { %v6635_v38 = vmul.f32 %v6609_v35, %v6516_v39  ;;  %v6651_v47 = vmul.f32 %v6516_v39, %v6516_v39  ;;  %v6520_v15 = vsub.f32 1.0, %v6519_v36  ;;  %v6483_v25 = vadd.f32 1.0, %v8147_v55 }
 0x86c   : > { %v6752_v8 = vsel %vm6751_vm13, %v8143_v5, %v6748_v14  ;;  %v6440_v16 = vpop.f32.mrf.mxu2 }
 0x86d   : > { %v6643_v17 = vadd.f32 %v7347_v51, %v6635_v38  ;;  %v6659_v29 = vmul.f32 %v7355_v20, %v6651_v47  ;;  %v6757_v50 = vsel %vm11845_vm7, %v6756_v19, %v6752_v8  ;;  %v6521_v46 = vmul.f32 %v8145_v54, %v6520_v15  ;;  %v7349_v19 = vld [vmem:[%s11989_s13 + $0x70] sm:$0xff] }
 0x86e   : > { %v6766_v49 = vmul.f32 %v6760_v37, %v6757_v50  ;;  %v6770_v56 = vmul.f32 %v6757_v50, %v6757_v50  ;;  %v6441_v30 = vadd.f32 %v11743_v1, %v6440_v16  ;;  %8150 = vrcp.f32 %v6483_v25 }
 0x86f   : > { %v6667_v28 = vadd.f32 %v6659_v29, %v6643_v17  ;;  %v6522_v13 = vadd.f32 %v8145_v54, %v6521_v46  ;;  %v6544_v48 = vand.u32 2147483648, %v6483_v25  ;;  %v6542_v24 = vand.u32 2147483647, %v6483_v25  ;;  %v6612_v29 = vld [vmem:[%s11989_s13 + $0x20] sm:$0xff] }
 0x870   : > { %v6768_v52 = vadd.f32 %v7378_v6, %v6766_v49  ;;  %v6772_v59 = vmul.f32 %v7380_v12, %v6770_v56  ;;  %6453 = vst [vmem:[%s11753_s28 + $0x28] sm:$0xff] %v6441_v30  ;;  %v7343_v5 = vmul.f32 -1.442695, %v6441_v30  ;;  %v8149_v62 = vpop.eup %8148  ;;  %vm6538_vm10 = vweird.f32 %v6483_v25  ;;  %v7350_v49 = vld [vmem:[%s11989_s13 + $0x78] sm:$0xff]  ;;  %v7358_v56 = vld [vmem:[%s11989_s13 + $0xd0] sm:$0xff] }
 0x871   : > { %6675 = vst [vmem:[%s11834_s23 + $0x8] sm:$0xff] %v6667_v28  ;;  %v6526_v40 = vsel %vm6525_vm9, %v8145_v54, %v6522_v13  ;;  %v6484_v11 = vadd.f32 1.0, %v8149_v62  ;;  %v6545_v33 = vor.u32 1.1754944e-38, %v6544_v48  ;;  %vm6543_vm14 = vcmp.eq.f32.partialorder %v6542_v24, 8.507059e+37  ;;  %v6614_v24 = vld [vmem:[%s11989_s13 + $0x30] sm:$0xff] }
 0x872   : > { %v6774_v9 = vadd.f32 %v6772_v59, %v6768_v52  ;;  %v6531_v32 = vsel %vm6528_vm3, %v6530_v4, %v6526_v40  ;;  %8152 = vpow2.f32 %v7343_v5 }
 0x873   : > { %v6636_v2 = vmul.f32 %v6610_v61, %v6531_v32  ;;  %v6652_v53 = vmul.f32 %v6531_v32, %v6531_v32  ;;  %8154 = vrcp.f32 %v6484_v11  ;;  %v6557_v20 = vand.u32 2147483647, %v6484_v11 }
 0x874   : > { %6776 = vst [vmem:[%s11834_s23 + $0x48] sm:$0xff] %v6774_v9  ;;  %v6443_v31 = vpop.f32.mrf.mxu2  ;;  %v8151_v7 = vpop.eup %8150  ;;  %v6559_v38 = vand.u32 2147483648, %v6484_v11  ;;  %vm6553_vm15 = vweird.f32 %v6484_v11 }
 0x875   : > { %v6644_v60 = vadd.f32 %v7348_v23, %v6636_v2  ;;  %v6660_v0 = vmul.f32 %v7356_v45, %v6652_v53  ;;  %v6444_v3 = vadd.f32 %v11743_v1, %v6443_v31  ;;  %v6534_v43 = vmul.f32 %v8151_v7, %v6483_v25  ;;  %v6613_v2 = vld [vmem:[%s11989_s13 + $0x28] sm:$0xff] }
 0x876   : > { %vm6539_vm2 = vweird.f32 %v8151_v7  ;;  %v6560_v17 = vor.u32 1.1754944e-38, %v6559_v38  ;;  %vm6558_vm6 = vcmp.eq.f32.partialorder %v6557_v20, 8.507059e+37 }
 0x877   : > { %v6668_v21 = vadd.f32 %v6660_v0, %v6644_v60  ;;  %6454 = vst [vmem:[%s11753_s28 + $0x30] sm:$0xff] %v6444_v3  ;;  %v7344_v34 = vmul.f32 -1.442695, %v6444_v3  ;;  %v6535_v63 = vsub.f32 1.0, %v6534_v43  ;;  %vm6540_vm5 = vmor %vm6538_vm10, %vm6539_vm2  ;;  %v7351_v0 = vld [vmem:[%s11989_s13 + $0x80] sm:$0xff]  ;;  %v7359_v3 = vld [vmem:[%s11989_s13 + $0xd8] sm:$0xff] }
 0x878   : > { %v8153_v10 = vpop.eup %8152 }
 0x879   : > { %6676 = vst [vmem:[%s11834_s23 + $0x10] sm:$0xff] %v6668_v21  ;;  %8156 = vpow2.f32 %v7344_v34  ;;  %v6536_v22 = vmul.f32 %v8151_v7, %v6535_v63  ;;  %v11892_v58 = vadd.f32 1.0, %v8153_v10  ;;  %v8155_v54 = vpop.eup %8154 }
 0x87a   : > { %v6549_v42 = vmul.f32 %v8155_v54, %v6484_v11  ;;  %vm6554_vm11 = vweird.f32 %v8155_v54 }
 0x87b   : > { %v6537_v35 = vadd.f32 %v8151_v7, %v6536_v22  ;;  %8158 = vrcp.f32 %v11892_v58  ;;  %vm6555_vm4 = vmor %vm6553_vm15, %vm6554_vm11  ;;  %v6574_v13 = vand.u32 2147483648, %v11892_v58  ;;  %v6572_v4 = vand.u32 2147483647, %v11892_v58 }
 0x87c   : > { %v6445_v41 = vpop.f32.mrf.mxu2  ;;  %v6550_v51 = vsub.f32 1.0, %v6549_v42  ;;  %vm6568_vm8 = vweird.f32 %v11892_v58  ;;  %v7352_v42 = vld [vmem:[%s11989_s13 + $0x88] sm:$0xff] }
 0x87d   : > { %v6446_v27 = vadd.f32 %v11743_v1, %v6445_v41  ;;  %v6541_v39 = vsel %vm6540_vm5, %v8151_v7, %v6537_v35  ;;  %v6575_v45 = vor.u32 1.1754944e-38, %v6574_v13  ;;  %vm6573_vm13 = vcmp.eq.f32.partialorder %v6572_v4, 8.507059e+37 }
 0x87e   : > { %v6546_v14 = vsel %vm6543_vm14, %v6545_v33, %v6541_v39  ;;  %v6551_v15 = vmul.f32 %v8155_v54, %v6550_v51  ;;  %v7360_v33 = vld [vmem:[%s11989_s13 + $0xe0] sm:$0xff] }
 0x87f   : > { %v8157_v36 = vpop.eup %8156  ;;  %6455 = vst [vmem:[%s11753_s28 + $0x38] sm:$0xff] %v6446_v27  ;;  %v6637_v1 = vmul.f32 %v6611_v44, %v6546_v14  ;;  %v6653_v37 = vmul.f32 %v6546_v14, %v6546_v14  ;;  %v7345_v57 = vmul.f32 -1.442695, %v6446_v27 }
 0x880   : > { %v11905_v47 = vadd.f32 1.0, %v8157_v36  ;;  %v6552_v55 = vadd.f32 %v8155_v54, %v6551_v15 }
 0x881   : > { %v8159_v8 = vpop.eup %8158  ;;  %v6645_v18 = vadd.f32 %v7349_v19, %v6637_v1  ;;  %v6661_v16 = vmul.f32 %v7357_v26, %v6653_v37  ;;  %v6615_v37 = vld [vmem:[%s11989_s13 + $0x38] sm:$0xff] }
 0x882   : > { %8160 = vrcp.f32 %v11905_v47  ;;  %v6564_v50 = vmul.f32 %v8159_v8, %v11892_v58  ;;  %v6556_v12 = vsel %vm6555_vm4, %v8155_v54, %v6552_v55  ;;  %vm6569_vm0 = vweird.f32 %v8159_v8 }
 0x883   : > { %8162 = vpow2.f32 %v7345_v57  ;;  %v6669_v6 = vadd.f32 %v6661_v16, %v6645_v18  ;;  %v6561_v46 = vsel %vm6558_vm6, %v6560_v17, %v6556_v12  ;;  %vm6570_vm7 = vmor %vm6568_vm8, %vm6569_vm0  ;;  %v6589_v31 = vand.u32 2147483648, %v11905_v47  ;;  %v7361_v18 = vld [vmem:[%s11989_s13 + $0xe8] sm:$0xff] }
 0x884   : > { %v6565_v25 = vsub.f32 1.0, %v6564_v50  ;;  %v6638_v30 = vmul.f32 %v6612_v29, %v6561_v46  ;;  %v6654_v28 = vmul.f32 %v6561_v46, %v6561_v46  ;;  %v6587_v21 = vand.u32 2147483647, %v11905_v47 }
 0x885   : > { %6677 = vst [vmem:[%s11834_s23 + $0x18] sm:$0xff] %v6669_v6  ;;  %vm6583_vm12 = vweird.f32 %v11905_v47  ;;  %v6590_v22 = vor.u32 1.1754944e-38, %v6589_v31  ;;  %v7441_v6 = vld [vmem:[%s11988_s12 + $0x2] ss:$0 sm:$0xff] }
 0x886   : > { %v6566_v59 = vmul.f32 %v8159_v8, %v6565_v25  ;;  %v6646_v40 = vadd.f32 %v7350_v49, %v6638_v30  ;;  %v6662_v5 = vmul.f32 %v7358_v56, %v6654_v28  ;;  %vm6588_vm3 = vcmp.eq.f32.partialorder %v6587_v21, 8.507059e+37 }
 0x888   : > { %v8161_v52 = vpop.eup %8160  ;;  %v6567_v9 = vadd.f32 %v8159_v8, %v6566_v59  ;;  %v6670_v23 = vadd.f32 %v6662_v5, %v6646_v40 }
 0x889   : > { %v8163_v61 = vpop.eup %8162  ;;  %v6579_v62 = vmul.f32 %v8161_v52, %v11905_v47  ;;  %vm6584_vm1 = vweird.f32 %v8161_v52 }
 0x88a   : > { %v6487_v32 = vadd.f32 1.0, %v8163_v61  ;;  %v6571_v11 = vsel %vm6570_vm7, %v8159_v8, %v6567_v9  ;;  %6678 = vst [vmem:[%s11834_s23 + $0x20] sm:$0xff] %v6670_v23  ;;  %vm6585_vm9 = vmor %vm6583_vm12, %vm6584_vm1  ;;  %v7353_v8 = vld [vmem:[%s11989_s13 + $0x90] sm:$0xff]  ;;  %v7395_v23 = vld [vmem:[%s11989_s13 + $0xa8] sm:$0xf] }
 0x88b   : > { %v6580_v53 = vsub.f32 1.0, %v6579_v62  ;;  %v6576_v60 = vsel %vm6573_vm13, %v6575_v45, %v6571_v11  ;;  %v6833_v62 = vld [vmem:[%s11989_s13 + $0x50] sm:$0xf]  ;;  %v7396_v45 = vld [vmem:[%s11989_s13 + $0x100] sm:$0xf] }
 0x88c   : > { %8164 = vrcp.f32 %v6487_v32  ;;  %v6639_v43 = vmul.f32 %v6613_v2, %v6576_v60  ;;  %v6655_v34 = vmul.f32 %v6576_v60, %v6576_v60  ;;  %v6604_v14 = vand.u32 2147483648, %v6487_v32 }
 0x88d   : > { %v6581_v7 = vmul.f32 %v8161_v52, %v6580_v53  ;;  %v6602_v38 = vand.u32 2147483647, %v6487_v32  ;;  %vm6598_vm10 = vweird.f32 %v6487_v32 }
 0x88e   : > { %v6647_v10 = vadd.f32 %v7351_v0, %v6639_v43  ;;  %v6663_v48 = vmul.f32 %v7359_v3, %v6655_v34  ;;  %v6605_v1 = vor.u32 1.1754944e-38, %v6604_v14 }
 0x88f   : > { %v6582_v63 = vadd.f32 %v8161_v52, %v6581_v7  ;;  %vm6603_vm14 = vcmp.eq.f32.partialorder %v6602_v38, 8.507059e+37 }
 0x890   : > { %v6671_v41 = vadd.f32 %v6663_v48, %v6647_v10 }
 0x891   : > { %v6586_v58 = vsel %vm6585_vm9, %v8161_v52, %v6582_v63 }
 0x892   : > { %v8165_v54 = vpop.eup %8164  ;;  %v6591_v35 = vsel %vm6588_vm3, %v6590_v22, %v6586_v58  ;;  %6679 = vst [vmem:[%s11834_s23 + $0x28] sm:$0xff] %v6671_v41 }
 0x893   : > { %v6640_v44 = vmul.f32 %v6614_v24, %v6591_v35  ;;  %v6656_v27 = vmul.f32 %v6591_v35, %v6591_v35  ;;  %v6594_v36 = vmul.f32 %v8165_v54, %v6487_v32  ;;  %vm6599_vm2 = vweird.f32 %v8165_v54 }
 0x894   : > { %vm6600_vm5 = vmor %vm6598_vm10, %vm6599_vm2 }
 0x895   : > { %v6648_v39 = vadd.f32 %v7352_v42, %v6640_v44  ;;  %v6664_v51 = vmul.f32 %v7360_v33, %v6656_v27  ;;  %v6595_v20 = vsub.f32 1.0, %v6594_v36 }
 0x897   : > { %v6672_v19 = vadd.f32 %v6664_v51, %v6648_v39  ;;  %v6596_v26 = vmul.f32 %v8165_v54, %v6595_v20 }
 0x899   : > { %6680 = vst [vmem:[%s11834_s23 + $0x30] sm:$0xff] %v6672_v19  ;;  %v6597_v47 = vadd.f32 %v8165_v54, %v6596_v26 }
 0x89b   : > { %v6601_v15 = vsel %vm6600_vm5, %v8165_v54, %v6597_v47 }
 0x89c   : > { %v6606_v57 = vsel %vm6603_vm14, %v6605_v1, %v6601_v15 }
 0x89d   : > { %v6641_v16 = vmul.f32 %v6615_v37, %v6606_v57  ;;  %v6657_v55 = vmul.f32 %v6606_v57, %v6606_v57 }
 0x89f   : > { %v6649_v17 = vadd.f32 %v7353_v8, %v6641_v16  ;;  %v6665_v29 = vmul.f32 %v7361_v18, %v6657_v55 }
 0x8a1   : > { %v6673_v50 = vadd.f32 %v6665_v29, %v6649_v17 }
 0x8a3   : > { %6681 = vst [vmem:[%s11834_s23 + $0x38] sm:$0xff] %v6673_v50 }
 0x8de   : > { %v6809_v12 = vpop.f32.mrf.mxu3 }
 0x8df   : > { %v6810_v46 = vadd.f32 %v7441_v6, %v6809_v12 }
 0x8e1   : > { %6813 = vst [vmem:[%s11753_s28 + $0x50] sm:$0xf] %v6810_v46  ;;  %v7394_v49 = vmul.f32 -1.442695, %v6810_v46 }
 0x8e3   : > { %8166 = vpow2.f32 %v7394_v49 }
 0x8e6   : > { %v6811_v56 = vpop.f32.mrf.mxu3 }
 0x8e9   : > { %v8167_v25 = vpop.eup %8166 }
 0x8ea   : > { %v6817_v30 = vadd.f32 1.0, %v8167_v25 }
 0x8ec   : > { %8168 = vrcp.f32 %v6817_v30  ;;  %v6829_v59 = vand.u32 2147483648, %v6817_v30  ;;  %v6827_v61 = vand.u32 2147483647, %v6817_v30  ;;  %vm6823_vm15 = vweird.f32 %v6817_v30 }
 0x8ee   : > { %v6830_v5 = vor.u32 1.1754944e-38, %v6829_v59  ;;  %vm6828_vm6 = vcmp.eq.f32.partialorder %v6827_v61, 8.507059e+37 }
 0x8f2   : > { %v8169_v28 = vpop.eup %8168 }
 0x8f3   : > { %v6819_v13 = vmul.f32 %v8169_v28, %v6817_v30  ;;  %vm6824_vm11 = vweird.f32 %v8169_v28 }
 0x8f4   : > { %vm6825_vm4 = vmor %vm6823_vm15, %vm6824_vm11 }
 0x8f5   : > { %v6820_v52 = vsub.f32 1.0, %v6819_v13 }
 0x8f7   : > { %v6821_v4 = vmul.f32 %v8169_v28, %v6820_v52 }
 0x8f9   : > { %v6822_v40 = vadd.f32 %v8169_v28, %v6821_v4 }
 0x8fb   : > { %v6826_v9 = vsel %vm6825_vm4, %v8169_v28, %v6822_v40 }
 0x8fc   : > { %v6831_v32 = vsel %vm6828_vm6, %v6830_v5, %v6826_v9 }
 0x8fd   : > { %v6836_v2 = vmul.f32 %v6833_v62, %v6831_v32  ;;  %v6838_v53 = vmul.f32 %v6831_v32, %v6831_v32 }
 0x8ff   : > { %v6837_v11 = vadd.f32 %v7395_v23, %v6836_v2  ;;  %v6839_v31 = vmul.f32 %v7396_v45, %v6838_v53 }
 0x901   : > { %v6840_v60 = vadd.f32 %v6839_v31, %v6837_v11 }
 0x903   : > { %6841 = vst [vmem:[%s11834_s23 + $0x50] sm:$0xf] %v6840_v60 }
 0x904 PF: > { %s26_s18 = sadd.s32 1, %s8183_s18  }
 0x905   : > { %p23_p4 = scmp.ge.s32.totalorder %s26_s18, 4  }
 0x907   :  { %25 = sbr.rel (!%p23_p4) target bundleno = 1 (0x1), region = 290 }

</bundles_post_ra>
